<compile_context>
chip_gen: v7x
topology: tpu7x:2x2x1
jax: 0.10.0
libtpu: 0.0.40
codegen_flags: <defaults>
</compile_context>

<pallas_src>
import jax
import jax.numpy as jnp
import numpy as np
from jax.experimental import pallas as pl
from jax.experimental.pallas import tpu as pltpu

# ----- synthetic consts (small, consistent with the forward's asserts) -----
BOARD_PIXEL_WIDTH = 32          # consts.BOARD_PIXEL_WIDTH
SQUARE_SIZE = 4                 # consts.SQUARE_SIZE  (8 * 4 == 32)
NUM_PIECE_TYPES = 13            # len(common.PIECE_TYPES)
C_STEM = 32                     # simplified backbone stem width
FEAT = 512                      # fc head output (LazyLinear(512) + ReLU)
H1, H2 = 768, 512               # dense MLP hidden sizes

K_RAW = 3 * 3 * 3               # Cin * kh * kw for the 3x3 conv stem
K_PAD = 32                      # lane-padded im2col patch width
P_PAD = 128                     # lane-padded logits width (dense vst stores)
S_TILE = 4                      # conv output positions per 4x4 tile (stride 2, pad 1)
S_FULL = 256                    # conv output positions per 32x32 image
BF16 = jnp.bfloat16


# --------------------------- JAX glue: im2col ------------------------------
def im2col(x, k=3, s=2, p=1):
    """x: [N, C, H, W] -> patches [N, Ho*Wo, C*k*k] (PyTorch (Cin, ki, kj) order)."""
    N, C, H, W = x.shape
    xp = jnp.pad(x, ((0, 0), (0, 0), (p, p), (p, p)))
    Ho = (H + 2 * p - k) // s + 1
    Wo = (W + 2 * p - k) // s + 1
    cols = []
    for i in range(k):
        for j in range(k):
            cols.append(xp[:, :, i:i + (Ho - 1) * s + 1:s, j:j + (Wo - 1) * s + 1:s])
    pat = jnp.stack(cols, axis=-1)                     # [N, C, Ho, Wo, k*k]
    pat = jnp.transpose(pat, (0, 2, 3, 1, 4))          # [N, Ho, Wo, C, k*k]
    return pat.reshape(N, Ho * Wo, C * k * k)


# -------------------- fused Pallas kernel: whole forward -------------------
# One grid step == IMGS_PER_STEP images: fused conv stem for all tiles + full
# images, both GAPs, then the dense head on the stacked (IMGS*64, .) rows.
# cat([tile, full]) @ W1 is computed as the exact concat split tf@W1a + ff@W1b.
def chessrec_kernel(pat_ref, avg_ref, wc_ref, bc_ref,
                    t_wf_ref, t_bf_ref, f_wf_ref, f_bf_ref,
                    w1a_ref, w1b_ref, b1_ref,
                    w2_ref, b2_ref, w3_ref, b3_ref,
                    out_ref):
    rows2 = pat_ref.shape[0]
    R = rows2 // 2            # tile-patch rows per step  (= imgs_per_step * 256)
    G = R // 4                # feature rows per step     (= imgs_per_step * 64)

    # ---- fused conv stem: tile conv in lanes 0:32, full-image conv in 32:64 ----
    hs = jnp.dot(pat_ref[...], wc_ref[...], preferred_element_type=jnp.float32)
    hs = jnp.maximum(hs + bc_ref[...], 0.0)             # (2R, 64)
    ht = hs[0:R]            # tile rows:  s     * G + img*64 + tile
    hf = hs[R:rows2]        # full rows:  poshi * G + img*64 + poslo

    # ---- tile GAP: 4 aligned G-row sublane slab adds (VPU only) ----
    g_t = (ht[0:G] + ht[G:2 * G] + ht[2 * G:3 * G] + ht[3 * G:4 * G]) * 0.25   # (G, 64)

    # ---- full-image GAP: slab-add to (G, 64), then one block-diagonal f32
    # averaging matmul on the MXU that both finishes the per-image reduction and
    # broadcasts each image's mean to its 64 tile rows (keeps the XLU idle). ----
    pf = hf[0:G] + hf[G:2 * G] + hf[2 * G:3 * G] + hf[3 * G:4 * G]             # (G, 64)
    g_f = jnp.dot(avg_ref[...], pf, preferred_element_type=jnp.float32)        # (G, 64)

    # ---- per-backbone fc heads (unwanted lane halves are zeroed by zero rows
    # in t_wf / f_wf, so no lane slicing is needed) ----
    tf = jnp.maximum(jnp.dot(g_t.astype(BF16), t_wf_ref[...],
                             preferred_element_type=jnp.float32) + t_bf_ref[...], 0.0)
    ff = jnp.maximum(jnp.dot(g_f.astype(BF16), f_wf_ref[...],
                             preferred_element_type=jnp.float32) + f_bf_ref[...], 0.0)

    # ---- dense head at M = G (= 256 rows for IMGS_PER_STEP = 4) ----
    h1 = (jnp.dot(tf.astype(BF16), w1a_ref[...], preferred_element_type=jnp.float32)
          + jnp.dot(ff.astype(BF16), w1b_ref[...], preferred_element_type=jnp.float32)
          + b1_ref[...])
    h1 = jnp.maximum(h1, 0.0)                                                  # (G, H1)
    h2 = jnp.maximum(jnp.dot(h1.astype(BF16), w2_ref[...],
                             preferred_element_type=jnp.float32) + b2_ref[...], 0.0)
    out_ref[...] = (jnp.dot(h2.astype(BF16), w3_ref[...],
                            preferred_element_type=jnp.float32) + b3_ref[...])  # (G, P_PAD)


def run_chessrec(pat, avg, q, batch_size, imgs_per_step):
    ns = batch_size // imgs_per_step
    R = imgs_per_step * 256
    G = imgs_per_step * 64
    const = lambda b: (0, 0)

    flops_step = 2 * (
        (2 * R) * K_PAD * (2 * C_STEM)        # fused conv stem
        + G * G * (2 * C_STEM)                # block-diagonal averaging matmul
        + 2 * (G * (2 * C_STEM) * FEAT)       # tile / full fc heads
        + 2 * (G * FEAT * H1)                 # tf@W1a + ff@W1b
        + G * H1 * H2
        + G * H2 * P_PAD)
    weight_bytes = sum(int(v.size) * v.dtype.itemsize for v in q.values())
    bytes_acc = (int(pat.size) * 2 + int(avg.size) * 4
                 + batch_size * 64 * P_PAD * 4 + weight_bytes)

    return pl.pallas_call(
        chessrec_kernel,
        out_shape=jax.ShapeDtypeStruct((batch_size * 64, P_PAD), jnp.float32),
        grid_spec=pltpu.PrefetchScalarGridSpec(
            num_scalar_prefetch=0,
            grid=(ns,),
            in_specs=[
                pl.BlockSpec((2 * R, K_PAD), lambda b: (b, 0)),   # stacked patches
                pl.BlockSpec((G, G), const),                      # per-image avg matrix
                pl.BlockSpec((K_PAD, 2 * C_STEM), const),         # fused conv weight
                pl.BlockSpec((1, 2 * C_STEM), const),             # fused conv bias
                pl.BlockSpec((2 * C_STEM, FEAT), const),          # tile fc (rows 32:64 = 0)
                pl.BlockSpec((1, FEAT), const),
                pl.BlockSpec((2 * C_STEM, FEAT), const),          # full fc (rows 0:32 = 0)
                pl.BlockSpec((1, FEAT), const),
                pl.BlockSpec((FEAT, H1), const),
                pl.BlockSpec((FEAT, H1), const),
                pl.BlockSpec((1, H1), const),
                pl.BlockSpec((H1, H2), const),
                pl.BlockSpec((1, H2), const),
                pl.BlockSpec((H2, P_PAD), const),
                pl.BlockSpec((1, P_PAD), const),
            ],
            out_specs=pl.BlockSpec((G, P_PAD), lambda b: (b, 0)),
        ),
        compiler_params=pltpu.CompilerParams(
            dimension_semantics=("parallel",)),
        cost_estimate=pl.CostEstimate(flops=int(flops_step * ns),
                                      transcendentals=0,
                                      bytes_accessed=int(bytes_acc)),
    )(pat, avg,
      q["wc"], q["bc"], q["t_wf"], q["t_bf"], q["f_wf"], q["f_bf"],
      q["w1a"], q["w1b"], q["b1"], q["w2"], q["b2"], q["w3p"], q["b3p"])


# ------------------------------ parameters ---------------------------------
def init_params(key):
    ks = jax.random.split(key, 16)

    def lin(k, fan_in, fan_out):
        return jax.random.normal(k, (fan_in, fan_out), jnp.float32) / np.sqrt(fan_in)

    def vec(k, n):
        return 0.1 * jax.random.normal(k, (1, n), jnp.float32)

    p = {}
    # tile backbone
    p["t_wc"] = lin(ks[0], K_RAW, C_STEM); p["t_bc"] = vec(ks[1], C_STEM)
    p["t_wf"] = lin(ks[2], C_STEM, FEAT);  p["t_bf"] = vec(ks[3], FEAT)
    # full-image backbone
    p["f_wc"] = lin(ks[4], K_RAW, C_STEM); p["f_bc"] = vec(ks[5], C_STEM)
    p["f_wf"] = lin(ks[6], C_STEM, FEAT);  p["f_bf"] = vec(ks[7], FEAT)
    # dense head: Linear(2*FEAT -> H1), Linear(H1 -> H2), Linear(H2 -> P)
    w1 = lin(ks[8], 2 * FEAT, H1)
    p["w1a"], p["w1b"] = w1[:FEAT], w1[FEAT:]
    p["b1"] = vec(ks[9], H1)
    p["w2"] = lin(ks[10], H1, H2); p["b2"] = vec(ks[11], H2)
    p["w3"] = lin(ks[12], H2, NUM_PIECE_TYPES)
    p["b3"] = vec(ks[13], NUM_PIECE_TYPES)
    return p


def _prep_params(p):
    """Fuse/pad weights for the kernel: conv weights lane-padded K 27->32 and
    concatenated along N (tile | full); fc weights row-padded with zeros so the
    garbage lane half of the fused stem output is annihilated; final layer
    lane-padded 13->128. Matmul weights bf16, biases f32."""
    def pad_k(w):
        return jnp.pad(w, ((0, K_PAD - w.shape[0]), (0, 0)))
    zeros_f = jnp.zeros((C_STEM, FEAT), jnp.float32)
    return {
        "wc": jnp.concatenate([pad_k(p["t_wc"]), pad_k(p["f_wc"])], axis=1).astype(BF16),
        "bc": jnp.concatenate([p["t_bc"], p["f_bc"]], axis=1),
        "t_wf": jnp.concatenate([p["t_wf"], zeros_f], axis=0).astype(BF16),
        "t_bf": p["t_bf"],
        "f_wf": jnp.concatenate([zeros_f, p["f_wf"]], axis=0).astype(BF16),
        "f_bf": p["f_bf"],
        "w1a": p["w1a"].astype(BF16), "w1b": p["w1b"].astype(BF16), "b1": p["b1"],
        "w2": p["w2"].astype(BF16), "b2": p["b2"],
        "w3p": jnp.pad(p["w3"], ((0, 0), (0, P_PAD - NUM_PIECE_TYPES))).astype(BF16),
        "b3p": jnp.pad(p["b3"], ((0, 0), (0, P_PAD - NUM_PIECE_TYPES))),
    }


# ------------------------------ forward pass --------------------------------
@jax.jit
def chess_rec_forward(img, p):
    B, ch, h, w = img.shape
    assert h == BOARD_PIXEL_WIDTH and w == BOARD_PIXEL_WIDTH and ch == 3
    # 4 images/step targets M=256 head matmuls (v6e/v7x MXU pass height); 2 is
    # already enough on v5e.  Fall back so any batch size divides evenly.
    imgs_per_step = 4 if B % 4 == 0 else (2 if B % 2 == 0 else 1)
    ns = B // imgs_per_step
    q = _prep_params(p)

    # unfold into 8x8 tiles of SQUARE_SIZE (pure layout, like torch.unfold/permute)
    x = img.reshape(B, ch, 8, SQUARE_SIZE, 8, SQUARE_SIZE)
    x = jnp.transpose(x, (0, 2, 4, 1, 3, 5))                 # [B, 8, 8, ch, s, s]
    tiles = x.reshape(B * 64, ch, SQUARE_SIZE, SQUARE_SIZE)

    # im2col; rows are arranged position-major WITHIN each grid step so the
    # kernel's GAPs are aligned slab adds:
    #   tile rows :  s     * (imgs*64) + img_in_step*64 + tile
    #   full rows :  poshi * (imgs*64) + img_in_step*64 + poslo   (pos = poshi*64+poslo)
    tp = im2col(tiles).reshape(ns, imgs_per_step, 64, S_TILE, K_RAW)
    tp = jnp.transpose(tp, (0, 3, 1, 2, 4)).reshape(ns, imgs_per_step * 256, K_RAW)
    fp = im2col(img).reshape(ns, imgs_per_step, 4, 64, K_RAW)
    fp = jnp.transpose(fp, (0, 2, 1, 3, 4)).reshape(ns, imgs_per_step * 256, K_RAW)

    # one stacked patch slab per step: [tile rows ; full rows], lane-padded bf16
    pat = jnp.concatenate([tp, fp], axis=1).reshape(ns * imgs_per_step * 512, K_RAW)
    pat = jnp.pad(pat, ((0, 0), (0, K_PAD - K_RAW))).astype(BF16)

    # block-diagonal per-image averaging matrix (finishes the full-image GAP and
    # broadcasts it to that image's 64 tile rows on the MXU)
    avg = jnp.kron(jnp.eye(imgs_per_step, dtype=jnp.float32),
                   jnp.full((64, 64), 1.0 / S_FULL, jnp.float32))

    logits = run_chessrec(pat, avg, q, B, imgs_per_step)      # [B*64, 128] (padded)
    return logits[:, :NUM_PIECE_TYPES].reshape(B, 64, NUM_PIECE_TYPES)


# ------------------------------ pure-JAX reference --------------------------
def ref_forward(img, p):
    B = img.shape[0]
    x = img.reshape(B, 3, 8, SQUARE_SIZE, 8, SQUARE_SIZE)
    x = jnp.transpose(x, (0, 2, 4, 1, 3, 5)).reshape(B * 64, 3, SQUARE_SIZE, SQUARE_SIZE)

    def backbone(imgs, wc, bc, wf, bfb):
        pat = im2col(imgs)
        h = jnp.einsum("nsk,kc->nsc", pat.astype(BF16), wc.astype(BF16),
                       preferred_element_type=jnp.float32)
        h = jnp.maximum(h + bc[0], 0.0)
        g = jnp.mean(h, axis=1)
        out = jnp.dot(g.astype(BF16), wf.astype(BF16),
                      preferred_element_type=jnp.float32) + bfb[0]
        return jnp.maximum(out, 0.0)

    t = backbone(x, p["t_wc"], p["t_bc"], p["t_wf"], p["t_bf"]).reshape(B, 64, FEAT)
    z = backbone(img, p["f_wc"], p["f_bc"], p["f_wf"], p["f_bf"]).reshape(B, 1, FEAT)
    z = jnp.broadcast_to(z, (B, 64, FEAT))
    cat = jnp.concatenate([t, z], axis=-1).reshape(B * 64, 2 * FEAT)
    w1 = jnp.concatenate([p["w1a"], p["w1b"]], axis=0)
    h1 = jnp.maximum(jnp.dot(cat.astype(BF16), w1.astype(BF16),
                             preferred_element_type=jnp.float32) + p["b1"][0], 0.0)
    h2 = jnp.maximum(jnp.dot(h1.astype(BF16), p["w2"].astype(BF16),
                             preferred_element_type=jnp.float32) + p["b2"][0], 0.0)
    out = jnp.dot(h2.astype(BF16), p["w3"].astype(BF16),
                  preferred_element_type=jnp.float32) + p["b3"][0]
    return out.reshape(B, 64, NUM_PIECE_TYPES)


if __name__ == "__main__":
    key = jax.random.PRNGKey(0)
    k_img, k_par = jax.random.split(key)
    B = 8   # -> 4 images per grid step, 2 grid steps (exercises both batching axes)
    img = jax.random.normal(k_img, (B, 3, BOARD_PIXEL_WIDTH, BOARD_PIXEL_WIDTH),
                            jnp.float32)
    params = init_params(k_par)

    out = jax.block_until_ready(chess_rec_forward(img, params))
    assert out.shape == (B, 64, NUM_PIECE_TYPES), out.shape

    ref = jax.block_until_ready(ref_forward(img, params))
    np.testing.assert_allclose(np.asarray(out), np.asarray(ref), rtol=5e-3, atol=5e-3)

    print("KERNEL_OK")
</pallas_src>

<mosaic_0001>
module attributes {stable_mosaic.version = 11 : i64} {
  func.func @chessrec_kernel(%arg0: i32, %arg1: memref<2048x32xbf16, #tpu.memory_space<vmem>>, %arg2: memref<256x256xf32, #tpu.memory_space<vmem>>, %arg3: memref<32x64xbf16, #tpu.memory_space<vmem>>, %arg4: memref<1x64xf32, #tpu.memory_space<vmem>>, %arg5: memref<64x512xbf16, #tpu.memory_space<vmem>>, %arg6: memref<1x512xf32, #tpu.memory_space<vmem>>, %arg7: memref<64x512xbf16, #tpu.memory_space<vmem>>, %arg8: memref<1x512xf32, #tpu.memory_space<vmem>>, %arg9: memref<512x768xbf16, #tpu.memory_space<vmem>>, %arg10: memref<512x768xbf16, #tpu.memory_space<vmem>>, %arg11: memref<1x768xf32, #tpu.memory_space<vmem>>, %arg12: memref<768x512xbf16, #tpu.memory_space<vmem>>, %arg13: memref<1x512xf32, #tpu.memory_space<vmem>>, %arg14: memref<512x128xbf16, #tpu.memory_space<vmem>>, %arg15: memref<1x128xf32, #tpu.memory_space<vmem>>, %arg16: memref<256x128xf32, #tpu.memory_space<vmem>>) attributes {dimension_semantics = [#tpu.dimension_semantics<parallel>], iteration_bounds = array<i64: 2>, scalar_prefetch = 0 : i64, scratch_operands = 0 : i64, tpu.core_type = #tpu.core_type<tc>, window_params = [{transform_indices = @transform_0, window_bounds = array<i64: 2048, 32>}, {pipeline_mode = #tpu.pipeline_mode<synchronous>, transform_indices = @transform_1, window_bounds = array<i64: 256, 256>}, {pipeline_mode = #tpu.pipeline_mode<synchronous>, transform_indices = @transform_2, window_bounds = array<i64: 32, 64>}, {pipeline_mode = #tpu.pipeline_mode<synchronous>, transform_indices = @transform_3, window_bounds = array<i64: 1, 64>}, {pipeline_mode = #tpu.pipeline_mode<synchronous>, transform_indices = @transform_4, window_bounds = array<i64: 64, 512>}, {pipeline_mode = #tpu.pipeline_mode<synchronous>, transform_indices = @transform_5, window_bounds = array<i64: 1, 512>}, {pipeline_mode = #tpu.pipeline_mode<synchronous>, transform_indices = @transform_6, window_bounds = array<i64: 64, 512>}, {pipeline_mode = #tpu.pipeline_mode<synchronous>, transform_indices = @transform_7, window_bounds = array<i64: 1, 512>}, {pipeline_mode = #tpu.pipeline_mode<synchronous>, transform_indices = @transform_8, window_bounds = array<i64: 512, 768>}, {pipeline_mode = #tpu.pipeline_mode<synchronous>, transform_indices = @transform_9, window_bounds = array<i64: 512, 768>}, {pipeline_mode = #tpu.pipeline_mode<synchronous>, transform_indices = @transform_10, window_bounds = array<i64: 1, 768>}, {pipeline_mode = #tpu.pipeline_mode<synchronous>, transform_indices = @transform_11, window_bounds = array<i64: 768, 512>}, {pipeline_mode = #tpu.pipeline_mode<synchronous>, transform_indices = @transform_12, window_bounds = array<i64: 1, 512>}, {pipeline_mode = #tpu.pipeline_mode<synchronous>, transform_indices = @transform_13, window_bounds = array<i64: 512, 128>}, {pipeline_mode = #tpu.pipeline_mode<synchronous>, transform_indices = @transform_14, window_bounds = array<i64: 1, 128>}, {transform_indices = @transform_15, window_bounds = array<i64: 256, 128>}]} {
    %c0 = arith.constant 0 : index
    %c0_0 = arith.constant 0 : index
    %0 = vector.load %arg1[%c0, %c0_0] : memref<2048x32xbf16, #tpu.memory_space<vmem>>, vector<2048x32xbf16>
    %c0_1 = arith.constant 0 : index
    %c0_2 = arith.constant 0 : index
    %1 = vector.load %arg3[%c0_1, %c0_2] : memref<32x64xbf16, #tpu.memory_space<vmem>>, vector<32x64xbf16>
    %cst = arith.constant dense<0.000000e+00> : vector<2048x64xf32>
    %2 = tpu.matmul %0, %1, %cst {dimension_numbers = #tpu.dot_dimension_numbers<[1], [0], [0], [1], [0, 0, 1, 1], [], []>} : vector<2048x32xbf16>, vector<32x64xbf16>, vector<2048x64xf32> -> vector<2048x64xf32>
    %c0_3 = arith.constant 0 : index
    %c0_4 = arith.constant 0 : index
    %3 = vector.load %arg4[%c0_3, %c0_4] : memref<1x64xf32, #tpu.memory_space<vmem>>, vector<1x64xf32>
    %4 = vector.broadcast %3 : vector<1x64xf32> to vector<2048x64xf32>
    %5 = arith.addf %2, %4 : vector<2048x64xf32>
    %cst_5 = arith.constant 0.000000e+00 : f32
    %6 = vector.broadcast %cst_5 : f32 to vector<2048x64xf32>
    %7 = arith.maximumf %5, %6 : vector<2048x64xf32>
    %8 = vector.extract_strided_slice %7 {offsets = [0, 0], sizes = [1024, 64], strides = [1, 1]} : vector<2048x64xf32> to vector<1024x64xf32>
    %9 = vector.extract_strided_slice %7 {offsets = [1024, 0], sizes = [1024, 64], strides = [1, 1]} : vector<2048x64xf32> to vector<1024x64xf32>
    %10 = vector.extract_strided_slice %8 {offsets = [0, 0], sizes = [256, 64], strides = [1, 1]} : vector<1024x64xf32> to vector<256x64xf32>
    %11 = vector.extract_strided_slice %8 {offsets = [256, 0], sizes = [256, 64], strides = [1, 1]} : vector<1024x64xf32> to vector<256x64xf32>
    %12 = arith.addf %10, %11 : vector<256x64xf32>
    %13 = vector.extract_strided_slice %8 {offsets = [512, 0], sizes = [256, 64], strides = [1, 1]} : vector<1024x64xf32> to vector<256x64xf32>
    %14 = arith.addf %12, %13 : vector<256x64xf32>
    %15 = vector.extract_strided_slice %8 {offsets = [768, 0], sizes = [256, 64], strides = [1, 1]} : vector<1024x64xf32> to vector<256x64xf32>
    %16 = arith.addf %14, %15 : vector<256x64xf32>
    %cst_6 = arith.constant 2.500000e-01 : f32
    %17 = vector.broadcast %cst_6 : f32 to vector<256x64xf32>
    %18 = arith.mulf %16, %17 : vector<256x64xf32>
    %19 = vector.extract_strided_slice %9 {offsets = [0, 0], sizes = [256, 64], strides = [1, 1]} : vector<1024x64xf32> to vector<256x64xf32>
    %20 = vector.extract_strided_slice %9 {offsets = [256, 0], sizes = [256, 64], strides = [1, 1]} : vector<1024x64xf32> to vector<256x64xf32>
    %21 = arith.addf %19, %20 : vector<256x64xf32>
    %22 = vector.extract_strided_slice %9 {offsets = [512, 0], sizes = [256, 64], strides = [1, 1]} : vector<1024x64xf32> to vector<256x64xf32>
    %23 = arith.addf %21, %22 : vector<256x64xf32>
    %24 = vector.extract_strided_slice %9 {offsets = [768, 0], sizes = [256, 64], strides = [1, 1]} : vector<1024x64xf32> to vector<256x64xf32>
    %25 = arith.addf %23, %24 : vector<256x64xf32>
    %c0_7 = arith.constant 0 : index
    %c0_8 = arith.constant 0 : index
    %26 = vector.load %arg2[%c0_7, %c0_8] : memref<256x256xf32, #tpu.memory_space<vmem>>, vector<256x256xf32>
    %cst_9 = arith.constant dense<0.000000e+00> : vector<256x64xf32>
    %27 = tpu.matmul %26, %25, %cst_9 {dimension_numbers = #tpu.dot_dimension_numbers<[1], [0], [0], [1], [0, 0, 1, 1], [], []>} : vector<256x256xf32>, vector<256x64xf32>, vector<256x64xf32> -> vector<256x64xf32>
    %28 = arith.truncf %18 : vector<256x64xf32> to vector<256x64xbf16>
    %c0_10 = arith.constant 0 : index
    %c0_11 = arith.constant 0 : index
    %29 = vector.load %arg5[%c0_10, %c0_11] : memref<64x512xbf16, #tpu.memory_space<vmem>>, vector<64x512xbf16>
    %cst_12 = arith.constant dense<0.000000e+00> : vector<256x512xf32>
    %30 = tpu.matmul %28, %29, %cst_12 {dimension_numbers = #tpu.dot_dimension_numbers<[1], [0], [0], [1], [0, 0, 1, 1], [], []>} : vector<256x64xbf16>, vector<64x512xbf16>, vector<256x512xf32> -> vector<256x512xf32>
    %c0_13 = arith.constant 0 : index
    %c0_14 = arith.constant 0 : index
    %31 = vector.load %arg6[%c0_13, %c0_14] : memref<1x512xf32, #tpu.memory_space<vmem>>, vector<1x512xf32>
    %32 = vector.broadcast %31 : vector<1x512xf32> to vector<256x512xf32>
    %33 = arith.addf %30, %32 : vector<256x512xf32>
    %cst_15 = arith.constant 0.000000e+00 : f32
    %34 = vector.broadcast %cst_15 : f32 to vector<256x512xf32>
    %35 = arith.maximumf %33, %34 : vector<256x512xf32>
    %36 = arith.truncf %27 : vector<256x64xf32> to vector<256x64xbf16>
    %c0_16 = arith.constant 0 : index
    %c0_17 = arith.constant 0 : index
    %37 = vector.load %arg7[%c0_16, %c0_17] : memref<64x512xbf16, #tpu.memory_space<vmem>>, vector<64x512xbf16>
    %cst_18 = arith.constant dense<0.000000e+00> : vector<256x512xf32>
    %38 = tpu.matmul %36, %37, %cst_18 {dimension_numbers = #tpu.dot_dimension_numbers<[1], [0], [0], [1], [0, 0, 1, 1], [], []>} : vector<256x64xbf16>, vector<64x512xbf16>, vector<256x512xf32> -> vector<256x512xf32>
    %c0_19 = arith.constant 0 : index
    %c0_20 = arith.constant 0 : index
    %39 = vector.load %arg8[%c0_19, %c0_20] : memref<1x512xf32, #tpu.memory_space<vmem>>, vector<1x512xf32>
    %40 = vector.broadcast %39 : vector<1x512xf32> to vector<256x512xf32>
    %41 = arith.addf %38, %40 : vector<256x512xf32>
    %cst_21 = arith.constant 0.000000e+00 : f32
    %42 = vector.broadcast %cst_21 : f32 to vector<256x512xf32>
    %43 = arith.maximumf %41, %42 : vector<256x512xf32>
    %44 = arith.truncf %35 : vector<256x512xf32> to vector<256x512xbf16>
    %c0_22 = arith.constant 0 : index
    %c0_23 = arith.constant 0 : index
    %45 = vector.load %arg9[%c0_22, %c0_23] : memref<512x768xbf16, #tpu.memory_space<vmem>>, vector<512x768xbf16>
    %cst_24 = arith.constant dense<0.000000e+00> : vector<256x768xf32>
    %46 = tpu.matmul %44, %45, %cst_24 {dimension_numbers = #tpu.dot_dimension_numbers<[1], [0], [0], [1], [0, 0, 1, 1], [], []>} : vector<256x512xbf16>, vector<512x768xbf16>, vector<256x768xf32> -> vector<256x768xf32>
    %47 = arith.truncf %43 : vector<256x512xf32> to vector<256x512xbf16>
    %c0_25 = arith.constant 0 : index
    %c0_26 = arith.constant 0 : index
    %48 = vector.load %arg10[%c0_25, %c0_26] : memref<512x768xbf16, #tpu.memory_space<vmem>>, vector<512x768xbf16>
    %cst_27 = arith.constant dense<0.000000e+00> : vector<256x768xf32>
    %49 = tpu.matmul %47, %48, %cst_27 {dimension_numbers = #tpu.dot_dimension_numbers<[1], [0], [0], [1], [0, 0, 1, 1], [], []>} : vector<256x512xbf16>, vector<512x768xbf16>, vector<256x768xf32> -> vector<256x768xf32>
    %50 = arith.addf %46, %49 : vector<256x768xf32>
    %c0_28 = arith.constant 0 : index
    %c0_29 = arith.constant 0 : index
    %51 = vector.load %arg11[%c0_28, %c0_29] : memref<1x768xf32, #tpu.memory_space<vmem>>, vector<1x768xf32>
    %52 = vector.broadcast %51 : vector<1x768xf32> to vector<256x768xf32>
    %53 = arith.addf %50, %52 : vector<256x768xf32>
    %cst_30 = arith.constant 0.000000e+00 : f32
    %54 = vector.broadcast %cst_30 : f32 to vector<256x768xf32>
    %55 = arith.maximumf %53, %54 : vector<256x768xf32>
    %56 = arith.truncf %55 : vector<256x768xf32> to vector<256x768xbf16>
    %c0_31 = arith.constant 0 : index
    %c0_32 = arith.constant 0 : index
    %57 = vector.load %arg12[%c0_31, %c0_32] : memref<768x512xbf16, #tpu.memory_space<vmem>>, vector<768x512xbf16>
    %cst_33 = arith.constant dense<0.000000e+00> : vector<256x512xf32>
    %58 = tpu.matmul %56, %57, %cst_33 {dimension_numbers = #tpu.dot_dimension_numbers<[1], [0], [0], [1], [0, 0, 1, 1], [], []>} : vector<256x768xbf16>, vector<768x512xbf16>, vector<256x512xf32> -> vector<256x512xf32>
    %c0_34 = arith.constant 0 : index
    %c0_35 = arith.constant 0 : index
    %59 = vector.load %arg13[%c0_34, %c0_35] : memref<1x512xf32, #tpu.memory_space<vmem>>, vector<1x512xf32>
    %60 = vector.broadcast %59 : vector<1x512xf32> to vector<256x512xf32>
    %61 = arith.addf %58, %60 : vector<256x512xf32>
    %cst_36 = arith.constant 0.000000e+00 : f32
    %62 = vector.broadcast %cst_36 : f32 to vector<256x512xf32>
    %63 = arith.maximumf %61, %62 : vector<256x512xf32>
    %64 = arith.truncf %63 : vector<256x512xf32> to vector<256x512xbf16>
    %c0_37 = arith.constant 0 : index
    %c0_38 = arith.constant 0 : index
    %65 = vector.load %arg14[%c0_37, %c0_38] : memref<512x128xbf16, #tpu.memory_space<vmem>>, vector<512x128xbf16>
    %cst_39 = arith.constant dense<0.000000e+00> : vector<256x128xf32>
    %66 = tpu.matmul %64, %65, %cst_39 {dimension_numbers = #tpu.dot_dimension_numbers<[1], [0], [0], [1], [0, 0, 1, 1], [], []>} : vector<256x512xbf16>, vector<512x128xbf16>, vector<256x128xf32> -> vector<256x128xf32>
    %c0_40 = arith.constant 0 : index
    %c0_41 = arith.constant 0 : index
    %67 = vector.load %arg15[%c0_40, %c0_41] : memref<1x128xf32, #tpu.memory_space<vmem>>, vector<1x128xf32>
    %68 = vector.broadcast %67 : vector<1x128xf32> to vector<256x128xf32>
    %69 = arith.addf %66, %68 : vector<256x128xf32>
    %c0_42 = arith.constant 0 : index
    %c0_43 = arith.constant 0 : index
    %70 = vector.load %arg16[%c0_42, %c0_43] : memref<256x128xf32, #tpu.memory_space<vmem>>, vector<256x128xf32>
    tpu.vector_store %arg16[%c0_42, %c0_43], %69 {strides = array<i32>} : memref<256x128xf32, #tpu.memory_space<vmem>>, vector<256x128xf32>,
    return
  }
  func.func @transform_0(%arg0: i32) -> (i32, i32) {
    %c0_i32 = arith.constant 0 : i32
    %c0_i32_0 = arith.constant 0 : i32
    return %arg0, %c0_i32 : i32, i32
  }
  func.func @transform_1(%arg0: i32) -> (i32, i32) {
    %c0_i32 = arith.constant 0 : i32
    %c0_i32_0 = arith.constant 0 : i32
    %c0_i32_1 = arith.constant 0 : i32
    return %c0_i32, %c0_i32_0 : i32, i32
  }
  func.func @transform_2(%arg0: i32) -> (i32, i32) {
    %c0_i32 = arith.constant 0 : i32
    %c0_i32_0 = arith.constant 0 : i32
    %c0_i32_1 = arith.constant 0 : i32
    return %c0_i32, %c0_i32_0 : i32, i32
  }
  func.func @transform_3(%arg0: i32) -> (i32, i32) {
    %c0_i32 = arith.constant 0 : i32
    %c0_i32_0 = arith.constant 0 : i32
    %c0_i32_1 = arith.constant 0 : i32
    return %c0_i32, %c0_i32_0 : i32, i32
  }
  func.func @transform_4(%arg0: i32) -> (i32, i32) {
    %c0_i32 = arith.constant 0 : i32
    %c0_i32_0 = arith.constant 0 : i32
    %c0_i32_1 = arith.constant 0 : i32
    return %c0_i32, %c0_i32_0 : i32, i32
  }
  func.func @transform_5(%arg0: i32) -> (i32, i32) {
    %c0_i32 = arith.constant 0 : i32
    %c0_i32_0 = arith.constant 0 : i32
    %c0_i32_1 = arith.constant 0 : i32
    return %c0_i32, %c0_i32_0 : i32, i32
  }
  func.func @transform_6(%arg0: i32) -> (i32, i32) {
    %c0_i32 = arith.constant 0 : i32
    %c0_i32_0 = arith.constant 0 : i32
    %c0_i32_1 = arith.constant 0 : i32
    return %c0_i32, %c0_i32_0 : i32, i32
  }
  func.func @transform_7(%arg0: i32) -> (i32, i32) {
    %c0_i32 = arith.constant 0 : i32
    %c0_i32_0 = arith.constant 0 : i32
    %c0_i32_1 = arith.constant 0 : i32
    return %c0_i32, %c0_i32_0 : i32, i32
  }
  func.func @transform_8(%arg0: i32) -> (i32, i32) {
    %c0_i32 = arith.constant 0 : i32
    %c0_i32_0 = arith.constant 0 : i32
    %c0_i32_1 = arith.constant 0 : i32
    return %c0_i32, %c0_i32_0 : i32, i32
  }
  func.func @transform_9(%arg0: i32) -> (i32, i32) {
    %c0_i32 = arith.constant 0 : i32
    %c0_i32_0 = arith.constant 0 : i32
    %c0_i32_1 = arith.constant 0 : i32
    return %c0_i32, %c0_i32_0 : i32, i32
  }
  func.func @transform_10(%arg0: i32) -> (i32, i32) {
    %c0_i32 = arith.constant 0 : i32
    %c0_i32_0 = arith.constant 0 : i32
    %c0_i32_1 = arith.constant 0 : i32
    return %c0_i32, %c0_i32_0 : i32, i32
  }
  func.func @transform_11(%arg0: i32) -> (i32, i32) {
    %c0_i32 = arith.constant 0 : i32
    %c0_i32_0 = arith.constant 0 : i32
    %c0_i32_1 = arith.constant 0 : i32
    return %c0_i32, %c0_i32_0 : i32, i32
  }
  func.func @transform_12(%arg0: i32) -> (i32, i32) {
    %c0_i32 = arith.constant 0 : i32
    %c0_i32_0 = arith.constant 0 : i32
    %c0_i32_1 = arith.constant 0 : i32
    return %c0_i32, %c0_i32_0 : i32, i32
  }
  func.func @transform_13(%arg0: i32) -> (i32, i32) {
    %c0_i32 = arith.constant 0 : i32
    %c0_i32_0 = arith.constant 0 : i32
    %c0_i32_1 = arith.constant 0 : i32
    return %c0_i32, %c0_i32_0 : i32, i32
  }
  func.func @transform_14(%arg0: i32) -> (i32, i32) {
    %c0_i32 = arith.constant 0 : i32
    %c0_i32_0 = arith.constant 0 : i32
    %c0_i32_1 = arith.constant 0 : i32
    return %c0_i32, %c0_i32_0 : i32, i32
  }
  func.func @transform_15(%arg0: i32) -> (i32, i32) {
    %c0_i32 = arith.constant 0 : i32
    %c0_i32_0 = arith.constant 0 : i32
    return %arg0, %c0_i32 : i32, i32
  }
}

</mosaic_0001>

<bundles_post_ra>
// kernel: chess_rec_forward.1
= control target key start
LH: loop header
LB: loop body
LE: loop exit
PB: predicated region body
PF: predicated region fallthrough
CT: control target
= control target key end

     0   :  { %s17259_s18 = smov 0   ;;  %s22655_s0 = inlined_call_operand.vmem [shape: bf16[4096,32], index: 0, kind: input, shape index: {}]   ;;  %s22656_s1 = inlined_call_operand.vmem [shape: f32[256,256], index: 1, kind: input, shape index: {}]   ;;  %s22657_s2 = inlined_call_operand.vmem [shape: bf16[32,64], index: 2, kind: input, shape index: {}]   ;;  %s22658_s3 = inlined_call_operand.vmem [shape: f32[1,64], index: 3, kind: input, shape index: {}]   ;;  %s22659_s4 = inlined_call_operand.vmem [shape: bf16[64,512], index: 4, kind: input, shape index: {}]   ;;  %s22660_s5 = inlined_call_operand.vmem [shape: f32[1,512], index: 5, kind: input, shape index: {}]   ;;  %s22661_s6 = inlined_call_operand.vmem [shape: bf16[64,512], index: 6, kind: input, shape index: {}]   ;;  %s22662_s7 = inlined_call_operand.vmem [shape: f32[1,512], index: 7, kind: input, shape index: {}]   ;;  %s22663_s8 = inlined_call_operand.vmem [shape: bf16[512,768], index: 8, kind: input, shape index: {}]   ;;  %s22664_s9 = inlined_call_operand.vmem [shape: bf16[512,768], index: 9, kind: input, shape index: {}]   ;;  %s22665_s10 = inlined_call_operand.vmem [shape: f32[1,768], index: 10, kind: input, shape index: {}]   ;;  %s22666_s11 = inlined_call_operand.vmem [shape: bf16[768,512], index: 11, kind: input, shape index: {}]   ;;  %s22667_s12 = inlined_call_operand.vmem [shape: f32[1,512], index: 12, kind: input, shape index: {}]   ;;  %s22668_s13 = inlined_call_operand.vmem [shape: bf16[512,128], index: 13, kind: input, shape index: {}]   ;;  %s22669_s14 = inlined_call_operand.vmem [shape: f32[1,128], index: 14, kind: input, shape index: {}]   ;;  %s22670_s15 = inlined_call_operand.vmem [shape: f32[512,128], index: 15, kind: output, shape index: {}]  }
   0x1 LB: > { %s13479_s19 = sadd.s32 4294967295, %s17175_s18   ;;  %p13483_p0 = scmp.ge.s32.totalorder %s17175_s18, 1  ;;  %s17175_s18 = sphi %s17259_s18, %s25_s18  }
   0x2   : > { %p438_p1 = scmp.lt.s32.totalorder %s17175_s18, 3 }
   0x4   : > { %p439_p2 = pnand %p13483_p0, %p438_p1 }
   0x6   : > { %442 = sbr.rel (%p439_p2) target bundleno = 3364 (0xd24), region = 80 }
   0xd   : > { %v16090_v0 = vld [vmem:[%s22657_s2] sm:$0xff]   ;;  %s13484_s22 = sshll.u32 %s13479_s19, 8  ;;  %v16091_v1 = vld [vmem:[%s22657_s2 + $0x8] sm:$0xff]   ;;  %vm1418_vm0 = vcmask 261120   ;;  %vm3763_vm1 = vcmask 523264   ;;  %s13486_s27 = sshll.u32 %s13479_s19, 5 }
   0xe   : > { %p487_p3 = scmp.lt.s32.totalorder %s13484_s22, 511  ;;  %14808 = vmatprep.subr.bf16.mxu0 %v16090_v0  ;;  %15116 = vmatprep.subr.bf16.mxu1 %v16090_v0  ;;  %p493_p4 = scmp.lt.s32.totalorder %s13486_s27, 63 }
   0xf   : > { %14809 = vmatpush3.bf16.msra.mxu0 %v16090_v0  ;;  %15118 = vmatpush3.bf16.msra.mxu1 %v16090_v0 }
  0x10   : > { %s23262_s22 = smov (!%p487_p3, %s13484_s22), 511  ;;  %14810 = vmatprep.subr.bf16.mxu0 %v16091_v1  ;;  %15117 = vmatprep.subr.bf16.mxu1 %v16091_v1  ;;  %s23264_s27 = smov (!%p493_p4, %s13486_s27), 63 }
  0x11   : > { %s13485_s25 = sshll.u32 %s23262_s22, 2  ;;  %s13487_s30 = sshll.u32 %s23264_s27, 3 }
  0x12   : > { %s17278_s28 = scalar_lea.vmem %s22655_s0, %s13485_s25  ;;  %s22556_s20 = scalar_lea.vmem %s22670_s15, %s13487_s30 }
  0x13   : > { %14811 = vmatpush3.bf16.msra.mxu0 %v16091_v1  ;;  %v16092_v2 = vld [vmem:[%s17278_s28] sm:$0xff]   ;;  %15119 = vmatpush3.bf16.msra.mxu1 %v16091_v1  ;;  %v16093_v3 = vld [vmem:[%s17278_s28 + $0x8] sm:$0xff]   ;;  %v16094_v4 = vld [vmem:[%s17278_s28 + $0x10] sm:$0xff]  }
  0x14   : > { %14812 = vmatprep.mubr.msk.bf16.mxu0 %vm1418_vm0, %v16092_v2  ;;  %v16095_v5 = vld [vmem:[%s17278_s28 + $0x18] sm:$0xff]   ;;  %v16096_v6 = vld [vmem:[%s17278_s28 + $0x20] sm:$0xff]   ;;  %v16097_v7 = vld [vmem:[%s17278_s28 + $0x28] sm:$0xff]  }
  0x15   : > { %v16098_v8 = vld [vmem:[%s17278_s28 + $0x30] sm:$0xff]   ;;  %v16099_v9 = vld [vmem:[%s17278_s28 + $0x38] sm:$0xff]   ;;  %v16100_v10 = vld [vmem:[%s17278_s28 + $0x40] sm:$0xff]  }
  0x16   : > { %14813 = vmatmul.mubr.msk.bf16.vlgmr.msra.gmra.mrb[0].mxu0 %vm1418_vm0, %v16093_v3  ;;  %v16101_v11 = vld [vmem:[%s17278_s28 + $0x48] sm:$0xff]   ;;  %v16102_v12 = vld [vmem:[%s17278_s28 + $0x50] sm:$0xff]   ;;  %v16103_v13 = vld [vmem:[%s17278_s28 + $0x58] sm:$0xff]  }
  0x17   : > { %14816 = vmatprep.mubr.msk.bf16.mxu0 %vm1418_vm0, %v16094_v4  ;;  %v16104_v14 = vld [vmem:[%s17278_s28 + $0x60] sm:$0xff]   ;;  %v16105_v15 = vld [vmem:[%s17278_s28 + $0x68] sm:$0xff]   ;;  %v16106_v16 = vld [vmem:[%s17278_s28 + $0x70] sm:$0xff]  }
  0x18   : > { %v16107_v17 = vld [vmem:[%s17278_s28 + $0x78] sm:$0xff]   ;;  %v16108_v18 = vld [vmem:[%s17278_s28 + $0x80] sm:$0xff]   ;;  %v16109_v19 = vld [vmem:[%s17278_s28 + $0x88] sm:$0xff]  }
  0x19   : > { %v16110_v20 = vld [vmem:[%s17278_s28 + $0x90] sm:$0xff]   ;;  %v16111_v21 = vld [vmem:[%s17278_s28 + $0x98] sm:$0xff]   ;;  %v16112_v22 = vld [vmem:[%s17278_s28 + $0xa0] sm:$0xff]  }
  0x1a   : > { %v16113_v23 = vld [vmem:[%s17278_s28 + $0xa8] sm:$0xff]   ;;  %v16114_v24 = vld [vmem:[%s17278_s28 + $0xb0] sm:$0xff]   ;;  %v16115_v25 = vld [vmem:[%s17278_s28 + $0xb8] sm:$0xff]  }
  0x1b   : > { %v16116_v26 = vld [vmem:[%s17278_s28 + $0xc0] sm:$0xff]   ;;  %v16117_v27 = vld [vmem:[%s17278_s28 + $0xc8] sm:$0xff]   ;;  %v16118_v28 = vld [vmem:[%s17278_s28 + $0xd0] sm:$0xff]  }
  0x1c   : > { %v16119_v29 = vld [vmem:[%s17278_s28 + $0xd8] sm:$0xff]   ;;  %v16120_v30 = vld [vmem:[%s17278_s28 + $0xe0] sm:$0xff]   ;;  %v16121_v31 = vld [vmem:[%s17278_s28 + $0xe8] sm:$0xff]  }
  0x1d   : > { %v16122_v32 = vld [vmem:[%s17278_s28 + $0xf0] sm:$0xff]   ;;  %v16123_v33 = vld [vmem:[%s17278_s28 + $0xf8] sm:$0xff]   ;;  %v16124_v34 = vld [vmem:[%s17278_s28 + $0x100] sm:$0xff]  }
  0x1e   : > { %14817 = vmatmul.mubr.msk.bf16.gmra.mrb[4].mxu0 %vm1418_vm0, %v16095_v5  ;;  %v16125_v35 = vld [vmem:[%s17278_s28 + $0x108] sm:$0xff]   ;;  %v16126_v36 = vld [vmem:[%s17278_s28 + $0x110] sm:$0xff]   ;;  %v16127_v37 = vld [vmem:[%s17278_s28 + $0x118] sm:$0xff]  }
  0x1f   : > { %14820 = vmatprep.mubr.msk.bf16.mxu0 %vm1418_vm0, %v16096_v6  ;;  %v16128_v38 = vld [vmem:[%s17278_s28 + $0x120] sm:$0xff]   ;;  %v16129_v39 = vld [vmem:[%s17278_s28 + $0x128] sm:$0xff]   ;;  %v16130_v40 = vld [vmem:[%s17278_s28 + $0x130] sm:$0xff]  }
  0x20   : > { %v16131_v41 = vld [vmem:[%s17278_s28 + $0x138] sm:$0xff]   ;;  %v16132_v42 = vld [vmem:[%s17278_s28 + $0x140] sm:$0xff]   ;;  %v16133_v43 = vld [vmem:[%s17278_s28 + $0x148] sm:$0xff]  }
  0x21   : > { %v16134_v44 = vld [vmem:[%s17278_s28 + $0x150] sm:$0xff]   ;;  %v16135_v45 = vld [vmem:[%s17278_s28 + $0x158] sm:$0xff]   ;;  %v16136_v46 = vld [vmem:[%s17278_s28 + $0x160] sm:$0xff]  }
  0x22   : > { %v16137_v47 = vld [vmem:[%s17278_s28 + $0x168] sm:$0xff]   ;;  %v16138_v48 = vld [vmem:[%s17278_s28 + $0x170] sm:$0xff]   ;;  %v16139_v49 = vld [vmem:[%s17278_s28 + $0x178] sm:$0xff]  }
  0x23   : > { %v16140_v50 = vld [vmem:[%s17278_s28 + $0x180] sm:$0xff]   ;;  %v16141_v51 = vld [vmem:[%s17278_s28 + $0x188] sm:$0xff]   ;;  %v16142_v52 = vld [vmem:[%s17278_s28 + $0x190] sm:$0xff]  }
  0x24   : > { %v16143_v53 = vld [vmem:[%s17278_s28 + $0x198] sm:$0xff]   ;;  %v16144_v54 = vld [vmem:[%s17278_s28 + $0x1a0] sm:$0xff]   ;;  %v16145_v55 = vld [vmem:[%s17278_s28 + $0x1a8] sm:$0xff]  }
  0x25   : > { %v16146_v56 = vld [vmem:[%s17278_s28 + $0x1b0] sm:$0xff]   ;;  %v16147_v57 = vld [vmem:[%s17278_s28 + $0x1b8] sm:$0xff]   ;;  %v16148_v61 = vld [vmem:[%s17278_s28 + $0x1c0] sm:$0xff]  }
  0x26   : > { %14821 = vmatmul.mubr.msk.bf16.gmra.mrb[8].mxu0 %vm1418_vm0, %v16097_v7  ;;  %v16149_v63 = vld [vmem:[%s17278_s28 + $0x1c8] sm:$0xff]   ;;  %v16150_v3 = vld [vmem:[%s17278_s28 + $0x1d0] sm:$0xff]   ;;  %v16151_v5 = vld [vmem:[%s17278_s28 + $0x1d8] sm:$0xff]  }
  0x27   : > { %14824 = vmatprep.mubr.msk.bf16.mxu0 %vm1418_vm0, %v16098_v8 }
  0x2e   : > { %14825 = vmatmul.mubr.msk.bf16.gmra.mrb[12].mxu0 %vm1418_vm0, %v16099_v9  ;;  %v16152_v9 = vld [vmem:[%s17278_s28 + $0x1e0] sm:$0xff]  }
  0x2f   : > { %14828 = vmatprep.mubr.msk.bf16.mxu0 %vm1418_vm0, %v16100_v10 }
  0x36   : > { %14829 = vmatmul.mubr.msk.bf16.gmra.mrb[16].mxu0 %vm1418_vm0, %v16101_v11  ;;  %v16153_v11 = vld [vmem:[%s17278_s28 + $0x1e8] sm:$0xff]  }
  0x37   : > { %14832 = vmatprep.mubr.msk.bf16.mxu0 %vm1418_vm0, %v16102_v12 }
  0x3e   : > { %14833 = vmatmul.mubr.msk.bf16.gmra.mrb[20].mxu0 %vm1418_vm0, %v16103_v13 }
  0x3f   : > { %14836 = vmatprep.mubr.msk.bf16.mxu0 %vm1418_vm0, %v16104_v14 }
  0x46   : > { %14837 = vmatmul.mubr.msk.bf16.gmra.mrb[24].mxu0 %vm1418_vm0, %v16105_v15  ;;  %v16154_v15 = vld [vmem:[%s17278_s28 + $0x1f0] sm:$0xff]  }
  0x47   : > { %14840 = vmatprep.mubr.msk.bf16.mxu0 %vm1418_vm0, %v16106_v16 }
  0x4e   : > { %14841 = vmatmul.mubr.msk.bf16.gmra.mrb[28].mxu0 %vm1418_vm0, %v16107_v17  ;;  %v16155_v17 = vld [vmem:[%s17278_s28 + $0x1f8] sm:$0xff]  }
  0x4f   : > { %14844 = vmatprep.mubr.msk.bf16.mxu0 %vm1418_vm0, %v16108_v18 }
  0x56   : > { %14845 = vmatmul.mubr.msk.bf16.gmra.mrb[32].mxu0 %vm1418_vm0, %v16109_v19 }
  0x57   : > { %14848 = vmatprep.mubr.msk.bf16.mxu0 %vm1418_vm0, %v16110_v20 }
  0x5e   : > { %14849 = vmatmul.mubr.msk.bf16.gmra.mrb[36].mxu0 %vm1418_vm0, %v16111_v21  ;;  %v16156_v21 = vld [vmem:[%s17278_s28 + $0x200] sm:$0xff]  }
  0x5f   : > { %14852 = vmatprep.mubr.msk.bf16.mxu0 %vm1418_vm0, %v16112_v22 }
  0x66   : > { %14853 = vmatmul.mubr.msk.bf16.gmra.mrb[40].mxu0 %vm1418_vm0, %v16113_v23  ;;  %v16157_v23 = vld [vmem:[%s17278_s28 + $0x208] sm:$0xff]  }
  0x67   : > { %14856 = vmatprep.mubr.msk.bf16.mxu0 %vm1418_vm0, %v16114_v24 }
  0x6e   : > { %14857 = vmatmul.mubr.msk.bf16.gmra.mrb[44].mxu0 %vm1418_vm0, %v16115_v25 }
  0x6f   : > { %14860 = vmatprep.mubr.msk.bf16.mxu0 %vm1418_vm0, %v16116_v26  ;;  %v16188_v26 = vld [vmem:[%s17278_s28 + $0x380] sm:$0xff]  }
  0x70   : > { %15036 = vmatprep.mubr.msk.bf16.mxu1 %vm1418_vm0, %v16188_v26 }
  0x76   : > { %14861 = vmatmul.mubr.msk.bf16.gmra.mrb[48].mxu0 %vm1418_vm0, %v16117_v27 }
  0x77   : > { %14864 = vmatprep.mubr.msk.bf16.mxu0 %vm1418_vm0, %v16118_v28  ;;  %v16158_v28 = vld [vmem:[%s17278_s28 + $0x210] sm:$0xff]  }
  0x7e   : > { %14865 = vmatmul.mubr.msk.bf16.gmra.mrb[52].mxu0 %vm1418_vm0, %v16119_v29  ;;  %v16190_v29 = vld [vmem:[%s17278_s28 + $0x388] sm:$0xff]  }
  0x7f   : > { %14868 = vmatprep.mubr.msk.bf16.mxu0 %vm1418_vm0, %v16120_v30  ;;  %15037 = vmatmul.mubr.msk.bf16.vlgmr.msra.gmra.mrb[0].mxu1 %vm1418_vm0, %v16190_v29 }
  0x86   : > { %14869 = vmatmul.mubr.msk.bf16.gmra.mrb[56].mxu0 %vm1418_vm0, %v16121_v31  ;;  %v16159_v31 = vld [vmem:[%s17278_s28 + $0x218] sm:$0xff]  }
  0x87   : > { %14872 = vmatprep.mubr.msk.bf16.mxu0 %vm1418_vm0, %v16122_v32 }
  0x8e   : > { %14873 = vmatmul.mubr.msk.bf16.gmra.mrb[60].mxu0 %vm1418_vm0, %v16123_v33 }
  0x8f   : > { %14876 = vmatprep.mubr.msk.bf16.mxu0 %vm1418_vm0, %v16124_v34  ;;  %v16192_v34 = vld [vmem:[%s17278_s28 + $0x390] sm:$0xff]  }
  0x90   : > { %15040 = vmatprep.mubr.msk.bf16.mxu1 %vm1418_vm0, %v16192_v34 }
  0x96   : > { %14877 = vmatmul.mubr.msk.bf16.gmra.mrb[64].mxu0 %vm1418_vm0, %v16125_v35 }
  0x97   : > { %14880 = vmatprep.mubr.msk.bf16.mxu0 %vm1418_vm0, %v16126_v36  ;;  %v16160_v36 = vld [vmem:[%s17278_s28 + $0x220] sm:$0xff]  }
  0x9e   : > { %14881 = vmatmul.mubr.msk.bf16.gmra.mrb[68].mxu0 %vm1418_vm0, %v16127_v37  ;;  %v16194_v37 = vld [vmem:[%s17278_s28 + $0x398] sm:$0xff]  }
  0x9f   : > { %14884 = vmatprep.mubr.msk.bf16.mxu0 %vm1418_vm0, %v16128_v38  ;;  %15041 = vmatmul.mubr.msk.bf16.gmra.mrb[4].mxu1 %vm1418_vm0, %v16194_v37 }
  0xa6   : > { %14885 = vmatmul.mubr.msk.bf16.gmra.mrb[72].mxu0 %vm1418_vm0, %v16129_v39  ;;  %v16161_v39 = vld [vmem:[%s17278_s28 + $0x228] sm:$0xff]  }
  0xa7   : > { %14888 = vmatprep.mubr.msk.bf16.mxu0 %vm1418_vm0, %v16130_v40 }
  0xae   : > { %14889 = vmatmul.mubr.msk.bf16.gmra.mrb[76].mxu0 %vm1418_vm0, %v16131_v41 }
  0xaf   : > { %14892 = vmatprep.mubr.msk.bf16.mxu0 %vm1418_vm0, %v16132_v42  ;;  %v16196_v42 = vld [vmem:[%s17278_s28 + $0x3a0] sm:$0xff]  }
  0xb0   : > { %15044 = vmatprep.mubr.msk.bf16.mxu1 %vm1418_vm0, %v16196_v42 }
  0xb6   : > { %14893 = vmatmul.mubr.msk.bf16.gmra.mrb[80].mxu0 %vm1418_vm0, %v16133_v43 }
  0xb7   : > { %14896 = vmatprep.mubr.msk.bf16.mxu0 %vm1418_vm0, %v16134_v44  ;;  %v16162_v44 = vld [vmem:[%s17278_s28 + $0x230] sm:$0xff]  }
  0xbe   : > { %14897 = vmatmul.mubr.msk.bf16.gmra.mrb[84].mxu0 %vm1418_vm0, %v16135_v45  ;;  %v16198_v45 = vld [vmem:[%s17278_s28 + $0x3a8] sm:$0xff]  }
  0xbf   : > { %14900 = vmatprep.mubr.msk.bf16.mxu0 %vm1418_vm0, %v16136_v46  ;;  %v17495_v46 = vld [vmem:[%s22658_s3] ss:$0 sm:$0xff]  ;;  %15045 = vmatmul.mubr.msk.bf16.gmra.mrb[8].mxu1 %vm1418_vm0, %v16198_v45 }
  0xc6   : > { %14901 = vmatmul.mubr.msk.bf16.gmra.mrb[88].mxu0 %vm1418_vm0, %v16137_v47 }
  0xc7   : > { %14904 = vmatprep.mubr.msk.bf16.mxu0 %vm1418_vm0, %v16138_v48 }
  0xce   : > { %14905 = vmatmul.mubr.msk.bf16.gmra.mrb[92].mxu0 %vm1418_vm0, %v16139_v49  ;;  %v16163_v49 = vld [vmem:[%s17278_s28 + $0x238] sm:$0xff]  }
  0xcf   : > { %14908 = vmatprep.mubr.msk.bf16.mxu0 %vm1418_vm0, %v16140_v50 }
  0xd6   : > { %14909 = vmatmul.mubr.msk.bf16.gmra.mrb[96].mxu0 %vm1418_vm0, %v16141_v51 }
  0xd7   : > { %14912 = vmatprep.mubr.msk.bf16.mxu0 %vm1418_vm0, %v16142_v52 }
  0xde   : > { %14913 = vmatmul.mubr.msk.bf16.gmra.mrb[100].mxu0 %vm1418_vm0, %v16143_v53 }
  0xdf   : > { %14916 = vmatprep.mubr.msk.bf16.mxu0 %vm1418_vm0, %v16144_v54 }
  0xe6   : > { %14917 = vmatmul.mubr.msk.bf16.gmra.mrb[104].mxu0 %vm1418_vm0, %v16145_v55  ;;  %v16200_v55 = vld [vmem:[%s17278_s28 + $0x3b0] sm:$0xff]  }
  0xe7   : > { %14920 = vmatprep.mubr.msk.bf16.mxu0 %vm1418_vm0, %v16146_v56  ;;  %15048 = vmatprep.mubr.msk.bf16.mxu1 %vm1418_vm0, %v16200_v55 }
  0xe9   : > { %v17391_v58 = vpop.f32.mrb[0].mxu0 }
  0xea   : > { %v17393_v59 = vpop.f32.mrb[1].mxu0  ;;  %v1846_v48 = vadd.f32 %v17391_v58, %v17495_v46  ;;  %v16202_v58 = vld [vmem:[%s17278_s28 + $0x3b8] sm:$0xff]  }
  0xeb   : > { %v17395_v60 = vpop.f32.mrb[2].mxu0  ;;  %v1838_v50 = vadd.f32 %v17495_v46, %v17393_v59  ;;  %15049 = vmatmul.mubr.msk.bf16.gmra.mrb[12].mxu1 %vm1418_vm0, %v16202_v58 }
  0xec   : > { %v17398_v62 = vpop.f32.mrb[3].mxu0  ;;  %v1849_v52 = vadd.f32 %v17395_v60, %v17495_v46 }
  0xed   : > { %v1841_v56 = vadd.f32 %v17495_v46, %v17398_v62  ;;  %v2860_v60 = vmax.f32 %v1838_v50, 0.0 }
  0xee   : > { %14921 = vmatmul.mubr.msk.bf16.gmra.mrb[108].mxu0 %vm1418_vm0, %v16147_v57  ;;  %v2863_v62 = vmax.f32 %v1849_v52, 0.0  ;;  %v16206_v52 = vld [vmem:[%s17278_s28 + $0x3c8] sm:$0xff]  }
  0xef   : > { %14924 = vmatprep.mubr.msk.bf16.mxu0 %vm1418_vm0, %v16148_v61 }
  0xf1   : > { %v17403_v0 = vpop.f32.mrb[4].mxu0 }
  0xf2   : > { %v17405_v1 = vpop.f32.mrb[5].mxu0  ;;  %v1862_v29 = vadd.f32 %v17403_v0, %v17495_v46 }
  0xf3   : > { %v17407_v2 = vpop.f32.mrb[6].mxu0 }
  0xf4   : > { %v17410_v4 = vpop.f32.mrb[7].mxu0  ;;  %v1865_v42 = vadd.f32 %v17407_v2, %v17495_v46 }
  0xf6   : > { %14925 = vmatmul.mubr.msk.bf16.gmra.mrb[112].mxu0 %vm1418_vm0, %v16149_v63  ;;  %v16164_v63 = vld [vmem:[%s17278_s28 + $0x240] sm:$0xff]  }
  0xf7   : > { %14928 = vmatprep.mubr.msk.bf16.mxu0 %vm1418_vm0, %v16150_v3  ;;  %v2862_v3 = vmax.f32 %v1846_v48, 0.0  ;;  %v16204_v48 = vld [vmem:[%s17278_s28 + $0x3c0] sm:$0xff]  }
  0xf8   : > { %15052 = vmatprep.mubr.msk.bf16.mxu1 %vm1418_vm0, %v16204_v48 }
  0xf9   : > { %v17415_v6 = vpop.f32.mrb[8].mxu0  ;;  %15053 = vmatmul.mubr.msk.bf16.gmra.mrb[16].mxu1 %vm1418_vm0, %v16206_v52 }
  0xfa   : > { %v17417_v7 = vpop.f32.mrb[9].mxu0 }
  0xfb   : > { %v17419_v8 = vpop.f32.mrb[10].mxu0 }
  0xfc   : > { %v17422_v10 = vpop.f32.mrb[11].mxu0 }
  0xfe   : > { %14929 = vmatmul.mubr.msk.bf16.gmra.mrb[116].mxu0 %vm1418_vm0, %v16151_v5 }
  0xff   : > { %14932 = vmatprep.mubr.msk.bf16.mxu0 %vm1418_vm0, %v16152_v9 }
 0x101   : > { %v17427_v12 = vpop.f32.mrb[12].mxu0 }
 0x102   : > { %v17429_v13 = vpop.f32.mrb[13].mxu0 }
 0x103   : > { %v17431_v14 = vpop.f32.mrb[14].mxu0 }
 0x104   : > { %v17434_v16 = vpop.f32.mrb[15].mxu0 }
 0x106   : > { %14933 = vmatmul.mubr.msk.bf16.gmra.mrb[120].mxu0 %vm1418_vm0, %v16153_v11 }
 0x107   : > { %14936 = vmatprep.mubr.msk.bf16.mxu0 %vm1418_vm0, %v16154_v15 }
 0x109   : > { %v17439_v18 = vpop.f32.mrb[16].mxu0 }
 0x10a   : > { %v17441_v19 = vpop.f32.mrb[17].mxu0 }
 0x10b   : > { %v17443_v20 = vpop.f32.mrb[18].mxu0 }
 0x10c   : > { %v17446_v22 = vpop.f32.mrb[19].mxu0 }
 0x10e   : > { %14937 = vmatmul.mubr.msk.bf16.gmra.mrb[124].mxu0 %vm1418_vm0, %v16155_v17 }
 0x10f   : > { %14940 = vmatprep.mubr.msk.bf16.mxu0 %vm1418_vm0, %v16156_v21 }
 0x111   : > { %v17451_v24 = vpop.f32.mrb[20].mxu0 }
 0x112   : > { %v17453_v25 = vpop.f32.mrb[21].mxu0 }
 0x113   : > { %v17456_v27 = vpop.f32.mrb[22].mxu0 }
 0x114   : > { %v17460_v30 = vpop.f32.mrb[23].mxu0 }
 0x116   : > { %14941 = vmatmul.mubr.msk.bf16.gmra.mrb[128].mxu0 %vm1418_vm0, %v16157_v23  ;;  %v2861_v23 = vmax.f32 %v1841_v56, 0.0 }
 0x117   : > { %14944 = vmatprep.mubr.msk.bf16.mxu0 %vm1418_vm0, %v16158_v28 }
 0x119   : > { %v17467_v32 = vpop.f32.mrb[24].mxu0 }
 0x11a   : > { %v17469_v33 = vpop.f32.mrb[25].mxu0 }
 0x11b   : > { %v17472_v35 = vpop.f32.mrb[26].mxu0 }
 0x11c   : > { %v17476_v38 = vpop.f32.mrb[27].mxu0 }
 0x11e   : > { %14945 = vmatmul.mubr.msk.bf16.gmra.mrb[132].mxu0 %vm1418_vm0, %v16159_v31  ;;  %v16165_v31 = vld [vmem:[%s17278_s28 + $0x248] sm:$0xff]  }
 0x11f   : > { %14948 = vmatprep.mubr.msk.bf16.mxu0 %vm1418_vm0, %v16160_v36  ;;  %v1854_v36 = vadd.f32 %v17495_v46, %v17405_v1 }
 0x121   : > { %v17483_v40 = vpop.f32.mrb[28].mxu0  ;;  %v2864_v2 = vmax.f32 %v1854_v36, 0.0 }
 0x122   : > { %v17485_v41 = vpop.f32.mrb[29].mxu0 }
 0x123   : > { %v17488_v43 = vpop.f32.mrb[30].mxu0 }
 0x124   : > { %v17497_v47 = vpop.f32.mrb[31].mxu0 }
 0x126   : > { %14949 = vmatmul.mubr.msk.bf16.gmra.mrb[136].mxu0 %vm1418_vm0, %v16161_v39 }
 0x127   : > { %14952 = vmatprep.mubr.msk.bf16.mxu0 %vm1418_vm0, %v16162_v44 }
 0x129   : > { %v14846_v51 = vpop.f32.mrb[32].mxu0 }
 0x12a   : > { %v1974_v53 = vadd.f32 %v14846_v51, %v17495_v46  ;;  %v1965_v54 = vpop.f32.mrb[33].mxu0  ;;  %v16166_v51 = vld [vmem:[%s17278_s28 + $0x250] sm:$0xff]  }
 0x12b   : > { %v1966_v57 = vadd.f32 %v17495_v46, %v1965_v54  ;;  %v14847_v61 = vpop.f32.mrb[34].mxu0 }
 0x12c   : > { %v2894_v5 = vmax.f32 %v1974_v53, 0.0  ;;  %v1977_v59 = vadd.f32 %v14847_v61, %v17495_v46  ;;  %v1968_v9 = vpop.f32.mrb[35].mxu0  ;;  %v2866_v53 = vmax.f32 %v1862_v29, 0.0 }
 0x12d   : > { %v2892_v11 = vmax.f32 %v1966_v57, 0.0  ;;  %v1969_v15 = vadd.f32 %v17495_v46, %v1968_v9  ;;  %v16167_v9 = vld [vmem:[%s17278_s28 + $0x258] sm:$0xff]  }
 0x12e   : > { %v2895_v17 = vmax.f32 %v1977_v59, 0.0  ;;  %14953 = vmatmul.mubr.msk.bf16.gmra.mrb[140].mxu0 %vm1418_vm0, %v16163_v49  ;;  %v17522_v21 = vadd.f32 %v2894_v5, %v2862_v3  ;;  %v1857_v49 = vadd.f32 %v17495_v46, %v17410_v4  ;;  %v2867_v4 = vmax.f32 %v1865_v42, 0.0  ;;  %v16210_v42 = vld [vmem:[%s17278_s28 + $0x3d8] sm:$0xff]  }
 0x12f   : > { %v17524_v26 = vadd.f32 %v2892_v11, %v2860_v60  ;;  %v2893_v28 = vmax.f32 %v1969_v15, 0.0  ;;  %14956 = vmatprep.mubr.msk.bf16.mxu0 %vm1418_vm0, %v16164_v63  ;;  %v1878_v59 = vadd.f32 %v17415_v6, %v17495_v46  ;;  %v1870_v11 = vadd.f32 %v17495_v46, %v17417_v7 }
 0x130   : > { %v17530_v34 = vadd.f32 %v2895_v17, %v2863_v62  ;;  %v2865_v58 = vmax.f32 %v1857_v49, 0.0  ;;  %v1881_v15 = vadd.f32 %v17419_v8, %v17495_v46 }
 0x131   : > { %v17534_v37 = vadd.f32 %v2893_v28, %v2861_v23  ;;  %v14850_v39 = vpop.f32.mrb[36].mxu0  ;;  %v1873_v23 = vadd.f32 %v17495_v46, %v17422_v10  ;;  %v2868_v48 = vmax.f32 %v1870_v11, 0.0 }
 0x132   : > { %v1990_v44 = vadd.f32 %v14850_v39, %v17495_v46  ;;  %v1981_v45 = vpop.f32.mrb[37].mxu0  ;;  %v16168_v39 = vld [vmem:[%s17278_s28 + $0x260] sm:$0xff]   ;;  %v2871_v49 = vmax.f32 %v1881_v15, 0.0 }
 0x133   : > { %v1982_v0 = vadd.f32 %v17495_v46, %v1981_v45  ;;  %v14851_v50 = vpop.f32.mrb[38].mxu0 }
 0x134   : > { %v2898_v1 = vmax.f32 %v1990_v44, 0.0  ;;  %v1993_v54 = vadd.f32 %v14851_v50, %v17495_v46  ;;  %v1984_v55 = vpop.f32.mrb[39].mxu0  ;;  %v2870_v44 = vmax.f32 %v1878_v59, 0.0  ;;  %v2869_v50 = vmax.f32 %v1873_v23, 0.0 }
 0x135   : > { %v2896_v56 = vmax.f32 %v1982_v0, 0.0  ;;  %v1985_v57 = vadd.f32 %v17495_v46, %v1984_v55 }
 0x136   : > { %v2899_v61 = vmax.f32 %v1993_v54, 0.0  ;;  %14957 = vmatmul.mubr.msk.bf16.gmra.mrb[144].mxu0 %vm1418_vm0, %v16165_v31  ;;  %v17550_v63 = vadd.f32 %v2898_v1, %v2866_v53  ;;  %v16208_v31 = vld [vmem:[%s17278_s28 + $0x3d0] sm:$0xff]   ;;  %v1886_v1 = vadd.f32 %v17495_v46, %v17429_v13  ;;  %v1897_v54 = vadd.f32 %v17431_v14, %v17495_v46 }
 0x137   : > { %v2897_v3 = vmax.f32 %v1985_v57, 0.0  ;;  %14960 = vmatprep.mubr.msk.bf16.mxu0 %vm1418_vm0, %v16166_v51  ;;  %v17553_v5 = vadd.f32 %v2896_v56, %v2864_v2  ;;  %15056 = vmatprep.mubr.msk.bf16.mxu1 %vm1418_vm0, %v16208_v31  ;;  %v1894_v51 = vadd.f32 %v17427_v12, %v17495_v46  ;;  %v1889_v12 = vadd.f32 %v17495_v46, %v17434_v16  ;;  %v16169_v57 = vld [vmem:[%s17278_s28 + $0x268] sm:$0xff]  }
 0x138   : > { %v17558_v60 = vadd.f32 %v2899_v61, %v2867_v4  ;;  %15057 = vmatmul.mubr.msk.bf16.gmra.mrb[20].mxu1 %vm1418_vm0, %v16210_v42  ;;  %v17593_v56 = vadd.f32 %v17439_v18, %v17495_v46  ;;  %v17600_v13 = vadd.f32 %v17495_v46, %v17441_v19  ;;  %v16170_v61 = vld [vmem:[%s17278_s28 + $0x270] sm:$0xff]   ;;  %v17611_v16 = vadd.f32 %v17495_v46, %v17446_v22 }
 0x139   : > { %v14854_v62 = vpop.f32.mrb[40].mxu0  ;;  %v17564_v17 = vadd.f32 %v2897_v3, %v2865_v58  ;;  %v17607_v3 = vadd.f32 %v17443_v20, %v17495_v46  ;;  %v2874_v11 = vmax.f32 %v1894_v51, 0.0  ;;  %v2872_v15 = vmax.f32 %v1886_v1, 0.0  ;;  %v16171_v51 = vld [vmem:[%s17278_s28 + $0x278] sm:$0xff]  }
 0x13a   : > { %v2006_v28 = vadd.f32 %v14854_v62, %v17495_v46  ;;  %v1997_v29 = vpop.f32.mrb[41].mxu0  ;;  %v2875_v19 = vmax.f32 %v1897_v54, 0.0  ;;  %v2878_v31 = vmax.f32 %v17593_v56, 0.0  ;;  %v2876_v22 = vmax.f32 %v17600_v13, 0.0  ;;  %v16216_v56 = vld [vmem:[%s17278_s28 + $0x3f0] sm:$0xff]  }
 0x13b   : > { %v1998_v6 = vadd.f32 %v17495_v46, %v1997_v29  ;;  %v14855_v36 = vpop.f32.mrb[42].mxu0  ;;  %v2873_v29 = vmax.f32 %v1889_v12, 0.0 }
 0x13c   : > { %v2902_v7 = vmax.f32 %v2006_v28, 0.0  ;;  %v2009_v45 = vadd.f32 %v14855_v36, %v17495_v46  ;;  %v2000_v8 = vpop.f32.mrb[43].mxu0  ;;  %v16214_v28 = vld [vmem:[%s17278_s28 + $0x3e8] sm:$0xff]  }
 0x13d   : > { %v2900_v10 = vmax.f32 %v1998_v6, 0.0  ;;  %v2001_v0 = vadd.f32 %v17495_v46, %v2000_v8 }
 0x13e   : > { %v2903_v52 = vmax.f32 %v2009_v45, 0.0  ;;  %14961 = vmatmul.mubr.msk.bf16.gmra.mrb[148].mxu0 %vm1418_vm0, %v16167_v9  ;;  %v17580_v53 = vadd.f32 %v2902_v7, %v2870_v44  ;;  %v16212_v9 = vld [vmem:[%s17278_s28 + $0x3e0] sm:$0xff]   ;;  %v2879_v7 = vmax.f32 %v17607_v3, 0.0  ;;  %v2877_v45 = vmax.f32 %v17611_v16, 0.0  ;;  %v16218_v3 = vld [vmem:[%s17278_s28 + $0x3f8] sm:$0xff]  }
 0x13f   : > { %v2901_v55 = vmax.f32 %v2001_v0, 0.0  ;;  %14964 = vmatprep.mubr.msk.bf16.mxu0 %vm1418_vm0, %v16168_v39  ;;  %v17587_v2 = vadd.f32 %v2900_v10, %v2868_v48  ;;  %15060 = vmatprep.mubr.msk.bf16.mxu1 %vm1418_vm0, %v16212_v9  ;;  %v1926_v39 = vadd.f32 %v17451_v24, %v17495_v46  ;;  %v1929_v24 = vadd.f32 %v17456_v27, %v17495_v46 }
 0x140   : > { %v17596_v4 = vadd.f32 %v2903_v52, %v2871_v49  ;;  %15061 = vmatmul.mubr.msk.bf16.gmra.mrb[24].mxu1 %vm1418_vm0, %v16214_v28  ;;  %v1918_v49 = vadd.f32 %v17495_v46, %v17453_v25  ;;  %v16173_v28 = vld [vmem:[%s17278_s28 + $0x288] sm:$0xff]  }
 0x141   : > { %v14858_v14 = vpop.f32.mrb[44].mxu0  ;;  %v17603_v58 = vadd.f32 %v2901_v55, %v2869_v50  ;;  %v1921_v50 = vadd.f32 %v17495_v46, %v17460_v30  ;;  %v2882_v1 = vmax.f32 %v1926_v39, 0.0  ;;  %v16172_v55 = vld [vmem:[%s17278_s28 + $0x280] sm:$0xff]   ;;  %v2883_v13 = vmax.f32 %v1929_v24, 0.0  ;;  %15064 = vmatprep.mubr.msk.bf16.mxu1 %vm1418_vm0, %v16216_v56 }
 0x142   : > { %v2022_v18 = vadd.f32 %v14858_v14, %v17495_v46  ;;  %v2013_v59 = vpop.f32.mrb[45].mxu0 }
 0x143   : > { %v2014_v62 = vadd.f32 %v17495_v46, %v2013_v59  ;;  %v14859_v23 = vpop.f32.mrb[46].mxu0  ;;  %v2881_v30 = vmax.f32 %v1921_v50, 0.0 }
 0x144   : > { %v2906_v20 = vmax.f32 %v2022_v18, 0.0  ;;  %v2025_v6 = vadd.f32 %v14859_v23, %v17495_v46  ;;  %v2016_v36 = vpop.f32.mrb[47].mxu0 }
 0x145   : > { %v2904_v42 = vmax.f32 %v2014_v62, 0.0  ;;  %v2017_v44 = vadd.f32 %v17495_v46, %v2016_v36 }
 0x146   : > { %v2907_v8 = vmax.f32 %v2025_v6, 0.0  ;;  %14965 = vmatmul.mubr.msk.bf16.gmra.mrb[152].mxu0 %vm1418_vm0, %v16169_v57  ;;  %v17628_v48 = vadd.f32 %v2906_v20, %v2874_v11  ;;  %v2880_v57 = vmax.f32 %v1918_v49, 0.0  ;;  %v16174_v6 = vld [vmem:[%s17278_s28 + $0x290] sm:$0xff]  }
 0x147   : > { %v2905_v10 = vmax.f32 %v2017_v44, 0.0  ;;  %14968 = vmatprep.mubr.msk.bf16.mxu0 %vm1418_vm0, %v16170_v61  ;;  %v17635_v0 = vadd.f32 %v2904_v42, %v2872_v15 }
 0x148   : > { %v17640_v52 = vadd.f32 %v2907_v8, %v2875_v19  ;;  %15065 = vmatmul.mubr.msk.bf16.gmra.mrb[28].mxu1 %vm1418_vm0, %v16218_v3 }
 0x149   : > { %v14862_v54 = vpop.f32.mrb[48].mxu0  ;;  %v17643_v12 = vadd.f32 %v2905_v10, %v2873_v29 }
 0x14a   : > { %v2038_v25 = vadd.f32 %v14862_v54, %v17495_v46  ;;  %v2029_v27 = vpop.f32.mrb[49].mxu0  ;;  %v1942_v54 = vadd.f32 %v17467_v32, %v17495_v46 }
 0x14b   : > { %v2030_v14 = vadd.f32 %v17495_v46, %v2029_v27  ;;  %v14863_v61 = vpop.f32.mrb[50].mxu0  ;;  %v1934_v27 = vadd.f32 %v17495_v46, %v17469_v33 }
 0x14c   : > { %v2910_v16 = vmax.f32 %v2038_v25, 0.0  ;;  %v2041_v18 = vadd.f32 %v14863_v61, %v17495_v46  ;;  %v2032_v59 = vpop.f32.mrb[51].mxu0 }
 0x14d   : > { %v2908_v9 = vmax.f32 %v2030_v14, 0.0  ;;  %v2033_v11 = vadd.f32 %v17495_v46, %v2032_v59  ;;  %v16176_v14 = vld [vmem:[%s17278_s28 + $0x2a0] sm:$0xff]  }
 0x14e   : > { %v2911_v15 = vmax.f32 %v2041_v18, 0.0  ;;  %14969 = vmatmul.mubr.msk.bf16.gmra.mrb[156].mxu0 %vm1418_vm0, %v16171_v51  ;;  %v17654_v19 = vadd.f32 %v2910_v16, %v2878_v31  ;;  %v1937_v16 = vadd.f32 %v17495_v46, %v17476_v38  ;;  %v2886_v18 = vmax.f32 %v1942_v54, 0.0 }
 0x14f   : > { %v2909_v62 = vmax.f32 %v2033_v11, 0.0  ;;  %14972 = vmatprep.mubr.msk.bf16.mxu0 %vm1418_vm0, %v16172_v55  ;;  %v17657_v23 = vadd.f32 %v2908_v9, %v2876_v22  ;;  %v16175_v55 = vld [vmem:[%s17278_s28 + $0x298] sm:$0xff]  }
 0x150   : > { %v17660_v29 = vadd.f32 %v2911_v15, %v2879_v7  ;;  %v2885_v38 = vmax.f32 %v1937_v16, 0.0 }
 0x151   : > { %v14866_v20 = vpop.f32.mrb[52].mxu0  ;;  %v17663_v36 = vadd.f32 %v2909_v62, %v2877_v45 }
 0x152   : > { %v2054_v39 = vadd.f32 %v14866_v20, %v17495_v46  ;;  %v2045_v42 = vpop.f32.mrb[53].mxu0  ;;  %v1958_v20 = vadd.f32 %v17483_v40, %v17495_v46 }
 0x153   : > { %v2046_v44 = vadd.f32 %v17495_v46, %v2045_v42  ;;  %v14867_v31 = vpop.f32.mrb[54].mxu0  ;;  %v16177_v42 = vld [vmem:[%s17278_s28 + $0x2a8] sm:$0xff]  }
 0x154   : > { %v2914_v8 = vmax.f32 %v2054_v39, 0.0  ;;  %v2057_v49 = vadd.f32 %v14867_v31, %v17495_v46  ;;  %v2048_v22 = vpop.f32.mrb[55].mxu0  ;;  %v1950_v31 = vadd.f32 %v17495_v46, %v17485_v41 }
 0x155   : > { %v2912_v24 = vmax.f32 %v2046_v44, 0.0  ;;  %v2049_v7 = vadd.f32 %v17495_v46, %v2048_v22 }
 0x156   : > { %v2915_v10 = vmax.f32 %v2057_v49, 0.0  ;;  %14973 = vmatmul.mubr.msk.bf16.gmra.mrb[160].mxu0 %vm1418_vm0, %v16173_v28  ;;  %v17670_v45 = vadd.f32 %v2914_v8, %v2882_v1  ;;  %v1945_v1 = vadd.f32 %v17472_v35, %v17495_v46  ;;  %v16178_v49 = vld [vmem:[%s17278_s28 + $0x2b0] sm:$0xff]  }
 0x157   : > { %v2913_v50 = vmax.f32 %v2049_v7, 0.0  ;;  %14976 = vmatprep.mubr.msk.bf16.mxu0 %vm1418_vm0, %v16174_v6  ;;  %v17673_v51 = vadd.f32 %v2912_v24, %v2880_v57  ;;  %v1961_v24 = vadd.f32 %v17488_v43, %v17495_v46 }
 0x158   : > { %v17678_v25 = vadd.f32 %v2915_v10, %v2883_v13  ;;  %v2887_v15 = vmax.f32 %v1945_v1, 0.0  ;;  %v2890_v10 = vmax.f32 %v1958_v20, 0.0 }
 0x159   : > { %v14870_v56 = vpop.f32.mrb[56].mxu0  ;;  %v17683_v61 = vadd.f32 %v2913_v50, %v2881_v30  ;;  %v2884_v30 = vmax.f32 %v1934_v27, 0.0  ;;  %v1953_v50 = vadd.f32 %v17495_v46, %v17497_v47  ;;  %v2891_v43 = vmax.f32 %v1961_v24, 0.0 }
 0x15a   : > { %v2070_v3 = vadd.f32 %v14870_v56, %v17495_v46  ;;  %v2061_v57 = vpop.f32.mrb[57].mxu0 }
 0x15b   : > { %v2062_v32 = vadd.f32 %v17495_v46, %v2061_v57  ;;  %v14871_v13 = vpop.f32.mrb[58].mxu0  ;;  %v2889_v47 = vmax.f32 %v1953_v50, 0.0 }
 0x15c   : > { %v2918_v59 = vmax.f32 %v2070_v3, 0.0  ;;  %v2073_v33 = vadd.f32 %v14871_v13, %v17495_v46  ;;  %v2064_v9 = vpop.f32.mrb[59].mxu0 }
 0x15d   : > { %v2916_v11 = vmax.f32 %v2062_v32, 0.0  ;;  %v2065_v35 = vadd.f32 %v17495_v46, %v2064_v9 }
 0x15e   : > { %v2919_v62 = vmax.f32 %v2073_v33, 0.0  ;;  %14977 = vmatmul.mubr.msk.bf16.gmra.mrb[164].mxu0 %vm1418_vm0, %v16175_v55  ;;  %v17694_v28 = vadd.f32 %v2918_v59, %v2886_v18 }
 0x15f   : > { %v2917_v6 = vmax.f32 %v2065_v35, 0.0  ;;  %14980 = vmatprep.mubr.msk.bf16.mxu0 %vm1418_vm0, %v16176_v14  ;;  %v17699_v39 = vadd.f32 %v2916_v11, %v2884_v30  ;;  %v2888_v14 = vmax.f32 %v1950_v31, 0.0  ;;  %v16179_v11 = vld [vmem:[%s17278_s28 + $0x2b8] sm:$0xff]  }
 0x160   : > { %v17702_v44 = vadd.f32 %v2919_v62, %v2887_v15  ;;  %v16180_v62 = vld [vmem:[%s17278_s28 + $0x2c0] sm:$0xff]  }
 0x161   : > { %v14874_v8 = vpop.f32.mrb[60].mxu0  ;;  %v17707_v22 = vadd.f32 %v2917_v6, %v2885_v38 }
 0x162   : > { %v2086_v40 = vadd.f32 %v14874_v8, %v17495_v46  ;;  %v2077_v7 = vpop.f32.mrb[61].mxu0 }
 0x163   : > { %v2078_v54 = vadd.f32 %v17495_v46, %v2077_v7  ;;  %v14875_v55 = vpop.f32.mrb[62].mxu0 }
 0x164   : > { %v2922_v27 = vmax.f32 %v2086_v40, 0.0  ;;  %v2089_v41 = vadd.f32 %v14875_v55, %v17495_v46  ;;  %v2080_v56 = vpop.f32.mrb[63].mxu0 }
 0x165   : > { %v2920_v1 = vmax.f32 %v2078_v54, 0.0  ;;  %v2081_v3 = vadd.f32 %v17495_v46, %v2080_v56  ;;  %v16182_v56 = vld [vmem:[%s17278_s28 + $0x2d0] sm:$0xff]  }
 0x166   : > { %v2923_v57 = vmax.f32 %v2089_v41, 0.0  ;;  %14981 = vmatmul.mubr.msk.bf16.gmra.mrb[168].mxu0 %vm1418_vm0, %v16177_v42  ;;  %v17718_v16 = vadd.f32 %v2922_v27, %v2890_v10  ;;  %v16181_v27 = vld [vmem:[%s17278_s28 + $0x2c8] sm:$0xff]  }
 0x167   : > { %v2921_v32 = vmax.f32 %v2081_v3, 0.0  ;;  %14984 = vmatprep.mubr.msk.bf16.mxu0 %vm1418_vm0, %v16178_v49  ;;  %v17721_v13 = vadd.f32 %v2920_v1, %v2888_v14 }
 0x168   : > { %v17723_v18 = vadd.f32 %v2923_v57, %v2891_v43 }
 0x169   : > { %v14878_v59 = vpop.f32.mrb[64].mxu0  ;;  %v17725_v33 = vadd.f32 %v2921_v32, %v2889_v47 }
 0x16a   : > { %v2102_v9 = vadd.f32 %v14878_v59, %v17495_v46  ;;  %v2093_v30 = vpop.f32.mrb[65].mxu0 }
 0x16b   : > { %v2094_v35 = vadd.f32 %v17495_v46, %v2093_v30  ;;  %v14879_v15 = vpop.f32.mrb[66].mxu0 }
 0x16c   : > { %v2926_v38 = vmax.f32 %v2102_v9, 0.0  ;;  %v2105_v20 = vadd.f32 %v14879_v15, %v17495_v46  ;;  %v2096_v6 = vpop.f32.mrb[67].mxu0 }
 0x16d   : > { %v2924_v42 = vmax.f32 %v2094_v35, 0.0  ;;  %v2097_v31 = vadd.f32 %v17495_v46, %v2096_v6  ;;  %v16183_v35 = vld [vmem:[%s17278_s28 + $0x2d8] sm:$0xff]  }
 0x16e   : > { %v2927_v8 = vmax.f32 %v2105_v20, 0.0  ;;  %14985 = vmatmul.mubr.msk.bf16.gmra.mrb[172].mxu0 %vm1418_vm0, %v16179_v11  ;;  %v17735_v49 = vadd.f32 %v17522_v21, %v2926_v38 }
 0x16f   : > { %v2925_v24 = vmax.f32 %v2097_v31, 0.0  ;;  %14988 = vmatprep.mubr.msk.bf16.mxu0 %vm1418_vm0, %v16180_v62  ;;  %v17739_v40 = vadd.f32 %v17524_v26, %v2924_v42  ;;  %v16184_v62 = vld [vmem:[%s17278_s28 + $0x2e0] sm:$0xff]  }
 0x170   : > { %v17742_v7 = vadd.f32 %v17530_v34, %v2927_v8 }
 0x171   : > { %v14882_v10 = vpop.f32.mrb[68].mxu0  ;;  %v17745_v50 = vadd.f32 %v17534_v37, %v2925_v24 }
 0x172   : > { %v2118_v54 = vadd.f32 %v14882_v10, %v17495_v46  ;;  %v2109_v55 = vpop.f32.mrb[69].mxu0 }
 0x173   : > { %v2110_v21 = vadd.f32 %v17495_v46, %v2109_v55  ;;  %v14883_v41 = vpop.f32.mrb[70].mxu0 }
 0x174   : > { %v2930_v14 = vmax.f32 %v2118_v54, 0.0  ;;  %v2121_v26 = vadd.f32 %v14883_v41, %v17495_v46  ;;  %v2112_v1 = vpop.f32.mrb[71].mxu0  ;;  %v16186_v41 = vld [vmem:[%s17278_s28 + $0x2f0] sm:$0xff]  }
 0x175   : > { %v2928_v3 = vmax.f32 %v2110_v21, 0.0  ;;  %v2113_v34 = vadd.f32 %v17495_v46, %v2112_v1 }
 0x176   : > { %v2931_v43 = vmax.f32 %v2121_v26, 0.0  ;;  %14989 = vmatmul.mubr.msk.bf16.gmra.mrb[176].mxu0 %vm1418_vm0, %v16181_v27  ;;  %v17755_v37 = vadd.f32 %v17550_v63, %v2930_v14  ;;  %v16185_v27 = vld [vmem:[%s17278_s28 + $0x2e8] sm:$0xff]  }
 0x177   : > { %v2929_v57 = vmax.f32 %v2113_v34, 0.0  ;;  %14992 = vmatprep.mubr.msk.bf16.mxu0 %vm1418_vm0, %v16182_v56  ;;  %v17759_v47 = vadd.f32 %v17553_v5, %v2928_v3 }
 0x178   : > { %v17762_v32 = vadd.f32 %v17558_v60, %v2931_v43 }
 0x179   : > { %v14886_v59 = vpop.f32.mrb[72].mxu0  ;;  %v17765_v9 = vadd.f32 %v17564_v17, %v2929_v57 }
 0x17a   : > { %v2134_v30 = vadd.f32 %v14886_v59, %v17495_v46  ;;  %v2125_v11 = vpop.f32.mrb[73].mxu0 }
 0x17b   : > { %v2126_v63 = vadd.f32 %v17495_v46, %v2125_v11  ;;  %v14887_v15 = vpop.f32.mrb[74].mxu0 }
 0x17c   : > { %v2934_v38 = vmax.f32 %v2134_v30, 0.0  ;;  %v2137_v20 = vadd.f32 %v14887_v15, %v17495_v46  ;;  %v2128_v5 = vpop.f32.mrb[75].mxu0 }
 0x17d   : > { %v2932_v6 = vmax.f32 %v2126_v63, 0.0  ;;  %v2129_v60 = vadd.f32 %v17495_v46, %v2128_v5  ;;  %v17790_v46 = vld [vmem:[%s22658_s3] ss:$0 sm:$0xff]  ;;  %v16187_v63 = vld [vmem:[%s17278_s28 + $0x2f8] sm:$0xff]  }
 0x17e   : > { %v2935_v42 = vmax.f32 %v2137_v20, 0.0  ;;  %14993 = vmatmul.mubr.msk.bf16.gmra.mrb[180].mxu0 %vm1418_vm0, %v16183_v35  ;;  %v17775_v17 = vadd.f32 %v17580_v53, %v2934_v38 }
 0x17f   : > { %v2933_v31 = vmax.f32 %v2129_v60, 0.0  ;;  %14996 = vmatprep.mubr.msk.bf16.mxu0 %vm1418_vm0, %v16184_v62  ;;  %v17779_v8 = vadd.f32 %v17587_v2, %v2932_v6  ;;  %v16189_v62 = vld [vmem:[%s17278_s28 + $0x300] sm:$0xff]  }
 0x180   : > { %v17782_v24 = vadd.f32 %v17596_v4, %v2935_v42 }
 0x181   : > { %v14890_v10 = vpop.f32.mrb[76].mxu0  ;;  %v17785_v54 = vadd.f32 %v17603_v58, %v2933_v31 }
 0x182   : > { %v2150_v53 = vadd.f32 %v17790_v46, %v14890_v10  ;;  %v2141_v55 = vpop.f32.mrb[77].mxu0 }
 0x183   : > { %v2142_v21 = vadd.f32 %v17790_v46, %v2141_v55  ;;  %v14891_v2 = vpop.f32.mrb[78].mxu0 }
 0x184   : > { %v2938_v56 = vmax.f32 %v2150_v53, 0.0  ;;  %v2153_v4 = vadd.f32 %v17790_v46, %v14891_v2  ;;  %v2144_v14 = vpop.f32.mrb[79].mxu0 }
 0x185   : > { %v2936_v58 = vmax.f32 %v2142_v21, 0.0  ;;  %v2145_v26 = vadd.f32 %v17790_v46, %v2144_v14  ;;  %v16191_v21 = vld [vmem:[%s17278_s28 + $0x308] sm:$0xff]  }
 0x186   : > { %v2939_v1 = vmax.f32 %v2153_v4, 0.0  ;;  %14997 = vmatmul.mubr.msk.bf16.gmra.mrb[184].mxu0 %vm1418_vm0, %v16185_v27  ;;  %v17800_v3 = vadd.f32 %v17628_v48, %v2938_v56 }
 0x187   : > { %v2937_v34 = vmax.f32 %v2145_v26, 0.0  ;;  %15000 = vmatprep.mubr.msk.bf16.mxu0 %vm1418_vm0, %v16186_v41  ;;  %v17804_v43 = vadd.f32 %v17635_v0, %v2936_v58  ;;  %v16193_v41 = vld [vmem:[%s17278_s28 + $0x310] sm:$0xff]  }
 0x188   : > { %v17807_v57 = vadd.f32 %v17640_v52, %v2939_v1 }
 0x189   : > { %v14894_v59 = vpop.f32.mrb[80].mxu0  ;;  %v17810_v30 = vadd.f32 %v17643_v12, %v2937_v34 }
 0x18a   : > { %v2166_v11 = vadd.f32 %v17790_v46, %v14894_v59  ;;  %v2157_v35 = vpop.f32.mrb[81].mxu0 }
 0x18b   : > { %v2158_v48 = vadd.f32 %v17790_v46, %v2157_v35  ;;  %v14895_v15 = vpop.f32.mrb[82].mxu0 }
 0x18c   : > { %v2942_v38 = vmax.f32 %v2166_v11, 0.0  ;;  %v2169_v0 = vadd.f32 %v17790_v46, %v14895_v15  ;;  %v2160_v20 = vpop.f32.mrb[83].mxu0 }
 0x18d   : > { %v2940_v5 = vmax.f32 %v2158_v48, 0.0  ;;  %v2161_v52 = vadd.f32 %v17790_v46, %v2160_v20  ;;  %v16195_v48 = vld [vmem:[%s17278_s28 + $0x318] sm:$0xff]  }
 0x18e   : > { %v2943_v6 = vmax.f32 %v2169_v0, 0.0  ;;  %15001 = vmatmul.mubr.msk.bf16.gmra.mrb[188].mxu0 %vm1418_vm0, %v16187_v63  ;;  %v17820_v12 = vadd.f32 %v17654_v19, %v2942_v38 }
 0x18f   : > { %v2941_v60 = vmax.f32 %v2161_v52, 0.0  ;;  %15004 = vmatprep.mubr.msk.bf16.mxu0 %vm1418_vm0, %v16189_v62  ;;  %v17824_v42 = vadd.f32 %v17657_v23, %v2940_v5  ;;  %v16197_v62 = vld [vmem:[%s17278_s28 + $0x320] sm:$0xff]  }
 0x190   : > { %v17827_v31 = vadd.f32 %v17660_v29, %v2943_v6 }
 0x191   : > { %v14898_v10 = vpop.f32.mrb[84].mxu0  ;;  %v17830_v53 = vadd.f32 %v17663_v36, %v2941_v60 }
 0x192   : > { %v2182_v55 = vadd.f32 %v17790_v46, %v14898_v10  ;;  %v2173_v27 = vpop.f32.mrb[85].mxu0 }
 0x193   : > { %v2174_v19 = vadd.f32 %v17790_v46, %v2173_v27  ;;  %v14899_v2 = vpop.f32.mrb[86].mxu0 }
 0x194   : > { %v2946_v56 = vmax.f32 %v2182_v55, 0.0  ;;  %v2185_v23 = vadd.f32 %v17790_v46, %v14899_v2  ;;  %v2176_v4 = vpop.f32.mrb[87].mxu0 }
 0x195   : > { %v2944_v14 = vmax.f32 %v2174_v19, 0.0  ;;  %v2177_v29 = vadd.f32 %v17790_v46, %v2176_v4  ;;  %v16199_v19 = vld [vmem:[%s17278_s28 + $0x328] sm:$0xff]  }
 0x196   : > { %v2947_v58 = vmax.f32 %v2185_v23, 0.0  ;;  %15005 = vmatmul.mubr.msk.bf16.gmra.mrb[192].mxu0 %vm1418_vm0, %v16191_v21  ;;  %v17840_v36 = vadd.f32 %v17670_v45, %v2946_v56 }
 0x197   : > { %v2945_v26 = vmax.f32 %v2177_v29, 0.0  ;;  %15008 = vmatprep.mubr.msk.bf16.mxu0 %vm1418_vm0, %v16193_v41  ;;  %v17844_v1 = vadd.f32 %v17673_v51, %v2944_v14  ;;  %v16201_v41 = vld [vmem:[%s17278_s28 + $0x330] sm:$0xff]  }
 0x198   : > { %v17847_v34 = vadd.f32 %v17678_v25, %v2947_v58 }
 0x199   : > { %v14902_v59 = vpop.f32.mrb[88].mxu0  ;;  %v17850_v11 = vadd.f32 %v17683_v61, %v2945_v26 }
 0x19a   : > { %v2198_v35 = vadd.f32 %v17790_v46, %v14902_v59  ;;  %v2189_v63 = vpop.f32.mrb[89].mxu0 }
 0x19b   : > { %v2190_v45 = vadd.f32 %v17790_v46, %v2189_v63  ;;  %v14903_v15 = vpop.f32.mrb[90].mxu0 }
 0x19c   : > { %v2950_v38 = vmax.f32 %v2198_v35, 0.0  ;;  %v2201_v51 = vadd.f32 %v17790_v46, %v14903_v15  ;;  %v2192_v0 = vpop.f32.mrb[91].mxu0 }
 0x19d   : > { %v2948_v20 = vmax.f32 %v2190_v45, 0.0  ;;  %v2193_v25 = vadd.f32 %v17790_v46, %v2192_v0  ;;  %v16203_v45 = vld [vmem:[%s17278_s28 + $0x338] sm:$0xff]  }
 0x19e   : > { %v2951_v5 = vmax.f32 %v2201_v51, 0.0  ;;  %15009 = vmatmul.mubr.msk.bf16.gmra.mrb[196].mxu0 %vm1418_vm0, %v16195_v48  ;;  %v17860_v61 = vadd.f32 %v17694_v28, %v2950_v38 }
 0x19f   : > { %v2949_v52 = vmax.f32 %v2193_v25, 0.0  ;;  %15012 = vmatprep.mubr.msk.bf16.mxu0 %vm1418_vm0, %v16197_v62  ;;  %v17864_v6 = vadd.f32 %v17699_v39, %v2948_v20  ;;  %v16205_v62 = vld [vmem:[%s17278_s28 + $0x340] sm:$0xff]  }
 0x1a0   : > { %v17867_v60 = vadd.f32 %v17702_v44, %v2951_v5 }
 0x1a1   : > { %v14906_v10 = vpop.f32.mrb[92].mxu0  ;;  %v17870_v55 = vadd.f32 %v17707_v22, %v2949_v52 }
 0x1a2   : > { %v2214_v27 = vadd.f32 %v17790_v46, %v14906_v10  ;;  %v2205_v21 = vpop.f32.mrb[93].mxu0 }
 0x1a3   : > { %v2206_v28 = vadd.f32 %v17790_v46, %v2205_v21  ;;  %v14907_v2 = vpop.f32.mrb[94].mxu0 }
 0x1a4   : > { %v2954_v56 = vmax.f32 %v2214_v27, 0.0  ;;  %v2217_v39 = vadd.f32 %v17790_v46, %v14907_v2  ;;  %v2208_v23 = vpop.f32.mrb[95].mxu0 }
 0x1a5   : > { %v2952_v4 = vmax.f32 %v2206_v28, 0.0  ;;  %v2209_v44 = vadd.f32 %v17790_v46, %v2208_v23  ;;  %v16207_v28 = vld [vmem:[%s17278_s28 + $0x348] sm:$0xff]  }
 0x1a6   : > { %v2955_v14 = vmax.f32 %v2217_v39, 0.0  ;;  %15013 = vmatmul.mubr.msk.bf16.gmra.mrb[200].mxu0 %vm1418_vm0, %v16199_v19  ;;  %v17880_v22 = vadd.f32 %v17718_v16, %v2954_v56 }
 0x1a7   : > { %v2953_v29 = vmax.f32 %v2209_v44, 0.0  ;;  %15016 = vmatprep.mubr.msk.bf16.mxu0 %vm1418_vm0, %v16201_v41  ;;  %v17884_v58 = vadd.f32 %v17721_v13, %v2952_v4 }
 0x1a8   : > { %v17887_v26 = vadd.f32 %v17723_v18, %v2955_v14 }
 0x1a9   : > { %v14910_v59 = vpop.f32.mrb[96].mxu0  ;;  %v17890_v35 = vadd.f32 %v17725_v33, %v2953_v29 }
 0x1aa   : > { %v2230_v63 = vadd.f32 %v17790_v46, %v14910_v59  ;;  %v2221_v48 = vpop.f32.mrb[97].mxu0 }
 0x1ab   : > { %v2222_v16 = vadd.f32 %v17790_v46, %v2221_v48  ;;  %v14911_v15 = vpop.f32.mrb[98].mxu0 }
 0x1ac   : > { %v2958_v38 = vmax.f32 %v2230_v63, 0.0  ;;  %v2233_v13 = vadd.f32 %v17790_v46, %v14911_v15  ;;  %v2224_v51 = vpop.f32.mrb[99].mxu0 }
 0x1ad   : > { %v2956_v0 = vmax.f32 %v2222_v16, 0.0  ;;  %v2225_v18 = vadd.f32 %v17790_v46, %v2224_v51 }
 0x1ae   : > { %v2959_v20 = vmax.f32 %v2233_v13, 0.0  ;;  %15017 = vmatmul.mubr.msk.bf16.gmra.mrb[204].mxu0 %vm1418_vm0, %v16203_v45  ;;  %v3182_v33 = vadd.f32 %v17735_v49, %v2958_v38 }
 0x1af   : > { %v3180_v25 = vadd.f32 %v17739_v40, %v2956_v0  ;;  %v2957_v5 = vmax.f32 %v2225_v18, 0.0  ;;  %15020 = vmatprep.mubr.msk.bf16.mxu0 %vm1418_vm0, %v16205_v62  ;;  %v16209_v40 = vld [vmem:[%s17278_s28 + $0x350] sm:$0xff]   ;;  %v16211_v0 = vld [vmem:[%s17278_s28 + $0x358] sm:$0xff]  }
 0x1b0   : > { %v3183_v52 = vadd.f32 %v17742_v7, %v2959_v20  ;;  %v3214_v2 = vmul.f32 0.25, %v3182_v33 }
 0x1b1   : > { %v3181_v10 = vadd.f32 %v17745_v50, %v2957_v5  ;;  %v14914_v27 = vpop.f32.mrb[100].mxu0  ;;  %v3212_v56 = vmul.f32 0.25, %v3180_v25 }
 0x1b2   : > { %v2246_v21 = vadd.f32 %v17790_v46, %v14914_v27  ;;  %v2237_v19 = vpop.f32.mrb[101].mxu0  ;;  %v3215_v41 = vmul.f32 0.25, %v3183_v52 }
 0x1b3   : > { %v3213_v39 = vmul.f32 0.25, %v3181_v10  ;;  %v2238_v49 = vadd.f32 %v17790_v46, %v2237_v19  ;;  %v14915_v23 = vpop.f32.mrb[102].mxu0 }
 0x1b4   : > { %v2962_v4 = vmax.f32 %v2246_v21, 0.0  ;;  %v2249_v44 = vadd.f32 %v17790_v46, %v14915_v23  ;;  %v2240_v14 = vpop.f32.mrb[103].mxu0  ;;  %v17909_v7 = vpack.c.bf16 %v3215_v41, %v3214_v2 }
 0x1b5   : > { %v17911_v50 = vpack.c.bf16 %v3213_v39, %v3212_v56  ;;  %v2960_v29 = vmax.f32 %v2238_v49, 0.0  ;;  %v2241_v59 = vadd.f32 %v17790_v46, %v2240_v14 }
 0x1b6   : > { %22856 = vst [vmem:[#allocation2_spill] sm:$0xff] %v17909_v7  ;;  %v2963_v63 = vmax.f32 %v2249_v44, 0.0  ;;  %15021 = vmatmul.mubr.msk.bf16.gmra.mrb[208].mxu0 %vm1418_vm0, %v16207_v28  ;;  %v3186_v48 = vadd.f32 %v17755_v37, %v2962_v4  ;;  %v16213_v37 = vld [vmem:[%s17278_s28 + $0x360] sm:$0xff]   ;;  %v16215_v44 = vld [vmem:[%s17278_s28 + $0x368] sm:$0xff]  }
 0x1b7   : > { %22857 = vst [vmem:[#allocation3_spill] sm:$0xff] %v17911_v50  ;;  %v2961_v45 = vmax.f32 %v2241_v59, 0.0  ;;  %15024 = vmatprep.mubr.msk.bf16.mxu0 %vm1418_vm0, %v16209_v40  ;;  %v3184_v16 = vadd.f32 %v17759_v47, %v2960_v29 }
 0x1b8   : > { %v3187_v15 = vadd.f32 %v17762_v32, %v2963_v63  ;;  %v3218_v18 = vmul.f32 0.25, %v3186_v48 }
 0x1b9   : > { %v14918_v62 = vpop.f32.mrb[104].mxu0  ;;  %v3185_v38 = vadd.f32 %v17765_v9, %v2961_v45  ;;  %v3216_v5 = vmul.f32 0.25, %v3184_v16 }
 0x1ba   : > { %v2262_v13 = vadd.f32 %v17790_v46, %v14918_v62  ;;  %v2253_v51 = vpop.f32.mrb[105].mxu0  ;;  %v3219_v20 = vmul.f32 0.25, %v3187_v15 }
 0x1bb   : > { %v2254_v33 = vadd.f32 %v17790_v46, %v2253_v51  ;;  %v14919_v25 = vpop.f32.mrb[106].mxu0  ;;  %v3217_v52 = vmul.f32 0.25, %v3185_v38 }
 0x1bc   : > { %v2966_v10 = vmax.f32 %v2262_v13, 0.0  ;;  %v2265_v47 = vadd.f32 %v17790_v46, %v14919_v25  ;;  %v2256_v27 = vpop.f32.mrb[107].mxu0  ;;  %v17925_v32 = vpack.c.bf16 %v3219_v20, %v3218_v18 }
 0x1bd   : > { %v2964_v9 = vmax.f32 %v2254_v33, 0.0  ;;  %v2257_v21 = vadd.f32 %v17790_v46, %v2256_v27  ;;  %v17928_v19 = vpack.c.bf16 %v3217_v52, %v3216_v5  ;;  %v16219_v52 = vld [vmem:[%s17278_s28 + $0x378] sm:$0xff]  }
 0x1be   : > { %22858 = vst [vmem:[#allocation4_spill] sm:$0xff] %v17925_v32  ;;  %v2967_v28 = vmax.f32 %v2265_v47, 0.0  ;;  %15025 = vmatmul.mubr.msk.bf16.gmra.mrb[212].mxu0 %vm1418_vm0, %v16211_v0  ;;  %v3190_v2 = vadd.f32 %v17775_v17, %v2966_v10  ;;  %v16217_v17 = vld [vmem:[%s17278_s28 + $0x370] sm:$0xff]  }
 0x1bf   : > { %22859 = vst [vmem:[#allocation5_spill] sm:$0xff] %v17928_v19  ;;  %v2965_v41 = vmax.f32 %v2257_v21, 0.0  ;;  %15028 = vmatprep.mubr.msk.bf16.mxu0 %vm1418_vm0, %v16213_v37  ;;  %v3188_v56 = vadd.f32 %v17779_v8, %v2964_v9 }
 0x1c0   : > { %v3191_v39 = vadd.f32 %v17782_v24, %v2967_v28  ;;  %v3222_v14 = vmul.f32 0.25, %v3190_v2 }
 0x1c1   : > { %v14922_v49 = vpop.f32.mrb[108].mxu0  ;;  %v3189_v23 = vadd.f32 %v17785_v54, %v2965_v41  ;;  %v3220_v48 = vmul.f32 0.25, %v3188_v56 }
 0x1c2   : > { %v2278_v40 = vadd.f32 %v17790_v46, %v14922_v49  ;;  %v2269_v4 = vpop.f32.mrb[109].mxu0  ;;  %v3223_v29 = vmul.f32 0.25, %v3191_v39 }
 0x1c3   : > { %v2270_v59 = vadd.f32 %v17790_v46, %v2269_v4  ;;  %v14923_v63 = vpop.f32.mrb[110].mxu0  ;;  %v3221_v45 = vmul.f32 0.25, %v3189_v23 }
 0x1c4   : > { %v2970_v16 = vmax.f32 %v2278_v40, 0.0  ;;  %v2281_v8 = vadd.f32 %v17790_v46, %v14923_v63  ;;  %v2272_v15 = vpop.f32.mrb[111].mxu0  ;;  %v17941_v24 = vpack.c.bf16 %v3223_v29, %v3222_v14 }
 0x1c5   : > { %v2968_v54 = vmax.f32 %v2270_v59, 0.0  ;;  %v2273_v62 = vadd.f32 %v17790_v46, %v2272_v15  ;;  %v17944_v38 = vpack.c.bf16 %v3221_v45, %v3220_v48 }
 0x1c6   : > { %22860 = vst [vmem:[#allocation6_spill] sm:$0xff] %v17941_v24  ;;  %v2971_v13 = vmax.f32 %v2281_v8, 0.0  ;;  %15029 = vmatmul.mubr.msk.bf16.gmra.mrb[216].mxu0 %vm1418_vm0, %v16215_v44  ;;  %v3194_v51 = vadd.f32 %v17800_v3, %v2970_v16 }
 0x1c7   : > { %22861 = vst [vmem:[#allocation7_spill] sm:$0xff] %v17944_v38  ;;  %v2969_v0 = vmax.f32 %v2273_v62, 0.0  ;;  %15032 = vmatprep.mubr.msk.bf16.mxu0 %vm1418_vm0, %v16217_v17  ;;  %v3192_v18 = vadd.f32 %v17804_v43, %v2968_v54 }
 0x1c8   : > { %v3195_v20 = vadd.f32 %v17807_v57, %v2971_v13  ;;  %v3226_v10 = vmul.f32 0.25, %v3194_v51 }
 0x1c9   : > { %v14926_v33 = vpop.f32.mrb[112].mxu0  ;;  %v3193_v25 = vadd.f32 %v17810_v30, %v2969_v0  ;;  %v3224_v3 = vmul.f32 0.25, %v3192_v18 }
 0x1ca   : > { %v2294_v37 = vadd.f32 %v17790_v46, %v14926_v33  ;;  %v2285_v5 = vpop.f32.mrb[113].mxu0  ;;  %v3227_v47 = vmul.f32 0.25, %v3195_v20 }
 0x1cb   : > { %v2286_v27 = vadd.f32 %v17790_v46, %v2285_v5  ;;  %v14927_v9 = vpop.f32.mrb[114].mxu0  ;;  %v3225_v21 = vmul.f32 0.25, %v3193_v25 }
 0x1cc   : > { %v2974_v28 = vmax.f32 %v2294_v37, 0.0  ;;  %v2297_v2 = vadd.f32 %v17790_v46, %v14927_v9  ;;  %v2288_v43 = vpop.f32.mrb[115].mxu0  ;;  %v17956_v41 = vpack.c.bf16 %v3227_v47, %v3226_v10 }
 0x1cd   : > { %v2972_v57 = vmax.f32 %v2286_v27, 0.0  ;;  %v2289_v30 = vadd.f32 %v17790_v46, %v2288_v43  ;;  %v17959_v56 = vpack.c.bf16 %v3225_v21, %v3224_v3 }
 0x1ce   : > { %22862 = vst [vmem:[#allocation8_spill] sm:$0xff] %v17956_v41  ;;  %v2975_v39 = vmax.f32 %v2297_v2, 0.0  ;;  %15033 = vmatmul.mubr.msk.bf16.gmra.mrb[220].mxu0 %vm1418_vm0, %v16219_v52  ;;  %v3198_v49 = vadd.f32 %v17820_v12, %v2974_v28 }
 0x1cf   : > { %22863 = vst [vmem:[#allocation9_spill] sm:$0xff] %v17959_v56  ;;  %v2973_v23 = vmax.f32 %v2289_v30, 0.0  ;;  %v3196_v40 = vadd.f32 %v17824_v42, %v2972_v57 }
 0x1d0   : > { %v3199_v4 = vadd.f32 %v17827_v31, %v2975_v39  ;;  %v3230_v63 = vmul.f32 0.25, %v3198_v49 }
 0x1d1   : > { %v14930_v44 = vpop.f32.mrb[116].mxu0  ;;  %v3197_v14 = vadd.f32 %v17830_v53, %v2973_v23  ;;  %v3228_v16 = vmul.f32 0.25, %v3196_v40 }
 0x1d2   : > { %v2310_v29 = vadd.f32 %v17790_v46, %v14930_v44  ;;  %v2301_v59 = vpop.f32.mrb[117].mxu0  ;;  %v3231_v17 = vmul.f32 0.25, %v3199_v4 }
 0x1d3   : > { %v2302_v48 = vadd.f32 %v17790_v46, %v2301_v59  ;;  %v14931_v45 = vpop.f32.mrb[118].mxu0  ;;  %v3229_v8 = vmul.f32 0.25, %v3197_v14 }
 0x1d4   : > { %v2978_v15 = vmax.f32 %v2310_v29, 0.0  ;;  %v2313_v12 = vadd.f32 %v17790_v46, %v14931_v45  ;;  %v2304_v54 = vpop.f32.mrb[119].mxu0  ;;  %v17969_v42 = vpack.c.bf16 %v3231_v17, %v3230_v63 }
 0x1d5   : > { %v2976_v31 = vmax.f32 %v2302_v48, 0.0  ;;  %v2305_v62 = vadd.f32 %v17790_v46, %v2304_v54  ;;  %v17972_v53 = vpack.c.bf16 %v3229_v8, %v3228_v16 }
 0x1d6   : > { %22864 = vst [vmem:[#allocation10_spill] sm:$0xff] %v17969_v42  ;;  %v2979_v13 = vmax.f32 %v2313_v12, 0.0  ;;  %v3202_v51 = vadd.f32 %v17840_v36, %v2978_v15 }
 0x1d7   : > { %22865 = vst [vmem:[#allocation11_spill] sm:$0xff] %v17972_v53  ;;  %v2977_v0 = vmax.f32 %v2305_v62, 0.0  ;;  %v3200_v18 = vadd.f32 %v17844_v1, %v2976_v31  ;;  %v18000_v62 = vpop.f32.mrb[0].mxu1 }
 0x1d8   : > { %v3203_v20 = vadd.f32 %v17847_v34, %v2979_v13  ;;  %v3234_v52 = vmul.f32 0.25, %v3202_v51 }
 0x1d9   : > { %v14934_v33 = vpop.f32.mrb[120].mxu0  ;;  %v3201_v25 = vadd.f32 %v17850_v11, %v2977_v0  ;;  %v3232_v9 = vmul.f32 0.25, %v3200_v18  ;;  %v18005_v0 = vpop.f32.mrb[1].mxu1 }
 0x1da   : > { %v2326_v37 = vadd.f32 %v17790_v46, %v14934_v33  ;;  %v2317_v5 = vpop.f32.mrb[121].mxu0  ;;  %v3235_v10 = vmul.f32 0.25, %v3203_v20  ;;  %v18010_v33 = vpop.f32.mrb[2].mxu1 }
 0x1db   : > { %v2318_v47 = vadd.f32 %v17790_v46, %v2317_v5  ;;  %v14935_v27 = vpop.f32.mrb[122].mxu0  ;;  %v3233_v3 = vmul.f32 0.25, %v3201_v25 }
 0x1dc   : > { %v2982_v21 = vmax.f32 %v2326_v37, 0.0  ;;  %v2329_v36 = vadd.f32 %v17790_v46, %v14935_v27  ;;  %v2320_v28 = vpop.f32.mrb[123].mxu0  ;;  %v17981_v1 = vpack.c.bf16 %v3235_v10, %v3234_v52 }
 0x1dd   : > { %v2980_v34 = vmax.f32 %v2318_v47, 0.0  ;;  %v2321_v2 = vadd.f32 %v17790_v46, %v2320_v28  ;;  %v17984_v11 = vpack.c.bf16 %v3233_v3, %v3232_v9 }
 0x1de   : > { %22866 = vst [vmem:[#allocation12_spill] sm:$0xff] %v17981_v1  ;;  %v2983_v43 = vmax.f32 %v2329_v36, 0.0  ;;  %v3206_v57 = vadd.f32 %v17860_v61, %v2982_v21 }
 0x1df   : > { %22867 = vst [vmem:[#allocation13_spill] sm:$0xff] %v17984_v11  ;;  %v2981_v30 = vmax.f32 %v2321_v2, 0.0  ;;  %v3204_v39 = vadd.f32 %v17864_v6, %v2980_v34  ;;  %v22671_v2 = vmov 0.0|0.0  }
 0x1e0   : > { %v3207_v49 = vadd.f32 %v17867_v60, %v2983_v43  ;;  %v3238_v14 = vmul.f32 0.25, %v3206_v57  ;;  %15068 = vmatprep.subr.bf16.mxu1 %v22671_v2 }
 0x1e1   : > { %v14938_v23 = vpop.f32.mrb[124].mxu0  ;;  %v3205_v40 = vadd.f32 %v17870_v55, %v2981_v30  ;;  %v3236_v17 = vmul.f32 0.25, %v3204_v39 }
 0x1e2   : > { %v2342_v4 = vadd.f32 %v17790_v46, %v14938_v23  ;;  %v2333_v44 = vpop.f32.mrb[125].mxu0  ;;  %v3239_v29 = vmul.f32 0.25, %v3207_v49 }
 0x1e3   : > { %v2334_v59 = vadd.f32 %v17790_v46, %v2333_v44  ;;  %v14939_v63 = vpop.f32.mrb[126].mxu0  ;;  %v3237_v48 = vmul.f32 0.25, %v3205_v40 }
 0x1e4   : > { %v2986_v45 = vmax.f32 %v2342_v4, 0.0  ;;  %v2345_v61 = vadd.f32 %v17790_v46, %v14939_v63  ;;  %v2336_v16 = vpop.f32.mrb[127].mxu0  ;;  %v17993_v6 = vpack.c.bf16 %v3239_v29, %v3238_v14 }
 0x1e5   : > { %v2984_v60 = vmax.f32 %v2334_v59, 0.0  ;;  %v2337_v8 = vadd.f32 %v17790_v46, %v2336_v16  ;;  %v17996_v55 = vpack.c.bf16 %v3237_v48, %v3236_v17 }
 0x1e6   : > { %22868 = vst [vmem:[#allocation14_spill] sm:$0xff] %v17993_v6  ;;  %v2987_v15 = vmax.f32 %v2345_v61, 0.0  ;;  %v3210_v12 = vadd.f32 %v17880_v22, %v2986_v45  ;;  %v18014_v22 = vpop.f32.mrb[3].mxu1 }
 0x1e7   : > { %22869 = vst [vmem:[#allocation15_spill] sm:$0xff] %v17996_v55  ;;  %v2985_v54 = vmax.f32 %v2337_v8, 0.0  ;;  %v3208_v31 = vadd.f32 %v17884_v58, %v2984_v60  ;;  %v18022_v27 = vpop.f32.mrb[4].mxu1 }
 0x1e8   : > { %v3211_v13 = vadd.f32 %v17887_v26, %v2987_v15  ;;  %v3242_v26 = vmul.f32 0.25, %v3210_v12  ;;  %v18026_v9 = vpop.f32.mrb[5].mxu1 }
 0x1e9   : > { %v18003_v51 = vpop.f32.mrb[128].mxu0  ;;  %v3209_v18 = vadd.f32 %v17890_v35, %v2985_v54  ;;  %v3240_v58 = vmul.f32 0.25, %v3208_v31  ;;  %v18030_v21 = vpop.f32.mrb[6].mxu1 }
 0x1ea   : > { %v18008_v20 = vpop.f32.mrb[129].mxu0  ;;  %v3243_v25 = vmul.f32 0.25, %v3211_v13  ;;  %v18034_v28 = vpop.f32.mrb[7].mxu1 }
 0x1eb   : > { %v18012_v37 = vpop.f32.mrb[130].mxu0  ;;  %v3241_v5 = vmul.f32 0.25, %v3209_v18  ;;  %v18039_v43 = vpop.f32.mrb[8].mxu1 }
 0x1ec   : > { %v18016_v52 = vpop.f32.mrb[131].mxu0  ;;  %v18020_v47 = vpack.c.bf16 %v3243_v25, %v3242_v26  ;;  %v18043_v30 = vpop.f32.mrb[9].mxu1 }
 0x1ed   : > { %v18018_v10 = vpack.c.bf16 %v3241_v5, %v3240_v58  ;;  %v18047_v49 = vpop.f32.mrb[10].mxu1 }
 0x1ee   : > { %22871 = vst [vmem:[#allocation17_spill] sm:$0xff] %v18020_v47  ;;  %v18051_v40 = vpop.f32.mrb[11].mxu1 }
 0x1ef   : > { %22870 = vst [vmem:[#allocation16_spill] sm:$0xff] %v18018_v10  ;;  %v18055_v44 = vpop.f32.mrb[12].mxu1 }
 0x1f0   : > { %v18059_v29 = vpop.f32.mrb[13].mxu1 }
 0x1f1   : > { %v18024_v35 = vpop.f32.mrb[132].mxu0  ;;  %v18063_v63 = vpop.f32.mrb[14].mxu1 }
 0x1f2   : > { %v18028_v3 = vpop.f32.mrb[133].mxu0  ;;  %22872 = vst [vmem:[#allocation18_spill] sm:$0xff] %v18063_v63  ;;  %v18067_v48 = vpop.f32.mrb[15].mxu1 }
 0x1f3   : > { %v18032_v36 = vpop.f32.mrb[134].mxu0  ;;  %22873 = vst [vmem:[#allocation19_spill] sm:$0xff] %v18067_v48  ;;  %v18071_v61 = vpop.f32.mrb[16].mxu1 }
 0x1f4   : > { %v18036_v34 = vpop.f32.mrb[135].mxu0  ;;  %22874 = vst [vmem:[#allocation20_spill] sm:$0xff] %v18071_v61  ;;  %v18075_v60 = vpop.f32.mrb[17].mxu1 }
 0x1f5   : > { %22875 = vst [vmem:[#allocation21_spill] sm:$0xff] %v18075_v60  ;;  %v18079_v15 = vpop.f32.mrb[18].mxu1 }
 0x1f6   : > { %22876 = vst [vmem:[#allocation22_spill] sm:$0xff] %v18079_v15  ;;  %v18083_v54 = vpop.f32.mrb[19].mxu1 }
 0x1f7   : > { %22877 = vst [vmem:[#allocation23_spill] sm:$0xff] %v18083_v54 }
 0x1f9   : > { %v18041_v57 = vpop.f32.mrb[136].mxu0 }
 0x1fa   : > { %v18045_v39 = vpop.f32.mrb[137].mxu0 }
 0x1fb   : > { %v18049_v23 = vpop.f32.mrb[138].mxu0 }
 0x1fc   : > { %v18053_v4 = vpop.f32.mrb[139].mxu0 }
 0x201   : > { %v18057_v14 = vpop.f32.mrb[140].mxu0 }
 0x202   : > { %v18061_v59 = vpop.f32.mrb[141].mxu0 }
 0x203   : > { %v18065_v17 = vpop.f32.mrb[142].mxu0 }
 0x204   : > { %v18069_v45 = vpop.f32.mrb[143].mxu0 }
 0x209   : > { %v18073_v16 = vpop.f32.mrb[144].mxu0 }
 0x20a   : > { %v18077_v8 = vpop.f32.mrb[145].mxu0 }
 0x20b   : > { %v18081_v12 = vpop.f32.mrb[146].mxu0  ;;  %v18087_v13 = vpop.f32.mrb[20].mxu1 }
 0x20c   : > { %v18085_v31 = vpop.f32.mrb[147].mxu0  ;;  %22878 = vst [vmem:[#allocation24_spill] sm:$0xff] %v18087_v13  ;;  %v18091_v25 = vpop.f32.mrb[21].mxu1 }
 0x20d   : > { %22879 = vst [vmem:[#allocation25_spill] sm:$0xff] %v18091_v25  ;;  %v18095_v5 = vpop.f32.mrb[22].mxu1 }
 0x20e   : > { %22880 = vst [vmem:[#allocation26_spill] sm:$0xff] %v18095_v5  ;;  %v18099_v2 = vpop.f32.mrb[23].mxu1 }
 0x20f   : > { %22881 = vst [vmem:[#allocation27_spill] sm:$0xff] %v18099_v2 }
 0x211   : > { %v18089_v18 = vpop.f32.mrb[148].mxu0 }
 0x212   : > { %v18093_v58 = vpop.f32.mrb[149].mxu0 }
 0x213   : > { %v18097_v26 = vpop.f32.mrb[150].mxu0  ;;  %v18103_v10 = vpop.f32.mrb[24].mxu1 }
 0x214   : > { %v18101_v47 = vpop.f32.mrb[151].mxu0  ;;  %22882 = vst [vmem:[#allocation28_spill] sm:$0xff] %v18103_v10  ;;  %v18107_v55 = vpop.f32.mrb[25].mxu1 }
 0x215   : > { %22883 = vst [vmem:[#allocation29_spill] sm:$0xff] %v18107_v55  ;;  %v18111_v11 = vpop.f32.mrb[26].mxu1 }
 0x216   : > { %22884 = vst [vmem:[#allocation30_spill] sm:$0xff] %v18111_v11  ;;  %v18115_v53 = vpop.f32.mrb[27].mxu1 }
 0x217   : > { %22885 = vst [vmem:[#allocation31_spill] sm:$0xff] %v18115_v53  ;;  %v2358_v53 = vadd.f32 %v17790_v46, %v18003_v51 }
 0x219   : > { %v18105_v6 = vpop.f32.mrb[152].mxu0  ;;  %v2990_v25 = vmax.f32 %v2358_v53, 0.0 }
 0x21a   : > { %v18109_v1 = vpop.f32.mrb[153].mxu0 }
 0x21b   : > { %v18113_v42 = vpop.f32.mrb[154].mxu0  ;;  %v18119_v56 = vpop.f32.mrb[28].mxu1 }
 0x21c   : > { %v18117_v41 = vpop.f32.mrb[155].mxu0  ;;  %22886 = vst [vmem:[#allocation32_spill] sm:$0xff] %v18119_v56  ;;  %v18123_v38 = vpop.f32.mrb[29].mxu1  ;;  %v2350_v56 = vadd.f32 %v17790_v46, %v18008_v20 }
 0x21d   : > { %22887 = vst [vmem:[#allocation33_spill] sm:$0xff] %v18123_v38  ;;  %v18127_v19 = vpop.f32.mrb[30].mxu1  ;;  %v2361_v38 = vadd.f32 %v17790_v46, %v18012_v37 }
 0x21e   : > { %22888 = vst [vmem:[#allocation34_spill] sm:$0xff] %v18127_v19  ;;  %v18131_v50 = vpop.f32.mrb[31].mxu1  ;;  %v2353_v19 = vadd.f32 %v17790_v46, %v18016_v52  ;;  %v2988_v15 = vmax.f32 %v2350_v56, 0.0 }
 0x21f   : > { %22889 = vst [vmem:[#allocation35_spill] sm:$0xff] %v18131_v50  ;;  %v2991_v61 = vmax.f32 %v2361_v38, 0.0  ;;  %v2377_v38 = vadd.f32 %v17790_v46, %v18032_v36 }
 0x220   : > { %v2989_v48 = vmax.f32 %v2353_v19, 0.0 }
 0x221   : > { %v18121_v24 = vpop.f32.mrb[156].mxu0 }
 0x222   : > { %v18125_v32 = vpop.f32.mrb[157].mxu0 }
 0x223   : > { %v18129_v7 = vpop.f32.mrb[158].mxu0 }
 0x224   : > { %v18133_v11 = vpop.f32.mrb[159].mxu0 }
 0x229   : > { %v14974_v55 = vpop.f32.mrb[160].mxu0 }
 0x22a   : > { %v2486_v10 = vadd.f32 %v17790_v46, %v14974_v55  ;;  %v2477_v2 = vpop.f32.mrb[161].mxu0 }
 0x22b   : > { %v2478_v50 = vadd.f32 %v17790_v46, %v2477_v2  ;;  %v14975_v5 = vpop.f32.mrb[162].mxu0  ;;  %v2374_v2 = vadd.f32 %v17790_v46, %v18024_v35 }
 0x22c   : > { %v3022_v13 = vmax.f32 %v2486_v10, 0.0  ;;  %v2489_v51 = vadd.f32 %v17790_v46, %v14975_v5  ;;  %v2480_v54 = vpop.f32.mrb[163].mxu0  ;;  %v2366_v10 = vadd.f32 %v17790_v46, %v18028_v3 }
 0x22d   : > { %v3020_v20 = vmax.f32 %v2478_v50, 0.0  ;;  %v2481_v60 = vadd.f32 %v17790_v46, %v2480_v54  ;;  %v2994_v3 = vmax.f32 %v2374_v2, 0.0  ;;  %v2390_v2 = vadd.f32 %v17790_v46, %v18041_v57 }
 0x22e   : > { %v18147_v37 = vadd.f32 %v3022_v13, %v2990_v25  ;;  %v3023_v55 = vmax.f32 %v2489_v51, 0.0  ;;  %v2992_v36 = vmax.f32 %v2366_v10, 0.0 }
 0x22f   : > { %v18149_v63 = vadd.f32 %v3020_v20, %v2988_v15  ;;  %v3021_v52 = vmax.f32 %v2481_v60, 0.0  ;;  %v2369_v60 = vadd.f32 %v17790_v46, %v18036_v34  ;;  %v2995_v20 = vmax.f32 %v2377_v38, 0.0 }
 0x230   : > { %v18153_v53 = vadd.f32 %v3023_v55, %v2991_v61  ;;  %v3341_v61 = vld [vmem:[%s22656_s1 + $0x8] sm:$0xff]  ;;  %v2393_v38 = vadd.f32 %v17790_v46, %v18049_v23 }
 0x231   : > { %v18157_v56 = vadd.f32 %v3021_v52, %v2989_v48  ;;  %v14978_v50 = vpop.f32.mrb[164].mxu0  ;;  %3468 = vmatprep.mubr.f32.mxu1 %v3341_v61  ;;  %v2993_v52 = vmax.f32 %v2369_v60, 0.0 }
 0x232   : > { %v2502_v54 = vadd.f32 %v17790_v46, %v14978_v50  ;;  %v2493_v19 = vpop.f32.mrb[165].mxu0 }
 0x233   : > { %v2494_v15 = vadd.f32 %v17790_v46, %v2493_v19  ;;  %v14979_v35 = vpop.f32.mrb[166].mxu0 }
 0x234   : > { %v3026_v48 = vmax.f32 %v2502_v54, 0.0  ;;  %v2505_v13 = vadd.f32 %v17790_v46, %v14979_v35  ;;  %v2496_v25 = vpop.f32.mrb[167].mxu0  ;;  %v2382_v35 = vadd.f32 %v17790_v46, %v18045_v39 }
 0x235   : > { %v3024_v5 = vmax.f32 %v2494_v15, 0.0  ;;  %v2497_v51 = vadd.f32 %v17790_v46, %v2496_v25 }
 0x236   : > { %v18170_v55 = vadd.f32 %v3026_v48, %v2994_v3  ;;  %v3027_v34 = vmax.f32 %v2505_v13, 0.0  ;;  %v2385_v3 = vadd.f32 %v17790_v46, %v18053_v4  ;;  %v2998_v13 = vmax.f32 %v2390_v2, 0.0 }
 0x237   : > { %v18172_v50 = vadd.f32 %v3024_v5, %v2992_v36  ;;  %v3025_v19 = vmax.f32 %v2497_v51, 0.0  ;;  %v2996_v5 = vmax.f32 %v2382_v35, 0.0 }
 0x238   : > { %v18176_v54 = vadd.f32 %v3027_v34, %v2995_v20  ;;  %v2999_v34 = vmax.f32 %v2393_v38, 0.0  ;;  %v2409_v38 = vadd.f32 %v17790_v46, %v18065_v17 }
 0x239   : > { %v18180_v10 = vadd.f32 %v3025_v19, %v2993_v52  ;;  %v14982_v15 = vpop.f32.mrb[168].mxu0  ;;  %v2997_v19 = vmax.f32 %v2385_v3, 0.0 }
 0x23a   : > { %v2518_v61 = vadd.f32 %v17790_v46, %v14982_v15  ;;  %v2509_v60 = vpop.f32.mrb[169].mxu0 }
 0x23b   : > { %v2510_v48 = vadd.f32 %v17790_v46, %v2509_v60  ;;  %v14983_v57 = vpop.f32.mrb[170].mxu0  ;;  %v2406_v60 = vadd.f32 %v17790_v46, %v18057_v14 }
 0x23c   : > { %v3030_v25 = vmax.f32 %v2518_v61, 0.0  ;;  %v2521_v36 = vadd.f32 %v17790_v46, %v14983_v57  ;;  %v2512_v39 = vpop.f32.mrb[171].mxu0  ;;  %v2398_v61 = vadd.f32 %v17790_v46, %v18061_v59 }
 0x23d   : > { %v3028_v51 = vmax.f32 %v2510_v48, 0.0  ;;  %v2513_v20 = vadd.f32 %v17790_v46, %v2512_v39 }
 0x23e   : > { %v18190_v23 = vadd.f32 %v3030_v25, %v2998_v13  ;;  %v3031_v52 = vmax.f32 %v2521_v36, 0.0  ;;  %v2401_v13 = vadd.f32 %v17790_v46, %v18069_v45  ;;  %v3002_v36 = vmax.f32 %v2406_v60, 0.0 }
 0x23f   : > { %v18192_v15 = vadd.f32 %v3028_v51, %v2996_v5  ;;  %v3029_v4 = vmax.f32 %v2513_v20, 0.0  ;;  %v3000_v51 = vmax.f32 %v2398_v61, 0.0 }
 0x240   : > { %v18196_v2 = vadd.f32 %v3031_v52, %v2999_v34  ;;  %v3003_v52 = vmax.f32 %v2409_v38, 0.0  ;;  %v2425_v38 = vadd.f32 %v17790_v46, %v18081_v12 }
 0x241   : > { %v18200_v35 = vadd.f32 %v3029_v4, %v2997_v19  ;;  %v14986_v48 = vpop.f32.mrb[172].mxu0  ;;  %v3001_v4 = vmax.f32 %v2401_v13, 0.0 }
 0x242   : > { %v2534_v57 = vadd.f32 %v17790_v46, %v14986_v48  ;;  %v2525_v3 = vpop.f32.mrb[173].mxu0 }
 0x243   : > { %v2526_v25 = vadd.f32 %v17790_v46, %v2525_v3  ;;  %v14987_v14 = vpop.f32.mrb[174].mxu0  ;;  %v2422_v3 = vadd.f32 %v17790_v46, %v18073_v16 }
 0x244   : > { %v3034_v39 = vmax.f32 %v2534_v57, 0.0  ;;  %v2537_v5 = vadd.f32 %v17790_v46, %v14987_v14  ;;  %v2528_v59 = vpop.f32.mrb[175].mxu0  ;;  %v2414_v57 = vadd.f32 %v17790_v46, %v18077_v8 }
 0x245   : > { %v3032_v20 = vmax.f32 %v2526_v25, 0.0  ;;  %v2529_v34 = vadd.f32 %v17790_v46, %v2528_v59 }
 0x246   : > { %v18210_v17 = vadd.f32 %v3034_v39, %v3002_v36  ;;  %v3035_v19 = vmax.f32 %v2537_v5, 0.0  ;;  %v2417_v36 = vadd.f32 %v17790_v46, %v18085_v31  ;;  %v3006_v5 = vmax.f32 %v2422_v3, 0.0 }
 0x247   : > { %v18212_v48 = vadd.f32 %v3032_v20, %v3000_v51  ;;  %v3033_v45 = vmax.f32 %v2529_v34, 0.0  ;;  %v3004_v20 = vmax.f32 %v2414_v57, 0.0 }
 0x248   : > { %v18216_v60 = vadd.f32 %v3035_v19, %v3003_v52  ;;  %v3007_v19 = vmax.f32 %v2425_v38, 0.0  ;;  %v2441_v38 = vadd.f32 %v17790_v46, %v18097_v26 }
 0x249   : > { %v18220_v61 = vadd.f32 %v3033_v45, %v3001_v4  ;;  %v14990_v25 = vpop.f32.mrb[176].mxu0  ;;  %v3005_v45 = vmax.f32 %v2417_v36, 0.0 }
 0x24a   : > { %v2550_v14 = vadd.f32 %v17790_v46, %v14990_v25  ;;  %v2541_v13 = vpop.f32.mrb[177].mxu0 }
 0x24b   : > { %v2542_v39 = vadd.f32 %v17790_v46, %v2541_v13  ;;  %v14991_v16 = vpop.f32.mrb[178].mxu0  ;;  %v2438_v13 = vadd.f32 %v17790_v46, %v18089_v18 }
 0x24c   : > { %v3038_v59 = vmax.f32 %v2550_v14, 0.0  ;;  %v2553_v51 = vadd.f32 %v17790_v46, %v14991_v16  ;;  %v2544_v8 = vpop.f32.mrb[179].mxu0  ;;  %v2430_v14 = vadd.f32 %v17790_v46, %v18093_v58 }
 0x24d   : > { %v3036_v34 = vmax.f32 %v2542_v39, 0.0  ;;  %v2545_v52 = vadd.f32 %v17790_v46, %v2544_v8 }
 0x24e   : > { %v18230_v12 = vadd.f32 %v3038_v59, %v3006_v5  ;;  %v3039_v4 = vmax.f32 %v2553_v51, 0.0  ;;  %v2433_v5 = vadd.f32 %v17790_v46, %v18101_v47  ;;  %v3010_v51 = vmax.f32 %v2438_v13, 0.0 }
 0x24f   : > { %v18232_v25 = vadd.f32 %v3036_v34, %v3004_v20  ;;  %v3037_v31 = vmax.f32 %v2545_v52, 0.0  ;;  %v3008_v34 = vmax.f32 %v2430_v14, 0.0 }
 0x250   : > { %v18236_v3 = vadd.f32 %v3039_v4, %v3007_v19  ;;  %v3011_v4 = vmax.f32 %v2441_v38, 0.0  ;;  %v2457_v38 = vadd.f32 %v17790_v46, %v18113_v42 }
 0x251   : > { %v18240_v57 = vadd.f32 %v3037_v31, %v3005_v45  ;;  %v14994_v39 = vpop.f32.mrb[180].mxu0  ;;  %v3009_v31 = vmax.f32 %v2433_v5, 0.0 }
 0x252   : > { %v2566_v16 = vadd.f32 %v17790_v46, %v14994_v39  ;;  %v2557_v36 = vpop.f32.mrb[181].mxu0 }
 0x253   : > { %v2558_v59 = vadd.f32 %v17790_v46, %v2557_v36  ;;  %v14995_v18 = vpop.f32.mrb[182].mxu0  ;;  %v2454_v36 = vadd.f32 %v17790_v46, %v18105_v6  ;;  %v18270_v6 = vld [vmem:[%s22658_s3] ss:$0 sm:$0xff] }
 0x254   : > { %v3042_v8 = vmax.f32 %v2566_v16, 0.0  ;;  %v2569_v20 = vadd.f32 %v17790_v46, %v14995_v18  ;;  %v2560_v58 = vpop.f32.mrb[183].mxu0  ;;  %v2446_v16 = vadd.f32 %v17790_v46, %v18109_v1 }
 0x255   : > { %v3040_v52 = vmax.f32 %v2558_v59, 0.0  ;;  %v2561_v19 = vadd.f32 %v17790_v46, %v2560_v58 }
 0x256   : > { %v18250_v26 = vadd.f32 %v3042_v8, %v3010_v51  ;;  %v3043_v45 = vmax.f32 %v2569_v20, 0.0  ;;  %v2449_v51 = vadd.f32 %v17790_v46, %v18117_v41  ;;  %v3014_v20 = vmax.f32 %v2454_v36, 0.0 }
 0x257   : > { %v18252_v39 = vadd.f32 %v3040_v52, %v3008_v34  ;;  %v3041_v47 = vmax.f32 %v2561_v19, 0.0  ;;  %v3012_v42 = vmax.f32 %v2446_v16, 0.0 }
 0x258   : > { %v18256_v13 = vadd.f32 %v3043_v45, %v3011_v4  ;;  %v3015_v45 = vmax.f32 %v2457_v38, 0.0  ;;  %v3013_v41 = vmax.f32 %v2449_v51, 0.0  ;;  %v2473_v38 = vadd.f32 %v18270_v6, %v18129_v7 }
 0x259   : > { %v18260_v14 = vadd.f32 %v3041_v47, %v3009_v31  ;;  %v14998_v59 = vpop.f32.mrb[184].mxu0 }
 0x25a   : > { %v2582_v18 = vadd.f32 %v17790_v46, %v14998_v59  ;;  %v2573_v5 = vpop.f32.mrb[185].mxu0 }
 0x25b   : > { %v2574_v8 = vadd.f32 %v18270_v6, %v2573_v5  ;;  %v14999_v1 = vpop.f32.mrb[186].mxu0  ;;  %v2470_v5 = vadd.f32 %v18270_v6, %v18121_v24 }
 0x25c   : > { %v3046_v58 = vmax.f32 %v2582_v18, 0.0  ;;  %v2585_v34 = vadd.f32 %v18270_v6, %v14999_v1  ;;  %v2576_v52 = vpop.f32.mrb[187].mxu0  ;;  %v2462_v18 = vadd.f32 %v18270_v6, %v18125_v32 }
 0x25d   : > { %v3044_v19 = vmax.f32 %v2574_v8, 0.0  ;;  %v2577_v4 = vadd.f32 %v18270_v6, %v2576_v52 }
 0x25e   : > { %v18275_v31 = vadd.f32 %v3046_v58, %v3014_v20  ;;  %v3047_v46 = vmax.f32 %v2585_v34, 0.0  ;;  %v2465_v20 = vadd.f32 %v18270_v6, %v18133_v11  ;;  %v3018_v34 = vmax.f32 %v2470_v5, 0.0 }
 0x25f   : > { %v18277_v47 = vadd.f32 %v3044_v19, %v3012_v42  ;;  %v3045_v59 = vmax.f32 %v2577_v4, 0.0  ;;  %v3016_v19 = vmax.f32 %v2462_v18, 0.0  ;;  %v2742_v5 = vadd.f32 %v18270_v6, %v18000_v62 }
 0x260   : > { %v18281_v36 = vadd.f32 %v3047_v46, %v3015_v45  ;;  %v3019_v46 = vmax.f32 %v2473_v38, 0.0  ;;  %v2734_v18 = vadd.f32 %v18270_v6, %v18005_v0 }
 0x261   : > { %v18285_v16 = vadd.f32 %v3045_v59, %v3013_v41  ;;  %v15002_v8 = vpop.f32.mrb[188].mxu0  ;;  %v3017_v59 = vmax.f32 %v2465_v20, 0.0 }
 0x262   : > { %v2598_v1 = vadd.f32 %v18270_v6, %v15002_v8  ;;  %v2589_v51 = vpop.f32.mrb[189].mxu0 }
 0x263   : > { %22890 = vst [vmem:[#allocation36_spill] sm:$0xff] %v18285_v16  ;;  %v2590_v58 = vadd.f32 %v18270_v6, %v2589_v51  ;;  %v15003_v24 = vpop.f32.mrb[190].mxu0 }
 0x264   : > { %v3050_v52 = vmax.f32 %v2598_v1, 0.0  ;;  %v2601_v42 = vadd.f32 %v18270_v6, %v15003_v24  ;;  %v2592_v32 = vpop.f32.mrb[191].mxu0 }
 0x265   : > { %v3048_v4 = vmax.f32 %v2590_v58, 0.0  ;;  %v2593_v45 = vadd.f32 %v18270_v6, %v2592_v32 }
 0x266   : > { %v18295_v7 = vadd.f32 %v3050_v52, %v3018_v34  ;;  %v3051_v41 = vmax.f32 %v2601_v42, 0.0  ;;  %v3086_v34 = vmax.f32 %v2742_v5, 0.0  ;;  %v2745_v42 = vadd.f32 %v18270_v6, %v18010_v33 }
 0x267   : > { %v18297_v8 = vadd.f32 %v3048_v4, %v3016_v19  ;;  %v3049_v11 = vmax.f32 %v2593_v45, 0.0  ;;  %v3084_v19 = vmax.f32 %v2734_v18, 0.0  ;;  %v2737_v45 = vadd.f32 %v18270_v6, %v18014_v22 }
 0x268   : > { %v18299_v16 = vadd.f32 %v3051_v41, %v3019_v46  ;;  %v2758_v5 = vadd.f32 %v18270_v6, %v18022_v27  ;;  %v3087_v33 = vmax.f32 %v2745_v42, 0.0  ;;  %v2750_v22 = vadd.f32 %v18270_v6, %v18026_v9 }
 0x269   : > { %v18303_v1 = vadd.f32 %v3049_v11, %v3017_v59  ;;  %v15006_v51 = vpop.f32.mrb[192].mxu0  ;;  %v3085_v18 = vmax.f32 %v2737_v45, 0.0  ;;  %v2761_v27 = vadd.f32 %v18270_v6, %v18030_v21 }
 0x26a   : > { %v2614_v38 = vadd.f32 %v18270_v6, %v15006_v51  ;;  %v2605_v58 = vpop.f32.mrb[193].mxu0  ;;  %v3088_v45 = vmax.f32 %v2750_v22, 0.0 }
 0x26b   : > { %v2606_v24 = vadd.f32 %v18270_v6, %v2605_v58  ;;  %v15007_v20 = vpop.f32.mrb[194].mxu0 }
 0x26c   : > { %v3054_v52 = vmax.f32 %v2614_v38, 0.0  ;;  %v2617_v32 = vadd.f32 %v18270_v6, %v15007_v20  ;;  %v2608_v62 = vpop.f32.mrb[195].mxu0 }
 0x26d   : > { %v3052_v4 = vmax.f32 %v2606_v24, 0.0  ;;  %v2609_v0 = vadd.f32 %v18270_v6, %v2608_v62 }
 0x26e   : > { %v3278_v46 = vadd.f32 %v18147_v37, %v3054_v52  ;;  %v3055_v41 = vmax.f32 %v2617_v32, 0.0  ;;  %v3090_v32 = vmax.f32 %v2758_v5, 0.0 }
 0x26f   : > { %v3276_v59 = vadd.f32 %v18149_v63, %v3052_v4  ;;  %v3053_v11 = vmax.f32 %v2609_v0, 0.0  ;;  %v2753_v4 = vadd.f32 %v18270_v6, %v18034_v28  ;;  %v16229_v28 = vld [vmem:[%s22661_s6 + $0x8] ss:$16 sps:$4 sm:$0xff]  }
 0x270   : > { %v3279_v51 = vadd.f32 %v18153_v53, %v3055_v41  ;;  %v3310_v38 = vadd.f32 %v3278_v46, %v3086_v34 }
 0x271   : > { %v3277_v58 = vadd.f32 %v18157_v56, %v3053_v11  ;;  %v15010_v24 = vpop.f32.mrb[196].mxu0  ;;  %v3308_v20 = vadd.f32 %v3276_v59, %v3084_v19 }
 0x272   : > { %v2630_v37 = vadd.f32 %v18270_v6, %v15010_v24  ;;  %v2621_v52 = vpop.f32.mrb[197].mxu0  ;;  %v3311_v63 = vadd.f32 %v3279_v51, %v3087_v33  ;;  %v2774_v33 = vadd.f32 %v18270_v6, %v18039_v43  ;;  %v16231_v51 = vld [vmem:[%s22661_s6 + $0xc] ss:$16 sps:$4 sm:$0xff]   ;;  %v2766_v43 = vadd.f32 %v18270_v6, %v18043_v30 }
 0x273   : > { %v2622_v62 = vadd.f32 %v18270_v6, %v2621_v52  ;;  %v15011_v53 = vpop.f32.mrb[198].mxu0  ;;  %v3309_v34 = vadd.f32 %v3277_v58, %v3085_v18  ;;  %4701 = vmatprep.subr.bf16.mxu0 %v16231_v51  ;;  %v2769_v30 = vadd.f32 %v18270_v6, %v18051_v40 }
 0x274   : > { %v3058_v42 = vmax.f32 %v2630_v37, 0.0  ;;  %v2633_v56 = vadd.f32 %v18270_v6, %v15011_v53  ;;  %v2624_v9 = vpop.f32.mrb[199].mxu0  ;;  %v15072_v19 = vpack.c.bf16 %v3311_v63, %v3310_v38  ;;  %v3091_v38 = vmax.f32 %v2761_v27, 0.0  ;;  %4702 = vmatpush1.bf16.msra.mxu0 %v16229_v28 }
 0x275   : > { %v3056_v0 = vmax.f32 %v2622_v62, 0.0  ;;  %v2625_v46 = vadd.f32 %v18270_v6, %v2624_v9  ;;  %v15069_v41 = vpack.c.bf16 %v3309_v34, %v3308_v20  ;;  %v3094_v62 = vmax.f32 %v2774_v33, 0.0 }
 0x276   : > { %v3282_v59 = vadd.f32 %v18170_v55, %v3058_v42  ;;  %v3059_v11 = vmax.f32 %v2633_v56, 0.0  ;;  %v22891_v55 = vmov 0.0|0.0  }
 0x277   : > { %v3280_v21 = vadd.f32 %v18172_v50, %v3056_v0  ;;  %v3057_v5 = vmax.f32 %v2625_v46, 0.0  ;;  %15070 = vmatpush1.bf16.msra.mxu1 %v15069_v41  ;;  %v3089_v50 = vmax.f32 %v2753_v4, 0.0  ;;  %v3092_v4 = vmax.f32 %v2766_v43, 0.0 }
 0x278   : > { %v3283_v18 = vadd.f32 %v18176_v54, %v3059_v11  ;;  %15071 = vmatprep.subr.bf16.mxu1 %v22891_v55  ;;  %v3314_v58 = vadd.f32 %v3282_v59, %v3090_v32  ;;  %v2777_v32 = vadd.f32 %v18270_v6, %v18047_v49  ;;  %v2790_v59 = vadd.f32 %v18270_v6, %v18055_v44 }
 0x279   : > { %v3281_v24 = vadd.f32 %v18180_v10, %v3057_v5  ;;  %v15014_v22 = vpop.f32.mrb[200].mxu0  ;;  %v3312_v20 = vadd.f32 %v3280_v21, %v3088_v45  ;;  %v3093_v5 = vmax.f32 %v2769_v30, 0.0  ;;  %v22894_v30 = vld [vmem:[#allocation20_spill] sm:$0xff] }
 0x27a   : > { %v2646_v37 = vadd.f32 %v18270_v6, %v15014_v22  ;;  %v2637_v52 = vpop.f32.mrb[201].mxu0  ;;  %v3315_v63 = vadd.f32 %v3283_v18, %v3091_v38  ;;  %v3095_v40 = vmax.f32 %v2777_v32, 0.0 }
 0x27b   : > { %v2638_v54 = vadd.f32 %v18270_v6, %v2637_v52  ;;  %v15015_v27 = vpop.f32.mrb[202].mxu0  ;;  %15073 = vmatpush1.bf16.msra.mxu1 %v15072_v19  ;;  %v3313_v10 = vadd.f32 %v3281_v24, %v3089_v50  ;;  %v22892_v50 = vld [vmem:[#allocation18_spill] sm:$0xff] }
 0x27c   : > { %v3062_v53 = vmax.f32 %v2646_v37, 0.0  ;;  %v2649_v34 = vadd.f32 %v18270_v6, %v15015_v27  ;;  %v2640_v42 = vpop.f32.mrb[203].mxu0  ;;  %15074 = vmatprep.subr.bf16.mxu1 %v22891_v55  ;;  %v15078_v56 = vpack.c.bf16 %v3315_v63, %v3314_v58  ;;  %v3098_v58 = vmax.f32 %v2790_v59, 0.0 }
 0x27d   : > { %v3060_v9 = vmax.f32 %v2638_v54, 0.0  ;;  %v2641_v45 = vadd.f32 %v18270_v6, %v2640_v42  ;;  %v15075_v0 = vpack.c.bf16 %v3313_v10, %v3312_v20  ;;  %v22893_v20 = vld [vmem:[#allocation19_spill] sm:$0xff]  ;;  %v2806_v42 = vadd.f32 %v18270_v6, %v22894_v30 }
 0x27e   : > { %v3286_v49 = vadd.f32 %v18190_v23, %v3062_v53  ;;  %v3063_v46 = vmax.f32 %v2649_v34, 0.0  ;;  %v2782_v23 = vadd.f32 %v18270_v6, %v18059_v29  ;;  %v2785_v29 = vadd.f32 %v18270_v6, %v22893_v20 }
 0x27f   : > { %v3284_v19 = vadd.f32 %v18192_v15, %v3060_v9  ;;  %v3061_v41 = vmax.f32 %v2641_v45, 0.0  ;;  %15076 = vmatpush1.bf16.msra.mxu1 %v15075_v0 }
 0x280   : > { %v3287_v11 = vadd.f32 %v18196_v2, %v3063_v46  ;;  %15077 = vmatprep.subr.bf16.mxu1 %v22891_v55  ;;  %v3318_v21 = vadd.f32 %v3286_v49, %v3094_v62  ;;  %v2793_v2 = vadd.f32 %v18270_v6, %v22892_v50  ;;  %v3096_v63 = vmax.f32 %v2782_v23, 0.0  ;;  %v22895_v46 = vld [vmem:[#allocation21_spill] sm:$0xff]  ;;  %v22897_v23 = vld [vmem:[#allocation23_spill] sm:$0xff] }
 0x281   : > { %v3285_v33 = vadd.f32 %v18200_v35, %v3061_v41  ;;  %v15018_v28 = vpop.f32.mrb[204].mxu0  ;;  %v3316_v51 = vadd.f32 %v3284_v19, %v3092_v4  ;;  %v3097_v45 = vmax.f32 %v2785_v29, 0.0 }
 0x282   : > { %v2662_v15 = vadd.f32 %v18270_v6, %v15018_v28  ;;  %v2653_v38 = vpop.f32.mrb[205].mxu0  ;;  %v3319_v18 = vadd.f32 %v3287_v11, %v3095_v40  ;;  %v3102_v40 = vmax.f32 %v2806_v42, 0.0  ;;  %v22900_v42 = vld [vmem:[#allocation26_spill] sm:$0xff] }
 0x283   : > { %v2654_v44 = vadd.f32 %v18270_v6, %v2653_v38  ;;  %v15019_v24 = vpop.f32.mrb[206].mxu0  ;;  %15079 = vmatpush1.bf16.msra.mxu1 %v15078_v56  ;;  %v3317_v22 = vadd.f32 %v3285_v33, %v3093_v5  ;;  %v3099_v56 = vmax.f32 %v2793_v2, 0.0 }
 0x284   : > { %v3066_v43 = vmax.f32 %v2662_v15, 0.0  ;;  %v2665_v35 = vadd.f32 %v18270_v6, %v15019_v24  ;;  %v2656_v37 = vpop.f32.mrb[207].mxu0  ;;  %15080 = vmatprep.subr.bf16.mxu1 %v22891_v55  ;;  %v15084_v52 = vpack.c.bf16 %v3319_v18, %v3318_v21  ;;  %v22896_v21 = vld [vmem:[#allocation22_spill] sm:$0xff] }
 0x285   : > { %v3064_v62 = vmax.f32 %v2654_v44, 0.0  ;;  %v2657_v54 = vadd.f32 %v18270_v6, %v2656_v37  ;;  %v15081_v32 = vpack.c.bf16 %v3317_v22, %v3316_v51  ;;  %v2801_v51 = vadd.f32 %v18270_v6, %v22897_v23 }
 0x286   : > { %v3290_v27 = vadd.f32 %v18210_v17, %v3066_v43  ;;  %v3067_v10 = vmax.f32 %v2665_v35, 0.0  ;;  %v2798_v17 = vadd.f32 %v18270_v6, %v22895_v46  ;;  %v22898_v35 = vld [vmem:[#allocation24_spill] sm:$0xff] }
 0x287   : > { %v3288_v53 = vadd.f32 %v18212_v48, %v3064_v62  ;;  %v3065_v34 = vmax.f32 %v2657_v54, 0.0  ;;  %15082 = vmatpush1.bf16.msra.mxu1 %v15081_v32  ;;  %v2822_v20 = vadd.f32 %v18270_v6, %v22898_v35  ;;  %v22899_v32 = vld [vmem:[#allocation25_spill] sm:$0xff] }
 0x288   : > { %v3291_v4 = vadd.f32 %v18216_v60, %v3067_v10  ;;  %15083 = vmatprep.subr.bf16.mxu1 %v22891_v55  ;;  %v3322_v9 = vadd.f32 %v3290_v27, %v3098_v58  ;;  %v2809_v60 = vadd.f32 %v18270_v6, %v22896_v21  ;;  %v3100_v18 = vmax.f32 %v2798_v17, 0.0 }
 0x289   : > { %v3289_v0 = vadd.f32 %v18220_v61, %v3065_v34  ;;  %v15022_v49 = vpop.f32.mrb[208].mxu0  ;;  %v3320_v19 = vadd.f32 %v3288_v53, %v3096_v63  ;;  %v3101_v63 = vmax.f32 %v2801_v51, 0.0  ;;  %v3106_v34 = vmax.f32 %v2822_v20, 0.0  ;;  %v22905_v20 = vld [vmem:[#allocation31_spill] sm:$0xff] }
 0x28a   : > { %v2678_v48 = vadd.f32 %v18270_v6, %v15022_v49  ;;  %v2669_v41 = vpop.f32.mrb[209].mxu0  ;;  %v3323_v59 = vadd.f32 %v3291_v4, %v3099_v56  ;;  %v3103_v29 = vmax.f32 %v2809_v60, 0.0  ;;  %v22902_v60 = vld [vmem:[#allocation28_spill] sm:$0xff] }
 0x28b   : > { %v2670_v11 = vadd.f32 %v18270_v6, %v2669_v41  ;;  %v15023_v5 = vpop.f32.mrb[210].mxu0  ;;  %15085 = vmatpush1.bf16.msra.mxu1 %v15084_v52  ;;  %v3321_v33 = vadd.f32 %v3289_v0, %v3097_v45  ;;  %v22901_v45 = vld [vmem:[#allocation27_spill] sm:$0xff] }
 0x28c   : > { %v3070_v28 = vmax.f32 %v2678_v48, 0.0  ;;  %v2681_v61 = vadd.f32 %v18270_v6, %v15023_v5  ;;  %v2672_v15 = vpop.f32.mrb[211].mxu0  ;;  %15086 = vmatprep.subr.bf16.mxu1 %v22891_v55  ;;  %v15090_v38 = vpack.c.bf16 %v3323_v59, %v3322_v9  ;;  %v2817_v0 = vadd.f32 %v18270_v6, %v22901_v45  ;;  %v22908_v45 = vld [vmem:[#allocation33_spill] sm:$0xff] }
 0x28d   : > { %v3068_v58 = vmax.f32 %v2670_v11, 0.0  ;;  %v2673_v44 = vadd.f32 %v18270_v6, %v2672_v15  ;;  %v15087_v50 = vpack.c.bf16 %v3321_v33, %v3320_v19  ;;  %v2838_v5 = vadd.f32 %v18270_v6, %v22902_v60 }
 0x28e   : > { %v3294_v2 = vadd.f32 %v18230_v12, %v3070_v28  ;;  %v3071_v24 = vmax.f32 %v2681_v61, 0.0  ;;  %v2814_v12 = vadd.f32 %v18270_v6, %v22899_v32  ;;  %v3105_v23 = vmax.f32 %v2817_v0, 0.0 }
 0x28f   : > { %v3292_v22 = vadd.f32 %v18232_v25, %v3068_v58  ;;  %v3069_v43 = vmax.f32 %v2673_v44, 0.0  ;;  %15088 = vmatpush1.bf16.msra.mxu1 %v15087_v50  ;;  %v3110_v50 = vmax.f32 %v2838_v5, 0.0 }
 0x290   : > { %v3295_v37 = vadd.f32 %v18236_v3, %v3071_v24  ;;  %15089 = vmatprep.subr.bf16.mxu1 %v22891_v55  ;;  %v3326_v52 = vadd.f32 %v3294_v2, %v3102_v40  ;;  %v2825_v3 = vadd.f32 %v18270_v6, %v22900_v42  ;;  %v3104_v17 = vmax.f32 %v2814_v12, 0.0  ;;  %v22904_v24 = vld [vmem:[#allocation30_spill] sm:$0xff] }
 0x291   : > { %v3293_v62 = vadd.f32 %v18240_v57, %v3069_v43  ;;  %v15026_v54 = vpop.f32.mrb[212].mxu0  ;;  %v3324_v27 = vadd.f32 %v3292_v22, %v3100_v18 }
 0x292   : > { %v2694_v25 = vadd.f32 %v18270_v6, %v15026_v54  ;;  %v2685_v10 = vpop.f32.mrb[213].mxu0  ;;  %v3327_v53 = vadd.f32 %v3295_v37, %v3103_v29  ;;  %v3107_v33 = vmax.f32 %v2825_v3, 0.0  ;;  %v2833_v29 = vadd.f32 %v18270_v6, %v22905_v20  ;;  %v16223_v20 = vld [vmem:[%s22659_s4 + $0x20] ss:$16 sps:$4 sm:$0xff]  }
 0x293   : > { %v2686_v30 = vadd.f32 %v18270_v6, %v2685_v10  ;;  %v15027_v56 = vpop.f32.mrb[214].mxu0  ;;  %15091 = vmatpush1.bf16.msra.mxu1 %v15090_v38  ;;  %v3325_v4 = vadd.f32 %v3293_v62, %v3101_v63  ;;  %v22903_v38 = vld [vmem:[#allocation29_spill] sm:$0xff] }
 0x294   : > { %v3074_v9 = vmax.f32 %v2694_v25, 0.0  ;;  %v2697_v57 = vadd.f32 %v18270_v6, %v15027_v56  ;;  %v2688_v49 = vpop.f32.mrb[215].mxu0  ;;  %15092 = vmatprep.subr.bf16.mxu1 %v22891_v55  ;;  %v15096_v46 = vpack.c.bf16 %v3327_v53, %v3326_v52  ;;  %v22906_v53 = vld [vmem:[#allocation32_spill] sm:$0xff]  ;;  %v3109_v56 = vmax.f32 %v2833_v29, 0.0  ;;  %v3345_v29 = vld [vmem:[%s22656_s1 + $0x28] sm:$0xff] }
 0x295   : > { %v3072_v19 = vmax.f32 %v2686_v30, 0.0  ;;  %v2689_v48 = vadd.f32 %v18270_v6, %v2688_v49  ;;  %v15093_v41 = vpack.c.bf16 %v3325_v4, %v3324_v27  ;;  %v22907_v4 = vld [vmem:[#allocation36_spill] sm:$0xff] }
 0x296   : > { %v3298_v59 = vadd.f32 %v18250_v26, %v3074_v9  ;;  %v3075_v40 = vmax.f32 %v2697_v57, 0.0  ;;  %v2830_v26 = vadd.f32 %v18270_v6, %v22903_v38 }
 0x297   : > { %v3296_v11 = vadd.f32 %v18252_v39, %v3072_v19  ;;  %v3073_v21 = vmax.f32 %v2689_v48, 0.0  ;;  %15094 = vmatpush1.bf16.msra.mxu1 %v15093_v41  ;;  %v22909_v48 = vld [vmem:[#allocation34_spill] sm:$0xff] }
 0x298   : > { %v3299_v28 = vadd.f32 %v18256_v13, %v3075_v40  ;;  %15095 = vmatprep.subr.bf16.mxu1 %v22891_v55  ;;  %v3330_v61 = vadd.f32 %v3298_v59, %v3106_v34  ;;  %v2841_v13 = vadd.f32 %v18270_v6, %v22904_v24  ;;  %v3108_v63 = vmax.f32 %v2830_v26, 0.0 }
 0x299   : > { %v3297_v51 = vadd.f32 %v18260_v14, %v3073_v21  ;;  %v15030_v15 = vpop.f32.mrb[216].mxu0  ;;  %v3328_v18 = vadd.f32 %v3296_v11, %v3104_v17  ;;  %v2854_v34 = vadd.f32 %v18270_v6, %v22906_v53  ;;  %v22910_v21 = vld [vmem:[#allocation35_spill] sm:$0xff]  ;;  %v3351_v53 = vld [vmem:[%s22656_s1 + $0x58] sm:$0xff] }
 0x29a   : > { %v2710_v39 = vadd.f32 %v18270_v6, %v15030_v15  ;;  %v2701_v58 = vpop.f32.mrb[217].mxu0  ;;  %v3331_v44 = vadd.f32 %v3299_v28, %v3107_v33  ;;  %v3111_v30 = vmax.f32 %v2841_v13, 0.0  ;;  %v2849_v60 = vadd.f32 %v18270_v6, %v22910_v21  ;;  %v3370_v21 = vld [vmem:[%s22656_s1 + $0xf0] sm:$0xff] }
 0x29b   : > { %v2702_v2 = vadd.f32 %v18270_v6, %v2701_v58  ;;  %v15031_v22 = vpop.f32.mrb[218].mxu0  ;;  %15097 = vmatpush1.bf16.msra.mxu1 %v15096_v46  ;;  %v3329_v43 = vadd.f32 %v3297_v51, %v3105_v23  ;;  %v3114_v17 = vmax.f32 %v2854_v34, 0.0  ;;  %v3350_v34 = vld [vmem:[%s22656_s1 + $0x50] sm:$0xff] }
 0x29c   : > { %v3078_v35 = vmax.f32 %v2710_v39, 0.0  ;;  %v2713_v14 = vadd.f32 %v18270_v6, %v15031_v22  ;;  %v2704_v37 = vpop.f32.mrb[219].mxu0  ;;  %15098 = vmatprep.subr.bf16.mxu1 %v22891_v55  ;;  %v15102_v52 = vpack.c.bf16 %v3331_v44, %v3330_v61 }
 0x29d   : > { %v3076_v62 = vmax.f32 %v2702_v2, 0.0  ;;  %v2705_v54 = vadd.f32 %v18270_v6, %v2704_v37  ;;  %v15099_v32 = vpack.c.bf16 %v3329_v43, %v3328_v18  ;;  %v22692_v43 = vmov 0   ;;  %v16228_v37 = vld [vmem:[%s22659_s4 + $0x44] ss:$16 sps:$4 sm:$0xff]  }
 0x29e   : > { %v3302_v12 = vadd.f32 %v18275_v31, %v3078_v35  ;;  %v3079_v27 = vmax.f32 %v2713_v14, 0.0  ;;  %v2846_v31 = vadd.f32 %v18270_v6, %v22908_v45  ;;  %4733 = vmatprep.mubr.bf16.mxu0 %v22692_v43  ;;  %v16225_v35 = vld [vmem:[%s22659_s4 + $0x24] ss:$16 sps:$4 sm:$0xff]  }
 0x29f   : > { %v3300_v25 = vadd.f32 %v18277_v47, %v3076_v62  ;;  %v3077_v10 = vmax.f32 %v2705_v54, 0.0  ;;  %15100 = vmatpush1.bf16.msra.mxu1 %v15099_v32  ;;  %v3342_v14 = vld [vmem:[%s22656_s1 + $0x10] sm:$0xff]  ;;  %v3347_v62 = vld [vmem:[%s22656_s1 + $0x38] sm:$0xff] }
 0x2a0   : > { %v3303_v42 = vadd.f32 %v18281_v36, %v3079_v27  ;;  %15101 = vmatprep.subr.bf16.mxu1 %v22891_v55  ;;  %v3334_v3 = vadd.f32 %v3302_v12, %v3110_v50  ;;  %v2857_v36 = vadd.f32 %v18270_v6, %v22909_v48  ;;  %v3112_v28 = vmax.f32 %v2846_v31, 0.0  ;;  %v16234_v54 = vld [vmem:[%s22659_s4 + $0x64] ss:$16 sps:$4 sm:$0xff]   ;;  %v16232_v12 = vld [vmem:[%s22659_s4 + $0x60] ss:$16 sps:$4 sm:$0xff]   ;;  %v3349_v27 = vld [vmem:[%s22656_s1 + $0x48] sm:$0xff] }
 0x2a1   : > { %v3301_v9 = vadd.f32 %v22907_v4, %v3077_v10  ;;  %v15034_v57 = vpop.f32.mrb[220].mxu0  ;;  %v3332_v0 = vadd.f32 %v3300_v25, %v3108_v63  ;;  %v3113_v50 = vmax.f32 %v2849_v60, 0.0  ;;  %v16226_v63 = vld [vmem:[%s22659_s4 + $0x40] ss:$16 sps:$4 sm:$0xff]   ;;  %v16237_v25 = vld [vmem:[%s22659_s4 + $0xc] ss:$16 sps:$4 sm:$0xff]  }
 0x2a2   : > { %v2726_v47 = vadd.f32 %v18270_v6, %v15034_v57  ;;  %v2717_v49 = vpop.f32.mrb[221].mxu0  ;;  %v3335_v46 = vadd.f32 %v3303_v42, %v3111_v30  ;;  %v3115_v39 = vmax.f32 %v2857_v36, 0.0  ;;  %v3346_v32 = vld [vmem:[%s22656_s1 + $0x30] sm:$0xff]  ;;  %v3348_v10 = vld [vmem:[%s22656_s1 + $0x40] sm:$0xff]  ;;  %v3353_v30 = vld [vmem:[%s22656_s1 + $0x68] sm:$0xff] }
 0x2a3   : > { %v2718_v19 = vadd.f32 %v18270_v6, %v2717_v49  ;;  %v15035_v41 = vpop.f32.mrb[222].mxu0  ;;  %15103 = vmatpush1.bf16.msra.mxu1 %v15102_v52  ;;  %v3333_v59 = vadd.f32 %v3301_v9, %v3109_v56  ;;  %v3344_v52 = vld [vmem:[%s22656_s1 + $0x20] sm:$0xff]  ;;  %v3354_v56 = vld [vmem:[%s22656_s1 + $0x70] sm:$0xff]  ;;  %v3357_v4 = vld [vmem:[%s22656_s1 + $0x88] sm:$0xff] }
 0x2a4   : > { %v3082_v40 = vmax.f32 %v2726_v47, 0.0  ;;  %v2729_v11 = vadd.f32 %v18270_v6, %v15035_v41  ;;  %v2720_v5 = vpop.f32.mrb[223].mxu0  ;;  %15104 = vmatprep.subr.bf16.mxu1 %v22891_v55  ;;  %v15108_v33 = vpack.c.bf16 %v3335_v46, %v3334_v3  ;;  %v3352_v42 = vld [vmem:[%s22656_s1 + $0x60] sm:$0xff]  ;;  %v3355_v3 = vld [vmem:[%s22656_s1 + $0x78] sm:$0xff]  ;;  %v3358_v45 = vld [vmem:[%s22656_s1 + $0x90] sm:$0xff] }
 0x2a5   : > { %v3080_v61 = vmax.f32 %v2718_v19, 0.0  ;;  %v2721_v23 = vadd.f32 %v18270_v6, %v2720_v5  ;;  %v15105_v51 = vpack.c.bf16 %v3333_v59, %v3332_v0  ;;  %v3356_v9 = vld [vmem:[%s22656_s1 + $0x80] sm:$0xff]  ;;  %v3359_v57 = vld [vmem:[%s22656_s1 + $0x98] sm:$0xff]  ;;  %v3361_v31 = vld [vmem:[%s22656_s1 + $0xa8] sm:$0xff] }
 0x2a6   : > { %v3306_v15 = vadd.f32 %v18295_v7, %v3082_v40  ;;  %v3083_v38 = vmax.f32 %v2729_v11, 0.0  ;;  %v3360_v0 = vld [vmem:[%s22656_s1 + $0xa0] sm:$0xff]  ;;  %v3363_v47 = vld [vmem:[%s22656_s1 + $0xb8] sm:$0xff]  ;;  %v3362_v49 = vld [vmem:[%s22656_s1 + $0xb0] sm:$0xff] }
 0x2a7   : > { %v3304_v26 = vadd.f32 %v18297_v8, %v3080_v61  ;;  %v3081_v18 = vmax.f32 %v2721_v23, 0.0  ;;  %15106 = vmatpush1.bf16.msra.mxu1 %v15105_v51  ;;  %v3340_v8 = vld [vmem:[%s22656_s1] sm:$0xff]  ;;  %v3365_v46 = vld [vmem:[%s22656_s1 + $0xc8] sm:$0xff]  ;;  %v3367_v19 = vld [vmem:[%s22656_s1 + $0xd8] sm:$0xff] }
 0x2a8   : > { %v3307_v58 = vadd.f32 %v18299_v16, %v3083_v38  ;;  %15107 = vmatprep.subr.bf16.mxu1 %v22891_v55  ;;  %v3338_v44 = vadd.f32 %v3306_v15, %v3114_v17  ;;  %v16222_v16 = vld [vmem:[%s22659_s4 + $0x4] ss:$16 sps:$4 sm:$0xff]   ;;  %v16241_v48 = vld [vmem:[%s22661_s6 + $0x28] ss:$16 sps:$4 sm:$0xff]   ;;  %v16243_v36 = vld [vmem:[%s22661_s6 + $0x2c] ss:$16 sps:$4 sm:$0xff]  }
 0x2a9   : > { %v3305_v2 = vadd.f32 %v18303_v1, %v3081_v18  ;;  %v3336_v24 = vadd.f32 %v3304_v26, %v3112_v28  ;;  %v16220_v1 = vld [vmem:[%s22659_s4] ss:$16 sps:$4 sm:$0xff]   ;;  %v3369_v59 = vld [vmem:[%s22656_s1 + $0xe8] sm:$0xff]  ;;  %4703 = vmatprep.subr.bf16.mxu0 %v16243_v36  ;;  %v3371_v11 = vld [vmem:[%s22656_s1 + $0xf8] sm:$0xff] }
 0x2aa   : > { %v3339_v13 = vadd.f32 %v3307_v58, %v3115_v39  ;;  %v3364_v17 = vld [vmem:[%s22656_s1 + $0xc0] sm:$0xff]  ;;  %v3366_v41 = vld [vmem:[%s22656_s1 + $0xd0] sm:$0xff]  ;;  %4704 = vmatpush1.bf16.msra.mxu0 %v16241_v48  ;;  %v3373_v60 = vld [vmem:[%s22656_s1 + $0x108] sm:$0xff] }
 0x2ab   : > { %15109 = vmatpush1.bf16.msra.mxu1 %v15108_v33  ;;  %v3337_v6 = vadd.f32 %v3305_v2, %v3113_v50  ;;  %v3368_v40 = vld [vmem:[%s22656_s1 + $0xe0] sm:$0xff]  ;;  %v3375_v33 = vld [vmem:[%s22656_s1 + $0x118] sm:$0xff]  ;;  %v3374_v28 = vld [vmem:[%s22656_s1 + $0x110] sm:$0xff] }
 0x2ac   : > { %15110 = vmatprep.subr.bf16.mxu1 %v22891_v55  ;;  %v15114_v7 = vpack.c.bf16 %v3339_v13, %v3338_v44  ;;  %v3372_v5 = vld [vmem:[%s22656_s1 + $0x100] sm:$0xff]  ;;  %v3377_v61 = vld [vmem:[%s22656_s1 + $0x128] sm:$0xff]  ;;  %v3379_v51 = vld [vmem:[%s22656_s1 + $0x138] sm:$0xff] }
 0x2ad   : > { %v15111_v22 = vpack.c.bf16 %v3337_v6, %v3336_v24  ;;  %v3376_v23 = vld [vmem:[%s22656_s1 + $0x120] sm:$0xff]  ;;  %v3378_v15 = vld [vmem:[%s22656_s1 + $0x130] sm:$0xff]  ;;  %v3381_v38 = vld [vmem:[%s22656_s1 + $0x148] sm:$0xff] }
 0x2ae   : > { %v3380_v26 = vld [vmem:[%s22656_s1 + $0x140] sm:$0xff]  ;;  %v3383_v18 = vld [vmem:[%s22656_s1 + $0x158] sm:$0xff]  ;;  %v3382_v44 = vld [vmem:[%s22656_s1 + $0x150] sm:$0xff] }
 0x2af   : > { %15112 = vmatpush1.bf16.msra.mxu1 %v15111_v22  ;;  %v16247_v39 = vld [vmem:[%s22661_s6 + $0x48] ss:$16 sps:$4 sm:$0xff]   ;;  %v16249_v58 = vld [vmem:[%s22661_s6 + $0x4c] ss:$16 sps:$4 sm:$0xff]   ;;  %v3384_v13 = vld [vmem:[%s22656_s1 + $0x160] sm:$0xff] }
 0x2b0   : > { %15113 = vmatprep.subr.bf16.mxu1 %v22891_v55  ;;  %v3343_v55 = vld [vmem:[%s22656_s1 + $0x18] sm:$0xff]  ;;  %v3385_v50 = vld [vmem:[%s22656_s1 + $0x168] sm:$0xff]  ;;  %4705 = vmatprep.subr.bf16.mxu0 %v16249_v58 }
 0x2b1   : > { %4706 = vmatpush1.bf16.msra.mxu0 %v16247_v39  ;;  %v16250_v2 = vld [vmem:[%s22661_s6 + $0x68] ss:$16 sps:$4 sm:$0xff]   ;;  %v16252_v24 = vld [vmem:[%s22661_s6 + $0x6c] ss:$16 sps:$4 sm:$0xff]  }
 0x2b2   : > { %v3387_v6 = vld [vmem:[%s22656_s1 + $0x178] sm:$0xff]  ;;  %4707 = vmatprep.subr.bf16.mxu0 %v16252_v24  ;;  %v3389_v22 = vld [vmem:[%s22656_s1 + $0x188] sm:$0xff] }
 0x2b3   : > { %15115 = vmatpush1.bf16.msra.mxu1 %v15114_v7  ;;  %v3386_v7 = vld [vmem:[%s22656_s1 + $0x170] sm:$0xff] }
 0x2b4   : > { %3812 = vmatprep.subr.bf16.mxu1 %v16222_v16  ;;  %v3388_v16 = vld [vmem:[%s22656_s1 + $0x180] sm:$0xff] }
 0x2b5   : > { %4708 = vmatpush1.bf16.msra.mxu0 %v16250_v2 }
 0x2b6   : > { %3469 = vmatmul.mubr.f32.vlgmr.msra.gmra.mrb[32].mxu1 %v3340_v8  ;;  %v3391_v8 = vld [vmem:[%s22656_s1 + $0x198] sm:$0xff] }
 0x2b7   : > { %3813 = vmatpush1.bf16.msra.mxu1 %v16220_v1  ;;  %3473 = vmatprep.mubr.f32.mxu1 %v3343_v55  ;;  %v3390_v1 = vld [vmem:[%s22656_s1 + $0x190] sm:$0xff]  ;;  %v3393_v55 = vld [vmem:[%s22656_s1 + $0x1a8] sm:$0xff] }
 0x2b8   : > { %3814 = vmatprep.subr.bf16.mxu1 %v16225_v35  ;;  %v3392_v35 = vld [vmem:[%s22656_s1 + $0x1a0] sm:$0xff] }
 0x2ba   : > { %3474 = vmatmul.mubr.f32.gmra.mrb[34].mxu1 %v3342_v14  ;;  %v3395_v14 = vld [vmem:[%s22656_s1 + $0x1b8] sm:$0xff] }
 0x2bb   : > { %3478 = vmatprep.mubr.f32.mxu1 %v3345_v29  ;;  %3815 = vmatpush1.bf16.msra.mxu1 %v16223_v20  ;;  %v3394_v20 = vld [vmem:[%s22656_s1 + $0x1b0] sm:$0xff]  ;;  %v3397_v29 = vld [vmem:[%s22656_s1 + $0x1c8] sm:$0xff] }
 0x2bc   : > { %3816 = vmatprep.subr.bf16.mxu1 %v16228_v37  ;;  %v3396_v37 = vld [vmem:[%s22656_s1 + $0x1c0] sm:$0xff] }
 0x2be   : > { %3479 = vmatmul.mubr.f32.gmra.mrb[36].mxu1 %v3344_v52  ;;  %v3399_v52 = vld [vmem:[%s22656_s1 + $0x1d8] sm:$0xff] }
 0x2bf   : > { %3483 = vmatprep.mubr.f32.mxu1 %v3347_v62  ;;  %3817 = vmatpush1.bf16.msra.mxu1 %v16226_v63  ;;  %v3398_v63 = vld [vmem:[%s22656_s1 + $0x1d0] sm:$0xff]  ;;  %v3401_v62 = vld [vmem:[%s22656_s1 + $0x1e8] sm:$0xff] }
 0x2c0   : > { %3818 = vmatprep.subr.bf16.mxu1 %v16234_v54  ;;  %v3400_v54 = vld [vmem:[%s22656_s1 + $0x1e0] sm:$0xff] }
 0x2c2   : > { %3484 = vmatmul.mubr.f32.gmra.mrb[38].mxu1 %v3346_v32  ;;  %v3403_v32 = vld [vmem:[%s22656_s1 + $0x1f8] sm:$0xff] }
 0x2c3   : > { %3488 = vmatprep.mubr.f32.mxu1 %v3349_v27  ;;  %3819 = vmatpush1.bf16.msra.mxu1 %v16232_v12  ;;  %v3402_v12 = vld [vmem:[%s22656_s1 + $0x1f0] sm:$0xff]  ;;  %v16235_v27 = vld [vmem:[%s22659_s4 + $0x8] ss:$16 sps:$4 sm:$0xff]  }
 0x2c4   : > { %4005 = vmatprep.subr.bf16.mxu1 %v16237_v25  ;;  %v16240_v25 = vld [vmem:[%s22659_s4 + $0x2c] ss:$16 sps:$4 sm:$0xff]  }
 0x2c6   : > { %3489 = vmatmul.mubr.f32.gmra.mrb[40].mxu1 %v3348_v10  ;;  %v22911_v10 = vld [vmem:[#allocation3_spill] sm:$0xff] }
 0x2c7   : > { %3493 = vmatprep.mubr.f32.mxu1 %v3351_v53  ;;  %v16238_v53 = vld [vmem:[%s22659_s4 + $0x28] ss:$16 sps:$4 sm:$0xff]  }
 0x2ca   : > { %3494 = vmatmul.mubr.f32.gmra.mrb[42].mxu1 %v3350_v34  ;;  %v16246_v34 = vld [vmem:[%s22659_s4 + $0x4c] ss:$16 sps:$4 sm:$0xff]  }
 0x2cb   : > { %3498 = vmatprep.mubr.f32.mxu1 %v3353_v30  ;;  %v16244_v30 = vld [vmem:[%s22659_s4 + $0x48] ss:$16 sps:$4 sm:$0xff]  }
 0x2ce   : > { %3499 = vmatmul.mubr.f32.gmra.mrb[44].mxu1 %v3352_v42  ;;  %v16255_v42 = vld [vmem:[%s22659_s4 + $0x6c] ss:$16 sps:$4 sm:$0xff]  }
 0x2cf   : > { %3503 = vmatprep.mubr.f32.mxu1 %v3355_v3  ;;  %v22912_v3 = vld [vmem:[#allocation2_spill] sm:$0xff] }
 0x2d2   : > { %3504 = vmatmul.mubr.f32.gmra.mrb[46].mxu1 %v3354_v56  ;;  %v16253_v56 = vld [vmem:[%s22659_s4 + $0x68] ss:$16 sps:$4 sm:$0xff]  }
 0x2d3   : > { %3508 = vmatprep.mubr.f32.mxu1 %v3357_v4  ;;  %v16258_v4 = vld [vmem:[%s22661_s6 + $0x4] ss:$16 sps:$4 sm:$0xff]  }
 0x2d6   : > { %3509 = vmatmul.mubr.f32.gmra.mrb[48].mxu1 %v3356_v9  ;;  %v22913_v9 = vld [vmem:[#allocation5_spill] sm:$0xff] }
 0x2d7   : > { %3513 = vmatprep.mubr.f32.mxu1 %v3359_v57  ;;  %v22914_v57 = vld [vmem:[#allocation4_spill] sm:$0xff] }
 0x2da   : > { %3514 = vmatmul.mubr.f32.gmra.mrb[50].mxu1 %v3358_v45  ;;  %v22915_v45 = vld [vmem:[#allocation7_spill] sm:$0xff] }
 0x2db   : > { %3518 = vmatprep.mubr.f32.mxu1 %v3361_v31  ;;  %v22916_v31 = vld [vmem:[#allocation6_spill] sm:$0xff] }
 0x2de   : > { %3519 = vmatmul.mubr.f32.gmra.mrb[52].mxu1 %v3360_v0  ;;  %v22917_v0 = vld [vmem:[#allocation9_spill] sm:$0xff] }
 0x2df   : > { %3523 = vmatprep.mubr.f32.mxu1 %v3363_v47  ;;  %v22918_v47 = vld [vmem:[#allocation8_spill] sm:$0xff] }
 0x2e2   : > { %3524 = vmatmul.mubr.f32.gmra.mrb[54].mxu1 %v3362_v49  ;;  %v22919_v49 = vld [vmem:[#allocation11_spill] sm:$0xff] }
 0x2e3   : > { %3528 = vmatprep.mubr.f32.mxu1 %v3365_v46  ;;  %v22920_v46 = vld [vmem:[#allocation10_spill] sm:$0xff] }
 0x2e6   : > { %3529 = vmatmul.mubr.f32.gmra.mrb[56].mxu1 %v3364_v17  ;;  %v22921_v17 = vld [vmem:[#allocation13_spill] sm:$0xff] }
 0x2e7   : > { %3533 = vmatprep.mubr.f32.mxu1 %v3367_v19 }
 0x2ea   : > { %3534 = vmatmul.mubr.f32.gmra.mrb[58].mxu1 %v3366_v41 }
 0x2eb   : > { %3538 = vmatprep.mubr.f32.mxu1 %v3369_v59 }
 0x2ee   : > { %3539 = vmatmul.mubr.f32.gmra.mrb[60].mxu1 %v3368_v40  ;;  %v22922_v40 = vld [vmem:[#allocation12_spill] sm:$0xff] }
 0x2ef   : > { %3543 = vmatprep.mubr.f32.mxu1 %v3371_v11 }
 0x2f2   : > { %3544 = vmatmul.mubr.f32.gmra.mrb[62].mxu1 %v3370_v21 }
 0x2f3   : > { %3548 = vmatprep.mubr.f32.mxu1 %v3373_v60 }
 0x2f6   : > { %3549 = vmatmul.mubr.f32.gmra.mrb[64].mxu1 %v3372_v5 }
 0x2f7   : > { %3553 = vmatprep.mubr.f32.mxu1 %v3375_v33  ;;  %v22923_v33 = vld [vmem:[#allocation15_spill] sm:$0xff] }
 0x2fa   : > { %3554 = vmatmul.mubr.f32.gmra.mrb[66].mxu1 %v3374_v28 }
 0x2fb   : > { %3558 = vmatprep.mubr.f32.mxu1 %v3377_v61 }
 0x2fe   : > { %3559 = vmatmul.mubr.f32.gmra.mrb[68].mxu1 %v3376_v23 }
 0x2ff   : > { %3563 = vmatprep.mubr.f32.mxu1 %v3379_v51 }
 0x302   : > { %3564 = vmatmul.mubr.f32.gmra.mrb[70].mxu1 %v3378_v15 }
 0x303   : > { %3568 = vmatprep.mubr.f32.mxu1 %v3381_v38  ;;  %v22924_v38 = vld [vmem:[#allocation14_spill] sm:$0xff] }
 0x306   : > { %3569 = vmatmul.mubr.f32.gmra.mrb[72].mxu1 %v3380_v26 }
 0x307   : > { %3573 = vmatprep.mubr.f32.mxu1 %v3383_v18 }
 0x30a   : > { %3574 = vmatmul.mubr.f32.gmra.mrb[74].mxu1 %v3382_v44 }
 0x30b   : > { %3578 = vmatprep.mubr.f32.mxu1 %v3385_v50  ;;  %v22925_v50 = vld [vmem:[#allocation16_spill] sm:$0xff] }
 0x30e   : > { %3579 = vmatmul.mubr.f32.gmra.mrb[76].mxu1 %v3384_v13 }
 0x30f   : > { %3583 = vmatprep.mubr.f32.mxu1 %v3387_v6 }
 0x312   : > { %3584 = vmatmul.mubr.f32.gmra.mrb[78].mxu1 %v3386_v7 }
 0x313   : > { %3588 = vmatprep.mubr.f32.mxu1 %v3389_v22  ;;  %v22926_v22 = vld [vmem:[#allocation17_spill] sm:$0xff] }
 0x316   : > { %3589 = vmatmul.mubr.f32.gmra.mrb[80].mxu1 %v3388_v16 }
 0x317   : > { %3593 = vmatprep.mubr.f32.mxu1 %v3391_v8 }
 0x31a   : > { %3594 = vmatmul.mubr.f32.gmra.mrb[82].mxu1 %v3390_v1 }
 0x31b   : > { %3598 = vmatprep.mubr.f32.mxu1 %v3393_v55  ;;  %v16256_v55 = vld [vmem:[%s22661_s6] ss:$16 sps:$4 sm:$0xff]  }
 0x31e   : > { %3599 = vmatmul.mubr.f32.gmra.mrb[84].mxu1 %v3392_v35  ;;  %v16261_v35 = vld [vmem:[%s22661_s6 + $0x24] ss:$16 sps:$4 sm:$0xff]  }
 0x31f   : > { %3603 = vmatprep.mubr.f32.mxu1 %v3395_v14 }
 0x322   : > { %3604 = vmatmul.mubr.f32.gmra.mrb[86].mxu1 %v3394_v20 }
 0x323   : > { %3608 = vmatprep.mubr.f32.mxu1 %v3397_v29 }
 0x326   : > { %3609 = vmatmul.mubr.f32.gmra.mrb[88].mxu1 %v3396_v37  ;;  %v16259_v37 = vld [vmem:[%s22661_s6 + $0x20] ss:$16 sps:$4 sm:$0xff]  }
 0x327   : > { %3613 = vmatprep.mubr.f32.mxu1 %v3399_v52  ;;  %v16264_v52 = vld [vmem:[%s22661_s6 + $0x44] ss:$16 sps:$4 sm:$0xff]  }
 0x32a   : > { %3614 = vmatmul.mubr.f32.gmra.mrb[90].mxu1 %v3398_v63 }
 0x32b   : > { %3618 = vmatprep.mubr.f32.mxu1 %v3401_v62 }
 0x32e   : > { %3619 = vmatmul.mubr.f32.gmra.mrb[92].mxu1 %v3400_v54  ;;  %v16262_v54 = vld [vmem:[%s22661_s6 + $0x40] ss:$16 sps:$4 sm:$0xff]  }
 0x32f   : > { %3623 = vmatprep.mubr.f32.mxu1 %v3403_v32  ;;  %v16267_v32 = vld [vmem:[%s22661_s6 + $0x64] ss:$16 sps:$4 sm:$0xff]  }
 0x332   : > { %3624 = vmatmul.mubr.f32.gmra.mrb[94].mxu1 %v3402_v12 }
 0x333   : > { %3844 = vmatprep.mubr.bf16.mxu1 %v22692_v43 }
 0x336   : > { %13763 = vmatmul.mubr.msk.bf16.vlgmr.msra.gmra.mrb[96].mxu1 %vm3763_vm1, %v22911_v10 }
 0x337   : > { %4006 = vmatpush1.bf16.msra.mxu1 %v16235_v27  ;;  %3854 = vmatprep.mubr.bf16.mxu1 %v22692_v43 }
 0x338   : > { %4007 = vmatprep.subr.bf16.mxu1 %v16240_v25 }
 0x33b   : > { %4008 = vmatpush1.bf16.msra.mxu1 %v16238_v53 }
 0x33c   : > { %4009 = vmatprep.subr.bf16.mxu1 %v16246_v34 }
 0x33e   : > { %13764 = vmatmul.mubr.msk.bf16.gmra.mrb[100].mxu1 %vm3763_vm1, %v22912_v3 }
 0x33f   : > { %3864 = vmatprep.mubr.bf16.mxu1 %v22692_v43  ;;  %4010 = vmatpush1.bf16.msra.mxu1 %v16244_v30 }
 0x340   : > { %4011 = vmatprep.subr.bf16.mxu1 %v16255_v42 }
 0x343   : > { %4012 = vmatpush1.bf16.msra.mxu1 %v16253_v56 }
 0x344   : > { %4508 = vmatprep.subr.bf16.mxu1 %v16258_v4 }
 0x346   : > { %13765 = vmatmul.mubr.msk.bf16.gmra.mrb[104].mxu1 %vm3763_vm1, %v22913_v9 }
 0x347   : > { %3874 = vmatprep.mubr.bf16.mxu1 %v22692_v43 }
 0x34e   : > { %13766 = vmatmul.mubr.msk.bf16.gmra.mrb[108].mxu1 %vm3763_vm1, %v22914_v57 }
 0x34f   : > { %3884 = vmatprep.mubr.bf16.mxu1 %v22692_v43 }
 0x356   : > { %13767 = vmatmul.mubr.msk.bf16.gmra.mrb[112].mxu1 %vm3763_vm1, %v22915_v45 }
 0x357   : > { %3894 = vmatprep.mubr.bf16.mxu1 %v22692_v43 }
 0x35e   : > { %13768 = vmatmul.mubr.msk.bf16.gmra.mrb[116].mxu1 %vm3763_vm1, %v22916_v31 }
 0x35f   : > { %3904 = vmatprep.mubr.bf16.mxu1 %v22692_v43 }
 0x366   : > { %13769 = vmatmul.mubr.msk.bf16.gmra.mrb[120].mxu1 %vm3763_vm1, %v22917_v0 }
 0x367   : > { %3914 = vmatprep.mubr.bf16.mxu1 %v22692_v43 }
 0x36e   : > { %13770 = vmatmul.mubr.msk.bf16.gmra.mrb[124].mxu1 %vm3763_vm1, %v22918_v47 }
 0x36f   : > { %3924 = vmatprep.mubr.bf16.mxu1 %v22692_v43 }
 0x376   : > { %13771 = vmatmul.mubr.msk.bf16.gmra.mrb[128].mxu1 %vm3763_vm1, %v22919_v49 }
 0x377   : > { %3934 = vmatprep.mubr.bf16.mxu1 %v22692_v43 }
 0x37e   : > { %13772 = vmatmul.mubr.msk.bf16.gmra.mrb[132].mxu1 %vm3763_vm1, %v22920_v46 }
 0x37f   : > { %3944 = vmatprep.mubr.bf16.mxu1 %v22692_v43 }
 0x386   : > { %13773 = vmatmul.mubr.msk.bf16.gmra.mrb[136].mxu1 %vm3763_vm1, %v22921_v17 }
 0x387   : > { %3954 = vmatprep.mubr.bf16.mxu1 %v22692_v43 }
 0x389   : > { %v3470_v19 = vpop.f32.mrb[32].mxu1 }
 0x38a   : > { %v3472_v48 = vpop.f32.mrb[33].mxu1 }
 0x38d   : > { %v3475_v36 = vpop.f32.mrb[34].mxu1 }
 0x38e   : > { %v18745_v41 = vpack.c.bf16 %v3475_v36, %v3470_v19  ;;  %v3477_v59 = vpop.f32.mrb[35].mxu1  ;;  %13774 = vmatmul.mubr.msk.bf16.gmra.mrb[140].mxu1 %vm3763_vm1, %v22922_v40 }
 0x38f   : > { %3964 = vmatprep.mubr.bf16.mxu1 %v22692_v43 }
 0x390   : > { %13827 = vmatmul.mubr.msk.bf16.vlgmr.msra.gmra.mrb[224].mxu0 %vm3763_vm1, %v18745_v41 }
 0x391   : > { %v3480_v11 = vpop.f32.mrb[36].mxu1  ;;  %4743 = vmatprep.mubr.bf16.mxu0 %v22692_v43 }
 0x392   : > { %v3482_v21 = vpop.f32.mrb[37].mxu1 }
 0x395   : > { %v3485_v60 = vpop.f32.mrb[38].mxu1 }
 0x396   : > { %v3487_v5 = vpop.f32.mrb[39].mxu1  ;;  %13775 = vmatmul.mubr.msk.bf16.gmra.mrb[144].mxu1 %vm3763_vm1, %v22923_v33  ;;  %v18755_v28 = vpack.c.bf16 %v3485_v60, %v3480_v11 }
 0x397   : > { %3974 = vmatprep.mubr.bf16.mxu1 %v22692_v43 }
 0x398   : > { %13828 = vmatmul.mubr.msk.bf16.gmra.mrb[228].mxu0 %vm3763_vm1, %v18755_v28 }
 0x399   : > { %v3490_v61 = vpop.f32.mrb[40].mxu1  ;;  %4753 = vmatprep.mubr.bf16.mxu0 %v22692_v43 }
 0x39a   : > { %v3492_v23 = vpop.f32.mrb[41].mxu1 }
 0x39d   : > { %v3495_v51 = vpop.f32.mrb[42].mxu1 }
 0x39e   : > { %v3497_v15 = vpop.f32.mrb[43].mxu1  ;;  %13776 = vmatmul.mubr.msk.bf16.gmra.mrb[148].mxu1 %vm3763_vm1, %v22924_v38  ;;  %v18763_v26 = vpack.c.bf16 %v3495_v51, %v3490_v61 }
 0x39f   : > { %3984 = vmatprep.mubr.bf16.mxu1 %v22692_v43 }
 0x3a0   : > { %13829 = vmatmul.mubr.msk.bf16.gmra.mrb[232].mxu0 %vm3763_vm1, %v18763_v26 }
 0x3a1   : > { %v3500_v18 = vpop.f32.mrb[44].mxu1  ;;  %4763 = vmatprep.mubr.bf16.mxu0 %v22692_v43 }
 0x3a2   : > { %v3502_v39 = vpop.f32.mrb[45].mxu1 }
 0x3a5   : > { %v3505_v58 = vpop.f32.mrb[46].mxu1 }
 0x3a6   : > { %v3507_v44 = vpop.f32.mrb[47].mxu1  ;;  %13777 = vmatmul.mubr.msk.bf16.gmra.mrb[152].mxu1 %vm3763_vm1, %v22925_v50  ;;  %v18771_v2 = vpack.c.bf16 %v3505_v58, %v3500_v18 }
 0x3a7   : > { %3994 = vmatprep.mubr.bf16.mxu1 %v22692_v43 }
 0x3a8   : > { %13830 = vmatmul.mubr.msk.bf16.gmra.mrb[236].mxu0 %vm3763_vm1, %v18771_v2 }
 0x3a9   : > { %v3510_v24 = vpop.f32.mrb[48].mxu1  ;;  %4773 = vmatprep.mubr.bf16.mxu0 %v22692_v43 }
 0x3aa   : > { %v3512_v13 = vpop.f32.mrb[49].mxu1 }
 0x3ad   : > { %v3515_v6 = vpop.f32.mrb[50].mxu1 }
 0x3ae   : > { %v3517_v7 = vpop.f32.mrb[51].mxu1  ;;  %13778 = vmatmul.mubr.msk.bf16.gmra.mrb[156].mxu1 %vm3763_vm1, %v22926_v22  ;;  %v18779_v16 = vpack.c.bf16 %v3515_v6, %v3510_v24 }
 0x3af   : > { %4037 = vmatprep.mubr.bf16.mxu1 %v22692_v43 }
 0x3b0   : > { %13831 = vmatmul.mubr.msk.bf16.gmra.mrb[240].mxu0 %vm3763_vm1, %v18779_v16 }
 0x3b1   : > { %v3520_v8 = vpop.f32.mrb[52].mxu1  ;;  %4783 = vmatprep.mubr.bf16.mxu0 %v22692_v43 }
 0x3b2   : > { %v3522_v1 = vpop.f32.mrb[53].mxu1 }
 0x3b5   : > { %v3525_v14 = vpop.f32.mrb[54].mxu1 }
 0x3b6   : > { %v3527_v20 = vpop.f32.mrb[55].mxu1  ;;  %13779 = vmatmul.mubr.msk.bf16.vlgmr.msra.gmra.mrb[160].mxu1 %vm3763_vm1, %v22911_v10  ;;  %v18793_v29 = vpack.c.bf16 %v3525_v14, %v3520_v8  ;;  %v16265_v10 = vld [vmem:[%s22661_s6 + $0x60] ss:$16 sps:$4 sm:$0xff]   ;;  %v3663_v14 = vlaneseq }
 0x3b7   : > { %4509 = vmatpush1.bf16.msra.mxu1 %v16256_v55  ;;  %4047 = vmatprep.mubr.bf16.mxu1 %v22692_v43 }
 0x3b8   : > { %13832 = vmatmul.mubr.msk.bf16.gmra.mrb[244].mxu0 %vm3763_vm1, %v18793_v29  ;;  %4510 = vmatprep.subr.bf16.mxu1 %v16261_v35 }
 0x3b9   : > { %v3530_v63 = vpop.f32.mrb[56].mxu1  ;;  %4793 = vmatprep.mubr.bf16.mxu0 %v22692_v43 }
 0x3ba   : > { %v3532_v62 = vpop.f32.mrb[57].mxu1 }
 0x3bb   : > { %4511 = vmatpush1.bf16.msra.mxu1 %v16259_v37 }
 0x3bc   : > { %4512 = vmatprep.subr.bf16.mxu1 %v16264_v52 }
 0x3bd   : > { %v3535_v12 = vpop.f32.mrb[58].mxu1 }
 0x3be   : > { %v3537_v27 = vpop.f32.mrb[59].mxu1  ;;  %13780 = vmatmul.mubr.msk.bf16.gmra.mrb[164].mxu1 %vm3763_vm1, %v22912_v3  ;;  %v18813_v25 = vpack.c.bf16 %v3535_v12, %v3530_v63  ;;  %v18882_v63 = vshrl.u32 %v3663_v14, 7 }
 0x3bf   : > { %4057 = vmatprep.mubr.bf16.mxu1 %v22692_v43  ;;  %4513 = vmatpush1.bf16.msra.mxu1 %v16262_v54 }
 0x3c0   : > { %13833 = vmatmul.mubr.msk.bf16.gmra.mrb[248].mxu0 %vm3763_vm1, %v18813_v25  ;;  %4514 = vmatprep.subr.bf16.mxu1 %v16267_v32  ;;  %22927 = vst [vmem:[#allocation18_spill] sm:$0xff] %v18882_v63  ;;  %v18889_v54 = vsub.s32 0, %v18882_v63  ;;  %v18894_v32 = vld [vmem:[%s22660_s5] sm:$0xf] }
 0x3c1   : > { %v3540_v53 = vpop.f32.mrb[60].mxu1  ;;  %4803 = vmatprep.mubr.bf16.mxu0 %v22692_v43 }
 0x3c2   : > { %v3542_v34 = vpop.f32.mrb[61].mxu1  ;;  %22928 = vst [vmem:[#allocation19_spill] sm:$0xff] %v18889_v54 }
 0x3c3   : > { %4515 = vmatpush1.bf16.msra.mxu1 %v16265_v10 }
 0x3c5   : > { %v3545_v30 = vpop.f32.mrb[62].mxu1 }
 0x3c6   : > { %v3547_v42 = vpop.f32.mrb[63].mxu1  ;;  %13781 = vmatmul.mubr.msk.bf16.gmra.mrb[168].mxu1 %vm3763_vm1, %v22913_v9  ;;  %v18824_v3 = vpack.c.bf16 %v3545_v30, %v3540_v53  ;;  %v18905_v53 = vrot.slane %v18894_v32, %v18889_v54 }
 0x3c7   : > { %4067 = vmatprep.mubr.bf16.mxu1 %v22692_v43 }
 0x3c8   : > { %13834 = vmatmul.mubr.msk.bf16.gmra.mrb[252].mxu0 %vm3763_vm1, %v18824_v3 }
 0x3c9   : > { %v3550_v56 = vpop.f32.mrb[64].mxu1  ;;  %4813 = vmatprep.mubr.bf16.mxu0 %v22692_v43 }
 0x3ca   : > { %v3552_v4 = vpop.f32.mrb[65].mxu1 }
 0x3cd   : > { %v3555_v19 = vpop.f32.mrb[66].mxu1 }
 0x3ce   : > { %v18830_v48 = vpack.c.bf16 %v3555_v19, %v3550_v56  ;;  %v3557_v36 = vpop.f32.mrb[67].mxu1  ;;  %13782 = vmatmul.mubr.msk.bf16.gmra.mrb[172].mxu1 %vm3763_vm1, %v22914_v57 }
 0x3cf   : > { %4077 = vmatprep.mubr.bf16.mxu1 %v22692_v43 }
 0x3d0   : > { %13835 = vmatmul.mubr.msk.bf16.gmra.mrb[0].mxu0 %vm3763_vm1, %v18830_v48 }
 0x3d1   : > { %v3560_v9 = vpop.f32.mrb[68].mxu1  ;;  %4823 = vmatprep.mubr.bf16.mxu0 %v22692_v43 }
 0x3d2   : > { %v3562_v59 = vpop.f32.mrb[69].mxu1 }
 0x3d5   : > { %v3565_v11 = vpop.f32.mrb[70].mxu1 }
 0x3d6   : > { %v18838_v21 = vpack.c.bf16 %v3565_v11, %v3560_v9  ;;  %v3567_v60 = vpop.f32.mrb[71].mxu1  ;;  %13783 = vmatmul.mubr.msk.bf16.gmra.mrb[176].mxu1 %vm3763_vm1, %v22915_v45 }
 0x3d7   : > { %4087 = vmatprep.mubr.bf16.mxu1 %v22692_v43 }
 0x3d8   : > { %13836 = vmatmul.mubr.msk.bf16.gmra.mrb[4].mxu0 %vm3763_vm1, %v18838_v21 }
 0x3d9   : > { %v3570_v57 = vpop.f32.mrb[72].mxu1  ;;  %4833 = vmatprep.mubr.bf16.mxu0 %v22692_v43 }
 0x3da   : > { %v3572_v5 = vpop.f32.mrb[73].mxu1 }
 0x3dd   : > { %v3575_v61 = vpop.f32.mrb[74].mxu1 }
 0x3de   : > { %v18846_v23 = vpack.c.bf16 %v3575_v61, %v3570_v57  ;;  %v3577_v51 = vpop.f32.mrb[75].mxu1  ;;  %13784 = vmatmul.mubr.msk.bf16.gmra.mrb[180].mxu1 %vm3763_vm1, %v22916_v31 }
 0x3df   : > { %4097 = vmatprep.mubr.bf16.mxu1 %v22692_v43 }
 0x3e0   : > { %13837 = vmatmul.mubr.msk.bf16.gmra.mrb[8].mxu0 %vm3763_vm1, %v18846_v23 }
 0x3e1   : > { %v3580_v45 = vpop.f32.mrb[76].mxu1  ;;  %4843 = vmatprep.mubr.bf16.mxu0 %v22692_v43 }
 0x3e2   : > { %v3582_v15 = vpop.f32.mrb[77].mxu1 }
 0x3e5   : > { %v3585_v18 = vpop.f32.mrb[78].mxu1 }
 0x3e6   : > { %v18854_v39 = vpack.c.bf16 %v3585_v18, %v3580_v45  ;;  %v3587_v58 = vpop.f32.mrb[79].mxu1  ;;  %13785 = vmatmul.mubr.msk.bf16.gmra.mrb[184].mxu1 %vm3763_vm1, %v22917_v0 }
 0x3e7   : > { %4107 = vmatprep.mubr.bf16.mxu1 %v22692_v43 }
 0x3e8   : > { %13838 = vmatmul.mubr.msk.bf16.gmra.mrb[12].mxu0 %vm3763_vm1, %v18854_v39 }
 0x3e9   : > { %v3590_v31 = vpop.f32.mrb[80].mxu1  ;;  %4853 = vmatprep.mubr.bf16.mxu0 %v22692_v43 }
 0x3ea   : > { %v3592_v44 = vpop.f32.mrb[81].mxu1 }
 0x3ed   : > { %v3595_v24 = vpop.f32.mrb[82].mxu1 }
 0x3ee   : > { %v18862_v13 = vpack.c.bf16 %v3595_v24, %v3590_v31  ;;  %v3597_v6 = vpop.f32.mrb[83].mxu1  ;;  %13786 = vmatmul.mubr.msk.bf16.gmra.mrb[188].mxu1 %vm3763_vm1, %v22918_v47 }
 0x3ef   : > { %4117 = vmatprep.mubr.bf16.mxu1 %v22692_v43 }
 0x3f0   : > { %13839 = vmatmul.mubr.msk.bf16.gmra.mrb[16].mxu0 %vm3763_vm1, %v18862_v13 }
 0x3f1   : > { %v3600_v0 = vpop.f32.mrb[84].mxu1  ;;  %4863 = vmatprep.mubr.bf16.mxu0 %v22692_v43 }
 0x3f2   : > { %v3602_v7 = vpop.f32.mrb[85].mxu1 }
 0x3f5   : > { %v3605_v8 = vpop.f32.mrb[86].mxu1 }
 0x3f6   : > { %v18870_v1 = vpack.c.bf16 %v3605_v8, %v3600_v0  ;;  %v3607_v55 = vpop.f32.mrb[87].mxu1  ;;  %13787 = vmatmul.mubr.msk.bf16.gmra.mrb[192].mxu1 %vm3763_vm1, %v22919_v49 }
 0x3f7   : > { %4127 = vmatprep.mubr.bf16.mxu1 %v22692_v43  ;;  %v16270_v55 = vld [vmem:[%s22664_s9 + $0x4] ss:$24 sps:$4 sm:$0xff]  }
 0x3f8   : > { %13840 = vmatmul.mubr.msk.bf16.gmra.mrb[20].mxu0 %vm3763_vm1, %v18870_v1  ;;  %6494 = vmatprep.subr.bf16.mxu1 %v16270_v55 }
 0x3f9   : > { %v3610_v47 = vpop.f32.mrb[88].mxu1  ;;  %4873 = vmatprep.mubr.bf16.mxu0 %v22692_v43 }
 0x3fa   : > { %v3612_v35 = vpop.f32.mrb[89].mxu1 }
 0x3fd   : > { %v3615_v20 = vpop.f32.mrb[90].mxu1 }
 0x3fe   : > { %v18878_v37 = vpack.c.bf16 %v3615_v20, %v3610_v47  ;;  %v3617_v52 = vpop.f32.mrb[91].mxu1  ;;  %13788 = vmatmul.mubr.msk.bf16.gmra.mrb[196].mxu1 %vm3763_vm1, %v22920_v46  ;;  %v18897_v46 = vsub.s32 1, %v18882_v63 }
 0x3ff   : > { %4137 = vmatprep.mubr.bf16.mxu1 %v22692_v43 }
 0x400   : > { %13841 = vmatmul.mubr.msk.bf16.gmra.mrb[24].mxu0 %vm3763_vm1, %v18878_v37  ;;  %22929 = vst [vmem:[#allocation20_spill] sm:$0xff] %v18897_v46  ;;  %v18910_v34 = vrot.slane %v18894_v32, %v18897_v46 }
 0x401   : > { %v3620_v49 = vpop.f32.mrb[92].mxu1  ;;  %4883 = vmatprep.mubr.bf16.mxu0 %v22692_v43 }
 0x402   : > { %v3622_v62 = vpop.f32.mrb[93].mxu1 }
 0x405   : > { %v3625_v12 = vpop.f32.mrb[94].mxu1 }
 0x406   : > { %v18899_v27 = vpack.c.bf16 %v3625_v12, %v3620_v49  ;;  %v3627_v10 = vpop.f32.mrb[95].mxu1  ;;  %13789 = vmatmul.mubr.msk.bf16.gmra.mrb[200].mxu1 %vm3763_vm1, %v22921_v17 }
 0x407   : > { %4147 = vmatprep.mubr.bf16.mxu1 %v22692_v43 }
 0x408   : > { %13842 = vmatmul.mubr.msk.bf16.gmra.mrb[28].mxu0 %vm3763_vm1, %v18899_v27 }
 0x409   : > { %v3846_v30 = vpop.f32.mrb[96].mxu1 }
 0x40a   : > { %v3847_v42 = vadd.f32 %v3846_v30, %v18905_v53  ;;  %v3848_v56 = vpop.f32.mrb[97].mxu1 }
 0x40b   : > { %v3850_v4 = vpop.f32.mrb[98].mxu1  ;;  %v3849_v17 = vadd.f32 %v3848_v56, %v18910_v34 }
 0x40c   : > { %v3851_v19 = vadd.f32 %v3850_v4, %v18905_v53  ;;  %v3852_v36 = vpop.f32.mrb[99].mxu1  ;;  %v4198_v59 = vmax.f32 %v3847_v42, 0.0 }
 0x40d   : > { %v3853_v9 = vadd.f32 %v3852_v36, %v18910_v34  ;;  %v4199_v60 = vmax.f32 %v3849_v17, 0.0 }
 0x40e   : > { %v4202_v11 = vmax.f32 %v3851_v19, 0.0  ;;  %13790 = vmatmul.mubr.msk.bf16.gmra.mrb[204].mxu1 %vm3763_vm1, %v22922_v40 }
 0x40f   : > { %4157 = vmatprep.mubr.bf16.mxu1 %v22692_v43  ;;  %v4203_v57 = vmax.f32 %v3853_v9, 0.0 }
 0x410   : > { %v18921_v5 = vpack.c.bf16 %v4202_v11, %v4198_v59 }
 0x411   : > { %v3856_v61 = vpop.f32.mrb[100].mxu1  ;;  %v18923_v51 = vpack.c.bf16 %v4203_v57, %v4199_v60 }
 0x412   : > { %v3857_v45 = vadd.f32 %v3856_v61, %v18905_v53  ;;  %v3858_v15 = vpop.f32.mrb[101].mxu1 }
 0x413   : > { %v3860_v18 = vpop.f32.mrb[102].mxu1  ;;  %v3859_v58 = vadd.f32 %v3858_v15, %v18910_v34 }
 0x414   : > { %v3861_v31 = vadd.f32 %v3860_v18, %v18905_v53  ;;  %v3862_v44 = vpop.f32.mrb[103].mxu1  ;;  %v4206_v24 = vmax.f32 %v3857_v45, 0.0 }
 0x415   : > { %v3863_v40 = vadd.f32 %v3862_v44, %v18910_v34  ;;  %v4207_v0 = vmax.f32 %v3859_v58, 0.0 }
 0x416   : > { %v4210_v6 = vmax.f32 %v3861_v31, 0.0  ;;  %13791 = vmatmul.mubr.msk.bf16.gmra.mrb[208].mxu1 %vm3763_vm1, %v22923_v33 }
 0x417   : > { %4167 = vmatprep.mubr.bf16.mxu1 %v22692_v43  ;;  %v4211_v7 = vmax.f32 %v3863_v40, 0.0 }
 0x418   : > { %v18932_v8 = vpack.c.bf16 %v4210_v6, %v4206_v24 }
 0x419   : > { %v3866_v47 = vpop.f32.mrb[104].mxu1  ;;  %v18937_v35 = vpack.c.bf16 %v4211_v7, %v4207_v0 }
 0x41a   : > { %v3867_v14 = vadd.f32 %v3866_v47, %v18905_v53  ;;  %v3868_v20 = vpop.f32.mrb[105].mxu1 }
 0x41b   : > { %v3870_v52 = vpop.f32.mrb[106].mxu1  ;;  %v3869_v33 = vadd.f32 %v3868_v20, %v18910_v34 }
 0x41c   : > { %v3871_v49 = vadd.f32 %v3870_v52, %v18905_v53  ;;  %v3872_v62 = vpop.f32.mrb[107].mxu1  ;;  %v4214_v10 = vmax.f32 %v3867_v14, 0.0 }
 0x41d   : > { %v3873_v12 = vadd.f32 %v3872_v62, %v18910_v34  ;;  %v4215_v42 = vmax.f32 %v3869_v33, 0.0 }
 0x41e   : > { %v4218_v30 = vmax.f32 %v3871_v49, 0.0  ;;  %13792 = vmatmul.mubr.msk.bf16.gmra.mrb[212].mxu1 %vm3763_vm1, %v22924_v38 }
 0x41f   : > { %4177 = vmatprep.mubr.bf16.mxu1 %v22692_v43  ;;  %v4219_v56 = vmax.f32 %v3873_v12, 0.0 }
 0x420   : > { %v18946_v4 = vpack.c.bf16 %v4218_v30, %v4214_v10 }
 0x421   : > { %v3876_v17 = vpop.f32.mrb[108].mxu1  ;;  %v18948_v19 = vpack.c.bf16 %v4219_v56, %v4215_v42  ;;  %v16268_v42 = vld [vmem:[%s22664_s9] ss:$24 sps:$4 sm:$0xff]  }
 0x422   : > { %v3877_v36 = vadd.f32 %v3876_v17, %v18905_v53  ;;  %v3878_v9 = vpop.f32.mrb[109].mxu1 }
 0x423   : > { %v3880_v59 = vpop.f32.mrb[110].mxu1  ;;  %v3879_v11 = vadd.f32 %v3878_v9, %v18910_v34 }
 0x424   : > { %v3881_v60 = vadd.f32 %v3880_v59, %v18905_v53  ;;  %v3882_v57 = vpop.f32.mrb[111].mxu1  ;;  %v4222_v61 = vmax.f32 %v3877_v36, 0.0  ;;  %v16273_v36 = vld [vmem:[%s22664_s9 + $0x34] ss:$24 sps:$4 sm:$0xff]  }
 0x425   : > { %v3883_v38 = vadd.f32 %v3882_v57, %v18910_v34  ;;  %v4223_v15 = vmax.f32 %v3879_v11, 0.0 }
 0x426   : > { %v4226_v45 = vmax.f32 %v3881_v60, 0.0  ;;  %13793 = vmatmul.mubr.msk.bf16.gmra.mrb[216].mxu1 %vm3763_vm1, %v22925_v50  ;;  %v16271_v60 = vld [vmem:[%s22664_s9 + $0x30] ss:$24 sps:$4 sm:$0xff]  }
 0x427   : > { %4187 = vmatprep.mubr.bf16.mxu1 %v22692_v43  ;;  %v4227_v18 = vmax.f32 %v3883_v38, 0.0 }
 0x428   : > { %v18957_v58 = vpack.c.bf16 %v4226_v45, %v4222_v61  ;;  %v16276_v45 = vld [vmem:[%s22664_s9 + $0x64] ss:$24 sps:$4 sm:$0xff]  }
 0x429   : > { %v3886_v31 = vpop.f32.mrb[112].mxu1  ;;  %v18959_v44 = vpack.c.bf16 %v4227_v18, %v4223_v15 }
 0x42a   : > { %22930 = vst [vmem:[#allocation21_spill] sm:$0xff] %v18957_v58  ;;  %v3887_v40 = vadd.f32 %v3886_v31, %v18905_v53  ;;  %v3888_v24 = vpop.f32.mrb[113].mxu1 }
 0x42b   : > { %22931 = vst [vmem:[#allocation22_spill] sm:$0xff] %v18959_v44  ;;  %v3890_v6 = vpop.f32.mrb[114].mxu1  ;;  %v3889_v0 = vadd.f32 %v3888_v24, %v18910_v34  ;;  %v16274_v24 = vld [vmem:[%s22664_s9 + $0x60] ss:$24 sps:$4 sm:$0xff]  }
 0x42c   : > { %v3891_v7 = vadd.f32 %v3890_v6, %v18905_v53  ;;  %v3892_v55 = vpop.f32.mrb[115].mxu1  ;;  %v4230_v47 = vmax.f32 %v3887_v40, 0.0 }
 0x42d   : > { %v3893_v50 = vadd.f32 %v3892_v55, %v18910_v34  ;;  %v4231_v20 = vmax.f32 %v3889_v0, 0.0  ;;  %v16279_v55 = vld [vmem:[%s22664_s9 + $0x94] ss:$24 sps:$4 sm:$0xff]  }
 0x42e   : > { %v4234_v14 = vmax.f32 %v3891_v7, 0.0  ;;  %13794 = vmatmul.mubr.msk.bf16.gmra.mrb[220].mxu1 %vm3763_vm1, %v22926_v22 }
 0x42f   : > { %4540 = vmatprep.mubr.bf16.mxu1 %v22692_v43  ;;  %v4235_v52 = vmax.f32 %v3893_v50, 0.0 }
 0x430   : > { %v18968_v33 = vpack.c.bf16 %v4234_v14, %v4230_v47 }
 0x431   : > { %v3896_v49 = vpop.f32.mrb[116].mxu1  ;;  %v18970_v62 = vpack.c.bf16 %v4235_v52, %v4231_v20  ;;  %v16277_v20 = vld [vmem:[%s22664_s9 + $0x90] ss:$24 sps:$4 sm:$0xff]  }
 0x432   : > { %22932 = vst [vmem:[#allocation23_spill] sm:$0xff] %v18968_v33  ;;  %v3897_v12 = vadd.f32 %v3896_v49, %v18905_v53  ;;  %v3898_v10 = vpop.f32.mrb[117].mxu1 }
 0x433   : > { %22933 = vst [vmem:[#allocation24_spill] sm:$0xff] %v18970_v62  ;;  %v3900_v30 = vpop.f32.mrb[118].mxu1  ;;  %v3899_v56 = vadd.f32 %v3898_v10, %v18910_v34  ;;  %v16282_v10 = vld [vmem:[%s22664_s9 + $0xc4] ss:$24 sps:$4 sm:$0xff]  }
 0x434   : > { %v3901_v22 = vadd.f32 %v3900_v30, %v18905_v53  ;;  %v3902_v17 = vpop.f32.mrb[119].mxu1  ;;  %v4238_v59 = vmax.f32 %v3897_v12, 0.0 }
 0x435   : > { %v3903_v9 = vadd.f32 %v3902_v17, %v18910_v34  ;;  %v4239_v57 = vmax.f32 %v3899_v56, 0.0  ;;  %v16280_v17 = vld [vmem:[%s22664_s9 + $0xc0] ss:$24 sps:$4 sm:$0xff]  }
 0x436   : > { %v4242_v11 = vmax.f32 %v3901_v22, 0.0  ;;  %13811 = vmatmul.mubr.msk.bf16.vlgmr.msra.gmra.mrb[224].mxu1 %vm3763_vm1, %v18745_v41 }
 0x437   : > { %4550 = vmatprep.mubr.bf16.mxu1 %v22692_v43  ;;  %6495 = vmatpush1.bf16.msra.mxu1 %v16268_v42  ;;  %v4243_v38 = vmax.f32 %v3903_v9, 0.0 }
 0x438   : > { %v18988_v61 = vpack.c.bf16 %v4242_v11, %v4238_v59  ;;  %6496 = vmatprep.subr.bf16.mxu1 %v16273_v36  ;;  %v16285_v11 = vld [vmem:[%s22664_s9 + $0xf4] ss:$24 sps:$4 sm:$0xff]  }
 0x439   : > { %v3906_v15 = vpop.f32.mrb[120].mxu1  ;;  %v18993_v18 = vpack.c.bf16 %v4243_v38, %v4239_v57 }
 0x43a   : > { %22934 = vst [vmem:[#allocation25_spill] sm:$0xff] %v18988_v61  ;;  %v3907_v41 = vadd.f32 %v3906_v15, %v18905_v53  ;;  %v3908_v31 = vpop.f32.mrb[121].mxu1 }
 0x43b   : > { %22935 = vst [vmem:[#allocation26_spill] sm:$0xff] %v18993_v18  ;;  %v3910_v40 = vpop.f32.mrb[122].mxu1  ;;  %6497 = vmatpush1.bf16.msra.mxu1 %v16271_v60  ;;  %v3909_v6 = vadd.f32 %v3908_v31, %v18910_v34 }
 0x43c   : > { %v3911_v0 = vadd.f32 %v3910_v40, %v18905_v53  ;;  %v3912_v7 = vpop.f32.mrb[123].mxu1  ;;  %6498 = vmatprep.subr.bf16.mxu1 %v16276_v45  ;;  %v4246_v47 = vmax.f32 %v3907_v41, 0.0  ;;  %v16283_v45 = vld [vmem:[%s22664_s9 + $0xf0] ss:$24 sps:$4 sm:$0xff]   ;;  %v16288_v40 = vld [vmem:[%s22664_s9 + $0x124] ss:$24 sps:$4 sm:$0xff]  }
 0x43d   : > { %v3913_v50 = vadd.f32 %v3912_v7, %v18910_v34  ;;  %v4247_v52 = vmax.f32 %v3909_v6, 0.0 }
 0x43e   : > { %v4250_v14 = vmax.f32 %v3911_v0, 0.0  ;;  %13812 = vmatmul.mubr.msk.bf16.gmra.mrb[228].mxu1 %vm3763_vm1, %v18755_v28 }
 0x43f   : > { %4560 = vmatprep.mubr.bf16.mxu1 %v22692_v43  ;;  %6499 = vmatpush1.bf16.msra.mxu1 %v16274_v24  ;;  %v4251_v49 = vmax.f32 %v3913_v50, 0.0 }
 0x440   : > { %v19011_v12 = vpack.c.bf16 %v4250_v14, %v4246_v47  ;;  %6500 = vmatprep.subr.bf16.mxu1 %v16279_v55  ;;  %v16286_v55 = vld [vmem:[%s22664_s9 + $0x120] ss:$24 sps:$4 sm:$0xff]  }
 0x441   : > { %v3916_v30 = vpop.f32.mrb[124].mxu1  ;;  %v19016_v42 = vpack.c.bf16 %v4251_v49, %v4247_v52 }
 0x442   : > { %22936 = vst [vmem:[#allocation27_spill] sm:$0xff] %v19011_v12  ;;  %v3917_v28 = vadd.f32 %v3916_v30, %v18905_v53  ;;  %v3918_v56 = vpop.f32.mrb[125].mxu1 }
 0x443   : > { %22937 = vst [vmem:[#allocation28_spill] sm:$0xff] %v19016_v42  ;;  %v3920_v22 = vpop.f32.mrb[126].mxu1  ;;  %6501 = vmatpush1.bf16.msra.mxu1 %v16277_v20  ;;  %v3919_v36 = vadd.f32 %v3918_v56, %v18910_v34  ;;  %v16289_v56 = vld [vmem:[%s22664_s9 + $0x150] ss:$24 sps:$4 sm:$0xff]  }
 0x444   : > { %v3921_v9 = vadd.f32 %v3920_v22, %v18905_v53  ;;  %v3922_v59 = vpop.f32.mrb[127].mxu1  ;;  %6502 = vmatprep.subr.bf16.mxu1 %v16282_v10  ;;  %v4254_v57 = vmax.f32 %v3917_v28, 0.0  ;;  %v16291_v22 = vld [vmem:[%s22664_s9 + $0x154] ss:$24 sps:$4 sm:$0xff]  }
 0x445   : > { %v3923_v60 = vadd.f32 %v3922_v59, %v18910_v34  ;;  %v4255_v15 = vmax.f32 %v3919_v36, 0.0 }
 0x446   : > { %v4258_v38 = vmax.f32 %v3921_v9, 0.0  ;;  %13813 = vmatmul.mubr.msk.bf16.gmra.mrb[232].mxu1 %vm3763_vm1, %v18763_v26 }
 0x447   : > { %4570 = vmatprep.mubr.bf16.mxu1 %v22692_v43  ;;  %6503 = vmatpush1.bf16.msra.mxu1 %v16280_v17  ;;  %v4259_v41 = vmax.f32 %v3923_v60, 0.0 }
 0x448   : > { %v19034_v31 = vpack.c.bf16 %v4258_v38, %v4254_v57  ;;  %6504 = vmatprep.subr.bf16.mxu1 %v16285_v11  ;;  %v16297_v38 = vld [vmem:[%s22664_s9 + $0xc] ss:$24 sps:$4 sm:$0xff]  }
 0x449   : > { %v3926_v24 = vpop.f32.mrb[128].mxu1  ;;  %v19039_v6 = vpack.c.bf16 %v4259_v41, %v4255_v15  ;;  %6880 = vmatprep.subr.bf16.mxu0 %v16297_v38 }
 0x44a   : > { %22938 = vst [vmem:[#allocation29_spill] sm:$0xff] %v19034_v31  ;;  %v3927_v26 = vadd.f32 %v3926_v24, %v18905_v53  ;;  %v3928_v0 = vpop.f32.mrb[129].mxu1 }
 0x44b   : > { %22939 = vst [vmem:[#allocation30_spill] sm:$0xff] %v19039_v6  ;;  %v3930_v7 = vpop.f32.mrb[130].mxu1  ;;  %6505 = vmatpush1.bf16.msra.mxu1 %v16283_v45  ;;  %v3929_v50 = vadd.f32 %v3928_v0, %v18910_v34  ;;  %v16295_v45 = vld [vmem:[%s22664_s9 + $0x8] ss:$24 sps:$4 sm:$0xff]  }
 0x44c   : > { %v3931_v47 = vadd.f32 %v3930_v7, %v18905_v53  ;;  %v3932_v14 = vpop.f32.mrb[131].mxu1  ;;  %6506 = vmatprep.subr.bf16.mxu1 %v16288_v40  ;;  %v4262_v52 = vmax.f32 %v3927_v26, 0.0  ;;  %6881 = vmatpush1.bf16.msra.mxu0 %v16295_v45  ;;  %v16292_v7 = vld [vmem:[%s22664_s9 + $0x180] ss:$24 sps:$4 sm:$0xff]  }
 0x44d   : > { %v3933_v20 = vadd.f32 %v3932_v14, %v18910_v34  ;;  %v4263_v10 = vmax.f32 %v3929_v50, 0.0 }
 0x44e   : > { %v4266_v49 = vmax.f32 %v3931_v47, 0.0  ;;  %13814 = vmatmul.mubr.msk.bf16.gmra.mrb[236].mxu1 %vm3763_vm1, %v18771_v2  ;;  %v16298_v47 = vld [vmem:[%s22664_s9 + $0x38] ss:$24 sps:$4 sm:$0xff]  }
 0x44f   : > { %4580 = vmatprep.mubr.bf16.mxu1 %v22692_v43  ;;  %6507 = vmatpush1.bf16.msra.mxu1 %v16286_v55  ;;  %v4267_v30 = vmax.f32 %v3933_v20, 0.0  ;;  %v16294_v55 = vld [vmem:[%s22664_s9 + $0x184] ss:$24 sps:$4 sm:$0xff]  }
 0x450   : > { %v19051_v28 = vpack.c.bf16 %v4266_v49, %v4262_v52  ;;  %6508 = vmatprep.subr.bf16.mxu1 %v16291_v22  ;;  %v19094_v22 = vsub.s32 2, %v18882_v63 }
 0x451   : > { %v3936_v17 = vpop.f32.mrb[132].mxu1  ;;  %v19059_v36 = vpack.c.bf16 %v4267_v30, %v4263_v10 }
 0x452   : > { %22940 = vst [vmem:[#allocation31_spill] sm:$0xff] %v19051_v28  ;;  %v3937_v2 = vadd.f32 %v3936_v17, %v18905_v53  ;;  %v3938_v9 = vpop.f32.mrb[133].mxu1  ;;  %22944 = vst [vmem:[#allocation34_spill] sm:$0xff] %v19094_v22  ;;  %v16306_v17 = vld [vmem:[%s22664_s9 + $0x6c] ss:$24 sps:$4 sm:$0xff]  }
 0x453   : > { %22941 = vst [vmem:[#allocation32_spill] sm:$0xff] %v19059_v36  ;;  %v3940_v59 = vpop.f32.mrb[134].mxu1  ;;  %6509 = vmatpush1.bf16.msra.mxu1 %v16289_v56  ;;  %v3939_v11 = vadd.f32 %v3938_v9, %v18910_v34  ;;  %v19103_v9 = vsub.s32 3, %v18882_v63 }
 0x454   : > { %v3941_v60 = vadd.f32 %v3940_v59, %v18905_v53  ;;  %v3942_v57 = vpop.f32.mrb[135].mxu1  ;;  %v4270_v41 = vmax.f32 %v3937_v2, 0.0  ;;  %6510 = vmatprep.subr.bf16.mxu1 %v16294_v55  ;;  %v4358_v2 = vld [vmem:[%s22662_s7] sm:$0xf]  ;;  %v16307_v55 = vld [vmem:[%s22664_s9 + $0x98] ss:$24 sps:$4 sm:$0xff]  }
 0x455   : > { %v3943_v15 = vadd.f32 %v3942_v57, %v18910_v34  ;;  %v4271_v24 = vmax.f32 %v3939_v11, 0.0  ;;  %22945 = vst [vmem:[#allocation35_spill] sm:$0xff] %v19103_v9  ;;  %v16304_v59 = vld [vmem:[%s22664_s9 + $0x68] ss:$24 sps:$4 sm:$0xff]  }
 0x456   : > { %v4274_v40 = vmax.f32 %v3941_v60, 0.0  ;;  %13815 = vmatmul.mubr.msk.bf16.gmra.mrb[240].mxu1 %vm3763_vm1, %v18779_v16  ;;  %v16300_v16 = vld [vmem:[%s22664_s9 + $0x3c] ss:$24 sps:$4 sm:$0xff]  }
 0x457   : > { %4590 = vmatprep.mubr.bf16.mxu1 %v22692_v43  ;;  %v4275_v26 = vmax.f32 %v3943_v15, 0.0  ;;  %6882 = vmatprep.subr.bf16.mxu0 %v16300_v16 }
 0x458   : > { %v19074_v0 = vpack.c.bf16 %v4274_v40, %v4270_v41  ;;  %6511 = vmatpush1.bf16.msra.mxu1 %v16292_v7  ;;  %6883 = vmatpush1.bf16.msra.mxu0 %v16298_v47  ;;  %v19115_v41 = vrot.slane %v4358_v2, %v19094_v22  ;;  %v16301_v40 = vld [vmem:[%s22664_s9 + $0x1b0] ss:$24 sps:$4 sm:$0xff]   ;;  %v19127_v7 = vrot.slane %v4358_v2, %v19103_v9  ;;  %v16315_v2 = vld [vmem:[%s22664_s9 + $0xcc] ss:$24 sps:$4 sm:$0xff]  }
 0x459   : > { %v3946_v50 = vpop.f32.mrb[136].mxu1  ;;  %v19088_v14 = vpack.c.bf16 %v4275_v26, %v4271_v24  ;;  %6884 = vmatprep.subr.bf16.mxu0 %v16306_v17  ;;  %v16303_v24 = vld [vmem:[%s22664_s9 + $0x1b4] ss:$24 sps:$4 sm:$0xff]  }
 0x45a   : > { %22942 = vst [vmem:[#allocation36_spill] sm:$0xff] %v19074_v0  ;;  %v3947_v20 = vadd.f32 %v3946_v50, %v18905_v53  ;;  %v3948_v52 = vpop.f32.mrb[137].mxu1  ;;  %6512 = vmatprep.subr.bf16.mxu1 %v16303_v24 }
 0x45b   : > { %22943 = vst [vmem:[#allocation33_spill] sm:$0xff] %v19088_v14  ;;  %v3950_v49 = vpop.f32.mrb[138].mxu1  ;;  %v3949_v10 = vadd.f32 %v3948_v52, %v18910_v34 }
 0x45c   : > { %v3951_v30 = vadd.f32 %v3950_v49, %v18905_v53  ;;  %v3952_v56 = vpop.f32.mrb[139].mxu1  ;;  %v4278_v60 = vmax.f32 %v3947_v20, 0.0  ;;  %6885 = vmatpush1.bf16.msra.mxu0 %v16304_v59  ;;  %6513 = vmatpush1.bf16.msra.mxu1 %v16301_v40 }
 0x45d   : > { %v3953_v11 = vadd.f32 %v3952_v56, %v18910_v34  ;;  %v4279_v38 = vmax.f32 %v3949_v10, 0.0 }
 0x45e   : > { %v4282_v57 = vmax.f32 %v3951_v30, 0.0  ;;  %13816 = vmatmul.mubr.msk.bf16.gmra.mrb[244].mxu1 %vm3763_vm1, %v18793_v29  ;;  %v16309_v29 = vld [vmem:[%s22664_s9 + $0x9c] ss:$24 sps:$4 sm:$0xff]  }
 0x45f   : > { %4600 = vmatprep.mubr.bf16.mxu1 %v22692_v43  ;;  %v4283_v45 = vmax.f32 %v3953_v11, 0.0  ;;  %6886 = vmatprep.subr.bf16.mxu0 %v16309_v29 }
 0x460   : > { %v19112_v15 = vpack.c.bf16 %v4282_v57, %v4278_v60  ;;  %6887 = vmatpush1.bf16.msra.mxu0 %v16307_v55  ;;  %v16313_v60 = vld [vmem:[%s22664_s9 + $0xc8] ss:$24 sps:$4 sm:$0xff]  }
 0x461   : > { %v3956_v26 = vpop.f32.mrb[140].mxu1  ;;  %v19132_v16 = vpack.c.bf16 %v4283_v45, %v4279_v38  ;;  %6888 = vmatprep.subr.bf16.mxu0 %v16315_v2 }
 0x462   : > { %22946 = vst [vmem:[#allocation3_spill] sm:$0xff] %v19112_v15  ;;  %v3957_v50 = vadd.f32 %v3956_v26, %v18905_v53  ;;  %v3958_v47 = vpop.f32.mrb[141].mxu1 }
 0x463   : > { %22947 = vst [vmem:[#allocation2_spill] sm:$0xff] %v19132_v16  ;;  %v3960_v20 = vpop.f32.mrb[142].mxu1  ;;  %v4735_v52 = vpop.f32.mrb[224].mxu0  ;;  %v3959_v49 = vadd.f32 %v3958_v47, %v18910_v34 }
 0x464   : > { %v3961_v10 = vadd.f32 %v3960_v20, %v18905_v53  ;;  %v4736_v30 = vadd.f32 %v4735_v52, %v19115_v41  ;;  %v3962_v56 = vpop.f32.mrb[143].mxu1  ;;  %v4737_v17 = vpop.f32.mrb[225].mxu0  ;;  %v4286_v38 = vmax.f32 %v3957_v50, 0.0  ;;  %6889 = vmatpush1.bf16.msra.mxu0 %v16313_v60 }
 0x465   : > { %v4738_v59 = vadd.f32 %v4737_v17, %v19127_v7  ;;  %v4739_v11 = vpop.f32.mrb[226].mxu0  ;;  %v3963_v57 = vadd.f32 %v3962_v56, %v18910_v34  ;;  %v4287_v55 = vmax.f32 %v3959_v49, 0.0  ;;  %v16316_v17 = vld [vmem:[%s22664_s9 + $0xf8] ss:$24 sps:$4 sm:$0xff]   ;;  %v16318_v49 = vld [vmem:[%s22664_s9 + $0xfc] ss:$24 sps:$4 sm:$0xff]  }
 0x466   : > { %v4290_v45 = vmax.f32 %v3961_v10, 0.0  ;;  %v4740_v40 = vadd.f32 %v4739_v11, %v19115_v41  ;;  %13817 = vmatmul.mubr.msk.bf16.gmra.mrb[248].mxu1 %vm3763_vm1, %v18813_v25  ;;  %v4741_v24 = vpop.f32.mrb[227].mxu0  ;;  %v4896_v29 = vmax.f32 %v4736_v30, 0.0  ;;  %v16310_v10 = vld [vmem:[%s22664_s9 + $0x1e0] ss:$24 sps:$4 sm:$0xff]   ;;  %6890 = vmatprep.subr.bf16.mxu0 %v16318_v49 }
 0x467   : > { %v4742_v26 = vadd.f32 %v4741_v24, %v19127_v7  ;;  %4610 = vmatprep.mubr.bf16.mxu1 %v22692_v43  ;;  %v4291_v47 = vmax.f32 %v3963_v57, 0.0  ;;  %v4897_v52 = vmax.f32 %v4738_v59, 0.0  ;;  %v16312_v25 = vld [vmem:[%s22664_s9 + $0x1e4] ss:$24 sps:$4 sm:$0xff]  }
 0x468   : > { %v19151_v20 = vpack.c.bf16 %v4290_v45, %v4286_v38  ;;  %v4900_v50 = vmax.f32 %v4740_v40, 0.0  ;;  %6514 = vmatprep.subr.bf16.mxu1 %v16312_v25  ;;  %6891 = vmatpush1.bf16.msra.mxu0 %v16316_v17 }
 0x469   : > { %v4901_v30 = vmax.f32 %v4742_v26, 0.0  ;;  %v3966_v56 = vpop.f32.mrb[144].mxu1  ;;  %v19165_v2 = vpack.c.bf16 %v4291_v47, %v4287_v55  ;;  %6515 = vmatpush1.bf16.msra.mxu1 %v16310_v10  ;;  %v16322_v10 = vld [vmem:[%s22664_s9 + $0x128] ss:$24 sps:$4 sm:$0xff]  }
 0x46a   : > { %22948 = vst [vmem:[#allocation5_spill] sm:$0xff] %v19151_v20  ;;  %v19167_v59 = vpack.c.bf16 %v4900_v50, %v4896_v29  ;;  %v3967_v11 = vadd.f32 %v3966_v56, %v18905_v53  ;;  %v3968_v60 = vpop.f32.mrb[145].mxu1  ;;  %v16324_v29 = vld [vmem:[%s22664_s9 + $0x12c] ss:$24 sps:$4 sm:$0xff]  }
 0x46b   : > { %22949 = vst [vmem:[#allocation4_spill] sm:$0xff] %v19165_v2  ;;  %v19170_v57 = vpack.c.bf16 %v4901_v30, %v4897_v52  ;;  %v3970_v38 = vpop.f32.mrb[146].mxu1  ;;  %v4745_v45 = vpop.f32.mrb[228].mxu0  ;;  %v3969_v40 = vadd.f32 %v3968_v60, %v18910_v34  ;;  %6892 = vmatprep.subr.bf16.mxu0 %v16324_v29  ;;  %v16327_v29 = vld [vmem:[%s22664_s9 + $0x15c] ss:$24 sps:$4 sm:$0xff]  }
 0x46c   : > { %v3971_v24 = vadd.f32 %v3970_v38, %v18905_v53  ;;  %v4746_v26 = vadd.f32 %v4745_v45, %v19115_v41  ;;  %v3972_v55 = vpop.f32.mrb[147].mxu1  ;;  %v4747_v47 = vpop.f32.mrb[229].mxu0  ;;  %v4294_v30 = vmax.f32 %v3967_v11, 0.0  ;;  %v16319_v11 = vld [vmem:[%s22664_s9 + $0x210] ss:$24 sps:$4 sm:$0xff]   ;;  %6893 = vmatpush1.bf16.msra.mxu0 %v16322_v10 }
 0x46d   : > { %v4748_v52 = vadd.f32 %v4747_v47, %v19127_v7  ;;  %v4749_v50 = vpop.f32.mrb[230].mxu0  ;;  %v3973_v25 = vadd.f32 %v3972_v55, %v18910_v34  ;;  %v4295_v45 = vmax.f32 %v3969_v40, 0.0  ;;  %v16325_v40 = vld [vmem:[%s22664_s9 + $0x158] ss:$24 sps:$4 sm:$0xff]   ;;  %6894 = vmatprep.subr.bf16.mxu0 %v16327_v29 }
 0x46e   : > { %v4298_v56 = vmax.f32 %v3971_v24, 0.0  ;;  %v4750_v49 = vadd.f32 %v4749_v50, %v19115_v41  ;;  %13818 = vmatmul.mubr.msk.bf16.gmra.mrb[252].mxu1 %vm3763_vm1, %v18824_v3  ;;  %v4751_v17 = vpop.f32.mrb[231].mxu0  ;;  %v4904_v60 = vmax.f32 %v4746_v26, 0.0  ;;  %v16321_v3 = vld [vmem:[%s22664_s9 + $0x214] ss:$24 sps:$4 sm:$0xff]  }
 0x46f   : > { %v4752_v38 = vadd.f32 %v4751_v17, %v19127_v7  ;;  %4620 = vmatprep.mubr.bf16.mxu1 %v22692_v43  ;;  %v4299_v47 = vmax.f32 %v3973_v25, 0.0  ;;  %v4905_v20 = vmax.f32 %v4748_v52, 0.0  ;;  %6516 = vmatprep.subr.bf16.mxu1 %v16321_v3 }
 0x470   : > { %v19188_v63 = vpack.c.bf16 %v4298_v56, %v4294_v30  ;;  %v4908_v55 = vmax.f32 %v4750_v49, 0.0  ;;  %6517 = vmatpush1.bf16.msra.mxu1 %v16319_v11  ;;  %6895 = vmatpush1.bf16.msra.mxu0 %v16325_v40  ;;  %v16331_v11 = vld [vmem:[%s22664_s9 + $0x188] ss:$24 sps:$4 sm:$0xff]  }
 0x471   : > { %v4909_v24 = vmax.f32 %v4752_v38, 0.0  ;;  %v3976_v26 = vpop.f32.mrb[148].mxu1  ;;  %v19202_v52 = vpack.c.bf16 %v4299_v47, %v4295_v45 }
 0x472   : > { %22950 = vst [vmem:[#allocation7_spill] sm:$0xff] %v19188_v63  ;;  %v19204_v50 = vpack.c.bf16 %v4908_v55, %v4904_v60  ;;  %v3977_v25 = vadd.f32 %v3976_v26, %v18905_v53  ;;  %v3978_v30 = vpop.f32.mrb[149].mxu1  ;;  %v16333_v60 = vld [vmem:[%s22664_s9 + $0x18c] ss:$24 sps:$4 sm:$0xff]  }
 0x473   : > { %22951 = vst [vmem:[#allocation6_spill] sm:$0xff] %v19202_v52  ;;  %v19207_v56 = vpack.c.bf16 %v4909_v24, %v4905_v20  ;;  %v3980_v10 = vpop.f32.mrb[150].mxu1  ;;  %v4755_v49 = vpop.f32.mrb[232].mxu0  ;;  %v3979_v17 = vadd.f32 %v3978_v30, %v18910_v34  ;;  %6896 = vmatprep.subr.bf16.mxu0 %v16333_v60  ;;  %v16336_v60 = vld [vmem:[%s22664_s9 + $0x1bc] ss:$24 sps:$4 sm:$0xff]  }
 0x474   : > { %v3981_v38 = vadd.f32 %v3980_v10, %v18905_v53  ;;  %v4756_v43 = vadd.f32 %v4755_v49, %v19115_v41  ;;  %v3982_v45 = vpop.f32.mrb[151].mxu1  ;;  %v4757_v47 = vpop.f32.mrb[233].mxu0  ;;  %v4302_v24 = vmax.f32 %v3977_v25, 0.0  ;;  %v22952_v49 = vmov 0   ;;  %v16328_v25 = vld [vmem:[%s22664_s9 + $0x240] ss:$24 sps:$4 sm:$0xff]   ;;  %6897 = vmatpush1.bf16.msra.mxu0 %v16331_v11 }
 0x475   : > { %v4758_v20 = vadd.f32 %v4757_v47, %v19127_v7  ;;  %v4759_v55 = vpop.f32.mrb[234].mxu0  ;;  %v3983_v3 = vadd.f32 %v3982_v45, %v18910_v34  ;;  %v4303_v47 = vmax.f32 %v3979_v17, 0.0  ;;  %v16334_v17 = vld [vmem:[%s22664_s9 + $0x1b8] ss:$24 sps:$4 sm:$0xff]   ;;  %6898 = vmatprep.subr.bf16.mxu0 %v16336_v60 }
 0x476   : > { %v4306_v26 = vmax.f32 %v3981_v38, 0.0  ;;  %v4760_v29 = vadd.f32 %v4759_v55, %v19115_v41  ;;  %13819 = vmatmul.mubr.msk.bf16.gmra.mrb[0].mxu1 %vm3763_vm1, %v18830_v48  ;;  %v4761_v40 = vpop.f32.mrb[235].mxu0  ;;  %v4912_v30 = vmax.f32 %v4756_v43, 0.0  ;;  %v16330_v48 = vld [vmem:[%s22664_s9 + $0x244] ss:$24 sps:$4 sm:$0xff]  }
 0x477   : > { %v4762_v10 = vadd.f32 %v4761_v40, %v19127_v7  ;;  %4630 = vmatprep.mubr.bf16.mxu1 %v22952_v49  ;;  %v4307_v63 = vmax.f32 %v3983_v3, 0.0  ;;  %v4913_v2 = vmax.f32 %v4758_v20, 0.0  ;;  %6518 = vmatprep.subr.bf16.mxu1 %v16330_v48 }
 0x478   : > { %v19225_v52 = vpack.c.bf16 %v4306_v26, %v4302_v24  ;;  %v4916_v45 = vmax.f32 %v4760_v29, 0.0  ;;  %6519 = vmatpush1.bf16.msra.mxu1 %v16328_v25  ;;  %6899 = vmatpush1.bf16.msra.mxu0 %v16334_v17  ;;  %v16340_v25 = vld [vmem:[%s22664_s9 + $0x1e8] ss:$24 sps:$4 sm:$0xff]  }
 0x479   : > { %v4917_v43 = vmax.f32 %v4762_v10, 0.0  ;;  %v3986_v38 = vpop.f32.mrb[152].mxu1  ;;  %v19239_v20 = vpack.c.bf16 %v4307_v63, %v4303_v47 }
 0x47a   : > { %22953 = vst [vmem:[#allocation9_spill] sm:$0xff] %v19225_v52  ;;  %v19241_v55 = vpack.c.bf16 %v4916_v45, %v4912_v30  ;;  %v3987_v3 = vadd.f32 %v3986_v38, %v18905_v53  ;;  %v3988_v24 = vpop.f32.mrb[153].mxu1  ;;  %v16342_v30 = vld [vmem:[%s22664_s9 + $0x1ec] ss:$24 sps:$4 sm:$0xff]  }
 0x47b   : > { %22954 = vst [vmem:[#allocation8_spill] sm:$0xff] %v19239_v20  ;;  %v19244_v26 = vpack.c.bf16 %v4917_v43, %v4913_v2  ;;  %v3990_v11 = vpop.f32.mrb[154].mxu1  ;;  %v4765_v29 = vpop.f32.mrb[236].mxu0  ;;  %v3989_v40 = vadd.f32 %v3988_v24, %v18910_v34  ;;  %6900 = vmatprep.subr.bf16.mxu0 %v16342_v30  ;;  %v16345_v30 = vld [vmem:[%s22664_s9 + $0x21c] ss:$24 sps:$4 sm:$0xff]  }
 0x47c   : > { %v3991_v10 = vadd.f32 %v3990_v11, %v18905_v53  ;;  %v4766_v52 = vadd.f32 %v4765_v29, %v19115_v41  ;;  %v3992_v63 = vpop.f32.mrb[155].mxu1  ;;  %v4767_v47 = vpop.f32.mrb[237].mxu0  ;;  %v4310_v43 = vmax.f32 %v3987_v3, 0.0  ;;  %v16337_v3 = vld [vmem:[%s22664_s9 + $0x270] ss:$24 sps:$4 sm:$0xff]   ;;  %6901 = vmatpush1.bf16.msra.mxu0 %v16340_v25 }
 0x47d   : > { %v4768_v2 = vadd.f32 %v4767_v47, %v19127_v7  ;;  %v4769_v45 = vpop.f32.mrb[238].mxu0  ;;  %v3993_v48 = vadd.f32 %v3992_v63, %v18910_v34  ;;  %v4311_v29 = vmax.f32 %v3989_v40, 0.0  ;;  %v16343_v40 = vld [vmem:[%s22664_s9 + $0x218] ss:$24 sps:$4 sm:$0xff]   ;;  %6902 = vmatprep.subr.bf16.mxu0 %v16345_v30 }
 0x47e   : > { %v4314_v38 = vmax.f32 %v3991_v10, 0.0  ;;  %v4770_v60 = vadd.f32 %v4769_v45, %v19115_v41  ;;  %13820 = vmatmul.mubr.msk.bf16.gmra.mrb[4].mxu1 %vm3763_vm1, %v18838_v21  ;;  %v4771_v17 = vpop.f32.mrb[239].mxu0  ;;  %v4920_v24 = vmax.f32 %v4766_v52, 0.0  ;;  %v16339_v21 = vld [vmem:[%s22664_s9 + $0x274] ss:$24 sps:$4 sm:$0xff]  }
 0x47f   : > { %v4772_v11 = vadd.f32 %v4771_v17, %v19127_v7  ;;  %4640 = vmatprep.mubr.bf16.mxu1 %v22952_v49  ;;  %v4315_v47 = vmax.f32 %v3993_v48, 0.0  ;;  %v4921_v15 = vmax.f32 %v4768_v2, 0.0  ;;  %6520 = vmatprep.subr.bf16.mxu1 %v16339_v21 }
 0x480   : > { %v19262_v20 = vpack.c.bf16 %v4314_v38, %v4310_v43  ;;  %v4924_v63 = vmax.f32 %v4770_v60, 0.0  ;;  %6521 = vmatpush1.bf16.msra.mxu1 %v16337_v3  ;;  %6903 = vmatpush1.bf16.msra.mxu0 %v16343_v40  ;;  %v19292_v3 = vrot.slane %v18894_v32, %v19094_v22 }
 0x481   : > { %v4925_v52 = vmax.f32 %v4772_v11, 0.0  ;;  %v3996_v10 = vpop.f32.mrb[156].mxu1  ;;  %v19276_v2 = vpack.c.bf16 %v4315_v47, %v4311_v29 }
 0x482   : > { %22955 = vst [vmem:[#allocation11_spill] sm:$0xff] %v19262_v20  ;;  %v19278_v45 = vpack.c.bf16 %v4924_v63, %v4920_v24  ;;  %v3997_v48 = vadd.f32 %v3996_v10, %v18905_v53  ;;  %v3998_v43 = vpop.f32.mrb[157].mxu1  ;;  %v16351_v24 = vld [vmem:[%s22664_s9 + $0x24c] ss:$24 sps:$4 sm:$0xff]  }
 0x483   : > { %22956 = vst [vmem:[#allocation10_spill] sm:$0xff] %v19276_v2  ;;  %v19281_v38 = vpack.c.bf16 %v4925_v52, %v4921_v15  ;;  %v4000_v25 = vpop.f32.mrb[158].mxu1  ;;  %v4775_v60 = vpop.f32.mrb[240].mxu0  ;;  %v3999_v17 = vadd.f32 %v3998_v43, %v18910_v34  ;;  %v19303_v43 = vrot.slane %v18894_v32, %v19103_v9  ;;  %6904 = vmatprep.subr.bf16.mxu0 %v16351_v24  ;;  %v16348_v32 = vld [vmem:[%s22664_s9 + $0x2a4] ss:$24 sps:$4 sm:$0xff]  }
 0x484   : > { %v4001_v11 = vadd.f32 %v4000_v25, %v18905_v53  ;;  %v4776_v20 = vadd.f32 %v4775_v60, %v19115_v41  ;;  %v4002_v29 = vpop.f32.mrb[159].mxu1  ;;  %v4777_v47 = vpop.f32.mrb[241].mxu0  ;;  %v16349_v53 = vld [vmem:[%s22664_s9 + $0x248] ss:$24 sps:$4 sm:$0xff]   ;;  %v4318_v52 = vmax.f32 %v3997_v48, 0.0  ;;  %6522 = vmatprep.subr.bf16.mxu1 %v16348_v32 }
 0x485   : > { %v4778_v15 = vadd.f32 %v4777_v47, %v19127_v7  ;;  %v4779_v63 = vpop.f32.mrb[242].mxu0  ;;  %v4003_v21 = vadd.f32 %v4002_v29, %v18910_v34  ;;  %v4319_v47 = vmax.f32 %v3999_v17, 0.0  ;;  %6905 = vmatpush1.bf16.msra.mxu0 %v16349_v53  ;;  %v16352_v17 = vld [vmem:[%s22664_s9 + $0x278] ss:$24 sps:$4 sm:$0xff]  }
 0x486   : > { %v4322_v10 = vmax.f32 %v4001_v11, 0.0  ;;  %v4780_v40 = vadd.f32 %v4779_v63, %v19115_v41  ;;  %13821 = vmatmul.mubr.msk.bf16.gmra.mrb[8].mxu1 %vm3763_vm1, %v18846_v23  ;;  %v4781_v30 = vpop.f32.mrb[243].mxu0  ;;  %v4928_v25 = vmax.f32 %v4776_v20, 0.0  ;;  %v16346_v23 = vld [vmem:[%s22664_s9 + $0x2a0] ss:$24 sps:$4 sm:$0xff]  }
 0x487   : > { %v4782_v60 = vadd.f32 %v4781_v30, %v19127_v7  ;;  %4650 = vmatprep.mubr.bf16.mxu1 %v22952_v49  ;;  %v4323_v34 = vmax.f32 %v4003_v21, 0.0  ;;  %v4929_v11 = vmax.f32 %v4778_v15, 0.0  ;;  %v16354_v15 = vld [vmem:[%s22664_s9 + $0x27c] ss:$24 sps:$4 sm:$0xff]   ;;  %6523 = vmatpush1.bf16.msra.mxu1 %v16346_v23  ;;  %v16358_v23 = vld [vmem:[%s22664_s9 + $0x2a8] ss:$24 sps:$4 sm:$0xff]  }
 0x488   : > { %v19307_v48 = vpack.c.bf16 %v4322_v10, %v4318_v52  ;;  %v4932_v29 = vmax.f32 %v4780_v40, 0.0  ;;  %6906 = vmatprep.subr.bf16.mxu0 %v16354_v15 }
 0x489   : > { %v4933_v20 = vmax.f32 %v4782_v60, 0.0  ;;  %v4039_v24 = vpop.f32.mrb[160].mxu1  ;;  %v19321_v63 = vpack.c.bf16 %v4323_v34, %v4319_v47  ;;  %6907 = vmatpush1.bf16.msra.mxu0 %v16352_v17 }
 0x48a   : > { %22957 = vst [vmem:[#allocation13_spill] sm:$0xff] %v19307_v48  ;;  %v19323_v21 = vpack.c.bf16 %v4932_v29, %v4928_v25  ;;  %v4040_v52 = vadd.f32 %v4039_v24, %v19292_v3  ;;  %v4041_v10 = vpop.f32.mrb[161].mxu1  ;;  %v16360_v25 = vld [vmem:[%s22664_s9 + $0x2ac] ss:$24 sps:$4 sm:$0xff]  }
 0x48b   : > { %22958 = vst [vmem:[#allocation12_spill] sm:$0xff] %v19321_v63  ;;  %v19326_v40 = vpack.c.bf16 %v4933_v20, %v4929_v11  ;;  %v4042_v53 = vadd.f32 %v4041_v10, %v19303_v43  ;;  %v4043_v30 = vpop.f32.mrb[162].mxu1  ;;  %v4785_v60 = vpop.f32.mrb[244].mxu0  ;;  %6908 = vmatprep.subr.bf16.mxu0 %v16360_v25  ;;  %v16363_v25 = vld [vmem:[%s22664_s9 + $0x2dc] ss:$24 sps:$4 sm:$0xff]  }
 0x48c   : > { %v4044_v9 = vadd.f32 %v4043_v30, %v19292_v3  ;;  %v4786_v22 = vadd.f32 %v4785_v60, %v19115_v41  ;;  %v4045_v47 = vpop.f32.mrb[163].mxu1  ;;  %v4787_v34 = vpop.f32.mrb[245].mxu0  ;;  %v4200_v20 = vmax.f32 %v4040_v52, 0.0 }
 0x48d   : > { %v4046_v11 = vadd.f32 %v4045_v47, %v19303_v43  ;;  %v4788_v29 = vadd.f32 %v4787_v34, %v19127_v7  ;;  %v4789_v32 = vpop.f32.mrb[246].mxu0  ;;  %v4201_v10 = vmax.f32 %v4042_v53, 0.0  ;;  %6909 = vmatpush1.bf16.msra.mxu0 %v16358_v23  ;;  %v16361_v53 = vld [vmem:[%s22664_s9 + $0x2d8] ss:$24 sps:$4 sm:$0xff]  }
 0x48e   : > { %v4204_v24 = vmax.f32 %v4044_v9, 0.0  ;;  %v4790_v15 = vadd.f32 %v4789_v32, %v19115_v41  ;;  %13822 = vmatmul.mubr.msk.bf16.gmra.mrb[12].mxu1 %vm3763_vm1, %v18854_v39  ;;  %v4791_v17 = vpop.f32.mrb[247].mxu0  ;;  %v4936_v30 = vmax.f32 %v4786_v22, 0.0  ;;  %v16355_v9 = vld [vmem:[%s22664_s9 + $0x2d0] ss:$24 sps:$4 sm:$0xff]   ;;  %6910 = vmatprep.subr.bf16.mxu0 %v16363_v25 }
 0x48f   : > { %v4205_v60 = vmax.f32 %v4046_v11, 0.0  ;;  %v4792_v47 = vadd.f32 %v4791_v17, %v19127_v7  ;;  %4660 = vmatprep.mubr.bf16.mxu1 %v22952_v49  ;;  %v4937_v48 = vmax.f32 %v4788_v29, 0.0  ;;  %v16357_v39 = vld [vmem:[%s22664_s9 + $0x2d4] ss:$24 sps:$4 sm:$0xff]  }
 0x490   : > { %v19344_v34 = vpack.c.bf16 %v4204_v24, %v4200_v20  ;;  %v4940_v63 = vmax.f32 %v4790_v15, 0.0  ;;  %6524 = vmatprep.subr.bf16.mxu1 %v16357_v39 }
 0x491   : > { %v4941_v52 = vmax.f32 %v4792_v47, 0.0  ;;  %v4049_v22 = vpop.f32.mrb[164].mxu1  ;;  %v19358_v11 = vpack.c.bf16 %v4205_v60, %v4201_v10  ;;  %6525 = vmatpush1.bf16.msra.mxu1 %v16355_v9  ;;  %6911 = vmatpush1.bf16.msra.mxu0 %v16361_v53 }
 0x492   : > { %22959 = vst [vmem:[#allocation15_spill] sm:$0xff] %v19344_v34  ;;  %v19360_v29 = vpack.c.bf16 %v4940_v63, %v4936_v30  ;;  %v4050_v32 = vadd.f32 %v4049_v22, %v19292_v3  ;;  %v4051_v20 = vpop.f32.mrb[165].mxu1 }
 0x493   : > { %22960 = vst [vmem:[#allocation14_spill] sm:$0xff] %v19358_v11  ;;  %v19363_v24 = vpack.c.bf16 %v4941_v52, %v4937_v48  ;;  %v4052_v23 = vadd.f32 %v4051_v20, %v19303_v43  ;;  %v4053_v15 = vpop.f32.mrb[166].mxu1  ;;  %v4795_v17 = vpop.f32.mrb[248].mxu0 }
 0x494   : > { %v4054_v47 = vadd.f32 %v4053_v15, %v19292_v3  ;;  %v4796_v34 = vadd.f32 %v4795_v17, %v19115_v41  ;;  %v4055_v10 = vpop.f32.mrb[167].mxu1  ;;  %v4797_v60 = vpop.f32.mrb[249].mxu0  ;;  %v4208_v48 = vmax.f32 %v4050_v32, 0.0  ;;  %v16366_v32 = vld [vmem:[%s22664_s9 + $0x304] ss:$24 sps:$4 sm:$0xff]  }
 0x495   : > { %v4056_v63 = vadd.f32 %v4055_v10, %v19303_v43  ;;  %v4798_v30 = vadd.f32 %v4797_v60, %v19127_v7  ;;  %v4799_v39 = vpop.f32.mrb[250].mxu0  ;;  %v4209_v25 = vmax.f32 %v4052_v23, 0.0  ;;  %6687 = vmatprep.subr.bf16.mxu1 %v16366_v32 }
 0x496   : > { %v4212_v52 = vmax.f32 %v4054_v47, 0.0  ;;  %v4800_v22 = vadd.f32 %v4799_v39, %v19115_v41  ;;  %13823 = vmatmul.mubr.msk.bf16.gmra.mrb[16].mxu1 %vm3763_vm1, %v18862_v13  ;;  %v4801_v9 = vpop.f32.mrb[251].mxu0  ;;  %v4944_v17 = vmax.f32 %v4796_v34, 0.0 }
 0x497   : > { %v4213_v20 = vmax.f32 %v4056_v63, 0.0  ;;  %v4802_v15 = vadd.f32 %v4801_v9, %v19127_v7  ;;  %4670 = vmatprep.mubr.bf16.mxu1 %v22952_v49  ;;  %v4945_v47 = vmax.f32 %v4798_v30, 0.0 }
 0x498   : > { %v19375_v53 = vpack.c.bf16 %v4212_v52, %v4208_v48  ;;  %v4948_v10 = vmax.f32 %v4800_v22, 0.0 }
 0x499   : > { %v4949_v60 = vmax.f32 %v4802_v15, 0.0  ;;  %v4059_v39 = vpop.f32.mrb[168].mxu1  ;;  %v19380_v11 = vpack.c.bf16 %v4213_v20, %v4209_v25 }
 0x49a   : > { %22961 = vst [vmem:[#allocation16_spill] sm:$0xff] %v19375_v53  ;;  %v19382_v13 = vpack.c.bf16 %v4948_v10, %v4944_v17  ;;  %v4060_v23 = vadd.f32 %v4059_v39, %v19292_v3  ;;  %v4061_v63 = vpop.f32.mrb[169].mxu1 }
 0x49b   : > { %22962 = vst [vmem:[#allocation17_spill] sm:$0xff] %v19380_v11  ;;  %v19385_v9 = vpack.c.bf16 %v4949_v60, %v4945_v47  ;;  %v4062_v34 = vadd.f32 %v4061_v63, %v19303_v43  ;;  %v4063_v48 = vpop.f32.mrb[170].mxu1  ;;  %v4805_v52 = vpop.f32.mrb[252].mxu0 }
 0x49c   : > { %v4064_v22 = vadd.f32 %v4063_v48, %v19292_v3  ;;  %v4806_v30 = vadd.f32 %v4805_v52, %v19115_v41  ;;  %v4065_v15 = vpop.f32.mrb[171].mxu1  ;;  %v4807_v53 = vpop.f32.mrb[253].mxu0  ;;  %v4216_v10 = vmax.f32 %v4060_v23, 0.0 }
 0x49d   : > { %v4066_v25 = vadd.f32 %v4065_v15, %v19303_v43  ;;  %v4808_v20 = vadd.f32 %v4807_v53, %v19127_v7  ;;  %v4809_v17 = vpop.f32.mrb[254].mxu0  ;;  %v4217_v60 = vmax.f32 %v4062_v34, 0.0 }
 0x49e   : > { %v4220_v39 = vmax.f32 %v4064_v22, 0.0  ;;  %v4810_v32 = vadd.f32 %v4809_v17, %v19115_v41  ;;  %13824 = vmatmul.mubr.msk.bf16.gmra.mrb[20].mxu1 %vm3763_vm1, %v18870_v1  ;;  %v4811_v47 = vpop.f32.mrb[255].mxu0  ;;  %v4952_v15 = vmax.f32 %v4806_v30, 0.0 }
 0x49f   : > { %v4221_v63 = vmax.f32 %v4066_v25, 0.0  ;;  %v4812_v48 = vadd.f32 %v4811_v47, %v19127_v7  ;;  %4680 = vmatprep.mubr.bf16.mxu1 %v22952_v49  ;;  %v4953_v53 = vmax.f32 %v4808_v20, 0.0 }
 0x4a0   : > { %v19397_v52 = vpack.c.bf16 %v4220_v39, %v4216_v10  ;;  %v4956_v11 = vmax.f32 %v4810_v32, 0.0 }
 0x4a1   : > { %v4957_v2 = vmax.f32 %v4812_v48, 0.0  ;;  %v4069_v23 = vpop.f32.mrb[172].mxu1  ;;  %v19399_v22 = vpack.c.bf16 %v4221_v63, %v4217_v60 }
 0x4a2   : > { %22963 = vst [vmem:[#allocation37_spill] sm:$0xff] %v19397_v52  ;;  %v19401_v17 = vpack.c.bf16 %v4956_v11, %v4952_v15  ;;  %v4070_v1 = vadd.f32 %v4069_v23, %v19292_v3  ;;  %v4071_v16 = vpop.f32.mrb[173].mxu1 }
 0x4a3   : > { %22964 = vst [vmem:[#allocation38_spill] sm:$0xff] %v19399_v22  ;;  %v19404_v34 = vpack.c.bf16 %v4957_v2, %v4953_v53  ;;  %v4072_v25 = vadd.f32 %v4071_v16, %v19303_v43  ;;  %v4073_v47 = vpop.f32.mrb[174].mxu1  ;;  %v4815_v0 = vpop.f32.mrb[0].mxu0 }
 0x4a4   : > { %v4074_v10 = vadd.f32 %v4073_v47, %v19292_v3  ;;  %v4816_v30 = vadd.f32 %v4815_v0, %v19115_v41  ;;  %v4075_v20 = vpop.f32.mrb[175].mxu1  ;;  %v4817_v39 = vpop.f32.mrb[1].mxu0  ;;  %v4224_v63 = vmax.f32 %v4070_v1, 0.0 }
 0x4a5   : > { %v4076_v32 = vadd.f32 %v4075_v20, %v19303_v43  ;;  %v4818_v11 = vadd.f32 %v4817_v39, %v19127_v7  ;;  %v4819_v60 = vpop.f32.mrb[2].mxu0  ;;  %v4225_v15 = vmax.f32 %v4072_v25, 0.0 }
 0x4a6   : > { %v4228_v48 = vmax.f32 %v4074_v10, 0.0  ;;  %v4820_v2 = vadd.f32 %v4819_v60, %v19115_v41  ;;  %13825 = vmatmul.mubr.msk.bf16.gmra.mrb[24].mxu1 %vm3763_vm1, %v18878_v37  ;;  %v4821_v16 = vpop.f32.mrb[3].mxu0  ;;  %v4960_v47 = vmax.f32 %v4816_v30, 0.0 }
 0x4a7   : > { %v4229_v53 = vmax.f32 %v4076_v32, 0.0  ;;  %v4822_v23 = vadd.f32 %v4821_v16, %v19127_v7  ;;  %4690 = vmatprep.mubr.bf16.mxu1 %v22952_v49  ;;  %v4961_v39 = vmax.f32 %v4818_v11, 0.0 }
 0x4a8   : > { %v19416_v0 = vpack.c.bf16 %v4228_v48, %v4224_v63  ;;  %v4964_v20 = vmax.f32 %v4820_v2, 0.0 }
 0x4a9   : > { %v4965_v52 = vmax.f32 %v4822_v23, 0.0  ;;  %v4079_v1 = vpop.f32.mrb[176].mxu1  ;;  %v19418_v10 = vpack.c.bf16 %v4229_v53, %v4225_v15 }
 0x4aa   : > { %22965 = vst [vmem:[#allocation39_spill] sm:$0xff] %v19416_v0  ;;  %v19420_v60 = vpack.c.bf16 %v4964_v20, %v4960_v47  ;;  %v4080_v37 = vadd.f32 %v4079_v1, %v19292_v3  ;;  %v4081_v22 = vpop.f32.mrb[177].mxu1 }
 0x4ab   : > { %22966 = vst [vmem:[#allocation40_spill] sm:$0xff] %v19418_v10  ;;  %v19423_v25 = vpack.c.bf16 %v4965_v52, %v4961_v39  ;;  %v4082_v32 = vadd.f32 %v4081_v22, %v19303_v43  ;;  %v4083_v16 = vpop.f32.mrb[178].mxu1  ;;  %v4825_v49 = vpop.f32.mrb[4].mxu0 }
 0x4ac   : > { %v4084_v63 = vadd.f32 %v4083_v16, %v19292_v3  ;;  %v4826_v30 = vadd.f32 %v4825_v49, %v19115_v41  ;;  %v4085_v11 = vpop.f32.mrb[179].mxu1  ;;  %v4827_v48 = vpop.f32.mrb[5].mxu0  ;;  %v4232_v23 = vmax.f32 %v4080_v37, 0.0 }
 0x4ad   : > { %v4086_v2 = vadd.f32 %v4085_v11, %v19303_v43  ;;  %v4828_v15 = vadd.f32 %v4827_v48, %v19127_v7  ;;  %v4829_v53 = vpop.f32.mrb[6].mxu0  ;;  %v4233_v20 = vmax.f32 %v4082_v32, 0.0 }
 0x4ae   : > { %v4236_v47 = vmax.f32 %v4084_v63, 0.0  ;;  %v4830_v52 = vadd.f32 %v4829_v53, %v19115_v41  ;;  %13826 = vmatmul.mubr.msk.bf16.gmra.mrb[28].mxu1 %vm3763_vm1, %v18899_v27  ;;  %v4831_v22 = vpop.f32.mrb[7].mxu0  ;;  %v4968_v49 = vmax.f32 %v4826_v30, 0.0 }
 0x4af   : > { %v4237_v39 = vmax.f32 %v4086_v2, 0.0  ;;  %v4832_v1 = vadd.f32 %v4831_v22, %v19127_v7  ;;  %v4969_v11 = vmax.f32 %v4828_v15, 0.0 }
 0x4b0   : > { %v19434_v16 = vpack.c.bf16 %v4236_v47, %v4232_v23  ;;  %v4972_v0 = vmax.f32 %v4830_v52, 0.0 }
 0x4b1   : > { %v4973_v10 = vmax.f32 %v4832_v1, 0.0  ;;  %v4089_v48 = vpop.f32.mrb[180].mxu1  ;;  %v19436_v14 = vpack.c.bf16 %v4237_v39, %v4233_v20 }
 0x4b2   : > { %22967 = vst [vmem:[#allocation41_spill] sm:$0xff] %v19434_v16  ;;  %v19438_v37 = vpack.c.bf16 %v4972_v0, %v4968_v49  ;;  %v4090_v63 = vadd.f32 %v4089_v48, %v19292_v3  ;;  %v4091_v53 = vpop.f32.mrb[181].mxu1 }
 0x4b3   : > { %22968 = vst [vmem:[#allocation42_spill] sm:$0xff] %v19436_v14  ;;  %v19441_v27 = vpack.c.bf16 %v4973_v10, %v4969_v11  ;;  %v4092_v32 = vadd.f32 %v4091_v53, %v19303_v43  ;;  %v4093_v2 = vpop.f32.mrb[182].mxu1  ;;  %v4835_v22 = vpop.f32.mrb[8].mxu0 }
 0x4b4   : > { %v4094_v23 = vadd.f32 %v4093_v2, %v19292_v3  ;;  %v4836_v30 = vadd.f32 %v4835_v22, %v19115_v41  ;;  %v4095_v15 = vpop.f32.mrb[183].mxu1  ;;  %v4837_v47 = vpop.f32.mrb[9].mxu0  ;;  %v4240_v39 = vmax.f32 %v4090_v63, 0.0 }
 0x4b5   : > { %v4096_v52 = vadd.f32 %v4095_v15, %v19303_v43  ;;  %v4838_v0 = vadd.f32 %v4837_v47, %v19127_v7  ;;  %v4839_v20 = vpop.f32.mrb[10].mxu0  ;;  %v4241_v11 = vmax.f32 %v4092_v32, 0.0 }
 0x4b6   : > { %v4244_v1 = vmax.f32 %v4094_v23, 0.0  ;;  %v4840_v10 = vadd.f32 %v4839_v20, %v19115_v41  ;;  %v4841_v49 = vpop.f32.mrb[11].mxu0  ;;  %v4976_v2 = vmax.f32 %v4836_v30, 0.0 }
 0x4b7   : > { %v4245_v48 = vmax.f32 %v4096_v52, 0.0  ;;  %v4842_v53 = vadd.f32 %v4841_v49, %v19127_v7  ;;  %v4977_v14 = vmax.f32 %v4838_v0, 0.0 }
 0x4b8   : > { %v19450_v16 = vpack.c.bf16 %v4244_v1, %v4240_v39  ;;  %v4980_v22 = vmax.f32 %v4840_v10, 0.0 }
 0x4b9   : > { %v4981_v28 = vmax.f32 %v4842_v53, 0.0  ;;  %v4099_v36 = vpop.f32.mrb[184].mxu1  ;;  %v19452_v15 = vpack.c.bf16 %v4245_v48, %v4241_v11 }
 0x4ba   : > { %22969 = vst [vmem:[#allocation43_spill] sm:$0xff] %v19450_v16  ;;  %v19454_v47 = vpack.c.bf16 %v4980_v22, %v4976_v2  ;;  %v4100_v63 = vadd.f32 %v4099_v36, %v19292_v3  ;;  %v4101_v23 = vpop.f32.mrb[185].mxu1 }
 0x4bb   : > { %22970 = vst [vmem:[#allocation44_spill] sm:$0xff] %v19452_v15  ;;  %v19457_v20 = vpack.c.bf16 %v4981_v28, %v4977_v14  ;;  %v4102_v32 = vadd.f32 %v4101_v23, %v19303_v43  ;;  %v4103_v52 = vpop.f32.mrb[186].mxu1  ;;  %v4845_v49 = vpop.f32.mrb[12].mxu0 }
 0x4bc   : > { %v4104_v39 = vadd.f32 %v4103_v52, %v19292_v3  ;;  %v4846_v30 = vadd.f32 %v4845_v49, %v19115_v41  ;;  %v4105_v0 = vpop.f32.mrb[187].mxu1  ;;  %v4847_v1 = vpop.f32.mrb[13].mxu0  ;;  %v4248_v53 = vmax.f32 %v4100_v63, 0.0 }
 0x4bd   : > { %v4106_v10 = vadd.f32 %v4105_v0, %v19303_v43  ;;  %v4848_v11 = vadd.f32 %v4847_v1, %v19127_v7  ;;  %v4849_v48 = vpop.f32.mrb[14].mxu0  ;;  %v4249_v2 = vmax.f32 %v4102_v32, 0.0 }
 0x4be   : > { %v4252_v36 = vmax.f32 %v4104_v39, 0.0  ;;  %v4850_v28 = vadd.f32 %v4849_v48, %v19115_v41  ;;  %v4851_v14 = vpop.f32.mrb[15].mxu0  ;;  %v4984_v52 = vmax.f32 %v4846_v30, 0.0 }
 0x4bf   : > { %v4253_v22 = vmax.f32 %v4106_v10, 0.0  ;;  %v4852_v23 = vadd.f32 %v4851_v14, %v19127_v7  ;;  %v4985_v15 = vmax.f32 %v4848_v11, 0.0 }
 0x4c0   : > { %v19466_v16 = vpack.c.bf16 %v4252_v36, %v4248_v53  ;;  %v4988_v49 = vmax.f32 %v4850_v28, 0.0 }
 0x4c1   : > { %v4989_v31 = vmax.f32 %v4852_v23, 0.0  ;;  %v4109_v6 = vpop.f32.mrb[188].mxu1  ;;  %v19468_v0 = vpack.c.bf16 %v4253_v22, %v4249_v2 }
 0x4c2   : > { %22971 = vst [vmem:[#allocation45_spill] sm:$0xff] %v19466_v16  ;;  %v19470_v1 = vpack.c.bf16 %v4988_v49, %v4984_v52  ;;  %v4110_v63 = vadd.f32 %v4109_v6, %v19292_v3  ;;  %v4111_v39 = vpop.f32.mrb[189].mxu1 }
 0x4c3   : > { %22972 = vst [vmem:[#allocation46_spill] sm:$0xff] %v19468_v0  ;;  %v19473_v48 = vpack.c.bf16 %v4989_v31, %v4985_v15  ;;  %v4112_v32 = vadd.f32 %v4111_v39, %v19303_v43  ;;  %v4113_v10 = vpop.f32.mrb[190].mxu1  ;;  %v4855_v14 = vpop.f32.mrb[16].mxu0 }
 0x4c4   : > { %v4114_v53 = vadd.f32 %v4113_v10, %v19292_v3  ;;  %v4856_v30 = vadd.f32 %v4855_v14, %v19115_v41  ;;  %v4115_v11 = vpop.f32.mrb[191].mxu1  ;;  %v4857_v36 = vpop.f32.mrb[17].mxu0  ;;  %v4256_v23 = vmax.f32 %v4110_v63, 0.0 }
 0x4c5   : > { %v4116_v28 = vadd.f32 %v4115_v11, %v19303_v43  ;;  %v4858_v2 = vadd.f32 %v4857_v36, %v19127_v7  ;;  %v4859_v22 = vpop.f32.mrb[18].mxu0  ;;  %v4257_v52 = vmax.f32 %v4112_v32, 0.0 }
 0x4c6   : > { %v4260_v6 = vmax.f32 %v4114_v53, 0.0  ;;  %v4860_v31 = vadd.f32 %v4859_v22, %v19115_v41  ;;  %v4861_v15 = vpop.f32.mrb[19].mxu0  ;;  %v4992_v10 = vmax.f32 %v4856_v30, 0.0 }
 0x4c7   : > { %v4261_v49 = vmax.f32 %v4116_v28, 0.0  ;;  %v4862_v39 = vadd.f32 %v4861_v15, %v19127_v7  ;;  %v4993_v0 = vmax.f32 %v4858_v2, 0.0 }
 0x4c8   : > { %v19482_v16 = vpack.c.bf16 %v4260_v6, %v4256_v23  ;;  %v4996_v14 = vmax.f32 %v4860_v31, 0.0 }
 0x4c9   : > { %v4997_v12 = vmax.f32 %v4862_v39, 0.0  ;;  %v4119_v42 = vpop.f32.mrb[192].mxu1  ;;  %v19484_v11 = vpack.c.bf16 %v4261_v49, %v4257_v52 }
 0x4ca   : > { %22973 = vst [vmem:[#allocation47_spill] sm:$0xff] %v19482_v16  ;;  %v19486_v36 = vpack.c.bf16 %v4996_v14, %v4992_v10  ;;  %v4120_v63 = vadd.f32 %v4119_v42, %v19292_v3  ;;  %v4121_v53 = vpop.f32.mrb[193].mxu1 }
 0x4cb   : > { %22974 = vst [vmem:[#allocation48_spill] sm:$0xff] %v19484_v11  ;;  %v19489_v22 = vpack.c.bf16 %v4997_v12, %v4993_v0  ;;  %v4122_v32 = vadd.f32 %v4121_v53, %v19303_v43  ;;  %v4123_v28 = vpop.f32.mrb[194].mxu1  ;;  %v4865_v15 = vpop.f32.mrb[20].mxu0 }
 0x4cc   : > { %v4124_v23 = vadd.f32 %v4123_v28, %v19292_v3  ;;  %v4866_v30 = vadd.f32 %v4865_v15, %v19115_v41  ;;  %v4125_v2 = vpop.f32.mrb[195].mxu1  ;;  %v4867_v6 = vpop.f32.mrb[21].mxu0  ;;  %v4264_v39 = vmax.f32 %v4120_v63, 0.0 }
 0x4cd   : > { %v4126_v31 = vadd.f32 %v4125_v2, %v19303_v43  ;;  %v4868_v52 = vadd.f32 %v4867_v6, %v19127_v7  ;;  %v4869_v49 = vpop.f32.mrb[22].mxu0  ;;  %v4265_v10 = vmax.f32 %v4122_v32, 0.0 }
 0x4ce   : > { %v4268_v42 = vmax.f32 %v4124_v23, 0.0  ;;  %v4870_v12 = vadd.f32 %v4869_v49, %v19115_v41  ;;  %v4871_v0 = vpop.f32.mrb[23].mxu0  ;;  %v5000_v28 = vmax.f32 %v4866_v30, 0.0 }
 0x4cf   : > { %v4269_v14 = vmax.f32 %v4126_v31, 0.0  ;;  %v4872_v53 = vadd.f32 %v4871_v0, %v19127_v7  ;;  %v5001_v11 = vmax.f32 %v4868_v52, 0.0 }
 0x4d0   : > { %v19498_v16 = vpack.c.bf16 %v4268_v42, %v4264_v39  ;;  %v5004_v15 = vmax.f32 %v4870_v12, 0.0  ;;  %v16393_v12 = vld [vmem:[%s22664_s9 + $0x30c] ss:$24 sps:$4 sm:$0xff]  }
 0x4d1   : > { %v5005_v61 = vmax.f32 %v4872_v53, 0.0  ;;  %v4129_v18 = vpop.f32.mrb[196].mxu1  ;;  %v19500_v2 = vpack.c.bf16 %v4269_v14, %v4265_v10  ;;  %7073 = vmatprep.subr.bf16.mxu0 %v16393_v12 }
 0x4d2   : > { %22975 = vst [vmem:[#allocation49_spill] sm:$0xff] %v19498_v16  ;;  %v19502_v6 = vpack.c.bf16 %v5004_v15, %v5000_v28  ;;  %v4130_v63 = vadd.f32 %v4129_v18, %v19292_v3  ;;  %v4131_v23 = vpop.f32.mrb[197].mxu1 }
 0x4d3   : > { %22976 = vst [vmem:[#allocation50_spill] sm:$0xff] %v19500_v2  ;;  %v19505_v49 = vpack.c.bf16 %v5005_v61, %v5001_v11  ;;  %v4132_v32 = vadd.f32 %v4131_v23, %v19303_v43  ;;  %v4133_v31 = vpop.f32.mrb[198].mxu1  ;;  %v4875_v0 = vpop.f32.mrb[24].mxu0 }
 0x4d4   : > { %v4134_v39 = vadd.f32 %v4133_v31, %v19292_v3  ;;  %v4876_v30 = vadd.f32 %v4875_v0, %v19115_v41  ;;  %v4135_v52 = vpop.f32.mrb[199].mxu1  ;;  %v4877_v42 = vpop.f32.mrb[25].mxu0  ;;  %v4272_v11 = vmax.f32 %v4130_v63, 0.0 }
 0x4d5   : > { %v4136_v10 = vadd.f32 %v4135_v52, %v19303_v43  ;;  %v4878_v18 = vadd.f32 %v4877_v42, %v19127_v7  ;;  %v4879_v61 = vpop.f32.mrb[26].mxu0  ;;  %v4273_v15 = vmax.f32 %v4132_v32, 0.0 }
 0x4d6   : > { %v4276_v14 = vmax.f32 %v4134_v39, 0.0  ;;  %v4880_v53 = vadd.f32 %v4879_v61, %v19115_v41  ;;  %v4881_v28 = vpop.f32.mrb[27].mxu0  ;;  %v5008_v16 = vmax.f32 %v4876_v30, 0.0 }
 0x4d7   : > { %v4277_v23 = vmax.f32 %v4136_v10, 0.0  ;;  %v4882_v31 = vadd.f32 %v4881_v28, %v19127_v7  ;;  %v5009_v33 = vmax.f32 %v4878_v18, 0.0 }
 0x4d8   : > { %v19517_v0 = vpack.c.bf16 %v4276_v14, %v4272_v11  ;;  %v5012_v2 = vmax.f32 %v4880_v53, 0.0 }
 0x4d9   : > { %v5013_v62 = vmax.f32 %v4882_v31, 0.0  ;;  %v4139_v52 = vpop.f32.mrb[200].mxu1  ;;  %v19519_v58 = vpack.c.bf16 %v4277_v23, %v4273_v15 }
 0x4da   : > { %22977 = vst [vmem:[#allocation51_spill] sm:$0xff] %v19517_v0  ;;  %v19521_v42 = vpack.c.bf16 %v5012_v2, %v5008_v16  ;;  %v4140_v63 = vadd.f32 %v4139_v52, %v19292_v3  ;;  %v4141_v39 = vpop.f32.mrb[201].mxu1 }
 0x4db   : > { %22978 = vst [vmem:[#allocation52_spill] sm:$0xff] %v19519_v58  ;;  %v19524_v61 = vpack.c.bf16 %v5013_v62, %v5009_v33  ;;  %v4142_v32 = vadd.f32 %v4141_v39, %v19303_v43  ;;  %v4143_v12 = vpop.f32.mrb[202].mxu1  ;;  %v4885_v10 = vpop.f32.mrb[28].mxu0 }
 0x4dc   : > { %v4144_v11 = vadd.f32 %v4143_v12, %v19292_v3  ;;  %v4886_v30 = vadd.f32 %v4885_v10, %v19115_v41  ;;  %v4145_v18 = vpop.f32.mrb[203].mxu1  ;;  %v4887_v14 = vpop.f32.mrb[29].mxu0  ;;  %v4280_v28 = vmax.f32 %v4140_v63, 0.0 }
 0x4dd   : > { %v4146_v53 = vadd.f32 %v4145_v18, %v19303_v43  ;;  %v4888_v16 = vadd.f32 %v4887_v14, %v19127_v7  ;;  %v4889_v2 = vpop.f32.mrb[30].mxu0  ;;  %v4281_v23 = vmax.f32 %v4142_v32, 0.0 }
 0x4de   : > { %v4284_v15 = vmax.f32 %v4144_v11, 0.0  ;;  %v4890_v33 = vadd.f32 %v4889_v2, %v19115_v41  ;;  %v4891_v62 = vpop.f32.mrb[31].mxu0  ;;  %v5016_v12 = vmax.f32 %v4886_v30, 0.0 }
 0x4df   : > { %v4285_v31 = vmax.f32 %v4146_v53, 0.0  ;;  %v4892_v52 = vadd.f32 %v4891_v62, %v19127_v7  ;;  %v5017_v0 = vmax.f32 %v4888_v16, 0.0 }
 0x4e0   : > { %v19533_v39 = vpack.c.bf16 %v4284_v15, %v4280_v28  ;;  %v5020_v10 = vmax.f32 %v4890_v33, 0.0 }
 0x4e1   : > { %v5021_v58 = vmax.f32 %v4892_v52, 0.0  ;;  %v4149_v44 = vpop.f32.mrb[204].mxu1  ;;  %v19535_v18 = vpack.c.bf16 %v4285_v31, %v4281_v23 }
 0x4e2   : > { %22979 = vst [vmem:[#allocation53_spill] sm:$0xff] %v19533_v39  ;;  %v19537_v14 = vpack.c.bf16 %v5020_v10, %v5016_v12  ;;  %v4150_v63 = vadd.f32 %v4149_v44, %v19292_v3  ;;  %v4151_v11 = vpop.f32.mrb[205].mxu1 }
 0x4e3   : > { %22980 = vst [vmem:[#allocation54_spill] sm:$0xff] %v19535_v18  ;;  %v19540_v41 = vpack.c.bf16 %v5021_v58, %v5017_v0  ;;  %v4152_v32 = vadd.f32 %v4151_v11, %v19303_v43  ;;  %v4153_v53 = vpop.f32.mrb[206].mxu1 }
 0x4e4   : > { %v4154_v7 = vadd.f32 %v4153_v53, %v19292_v3  ;;  %v4155_v2 = vpop.f32.mrb[207].mxu1  ;;  %v4288_v16 = vmax.f32 %v4150_v63, 0.0 }
 0x4e5   : > { %v4156_v30 = vadd.f32 %v4155_v2, %v19303_v43  ;;  %v4289_v15 = vmax.f32 %v4152_v32, 0.0 }
 0x4e6   : > { %v4292_v28 = vmax.f32 %v4154_v7, 0.0 }
 0x4e7   : > { %v4293_v33 = vmax.f32 %v4156_v30, 0.0 }
 0x4e8   : > { %v19545_v62 = vpack.c.bf16 %v4292_v28, %v4288_v16 }
 0x4e9   : > { %v4159_v23 = vpop.f32.mrb[208].mxu1  ;;  %v19547_v31 = vpack.c.bf16 %v4293_v33, %v4289_v15 }
 0x4ea   : > { %22981 = vst [vmem:[#allocation55_spill] sm:$0xff] %v19545_v62  ;;  %v4160_v58 = vadd.f32 %v4159_v23, %v19292_v3  ;;  %v4161_v44 = vpop.f32.mrb[209].mxu1 }
 0x4eb   : > { %22982 = vst [vmem:[#allocation56_spill] sm:$0xff] %v19547_v31  ;;  %v4162_v0 = vadd.f32 %v4161_v44, %v19303_v43  ;;  %v4163_v52 = vpop.f32.mrb[210].mxu1 }
 0x4ec   : > { %v4164_v12 = vadd.f32 %v4163_v52, %v19292_v3  ;;  %v4165_v10 = vpop.f32.mrb[211].mxu1  ;;  %v4296_v63 = vmax.f32 %v4160_v58, 0.0 }
 0x4ed   : > { %v4166_v11 = vadd.f32 %v4165_v10, %v19303_v43  ;;  %v4297_v32 = vmax.f32 %v4162_v0, 0.0 }
 0x4ee   : > { %v4300_v53 = vmax.f32 %v4164_v12, 0.0 }
 0x4ef   : > { %v4301_v7 = vmax.f32 %v4166_v11, 0.0 }
 0x4f0   : > { %v19553_v2 = vpack.c.bf16 %v4300_v53, %v4296_v63 }
 0x4f1   : > { %v4169_v30 = vpop.f32.mrb[212].mxu1  ;;  %v19555_v16 = vpack.c.bf16 %v4301_v7, %v4297_v32 }
 0x4f2   : > { %22983 = vst [vmem:[#allocation57_spill] sm:$0xff] %v19553_v2  ;;  %v4170_v28 = vadd.f32 %v4169_v30, %v19292_v3  ;;  %v4171_v15 = vpop.f32.mrb[213].mxu1 }
 0x4f3   : > { %22984 = vst [vmem:[#allocation58_spill] sm:$0xff] %v19555_v16  ;;  %v4172_v33 = vadd.f32 %v4171_v15, %v19303_v43  ;;  %v4173_v23 = vpop.f32.mrb[214].mxu1 }
 0x4f4   : > { %v4174_v44 = vadd.f32 %v4173_v23, %v19292_v3  ;;  %v4175_v52 = vpop.f32.mrb[215].mxu1  ;;  %v4304_v58 = vmax.f32 %v4170_v28, 0.0 }
 0x4f5   : > { %v4176_v10 = vadd.f32 %v4175_v52, %v19303_v43  ;;  %v4305_v0 = vmax.f32 %v4172_v33, 0.0 }
 0x4f6   : > { %v4308_v12 = vmax.f32 %v4174_v44, 0.0 }
 0x4f7   : > { %v4309_v11 = vmax.f32 %v4176_v10, 0.0 }
 0x4f8   : > { %v19561_v63 = vpack.c.bf16 %v4308_v12, %v4304_v58 }
 0x4f9   : > { %v4179_v53 = vpop.f32.mrb[216].mxu1  ;;  %v19563_v32 = vpack.c.bf16 %v4309_v11, %v4305_v0 }
 0x4fa   : > { %22985 = vst [vmem:[#allocation59_spill] sm:$0xff] %v19561_v63  ;;  %v4180_v7 = vadd.f32 %v4179_v53, %v19292_v3  ;;  %v4181_v30 = vpop.f32.mrb[217].mxu1 }
 0x4fb   : > { %22986 = vst [vmem:[#allocation60_spill] sm:$0xff] %v19563_v32  ;;  %v4182_v15 = vadd.f32 %v4181_v30, %v19303_v43  ;;  %v4183_v2 = vpop.f32.mrb[218].mxu1 }
 0x4fc   : > { %v4184_v23 = vadd.f32 %v4183_v2, %v19292_v3  ;;  %v4185_v16 = vpop.f32.mrb[219].mxu1  ;;  %v4312_v28 = vmax.f32 %v4180_v7, 0.0 }
 0x4fd   : > { %v4186_v52 = vadd.f32 %v4185_v16, %v19303_v43  ;;  %v4313_v33 = vmax.f32 %v4182_v15, 0.0  ;;  %v17166_v15 = vld [vmem:[%s22662_s7] sm:$0xf] }
 0x4fe   : > { %v4316_v44 = vmax.f32 %v4184_v23, 0.0 }
 0x4ff   : > { %v4317_v10 = vmax.f32 %v4186_v52, 0.0  ;;  %v19581_v52 = vrot.slane %v17166_v15, %v18889_v54 }
 0x500   : > { %v19569_v58 = vpack.c.bf16 %v4316_v44, %v4312_v28 }
 0x501   : > { %v4189_v12 = vpop.f32.mrb[220].mxu1  ;;  %v19571_v0 = vpack.c.bf16 %v4317_v10, %v4313_v33  ;;  %v19584_v33 = vrot.slane %v17166_v15, %v18897_v46 }
 0x502   : > { %22987 = vst [vmem:[#allocation61_spill] sm:$0xff] %v19569_v58  ;;  %v4190_v11 = vadd.f32 %v4189_v12, %v19292_v3  ;;  %v4191_v53 = vpop.f32.mrb[221].mxu1 }
 0x503   : > { %22988 = vst [vmem:[#allocation62_spill] sm:$0xff] %v19571_v0  ;;  %v4192_v30 = vadd.f32 %v4191_v53, %v19303_v43  ;;  %v4193_v63 = vpop.f32.mrb[222].mxu1 }
 0x504   : > { %v4194_v2 = vadd.f32 %v4193_v63, %v19292_v3  ;;  %v4195_v32 = vpop.f32.mrb[223].mxu1  ;;  %v4320_v7 = vmax.f32 %v4190_v11, 0.0 }
 0x505   : > { %v4196_v16 = vadd.f32 %v4195_v32, %v19303_v43  ;;  %v4321_v28 = vmax.f32 %v4192_v30, 0.0 }
 0x506   : > { %v4324_v23 = vmax.f32 %v4194_v2, 0.0 }
 0x507   : > { %v4325_v44 = vmax.f32 %v4196_v16, 0.0 }
 0x508   : > { %v19586_v10 = vpack.c.bf16 %v4324_v23, %v4320_v7 }
 0x509   : > { %v4542_v3 = vpop.f32.mrb[224].mxu1  ;;  %v19588_v63 = vpack.c.bf16 %v4325_v44, %v4321_v28  ;;  %v16364_v44 = vld [vmem:[%s22664_s9 + $0x300] ss:$24 sps:$4 sm:$0xff]  }
 0x50a   : > { %22989 = vst [vmem:[#allocation63_spill] sm:$0xff] %v19586_v10  ;;  %v4543_v43 = vadd.f32 %v4542_v3, %v19581_v52  ;;  %v4544_v32 = vpop.f32.mrb[225].mxu1  ;;  %v16391_v3 = vld [vmem:[%s22664_s9 + $0x308] ss:$24 sps:$4 sm:$0xff]  }
 0x50b   : > { %22990 = vst [vmem:[#allocation64_spill] sm:$0xff] %v19588_v63  ;;  %v4545_v12 = vadd.f32 %v4544_v32, %v19584_v33  ;;  %v4546_v11 = vpop.f32.mrb[226].mxu1 }
 0x50c   : > { %v4547_v53 = vadd.f32 %v4546_v11, %v19581_v52  ;;  %v4548_v2 = vpop.f32.mrb[227].mxu1  ;;  %v4894_v16 = vmax.f32 %v4543_v43, 0.0  ;;  %v16369_v43 = vld [vmem:[%s22664_s9 + $0x334] ss:$24 sps:$4 sm:$0xff]  }
 0x50d   : > { %v4549_v30 = vadd.f32 %v4548_v2, %v19584_v33  ;;  %v4895_v15 = vmax.f32 %v4545_v12, 0.0 }
 0x50e   : > { %v4898_v54 = vmax.f32 %v4547_v53, 0.0 }
 0x50f   : > { %v4899_v46 = vmax.f32 %v4549_v30, 0.0 }
 0x510   : > { %v19594_v7 = vpack.c.bf16 %v4898_v54, %v4894_v16  ;;  %v16396_v54 = vld [vmem:[%s22664_s9 + $0x33c] ss:$24 sps:$4 sm:$0xff]   ;;  %v16367_v16 = vld [vmem:[%s22664_s9 + $0x330] ss:$24 sps:$4 sm:$0xff]  }
 0x511   : > { %v4552_v23 = vpop.f32.mrb[228].mxu1  ;;  %v19596_v28 = vpack.c.bf16 %v4899_v46, %v4895_v15  ;;  %v16394_v15 = vld [vmem:[%s22664_s9 + $0x338] ss:$24 sps:$4 sm:$0xff]  }
 0x512   : > { %v4553_v32 = vadd.f32 %v4552_v23, %v19581_v52  ;;  %v4554_v11 = vpop.f32.mrb[229].mxu1 }
 0x513   : > { %v4555_v46 = vadd.f32 %v4554_v11, %v19584_v33  ;;  %v4556_v12 = vpop.f32.mrb[230].mxu1  ;;  %6526 = vmatprep.mubr.bf16.mxu1 %v19596_v28  ;;  %6912 = vmatprep.mubr.bf16.mxu0 %v19596_v28 }
 0x514   : > { %v4557_v53 = vadd.f32 %v4556_v12, %v19581_v52  ;;  %v4558_v2 = vpop.f32.mrb[231].mxu1  ;;  %6527 = vmatmul.mubr.bf16.vlgmr.msra.gmra.mrb[32].mxu1 %v19594_v7  ;;  %6913 = vmatmul.mubr.bf16.vlgmr.msra.gmra.mrb[32].mxu0 %v19594_v7  ;;  %v4902_v23 = vmax.f32 %v4553_v32, 0.0  ;;  %v16372_v12 = vld [vmem:[%s22664_s9 + $0x364] ss:$24 sps:$4 sm:$0xff]   ;;  %v16370_v32 = vld [vmem:[%s22664_s9 + $0x360] ss:$24 sps:$4 sm:$0xff]  }
 0x515   : > { %v4559_v30 = vadd.f32 %v4558_v2, %v19584_v33  ;;  %6688 = vmatpush1.bf16.msra.mxu1 %v16364_v44  ;;  %7074 = vmatpush1.bf16.msra.mxu0 %v16391_v3  ;;  %v16402_v44 = vld [vmem:[%s22664_s9 + $0x36c] ss:$24 sps:$4 sm:$0xff]   ;;  %v4903_v2 = vmax.f32 %v4555_v46, 0.0 }
 0x516   : > { %v4906_v11 = vmax.f32 %v4557_v53, 0.0  ;;  %6689 = vmatprep.subr.bf16.mxu1 %v16369_v43  ;;  %7075 = vmatprep.subr.bf16.mxu0 %v16396_v54  ;;  %v16400_v43 = vld [vmem:[%s22664_s9 + $0x368] ss:$24 sps:$4 sm:$0xff]   ;;  %v16375_v46 = vld [vmem:[%s22664_s9 + $0x394] ss:$24 sps:$4 sm:$0xff]  }
 0x517   : > { %v4907_v10 = vmax.f32 %v4559_v30, 0.0 }
 0x518   : > { %v19630_v63 = vpack.c.bf16 %v4906_v11, %v4902_v23 }
 0x519   : > { %v4562_v3 = vpop.f32.mrb[232].mxu1  ;;  %v19632_v58 = vpack.c.bf16 %v4907_v10, %v4903_v2  ;;  %6690 = vmatpush1.bf16.msra.mxu1 %v16367_v16  ;;  %7076 = vmatpush1.bf16.msra.mxu0 %v16394_v15  ;;  %v16405_v10 = vld [vmem:[%s22664_s9 + $0x39c] ss:$24 sps:$4 sm:$0xff]  }
 0x51a   : > { %v4563_v54 = vadd.f32 %v4562_v3, %v19581_v52  ;;  %v4564_v53 = vpop.f32.mrb[233].mxu1  ;;  %6691 = vmatprep.subr.bf16.mxu1 %v16372_v12  ;;  %7077 = vmatprep.subr.bf16.mxu0 %v16402_v44  ;;  %v16373_v12 = vld [vmem:[%s22664_s9 + $0x390] ss:$24 sps:$4 sm:$0xff]  }
 0x51b   : > { %v4565_v30 = vadd.f32 %v4564_v53, %v19584_v33  ;;  %v4566_v16 = vpop.f32.mrb[234].mxu1  ;;  %6536 = vmatprep.mubr.bf16.mxu1 %v19632_v58  ;;  %6922 = vmatprep.mubr.bf16.mxu0 %v19632_v58  ;;  %v16403_v44 = vld [vmem:[%s22664_s9 + $0x398] ss:$24 sps:$4 sm:$0xff]   ;;  %v16378_v53 = vld [vmem:[%s22664_s9 + $0x3c4] ss:$24 sps:$4 sm:$0xff]  }
 0x51c   : > { %v4567_v15 = vadd.f32 %v4566_v16, %v19581_v52  ;;  %v4568_v23 = vpop.f32.mrb[235].mxu1  ;;  %6537 = vmatmul.mubr.bf16.gmra.mrb[36].mxu1 %v19630_v63  ;;  %6923 = vmatmul.mubr.bf16.gmra.mrb[36].mxu0 %v19630_v63  ;;  %v4910_v2 = vmax.f32 %v4563_v54, 0.0  ;;  %v16376_v54 = vld [vmem:[%s22664_s9 + $0x3c0] ss:$24 sps:$4 sm:$0xff]  }
 0x51d   : > { %v4569_v11 = vadd.f32 %v4568_v23, %v19584_v33  ;;  %6692 = vmatpush1.bf16.msra.mxu1 %v16370_v32  ;;  %7078 = vmatpush1.bf16.msra.mxu0 %v16400_v43  ;;  %v16411_v32 = vld [vmem:[%s22664_s9 + $0x3cc] ss:$24 sps:$4 sm:$0xff]   ;;  %v4911_v16 = vmax.f32 %v4565_v30, 0.0 }
 0x51e   : > { %v4914_v3 = vmax.f32 %v4567_v15, 0.0  ;;  %6693 = vmatprep.subr.bf16.mxu1 %v16375_v46  ;;  %7079 = vmatprep.subr.bf16.mxu0 %v16405_v10  ;;  %v16409_v46 = vld [vmem:[%s22664_s9 + $0x3c8] ss:$24 sps:$4 sm:$0xff]   ;;  %v16381_v30 = vld [vmem:[%s22664_s9 + $0x3f4] ss:$24 sps:$4 sm:$0xff]  }
 0x51f   : > { %v4915_v23 = vmax.f32 %v4569_v11, 0.0  ;;  %v16414_v11 = vld [vmem:[%s22664_s9 + $0x3fc] ss:$24 sps:$4 sm:$0xff]  }
 0x520   : > { %v19666_v0 = vpack.c.bf16 %v4914_v3, %v4910_v2 }
 0x521   : > { %v4572_v43 = vpop.f32.mrb[236].mxu1  ;;  %v19668_v62 = vpack.c.bf16 %v4915_v23, %v4911_v16  ;;  %6694 = vmatpush1.bf16.msra.mxu1 %v16373_v12  ;;  %7080 = vmatpush1.bf16.msra.mxu0 %v16403_v44  ;;  %v16412_v16 = vld [vmem:[%s22664_s9 + $0x3f8] ss:$24 sps:$4 sm:$0xff]  }
 0x522   : > { %v4573_v10 = vadd.f32 %v4572_v43, %v19581_v52  ;;  %v4574_v15 = vpop.f32.mrb[237].mxu1  ;;  %6695 = vmatprep.subr.bf16.mxu1 %v16378_v53  ;;  %7081 = vmatprep.subr.bf16.mxu0 %v16411_v32  ;;  %v16379_v32 = vld [vmem:[%s22664_s9 + $0x3f0] ss:$24 sps:$4 sm:$0xff]  }
 0x523   : > { %v4575_v12 = vadd.f32 %v4574_v15, %v19584_v33  ;;  %v4576_v44 = vpop.f32.mrb[238].mxu1  ;;  %6546 = vmatprep.mubr.bf16.mxu1 %v19668_v62  ;;  %6932 = vmatprep.mubr.bf16.mxu0 %v19668_v62  ;;  %v16384_v15 = vld [vmem:[%s22664_s9 + $0x424] ss:$24 sps:$4 sm:$0xff]  }
 0x524   : > { %v4577_v2 = vadd.f32 %v4576_v44, %v19581_v52  ;;  %v4578_v3 = vpop.f32.mrb[239].mxu1  ;;  %6547 = vmatmul.mubr.bf16.gmra.mrb[40].mxu1 %v19666_v0  ;;  %6933 = vmatmul.mubr.bf16.gmra.mrb[40].mxu0 %v19666_v0  ;;  %v4918_v23 = vmax.f32 %v4573_v10, 0.0  ;;  %v16382_v10 = vld [vmem:[%s22664_s9 + $0x420] ss:$24 sps:$4 sm:$0xff]  }
 0x525   : > { %v4579_v53 = vadd.f32 %v4578_v3, %v19584_v33  ;;  %6696 = vmatpush1.bf16.msra.mxu1 %v16376_v54  ;;  %7082 = vmatpush1.bf16.msra.mxu0 %v16409_v46  ;;  %v16420_v54 = vld [vmem:[%s22664_s9 + $0x42c] ss:$24 sps:$4 sm:$0xff]   ;;  %v4919_v44 = vmax.f32 %v4575_v12, 0.0 }
 0x526   : > { %v4922_v43 = vmax.f32 %v4577_v2, 0.0  ;;  %6697 = vmatprep.subr.bf16.mxu1 %v16381_v30  ;;  %7083 = vmatprep.subr.bf16.mxu0 %v16414_v11  ;;  %v16418_v30 = vld [vmem:[%s22664_s9 + $0x428] ss:$24 sps:$4 sm:$0xff]   ;;  %v16387_v12 = vld [vmem:[%s22664_s9 + $0x454] ss:$24 sps:$4 sm:$0xff]  }
 0x527   : > { %v4923_v3 = vmax.f32 %v4579_v53, 0.0  ;;  %v16423_v53 = vld [vmem:[%s22664_s9 + $0x45c] ss:$24 sps:$4 sm:$0xff]  }
 0x528   : > { %v19702_v31 = vpack.c.bf16 %v4922_v43, %v4918_v23 }
 0x529   : > { %v4582_v46 = vpop.f32.mrb[240].mxu1  ;;  %v19704_v39 = vpack.c.bf16 %v4923_v3, %v4919_v44  ;;  %6698 = vmatpush1.bf16.msra.mxu1 %v16379_v32  ;;  %7084 = vmatpush1.bf16.msra.mxu0 %v16412_v16  ;;  %v16421_v44 = vld [vmem:[%s22664_s9 + $0x458] ss:$24 sps:$4 sm:$0xff]  }
 0x52a   : > { %22991 = vst [vmem:[#allocation65_spill] sm:$0xff] %v19702_v31  ;;  %v4583_v11 = vadd.f32 %v4582_v46, %v19581_v52  ;;  %v4584_v2 = vpop.f32.mrb[241].mxu1  ;;  %6699 = vmatprep.subr.bf16.mxu1 %v16384_v15  ;;  %7085 = vmatprep.subr.bf16.mxu0 %v16420_v54  ;;  %v16385_v54 = vld [vmem:[%s22664_s9 + $0x450] ss:$24 sps:$4 sm:$0xff]  }
 0x52b   : > { %22992 = vst [vmem:[#allocation66_spill] sm:$0xff] %v19704_v39  ;;  %v4585_v32 = vadd.f32 %v4584_v2, %v19584_v33  ;;  %v4586_v16 = vpop.f32.mrb[242].mxu1  ;;  %6556 = vmatprep.mubr.bf16.mxu1 %v19704_v39  ;;  %6942 = vmatprep.mubr.bf16.mxu0 %v19704_v39  ;;  %v16390_v2 = vld [vmem:[%s22664_s9 + $0x484] ss:$24 sps:$4 sm:$0xff]  }
 0x52c   : > { %v4587_v23 = vadd.f32 %v4586_v16, %v19581_v52  ;;  %v4588_v43 = vpop.f32.mrb[243].mxu1  ;;  %6557 = vmatmul.mubr.bf16.gmra.mrb[44].mxu1 %v19702_v31  ;;  %6943 = vmatmul.mubr.bf16.gmra.mrb[44].mxu0 %v19702_v31  ;;  %v4926_v3 = vmax.f32 %v4583_v11, 0.0  ;;  %v16388_v11 = vld [vmem:[%s22664_s9 + $0x480] ss:$24 sps:$4 sm:$0xff]  }
 0x52d   : > { %v4589_v15 = vadd.f32 %v4588_v43, %v19584_v33  ;;  %6700 = vmatpush1.bf16.msra.mxu1 %v16382_v10  ;;  %7086 = vmatpush1.bf16.msra.mxu0 %v16418_v30  ;;  %v16429_v10 = vld [vmem:[%s22664_s9 + $0x48c] ss:$24 sps:$4 sm:$0xff]   ;;  %v4927_v16 = vmax.f32 %v4585_v32, 0.0 }
 0x52e   : > { %v4930_v46 = vmax.f32 %v4587_v23, 0.0  ;;  %6701 = vmatprep.subr.bf16.mxu1 %v16387_v12  ;;  %7087 = vmatprep.subr.bf16.mxu0 %v16423_v53  ;;  %v16427_v12 = vld [vmem:[%s22664_s9 + $0x488] ss:$24 sps:$4 sm:$0xff]   ;;  %v16399_v32 = vld [vmem:[%s22664_s9 + $0x4b4] ss:$24 sps:$4 sm:$0xff]  }
 0x52f   : > { %v4931_v43 = vmax.f32 %v4589_v15, 0.0  ;;  %v16432_v15 = vld [vmem:[%s22664_s9 + $0x4bc] ss:$24 sps:$4 sm:$0xff]  }
 0x530   : > { %v19738_v18 = vpack.c.bf16 %v4930_v46, %v4926_v3 }
 0x531   : > { %v4592_v30 = vpop.f32.mrb[244].mxu1  ;;  %v19740_v31 = vpack.c.bf16 %v4931_v43, %v4927_v16  ;;  %6702 = vmatpush1.bf16.msra.mxu1 %v16385_v54  ;;  %7088 = vmatpush1.bf16.msra.mxu0 %v16421_v44  ;;  %v16430_v16 = vld [vmem:[%s22664_s9 + $0x4b8] ss:$24 sps:$4 sm:$0xff]  }
 0x532   : > { %22993 = vst [vmem:[#allocation67_spill] sm:$0xff] %v19738_v18  ;;  %v4593_v53 = vadd.f32 %v4592_v30, %v19581_v52  ;;  %v4594_v23 = vpop.f32.mrb[245].mxu1  ;;  %6703 = vmatprep.subr.bf16.mxu1 %v16390_v2  ;;  %7089 = vmatprep.subr.bf16.mxu0 %v16429_v10  ;;  %v16397_v10 = vld [vmem:[%s22664_s9 + $0x4b0] ss:$24 sps:$4 sm:$0xff]  }
 0x533   : > { %22994 = vst [vmem:[#allocation68_spill] sm:$0xff] %v19740_v31  ;;  %v4595_v54 = vadd.f32 %v4594_v23, %v19584_v33  ;;  %v4596_v44 = vpop.f32.mrb[246].mxu1  ;;  %6566 = vmatprep.mubr.bf16.mxu1 %v19740_v31  ;;  %6952 = vmatprep.mubr.bf16.mxu0 %v19740_v31  ;;  %v16408_v23 = vld [vmem:[%s22664_s9 + $0x4e4] ss:$24 sps:$4 sm:$0xff]  }
 0x534   : > { %v4597_v3 = vadd.f32 %v4596_v44, %v19581_v52  ;;  %v4598_v46 = vpop.f32.mrb[247].mxu1  ;;  %6567 = vmatmul.mubr.bf16.gmra.mrb[48].mxu1 %v19738_v18  ;;  %6953 = vmatmul.mubr.bf16.gmra.mrb[48].mxu0 %v19738_v18  ;;  %v4934_v43 = vmax.f32 %v4593_v53, 0.0  ;;  %v16406_v53 = vld [vmem:[%s22664_s9 + $0x4e0] ss:$24 sps:$4 sm:$0xff]  }
 0x535   : > { %v4599_v2 = vadd.f32 %v4598_v46, %v19584_v33  ;;  %6704 = vmatpush1.bf16.msra.mxu1 %v16388_v11  ;;  %7090 = vmatpush1.bf16.msra.mxu0 %v16427_v12  ;;  %v16438_v11 = vld [vmem:[%s22664_s9 + $0x4ec] ss:$24 sps:$4 sm:$0xff]   ;;  %v4935_v44 = vmax.f32 %v4595_v54, 0.0 }
 0x536   : > { %v4938_v30 = vmax.f32 %v4597_v3, 0.0  ;;  %6705 = vmatprep.subr.bf16.mxu1 %v16399_v32  ;;  %7091 = vmatprep.subr.bf16.mxu0 %v16432_v15  ;;  %v16436_v32 = vld [vmem:[%s22664_s9 + $0x4e8] ss:$24 sps:$4 sm:$0xff]   ;;  %v16417_v54 = vld [vmem:[%s22664_s9 + $0x514] ss:$24 sps:$4 sm:$0xff]  }
 0x537   : > { %v4939_v46 = vmax.f32 %v4599_v2, 0.0  ;;  %v16441_v2 = vld [vmem:[%s22664_s9 + $0x51c] ss:$24 sps:$4 sm:$0xff]  }
 0x538   : > { %v19774_v18 = vpack.c.bf16 %v4938_v30, %v4934_v43 }
 0x539   : > { %v4602_v12 = vpop.f32.mrb[248].mxu1  ;;  %v19776_v31 = vpack.c.bf16 %v4939_v46, %v4935_v44  ;;  %6706 = vmatpush1.bf16.msra.mxu1 %v16397_v10  ;;  %7092 = vmatpush1.bf16.msra.mxu0 %v16430_v16  ;;  %v16439_v44 = vld [vmem:[%s22664_s9 + $0x518] ss:$24 sps:$4 sm:$0xff]  }
 0x53a   : > { %22995 = vst [vmem:[#allocation69_spill] sm:$0xff] %v19774_v18  ;;  %v4603_v15 = vadd.f32 %v4602_v12, %v19581_v52  ;;  %v4604_v3 = vpop.f32.mrb[249].mxu1  ;;  %6707 = vmatprep.subr.bf16.mxu1 %v16408_v23  ;;  %7093 = vmatprep.subr.bf16.mxu0 %v16438_v11  ;;  %v16415_v11 = vld [vmem:[%s22664_s9 + $0x510] ss:$24 sps:$4 sm:$0xff]  }
 0x53b   : > { %22996 = vst [vmem:[#allocation70_spill] sm:$0xff] %v19776_v31  ;;  %v4605_v10 = vadd.f32 %v4604_v3, %v19584_v33  ;;  %v4606_v16 = vpop.f32.mrb[250].mxu1  ;;  %6576 = vmatprep.mubr.bf16.mxu1 %v19776_v31  ;;  %6962 = vmatprep.mubr.bf16.mxu0 %v19776_v31  ;;  %v16426_v3 = vld [vmem:[%s22664_s9 + $0x544] ss:$24 sps:$4 sm:$0xff]  }
 0x53c   : > { %v4607_v43 = vadd.f32 %v4606_v16, %v19581_v52  ;;  %v4608_v30 = vpop.f32.mrb[251].mxu1  ;;  %6577 = vmatmul.mubr.bf16.gmra.mrb[52].mxu1 %v19774_v18  ;;  %6963 = vmatmul.mubr.bf16.gmra.mrb[52].mxu0 %v19774_v18  ;;  %v4942_v46 = vmax.f32 %v4603_v15, 0.0  ;;  %v16424_v15 = vld [vmem:[%s22664_s9 + $0x540] ss:$24 sps:$4 sm:$0xff]  }
 0x53d   : > { %v4609_v23 = vadd.f32 %v4608_v30, %v19584_v33  ;;  %6708 = vmatpush1.bf16.msra.mxu1 %v16406_v53  ;;  %7094 = vmatpush1.bf16.msra.mxu0 %v16436_v32  ;;  %v16447_v53 = vld [vmem:[%s22664_s9 + $0x54c] ss:$24 sps:$4 sm:$0xff]   ;;  %v4943_v16 = vmax.f32 %v4605_v10, 0.0 }
 0x53e   : > { %v4946_v12 = vmax.f32 %v4607_v43, 0.0  ;;  %6709 = vmatprep.subr.bf16.mxu1 %v16417_v54  ;;  %7095 = vmatprep.subr.bf16.mxu0 %v16441_v2  ;;  %v16445_v54 = vld [vmem:[%s22664_s9 + $0x548] ss:$24 sps:$4 sm:$0xff]   ;;  %v16435_v10 = vld [vmem:[%s22664_s9 + $0x574] ss:$24 sps:$4 sm:$0xff]  }
 0x53f   : > { %v4947_v30 = vmax.f32 %v4609_v23, 0.0  ;;  %v16450_v23 = vld [vmem:[%s22664_s9 + $0x57c] ss:$24 sps:$4 sm:$0xff]  }
 0x540   : > { %v19810_v18 = vpack.c.bf16 %v4946_v12, %v4942_v46 }
 0x541   : > { %v4612_v32 = vpop.f32.mrb[252].mxu1  ;;  %v19812_v31 = vpack.c.bf16 %v4947_v30, %v4943_v16  ;;  %6710 = vmatpush1.bf16.msra.mxu1 %v16415_v11  ;;  %7096 = vmatpush1.bf16.msra.mxu0 %v16439_v44  ;;  %v16448_v16 = vld [vmem:[%s22664_s9 + $0x578] ss:$24 sps:$4 sm:$0xff]  }
 0x542   : > { %22997 = vst [vmem:[#allocation71_spill] sm:$0xff] %v19810_v18  ;;  %v4613_v2 = vadd.f32 %v4612_v32, %v19581_v52  ;;  %v4614_v43 = vpop.f32.mrb[253].mxu1  ;;  %6711 = vmatprep.subr.bf16.mxu1 %v16426_v3  ;;  %7097 = vmatprep.subr.bf16.mxu0 %v16447_v53  ;;  %v16433_v53 = vld [vmem:[%s22664_s9 + $0x570] ss:$24 sps:$4 sm:$0xff]  }
 0x543   : > { %22998 = vst [vmem:[#allocation72_spill] sm:$0xff] %v19812_v31  ;;  %v4615_v11 = vadd.f32 %v4614_v43, %v19584_v33  ;;  %v4616_v44 = vpop.f32.mrb[254].mxu1  ;;  %6586 = vmatprep.mubr.bf16.mxu1 %v19812_v31  ;;  %6972 = vmatprep.mubr.bf16.mxu0 %v19812_v31  ;;  %v16444_v43 = vld [vmem:[%s22664_s9 + $0x5a4] ss:$24 sps:$4 sm:$0xff]  }
 0x544   : > { %v4617_v46 = vadd.f32 %v4616_v44, %v19581_v52  ;;  %v4618_v12 = vpop.f32.mrb[255].mxu1  ;;  %6587 = vmatmul.mubr.bf16.gmra.mrb[56].mxu1 %v19810_v18  ;;  %6973 = vmatmul.mubr.bf16.gmra.mrb[56].mxu0 %v19810_v18  ;;  %v4950_v30 = vmax.f32 %v4613_v2, 0.0  ;;  %v16442_v2 = vld [vmem:[%s22664_s9 + $0x5a0] ss:$24 sps:$4 sm:$0xff]  }
 0x545   : > { %v4619_v3 = vadd.f32 %v4618_v12, %v19584_v33  ;;  %6712 = vmatpush1.bf16.msra.mxu1 %v16424_v15  ;;  %7098 = vmatpush1.bf16.msra.mxu0 %v16445_v54  ;;  %v16456_v15 = vld [vmem:[%s22664_s9 + $0x5ac] ss:$24 sps:$4 sm:$0xff]   ;;  %v4951_v44 = vmax.f32 %v4615_v11, 0.0 }
 0x546   : > { %v4954_v32 = vmax.f32 %v4617_v46, 0.0  ;;  %6713 = vmatprep.subr.bf16.mxu1 %v16435_v10  ;;  %7099 = vmatprep.subr.bf16.mxu0 %v16450_v23  ;;  %v16454_v10 = vld [vmem:[%s22664_s9 + $0x5a8] ss:$24 sps:$4 sm:$0xff]   ;;  %v16453_v11 = vld [vmem:[%s22664_s9 + $0x5d4] ss:$24 sps:$4 sm:$0xff]  }
 0x547   : > { %v4955_v12 = vmax.f32 %v4619_v3, 0.0  ;;  %v16459_v3 = vld [vmem:[%s22664_s9 + $0x5dc] ss:$24 sps:$4 sm:$0xff]  }
 0x548   : > { %v19846_v18 = vpack.c.bf16 %v4954_v32, %v4950_v30 }
 0x549   : > { %v4622_v54 = vpop.f32.mrb[0].mxu1  ;;  %v19848_v31 = vpack.c.bf16 %v4955_v12, %v4951_v44  ;;  %6714 = vmatpush1.bf16.msra.mxu1 %v16433_v53  ;;  %7100 = vmatpush1.bf16.msra.mxu0 %v16448_v16  ;;  %v16457_v44 = vld [vmem:[%s22664_s9 + $0x5d8] ss:$24 sps:$4 sm:$0xff]  }
 0x54a   : > { %22999 = vst [vmem:[#allocation73_spill] sm:$0xff] %v19846_v18  ;;  %v4623_v23 = vadd.f32 %v4622_v54, %v19581_v52  ;;  %v4624_v46 = vpop.f32.mrb[1].mxu1  ;;  %6715 = vmatprep.subr.bf16.mxu1 %v16444_v43  ;;  %7101 = vmatprep.subr.bf16.mxu0 %v16456_v15  ;;  %v16451_v15 = vld [vmem:[%s22664_s9 + $0x5d0] ss:$24 sps:$4 sm:$0xff]  }
 0x54b   : > { %23000 = vst [vmem:[#allocation74_spill] sm:$0xff] %v19848_v31  ;;  %v4625_v53 = vadd.f32 %v4624_v46, %v19584_v33  ;;  %v4626_v16 = vpop.f32.mrb[2].mxu1  ;;  %6596 = vmatprep.mubr.bf16.mxu1 %v19848_v31  ;;  %6982 = vmatprep.mubr.bf16.mxu0 %v19848_v31  ;;  %v16462_v46 = vld [vmem:[%s22664_s9 + $0x14] ss:$24 sps:$4 sm:$0xff]  }
 0x54c   : > { %v4627_v30 = vadd.f32 %v4626_v16, %v19581_v52  ;;  %v4628_v32 = vpop.f32.mrb[3].mxu1  ;;  %6597 = vmatmul.mubr.bf16.gmra.mrb[60].mxu1 %v19846_v18  ;;  %6983 = vmatmul.mubr.bf16.gmra.mrb[60].mxu0 %v19846_v18  ;;  %v4958_v12 = vmax.f32 %v4623_v23, 0.0 }
 0x54d   : > { %v4629_v43 = vadd.f32 %v4628_v32, %v19584_v33  ;;  %6716 = vmatpush1.bf16.msra.mxu1 %v16442_v2  ;;  %7102 = vmatpush1.bf16.msra.mxu0 %v16454_v10  ;;  %v4959_v16 = vmax.f32 %v4625_v53, 0.0 }
 0x54e   : > { %v4962_v54 = vmax.f32 %v4627_v30, 0.0  ;;  %6717 = vmatprep.subr.bf16.mxu1 %v16453_v11  ;;  %7103 = vmatprep.subr.bf16.mxu0 %v16459_v3 }
 0x54f   : > { %v4963_v32 = vmax.f32 %v4629_v43, 0.0 }
 0x550   : > { %v19879_v2 = vpack.c.bf16 %v4962_v54, %v4958_v12 }
 0x551   : > { %v4632_v18 = vpop.f32.mrb[4].mxu1  ;;  %v19881_v31 = vpack.c.bf16 %v4963_v32, %v4959_v16  ;;  %6718 = vmatpush1.bf16.msra.mxu1 %v16451_v15  ;;  %7104 = vmatpush1.bf16.msra.mxu0 %v16457_v44 }
 0x552   : > { %23001 = vst [vmem:[#allocation75_spill] sm:$0xff] %v19879_v2  ;;  %v4633_v10 = vadd.f32 %v4632_v18, %v19581_v52  ;;  %v4634_v39 = vpop.f32.mrb[5].mxu1  ;;  %7266 = vmatprep.subr.bf16.mxu1 %v16462_v46  ;;  %v16489_v18 = vld [vmem:[%s22663_s8 + $0xc] ss:$24 sps:$4 sm:$0xff]  }
 0x553   : > { %v4635_v23 = vadd.f32 %v4634_v39, %v19584_v33  ;;  %v4636_v11 = vpop.f32.mrb[6].mxu1  ;;  %6606 = vmatprep.mubr.bf16.mxu1 %v19881_v31  ;;  %6992 = vmatprep.mubr.bf16.mxu0 %v19881_v31 }
 0x554   : > { %v4637_v3 = vadd.f32 %v4636_v11, %v19581_v52  ;;  %v4638_v53 = vpop.f32.mrb[7].mxu1  ;;  %6607 = vmatmul.mubr.bf16.gmra.mrb[64].mxu1 %v19879_v2  ;;  %6993 = vmatmul.mubr.bf16.gmra.mrb[64].mxu0 %v19879_v2  ;;  %v4966_v43 = vmax.f32 %v4633_v10, 0.0 }
 0x555   : > { %v4639_v30 = vadd.f32 %v4638_v53, %v19584_v33  ;;  %v4967_v15 = vmax.f32 %v4635_v23, 0.0  ;;  %8998 = vmatprep.subr.bf16.mxu0 %v16489_v18 }
 0x556   : > { %v4970_v39 = vmax.f32 %v4637_v3, 0.0 }
 0x557   : > { %v4971_v44 = vmax.f32 %v4639_v30, 0.0 }
 0x558   : > { %v19894_v12 = vpack.c.bf16 %v4970_v39, %v4966_v43 }
 0x559   : > { %v4642_v54 = vpop.f32.mrb[8].mxu1  ;;  %v19896_v46 = vpack.c.bf16 %v4971_v44, %v4967_v15 }
 0x55a   : > { %23002 = vst [vmem:[#allocation76_spill] sm:$0xff] %v19894_v12  ;;  %v4643_v16 = vadd.f32 %v4642_v54, %v19581_v52  ;;  %v4644_v32 = vpop.f32.mrb[9].mxu1 }
 0x55b   : > { %23003 = vst [vmem:[#allocation77_spill] sm:$0xff] %v19896_v46  ;;  %v4645_v11 = vadd.f32 %v4644_v32, %v19584_v33  ;;  %v4646_v53 = vpop.f32.mrb[10].mxu1  ;;  %6616 = vmatprep.mubr.bf16.mxu1 %v19896_v46  ;;  %7002 = vmatprep.mubr.bf16.mxu0 %v19896_v46 }
 0x55c   : > { %v4647_v10 = vadd.f32 %v4646_v53, %v19581_v52  ;;  %v4648_v23 = vpop.f32.mrb[11].mxu1  ;;  %6617 = vmatmul.mubr.bf16.gmra.mrb[68].mxu1 %v19894_v12  ;;  %7003 = vmatmul.mubr.bf16.gmra.mrb[68].mxu0 %v19894_v12  ;;  %v4974_v30 = vmax.f32 %v4643_v16, 0.0 }
 0x55d   : > { %v4649_v3 = vadd.f32 %v4648_v23, %v19584_v33  ;;  %v4975_v43 = vmax.f32 %v4645_v11, 0.0 }
 0x55e   : > { %v4978_v18 = vmax.f32 %v4647_v10, 0.0 }
 0x55f   : > { %v4979_v39 = vmax.f32 %v4649_v3, 0.0 }
 0x560   : > { %v19906_v15 = vpack.c.bf16 %v4978_v18, %v4974_v30 }
 0x561   : > { %v4652_v44 = vpop.f32.mrb[12].mxu1  ;;  %v19908_v54 = vpack.c.bf16 %v4979_v39, %v4975_v43 }
 0x562   : > { %23004 = vst [vmem:[#allocation78_spill] sm:$0xff] %v19906_v15  ;;  %v4653_v32 = vadd.f32 %v4652_v44, %v19581_v52  ;;  %v4654_v46 = vpop.f32.mrb[13].mxu1 }
 0x563   : > { %23005 = vst [vmem:[#allocation79_spill] sm:$0xff] %v19908_v54  ;;  %v4655_v53 = vadd.f32 %v4654_v46, %v19584_v33  ;;  %v4656_v2 = vpop.f32.mrb[14].mxu1  ;;  %6626 = vmatprep.mubr.bf16.mxu1 %v19908_v54  ;;  %7012 = vmatprep.mubr.bf16.mxu0 %v19908_v54 }
 0x564   : > { %v4657_v16 = vadd.f32 %v4656_v2, %v19581_v52  ;;  %v4658_v10 = vpop.f32.mrb[15].mxu1  ;;  %6627 = vmatmul.mubr.bf16.gmra.mrb[72].mxu1 %v19906_v15  ;;  %7013 = vmatmul.mubr.bf16.gmra.mrb[72].mxu0 %v19906_v15  ;;  %v4982_v23 = vmax.f32 %v4653_v32, 0.0 }
 0x565   : > { %v4659_v11 = vadd.f32 %v4658_v10, %v19584_v33  ;;  %v4983_v30 = vmax.f32 %v4655_v53, 0.0 }
 0x566   : > { %v4986_v3 = vmax.f32 %v4657_v16, 0.0 }
 0x567   : > { %v4987_v18 = vmax.f32 %v4659_v11, 0.0 }
 0x568   : > { %v19918_v43 = vpack.c.bf16 %v4986_v3, %v4982_v23 }
 0x569   : > { %v4662_v46 = vpop.f32.mrb[16].mxu1  ;;  %v19920_v39 = vpack.c.bf16 %v4987_v18, %v4983_v30 }
 0x56a   : > { %23006 = vst [vmem:[#allocation80_spill] sm:$0xff] %v19918_v43  ;;  %v4663_v44 = vadd.f32 %v4662_v46, %v19581_v52  ;;  %v4664_v54 = vpop.f32.mrb[17].mxu1 }
 0x56b   : > { %23007 = vst [vmem:[#allocation81_spill] sm:$0xff] %v19920_v39  ;;  %v4665_v2 = vadd.f32 %v4664_v54, %v19584_v33  ;;  %v4666_v12 = vpop.f32.mrb[18].mxu1  ;;  %6636 = vmatprep.mubr.bf16.mxu1 %v19920_v39  ;;  %7022 = vmatprep.mubr.bf16.mxu0 %v19920_v39 }
 0x56c   : > { %v4667_v32 = vadd.f32 %v4666_v12, %v19581_v52  ;;  %v4668_v16 = vpop.f32.mrb[19].mxu1  ;;  %6637 = vmatmul.mubr.bf16.gmra.mrb[76].mxu1 %v19918_v43  ;;  %7023 = vmatmul.mubr.bf16.gmra.mrb[76].mxu0 %v19918_v43  ;;  %v4990_v10 = vmax.f32 %v4663_v44, 0.0 }
 0x56d   : > { %v4669_v53 = vadd.f32 %v4668_v16, %v19584_v33  ;;  %v4991_v23 = vmax.f32 %v4665_v2, 0.0 }
 0x56e   : > { %v4994_v11 = vmax.f32 %v4667_v32, 0.0 }
 0x56f   : > { %v4995_v3 = vmax.f32 %v4669_v53, 0.0 }
 0x570   : > { %v19930_v30 = vpack.c.bf16 %v4994_v11, %v4990_v10 }
 0x571   : > { %v4672_v54 = vpop.f32.mrb[20].mxu1  ;;  %v19932_v18 = vpack.c.bf16 %v4995_v3, %v4991_v23 }
 0x572   : > { %23008 = vst [vmem:[#allocation82_spill] sm:$0xff] %v19930_v30  ;;  %v4673_v46 = vadd.f32 %v4672_v54, %v19581_v52  ;;  %v4674_v39 = vpop.f32.mrb[21].mxu1 }
 0x573   : > { %23009 = vst [vmem:[#allocation83_spill] sm:$0xff] %v19932_v18  ;;  %v4675_v12 = vadd.f32 %v4674_v39, %v19584_v33  ;;  %v4676_v15 = vpop.f32.mrb[22].mxu1  ;;  %6646 = vmatprep.mubr.bf16.mxu1 %v19932_v18  ;;  %7032 = vmatprep.mubr.bf16.mxu0 %v19932_v18 }
 0x574   : > { %v4677_v44 = vadd.f32 %v4676_v15, %v19581_v52  ;;  %v4678_v32 = vpop.f32.mrb[23].mxu1  ;;  %6647 = vmatmul.mubr.bf16.gmra.mrb[80].mxu1 %v19930_v30  ;;  %7033 = vmatmul.mubr.bf16.gmra.mrb[80].mxu0 %v19930_v30  ;;  %v4998_v16 = vmax.f32 %v4673_v46, 0.0 }
 0x575   : > { %v4679_v2 = vadd.f32 %v4678_v32, %v19584_v33  ;;  %v4999_v10 = vmax.f32 %v4675_v12, 0.0 }
 0x576   : > { %v5002_v53 = vmax.f32 %v4677_v44, 0.0 }
 0x577   : > { %v5003_v11 = vmax.f32 %v4679_v2, 0.0 }
 0x578   : > { %v19942_v23 = vpack.c.bf16 %v5002_v53, %v4998_v16 }
 0x579   : > { %v4682_v39 = vpop.f32.mrb[24].mxu1  ;;  %v19944_v3 = vpack.c.bf16 %v5003_v11, %v4999_v10 }
 0x57a   : > { %v4683_v54 = vadd.f32 %v4682_v39, %v19581_v52  ;;  %v4684_v18 = vpop.f32.mrb[25].mxu1 }
 0x57b   : > { %23010 = vst [vmem:[#allocation84_spill] sm:$0xff] %v19944_v3  ;;  %v4685_v15 = vadd.f32 %v4684_v18, %v19584_v33  ;;  %v4686_v43 = vpop.f32.mrb[26].mxu1  ;;  %6656 = vmatprep.mubr.bf16.mxu1 %v19944_v3  ;;  %7042 = vmatprep.mubr.bf16.mxu0 %v19944_v3 }
 0x57c   : > { %v4687_v46 = vadd.f32 %v4686_v43, %v19581_v52  ;;  %v4688_v44 = vpop.f32.mrb[27].mxu1  ;;  %6657 = vmatmul.mubr.bf16.gmra.mrb[84].mxu1 %v19942_v23  ;;  %7043 = vmatmul.mubr.bf16.gmra.mrb[84].mxu0 %v19942_v23  ;;  %v5006_v32 = vmax.f32 %v4683_v54, 0.0 }
 0x57d   : > { %v4689_v12 = vadd.f32 %v4688_v44, %v19584_v33  ;;  %v5007_v16 = vmax.f32 %v4685_v15, 0.0 }
 0x57e   : > { %v5010_v2 = vmax.f32 %v4687_v46, 0.0 }
 0x57f   : > { %v5011_v53 = vmax.f32 %v4689_v12, 0.0 }
 0x580   : > { %v19954_v10 = vpack.c.bf16 %v5010_v2, %v5006_v32 }
 0x581   : > { %v4692_v18 = vpop.f32.mrb[28].mxu1  ;;  %v19956_v11 = vpack.c.bf16 %v5011_v53, %v5007_v16  ;;  %v16492_v53 = vld [vmem:[%s22663_s8 + $0x3c] ss:$24 sps:$4 sm:$0xff]  }
 0x582   : > { %v4693_v39 = vadd.f32 %v4692_v18, %v19581_v52  ;;  %v4694_v3 = vpop.f32.mrb[29].mxu1  ;;  %v16463_v18 = vld [vmem:[%s22664_s9 + $0x40] ss:$24 sps:$4 sm:$0xff]  }
 0x583   : > { %v4695_v43 = vadd.f32 %v4694_v3, %v19584_v33  ;;  %v4696_v30 = vpop.f32.mrb[30].mxu1  ;;  %6666 = vmatprep.mubr.bf16.mxu1 %v19956_v11  ;;  %7052 = vmatprep.mubr.bf16.mxu0 %v19956_v11 }
 0x584   : > { %v4697_v54 = vadd.f32 %v4696_v30, %v19581_v52  ;;  %v4698_v46 = vpop.f32.mrb[31].mxu1  ;;  %6667 = vmatmul.mubr.bf16.gmra.mrb[88].mxu1 %v19954_v10  ;;  %7053 = vmatmul.mubr.bf16.gmra.mrb[88].mxu0 %v19954_v10  ;;  %v5014_v44 = vmax.f32 %v4693_v39, 0.0  ;;  %v16460_v52 = vld [vmem:[%s22664_s9 + $0x10] ss:$24 sps:$4 sm:$0xff]   ;;  %v16465_v30 = vld [vmem:[%s22664_s9 + $0x44] ss:$24 sps:$4 sm:$0xff]  }
 0x585   : > { %v4699_v15 = vadd.f32 %v4698_v46, %v19584_v33  ;;  %v5015_v32 = vmax.f32 %v4695_v43, 0.0  ;;  %v16487_v33 = vld [vmem:[%s22663_s8 + $0x8] ss:$24 sps:$4 sm:$0xff]   ;;  %v16490_v39 = vld [vmem:[%s22663_s8 + $0x38] ss:$24 sps:$4 sm:$0xff]  }
 0x586   : > { %v5018_v12 = vmax.f32 %v4697_v54, 0.0  ;;  %v16468_v43 = vld [vmem:[%s22664_s9 + $0x74] ss:$24 sps:$4 sm:$0xff]   ;;  %v16466_v46 = vld [vmem:[%s22664_s9 + $0x70] ss:$24 sps:$4 sm:$0xff]  }
 0x587   : > { %v5019_v2 = vmax.f32 %v4699_v15, 0.0  ;;  %v16498_v54 = vld [vmem:[%s22663_s8 + $0x6c] ss:$24 sps:$4 sm:$0xff]   ;;  %v16496_v15 = vld [vmem:[%s22663_s8 + $0x68] ss:$24 sps:$4 sm:$0xff]  }
 0x588   : > { %v19966_v16 = vpack.c.bf16 %v5018_v12, %v5014_v44  ;;  %v16471_v44 = vld [vmem:[%s22664_s9 + $0xa4] ss:$24 sps:$4 sm:$0xff]  }
 0x589   : > { %v19968_v3 = vpack.c.bf16 %v5019_v2, %v5015_v32  ;;  %v16501_v12 = vld [vmem:[%s22663_s8 + $0x9c] ss:$24 sps:$4 sm:$0xff]   ;;  %v16469_v32 = vld [vmem:[%s22664_s9 + $0xa0] ss:$24 sps:$4 sm:$0xff]  }
 0x58a   : > { %v16499_v2 = vld [vmem:[%s22663_s8 + $0x98] ss:$24 sps:$4 sm:$0xff]  }
 0x58b   : > { %6676 = vmatprep.mubr.bf16.mxu1 %v19968_v3  ;;  %7062 = vmatprep.mubr.bf16.mxu0 %v19968_v3 }
 0x58c   : > { %6677 = vmatmul.mubr.bf16.gmra.mrb[92].mxu1 %v19966_v16  ;;  %7063 = vmatmul.mubr.bf16.gmra.mrb[92].mxu0 %v19966_v16 }
 0x58d   : > { %6719 = vmatprep.mubr.bf16.mxu1 %v19170_v57  ;;  %7105 = vmatprep.mubr.bf16.mxu0 %v19170_v57 }
 0x594   : > { %6720 = vmatmul.mubr.bf16.vlgmr.msra.gmra.mrb[32].mxu1 %v19167_v59  ;;  %7106 = vmatmul.mubr.bf16.vlgmr.msra.gmra.mrb[32].mxu0 %v19167_v59 }
 0x595   : > { %6729 = vmatprep.mubr.bf16.mxu1 %v19207_v56  ;;  %7115 = vmatprep.mubr.bf16.mxu0 %v19207_v56 }
 0x596   : > { %7267 = vmatpush1.bf16.msra.mxu1 %v16460_v52  ;;  %8999 = vmatpush1.bf16.msra.mxu0 %v16487_v33  ;;  %v16474_v52 = vld [vmem:[%s22664_s9 + $0xd4] ss:$24 sps:$4 sm:$0xff]  }
 0x597   : > { %7268 = vmatprep.subr.bf16.mxu1 %v16465_v30  ;;  %9000 = vmatprep.subr.bf16.mxu0 %v16492_v53  ;;  %v16507_v33 = vld [vmem:[%s22663_s8 + $0xcc] ss:$24 sps:$4 sm:$0xff]   ;;  %v16472_v30 = vld [vmem:[%s22664_s9 + $0xd0] ss:$24 sps:$4 sm:$0xff]  }
 0x598   : > { %v16505_v53 = vld [vmem:[%s22663_s8 + $0xc8] ss:$24 sps:$4 sm:$0xff]  }
 0x59a   : > { %7269 = vmatpush1.bf16.msra.mxu1 %v16463_v18  ;;  %9001 = vmatpush1.bf16.msra.mxu0 %v16490_v39  ;;  %v16477_v18 = vld [vmem:[%s22664_s9 + $0x104] ss:$24 sps:$4 sm:$0xff]  }
 0x59b   : > { %7270 = vmatprep.subr.bf16.mxu1 %v16468_v43  ;;  %9002 = vmatprep.subr.bf16.mxu0 %v16498_v54  ;;  %v16510_v39 = vld [vmem:[%s22663_s8 + $0xfc] ss:$24 sps:$4 sm:$0xff]   ;;  %v16475_v43 = vld [vmem:[%s22664_s9 + $0x100] ss:$24 sps:$4 sm:$0xff]  }
 0x59c   : > { %6730 = vmatmul.mubr.bf16.gmra.mrb[36].mxu1 %v19204_v50  ;;  %7116 = vmatmul.mubr.bf16.gmra.mrb[36].mxu0 %v19204_v50  ;;  %v16508_v54 = vld [vmem:[%s22663_s8 + $0xf8] ss:$24 sps:$4 sm:$0xff]  }
 0x59d   : > { %6739 = vmatprep.mubr.bf16.mxu1 %v19244_v26  ;;  %7125 = vmatprep.mubr.bf16.mxu0 %v19244_v26 }
 0x59e   : > { %7271 = vmatpush1.bf16.msra.mxu1 %v16466_v46  ;;  %9003 = vmatpush1.bf16.msra.mxu0 %v16496_v15  ;;  %v16480_v46 = vld [vmem:[%s22664_s9 + $0x134] ss:$24 sps:$4 sm:$0xff]  }
 0x59f   : > { %7272 = vmatprep.subr.bf16.mxu1 %v16471_v44  ;;  %9004 = vmatprep.subr.bf16.mxu0 %v16501_v12  ;;  %v16516_v15 = vld [vmem:[%s22663_s8 + $0x12c] ss:$24 sps:$4 sm:$0xff]   ;;  %v16478_v44 = vld [vmem:[%s22664_s9 + $0x130] ss:$24 sps:$4 sm:$0xff]  }
 0x5a0   : > { %v16514_v12 = vld [vmem:[%s22663_s8 + $0x128] ss:$24 sps:$4 sm:$0xff]  }
 0x5a2   : > { %7273 = vmatpush1.bf16.msra.mxu1 %v16469_v32  ;;  %9005 = vmatpush1.bf16.msra.mxu0 %v16499_v2  ;;  %v16483_v32 = vld [vmem:[%s22664_s9 + $0x164] ss:$24 sps:$4 sm:$0xff]  }
 0x5a3   : > { %7274 = vmatprep.subr.bf16.mxu1 %v16474_v52  ;;  %9006 = vmatprep.subr.bf16.mxu0 %v16507_v33  ;;  %v16519_v2 = vld [vmem:[%s22663_s8 + $0x15c] ss:$24 sps:$4 sm:$0xff]   ;;  %v16481_v52 = vld [vmem:[%s22664_s9 + $0x160] ss:$24 sps:$4 sm:$0xff]  }
 0x5a4   : > { %6740 = vmatmul.mubr.bf16.gmra.mrb[40].mxu1 %v19241_v55  ;;  %7126 = vmatmul.mubr.bf16.gmra.mrb[40].mxu0 %v19241_v55  ;;  %v16517_v33 = vld [vmem:[%s22663_s8 + $0x158] ss:$24 sps:$4 sm:$0xff]  }
 0x5a5   : > { %6749 = vmatprep.mubr.bf16.mxu1 %v19281_v38  ;;  %7135 = vmatprep.mubr.bf16.mxu0 %v19281_v38 }
 0x5a6   : > { %7275 = vmatpush1.bf16.msra.mxu1 %v16472_v30  ;;  %9007 = vmatpush1.bf16.msra.mxu0 %v16505_v53  ;;  %v16486_v30 = vld [vmem:[%s22664_s9 + $0x194] ss:$24 sps:$4 sm:$0xff]  }
 0x5a7   : > { %7276 = vmatprep.subr.bf16.mxu1 %v16477_v18  ;;  %9008 = vmatprep.subr.bf16.mxu0 %v16510_v39  ;;  %v16525_v53 = vld [vmem:[%s22663_s8 + $0x18c] ss:$24 sps:$4 sm:$0xff]   ;;  %v16484_v18 = vld [vmem:[%s22664_s9 + $0x190] ss:$24 sps:$4 sm:$0xff]  }
 0x5a8   : > { %v16523_v39 = vld [vmem:[%s22663_s8 + $0x188] ss:$24 sps:$4 sm:$0xff]  }
 0x5aa   : > { %7277 = vmatpush1.bf16.msra.mxu1 %v16475_v43  ;;  %9009 = vmatpush1.bf16.msra.mxu0 %v16508_v54  ;;  %v16495_v43 = vld [vmem:[%s22664_s9 + $0x1c4] ss:$24 sps:$4 sm:$0xff]  }
 0x5ab   : > { %7278 = vmatprep.subr.bf16.mxu1 %v16480_v46  ;;  %9010 = vmatprep.subr.bf16.mxu0 %v16516_v15  ;;  %v16528_v54 = vld [vmem:[%s22663_s8 + $0x1bc] ss:$24 sps:$4 sm:$0xff]   ;;  %v16493_v46 = vld [vmem:[%s22664_s9 + $0x1c0] ss:$24 sps:$4 sm:$0xff]  }
 0x5ac   : > { %6750 = vmatmul.mubr.bf16.gmra.mrb[44].mxu1 %v19278_v45  ;;  %7136 = vmatmul.mubr.bf16.gmra.mrb[44].mxu0 %v19278_v45  ;;  %v16526_v15 = vld [vmem:[%s22663_s8 + $0x1b8] ss:$24 sps:$4 sm:$0xff]  }
 0x5ad   : > { %6759 = vmatprep.mubr.bf16.mxu1 %v19326_v40  ;;  %7145 = vmatprep.mubr.bf16.mxu0 %v19326_v40 }
 0x5ae   : > { %7279 = vmatpush1.bf16.msra.mxu1 %v16478_v44  ;;  %9011 = vmatpush1.bf16.msra.mxu0 %v16514_v12  ;;  %v16504_v44 = vld [vmem:[%s22664_s9 + $0x1f4] ss:$24 sps:$4 sm:$0xff]  }
 0x5af   : > { %7280 = vmatprep.subr.bf16.mxu1 %v16483_v32  ;;  %9012 = vmatprep.subr.bf16.mxu0 %v16519_v2  ;;  %v16534_v12 = vld [vmem:[%s22663_s8 + $0x1ec] ss:$24 sps:$4 sm:$0xff]   ;;  %v16502_v32 = vld [vmem:[%s22664_s9 + $0x1f0] ss:$24 sps:$4 sm:$0xff]  }
 0x5b0   : > { %v16532_v2 = vld [vmem:[%s22663_s8 + $0x1e8] ss:$24 sps:$4 sm:$0xff]  }
 0x5b2   : > { %7281 = vmatpush1.bf16.msra.mxu1 %v16481_v52  ;;  %9013 = vmatpush1.bf16.msra.mxu0 %v16517_v33  ;;  %v16513_v52 = vld [vmem:[%s22664_s9 + $0x224] ss:$24 sps:$4 sm:$0xff]  }
 0x5b3   : > { %7282 = vmatprep.subr.bf16.mxu1 %v16486_v30  ;;  %9014 = vmatprep.subr.bf16.mxu0 %v16525_v53  ;;  %v16537_v33 = vld [vmem:[%s22663_s8 + $0x21c] ss:$24 sps:$4 sm:$0xff]   ;;  %v16511_v30 = vld [vmem:[%s22664_s9 + $0x220] ss:$24 sps:$4 sm:$0xff]  }
 0x5b4   : > { %6760 = vmatmul.mubr.bf16.gmra.mrb[48].mxu1 %v19323_v21  ;;  %7146 = vmatmul.mubr.bf16.gmra.mrb[48].mxu0 %v19323_v21  ;;  %v16535_v53 = vld [vmem:[%s22663_s8 + $0x218] ss:$24 sps:$4 sm:$0xff]  }
 0x5b5   : > { %6769 = vmatprep.mubr.bf16.mxu1 %v19363_v24  ;;  %7155 = vmatprep.mubr.bf16.mxu0 %v19363_v24 }
 0x5b6   : > { %7283 = vmatpush1.bf16.msra.mxu1 %v16484_v18  ;;  %9015 = vmatpush1.bf16.msra.mxu0 %v16523_v39  ;;  %v16522_v18 = vld [vmem:[%s22664_s9 + $0x254] ss:$24 sps:$4 sm:$0xff]  }
 0x5b7   : > { %7284 = vmatprep.subr.bf16.mxu1 %v16495_v43  ;;  %9016 = vmatprep.subr.bf16.mxu0 %v16528_v54  ;;  %v16543_v39 = vld [vmem:[%s22663_s8 + $0x24c] ss:$24 sps:$4 sm:$0xff]   ;;  %v16520_v43 = vld [vmem:[%s22664_s9 + $0x250] ss:$24 sps:$4 sm:$0xff]  }
 0x5b8   : > { %v16541_v54 = vld [vmem:[%s22663_s8 + $0x248] ss:$24 sps:$4 sm:$0xff]  }
 0x5ba   : > { %7285 = vmatpush1.bf16.msra.mxu1 %v16493_v46  ;;  %9017 = vmatpush1.bf16.msra.mxu0 %v16526_v15  ;;  %v16531_v46 = vld [vmem:[%s22664_s9 + $0x284] ss:$24 sps:$4 sm:$0xff]  }
 0x5bb   : > { %7286 = vmatprep.subr.bf16.mxu1 %v16504_v44  ;;  %9018 = vmatprep.subr.bf16.mxu0 %v16534_v12  ;;  %v16546_v15 = vld [vmem:[%s22663_s8 + $0x27c] ss:$24 sps:$4 sm:$0xff]   ;;  %v16529_v44 = vld [vmem:[%s22664_s9 + $0x280] ss:$24 sps:$4 sm:$0xff]  }
 0x5bc   : > { %6770 = vmatmul.mubr.bf16.gmra.mrb[52].mxu1 %v19360_v29  ;;  %7156 = vmatmul.mubr.bf16.gmra.mrb[52].mxu0 %v19360_v29  ;;  %v16544_v12 = vld [vmem:[%s22663_s8 + $0x278] ss:$24 sps:$4 sm:$0xff]  }
 0x5bd   : > { %6779 = vmatprep.mubr.bf16.mxu1 %v19385_v9  ;;  %7165 = vmatprep.mubr.bf16.mxu0 %v19385_v9 }
 0x5be   : > { %7287 = vmatpush1.bf16.msra.mxu1 %v16502_v32  ;;  %9019 = vmatpush1.bf16.msra.mxu0 %v16532_v2  ;;  %v16540_v32 = vld [vmem:[%s22664_s9 + $0x2b4] ss:$24 sps:$4 sm:$0xff]  }
 0x5bf   : > { %7288 = vmatprep.subr.bf16.mxu1 %v16513_v52  ;;  %9020 = vmatprep.subr.bf16.mxu0 %v16537_v33  ;;  %v16552_v2 = vld [vmem:[%s22663_s8 + $0x2ac] ss:$24 sps:$4 sm:$0xff]   ;;  %v16538_v52 = vld [vmem:[%s22664_s9 + $0x2b0] ss:$24 sps:$4 sm:$0xff]  }
 0x5c0   : > { %v16550_v33 = vld [vmem:[%s22663_s8 + $0x2a8] ss:$24 sps:$4 sm:$0xff]  }
 0x5c2   : > { %7289 = vmatpush1.bf16.msra.mxu1 %v16511_v30  ;;  %9021 = vmatpush1.bf16.msra.mxu0 %v16535_v53  ;;  %v16549_v30 = vld [vmem:[%s22664_s9 + $0x2e4] ss:$24 sps:$4 sm:$0xff]  }
 0x5c3   : > { %7290 = vmatprep.subr.bf16.mxu1 %v16522_v18  ;;  %9022 = vmatprep.subr.bf16.mxu0 %v16543_v39  ;;  %v16555_v53 = vld [vmem:[%s22663_s8 + $0x2dc] ss:$24 sps:$4 sm:$0xff]   ;;  %v16547_v18 = vld [vmem:[%s22664_s9 + $0x2e0] ss:$24 sps:$4 sm:$0xff]  }
 0x5c4   : > { %6780 = vmatmul.mubr.bf16.gmra.mrb[56].mxu1 %v19382_v13  ;;  %7166 = vmatmul.mubr.bf16.gmra.mrb[56].mxu0 %v19382_v13  ;;  %v16553_v39 = vld [vmem:[%s22663_s8 + $0x2d8] ss:$24 sps:$4 sm:$0xff]  }
 0x5c5   : > { %6789 = vmatprep.mubr.bf16.mxu1 %v19404_v34  ;;  %7175 = vmatprep.mubr.bf16.mxu0 %v19404_v34 }
 0x5c6   : > { %7291 = vmatpush1.bf16.msra.mxu1 %v16520_v43  ;;  %9023 = vmatpush1.bf16.msra.mxu0 %v16541_v54  ;;  %v16558_v43 = vld [vmem:[%s22664_s9 + $0x314] ss:$24 sps:$4 sm:$0xff]  }
 0x5c7   : > { %7292 = vmatprep.subr.bf16.mxu1 %v16531_v46  ;;  %9024 = vmatprep.subr.bf16.mxu0 %v16546_v15  ;;  %v16585_v54 = vld [vmem:[%s22663_s8 + $0x30c] ss:$24 sps:$4 sm:$0xff]   ;;  %v16556_v46 = vld [vmem:[%s22664_s9 + $0x310] ss:$24 sps:$4 sm:$0xff]  }
 0x5c8   : > { %v16561_v15 = vld [vmem:[%s22664_s9 + $0x344] ss:$24 sps:$4 sm:$0xff]  }
 0x5ca   : > { %7293 = vmatpush1.bf16.msra.mxu1 %v16529_v44  ;;  %9025 = vmatpush1.bf16.msra.mxu0 %v16544_v12  ;;  %v16583_v44 = vld [vmem:[%s22663_s8 + $0x308] ss:$24 sps:$4 sm:$0xff]  }
 0x5cb   : > { %7294 = vmatprep.subr.bf16.mxu1 %v16540_v32  ;;  %9026 = vmatprep.subr.bf16.mxu0 %v16552_v2  ;;  %v16559_v12 = vld [vmem:[%s22664_s9 + $0x340] ss:$24 sps:$4 sm:$0xff]   ;;  %v16594_v2 = vld [vmem:[%s22663_s8 + $0x36c] ss:$24 sps:$4 sm:$0xff]  }
 0x5cc   : > { %6790 = vmatmul.mubr.bf16.gmra.mrb[60].mxu1 %v19401_v17  ;;  %7176 = vmatmul.mubr.bf16.gmra.mrb[60].mxu0 %v19401_v17  ;;  %v16586_v32 = vld [vmem:[%s22663_s8 + $0x338] ss:$24 sps:$4 sm:$0xff]  }
 0x5cd   : > { %6799 = vmatprep.mubr.bf16.mxu1 %v19423_v25  ;;  %7185 = vmatprep.mubr.bf16.mxu0 %v19423_v25 }
 0x5ce   : > { %7295 = vmatpush1.bf16.msra.mxu1 %v16538_v52  ;;  %9027 = vmatpush1.bf16.msra.mxu0 %v16550_v33  ;;  %v16567_v52 = vld [vmem:[%s22664_s9 + $0x3a4] ss:$24 sps:$4 sm:$0xff]   ;;  %v16592_v33 = vld [vmem:[%s22663_s8 + $0x368] ss:$24 sps:$4 sm:$0xff]  }
 0x5cf   : > { %7296 = vmatprep.subr.bf16.mxu1 %v16549_v30  ;;  %9028 = vmatprep.subr.bf16.mxu0 %v16555_v53  ;;  %v16597_v30 = vld [vmem:[%s22663_s8 + $0x39c] ss:$24 sps:$4 sm:$0xff]   ;;  %v16565_v53 = vld [vmem:[%s22664_s9 + $0x3a0] ss:$24 sps:$4 sm:$0xff]  }
 0x5d2   : > { %7297 = vmatpush1.bf16.msra.mxu1 %v16547_v18  ;;  %9029 = vmatpush1.bf16.msra.mxu0 %v16553_v39  ;;  %v16595_v18 = vld [vmem:[%s22663_s8 + $0x398] ss:$24 sps:$4 sm:$0xff]   ;;  %v16603_v39 = vld [vmem:[%s22663_s8 + $0x3cc] ss:$24 sps:$4 sm:$0xff]  }
 0x5d3   : > { %7459 = vmatprep.subr.bf16.mxu1 %v16558_v43  ;;  %9191 = vmatprep.subr.bf16.mxu0 %v16585_v54  ;;  %v16573_v43 = vld [vmem:[%s22664_s9 + $0x404] ss:$24 sps:$4 sm:$0xff]   ;;  %v16601_v54 = vld [vmem:[%s22663_s8 + $0x3c8] ss:$24 sps:$4 sm:$0xff]  }
 0x5d4   : > { %6800 = vmatmul.mubr.bf16.gmra.mrb[64].mxu1 %v19420_v60  ;;  %7186 = vmatmul.mubr.bf16.gmra.mrb[64].mxu0 %v19420_v60 }
 0x5d5   : > { %6809 = vmatprep.mubr.bf16.mxu1 %v19441_v27  ;;  %7195 = vmatprep.mubr.bf16.mxu0 %v19441_v27 }
 0x5dc   : > { %6810 = vmatmul.mubr.bf16.gmra.mrb[68].mxu1 %v19438_v37  ;;  %7196 = vmatmul.mubr.bf16.gmra.mrb[68].mxu0 %v19438_v37 }
 0x5dd   : > { %6819 = vmatprep.mubr.bf16.mxu1 %v19457_v20  ;;  %7205 = vmatprep.mubr.bf16.mxu0 %v19457_v20 }
 0x5e4   : > { %6820 = vmatmul.mubr.bf16.gmra.mrb[72].mxu1 %v19454_v47  ;;  %7206 = vmatmul.mubr.bf16.gmra.mrb[72].mxu0 %v19454_v47 }
 0x5e5   : > { %6829 = vmatprep.mubr.bf16.mxu1 %v19473_v48  ;;  %7215 = vmatprep.mubr.bf16.mxu0 %v19473_v48 }
 0x5ec   : > { %6830 = vmatmul.mubr.bf16.gmra.mrb[76].mxu1 %v19470_v1  ;;  %7216 = vmatmul.mubr.bf16.gmra.mrb[76].mxu0 %v19470_v1 }
 0x5ed   : > { %6839 = vmatprep.mubr.bf16.mxu1 %v19489_v22  ;;  %7225 = vmatprep.mubr.bf16.mxu0 %v19489_v22 }
 0x5f4   : > { %6840 = vmatmul.mubr.bf16.gmra.mrb[80].mxu1 %v19486_v36  ;;  %7226 = vmatmul.mubr.bf16.gmra.mrb[80].mxu0 %v19486_v36 }
 0x5f5   : > { %6849 = vmatprep.mubr.bf16.mxu1 %v19505_v49  ;;  %7235 = vmatprep.mubr.bf16.mxu0 %v19505_v49 }
 0x5fc   : > { %6850 = vmatmul.mubr.bf16.gmra.mrb[84].mxu1 %v19502_v6  ;;  %7236 = vmatmul.mubr.bf16.gmra.mrb[84].mxu0 %v19502_v6 }
 0x5fd   : > { %6859 = vmatprep.mubr.bf16.mxu1 %v19524_v61  ;;  %7245 = vmatprep.mubr.bf16.mxu0 %v19524_v61 }
 0x604   : > { %6860 = vmatmul.mubr.bf16.gmra.mrb[88].mxu1 %v19521_v42  ;;  %7246 = vmatmul.mubr.bf16.gmra.mrb[88].mxu0 %v19521_v42 }
 0x605   : > { %6869 = vmatprep.mubr.bf16.mxu1 %v19540_v41  ;;  %7255 = vmatprep.mubr.bf16.mxu0 %v19540_v41 }
 0x60c   : > { %6870 = vmatmul.mubr.bf16.gmra.mrb[92].mxu1 %v19537_v14  ;;  %7256 = vmatmul.mubr.bf16.gmra.mrb[92].mxu0 %v19537_v14 }
 0x60d   : > { %7298 = vmatprep.mubr.bf16.mxu1 %v19596_v28  ;;  %9030 = vmatprep.mubr.bf16.mxu0 %v18923_v51  ;;  %v16588_v28 = vld [vmem:[%s22663_s8 + $0x33c] ss:$24 sps:$4 sm:$0xff]  }
 0x614   : > { %7299 = vmatmul.mubr.bf16.vlgmr.msra.gmra.mrb[96].mxu1 %v19594_v7  ;;  %9031 = vmatmul.mubr.bf16.vlgmr.msra.gmra.mrb[32].mxu0 %v18921_v5  ;;  %v16564_v7 = vld [vmem:[%s22664_s9 + $0x374] ss:$24 sps:$4 sm:$0xff]  }
 0x615   : > { %7308 = vmatprep.mubr.bf16.mxu1 %v19632_v58  ;;  %7460 = vmatpush1.bf16.msra.mxu1 %v16556_v46  ;;  %v16562_v58 = vld [vmem:[%s22664_s9 + $0x370] ss:$24 sps:$4 sm:$0xff]   ;;  %v16606_v46 = vld [vmem:[%s22663_s8 + $0x3fc] ss:$24 sps:$4 sm:$0xff]  }
 0x616   : > { %9040 = vmatprep.mubr.bf16.mxu0 %v18937_v35  ;;  %7461 = vmatprep.subr.bf16.mxu1 %v16561_v15  ;;  %v23011_v15 = vld [vmem:[#allocation66_spill] sm:$0xff] }
 0x617   : > { %9192 = vmatpush1.bf16.msra.mxu0 %v16583_v44  ;;  %v23012_v44 = vld [vmem:[#allocation22_spill] sm:$0xff] }
 0x618   : > { %9193 = vmatprep.subr.bf16.mxu0 %v16588_v28  ;;  %v16571_v28 = vld [vmem:[%s22664_s9 + $0x400] ss:$24 sps:$4 sm:$0xff]  }
 0x619   : > { %7462 = vmatpush1.bf16.msra.mxu1 %v16559_v12  ;;  %v16604_v12 = vld [vmem:[%s22663_s8 + $0x3f8] ss:$24 sps:$4 sm:$0xff]  }
 0x61a   : > { %7463 = vmatprep.subr.bf16.mxu1 %v16564_v7  ;;  %v16574_v7 = vld [vmem:[%s22664_s9 + $0x430] ss:$24 sps:$4 sm:$0xff]  }
 0x61b   : > { %9194 = vmatpush1.bf16.msra.mxu0 %v16586_v32  ;;  %v16612_v32 = vld [vmem:[%s22663_s8 + $0x42c] ss:$24 sps:$4 sm:$0xff]  }
 0x61c   : > { %7309 = vmatmul.mubr.bf16.gmra.mrb[100].mxu1 %v19630_v63  ;;  %9041 = vmatmul.mubr.bf16.gmra.mrb[36].mxu0 %v18932_v8  ;;  %v16570_v63 = vld [vmem:[%s22664_s9 + $0x3d4] ss:$24 sps:$4 sm:$0xff]  }
 0x61d   : > { %7318 = vmatprep.mubr.bf16.mxu1 %v19668_v62  ;;  %9050 = vmatprep.mubr.bf16.mxu0 %v18948_v19  ;;  %v16568_v62 = vld [vmem:[%s22664_s9 + $0x3d0] ss:$24 sps:$4 sm:$0xff]  }
 0x61e   : > { %7464 = vmatpush1.bf16.msra.mxu1 %v16562_v58  ;;  %9195 = vmatprep.subr.bf16.mxu0 %v16594_v2  ;;  %v16579_v58 = vld [vmem:[%s22664_s9 + $0x464] ss:$24 sps:$4 sm:$0xff]   ;;  %v16610_v2 = vld [vmem:[%s22663_s8 + $0x428] ss:$24 sps:$4 sm:$0xff]  }
 0x61f   : > { %7465 = vmatprep.subr.bf16.mxu1 %v16567_v52  ;;  %9196 = vmatpush1.bf16.msra.mxu0 %v16592_v33  ;;  %v23013_v52 = vld [vmem:[#allocation65_spill] sm:$0xff] }
 0x620   : > { %9197 = vmatprep.subr.bf16.mxu0 %v16597_v30  ;;  %v23014_v33 = vld [vmem:[#allocation21_spill] sm:$0xff] }
 0x621   : > { %v16615_v30 = vld [vmem:[%s22663_s8 + $0x45c] ss:$24 sps:$4 sm:$0xff]  }
 0x622   : > { %7466 = vmatpush1.bf16.msra.mxu1 %v16565_v53  ;;  %v23015_v53 = vld [vmem:[#allocation68_spill] sm:$0xff] }
 0x623   : > { %7467 = vmatprep.subr.bf16.mxu1 %v16570_v63  ;;  %9198 = vmatpush1.bf16.msra.mxu0 %v16595_v18  ;;  %v23016_v63 = vld [vmem:[#allocation24_spill] sm:$0xff]  ;;  %v16577_v18 = vld [vmem:[%s22664_s9 + $0x460] ss:$24 sps:$4 sm:$0xff]  }
 0x624   : > { %7319 = vmatmul.mubr.bf16.gmra.mrb[104].mxu1 %v19666_v0  ;;  %9051 = vmatmul.mubr.bf16.gmra.mrb[40].mxu0 %v18946_v4  ;;  %v16576_v0 = vld [vmem:[%s22664_s9 + $0x434] ss:$24 sps:$4 sm:$0xff]  }
 0x625   : > { %7328 = vmatprep.mubr.bf16.mxu1 %v23011_v15  ;;  %9060 = vmatprep.mubr.bf16.mxu0 %v23012_v44  ;;  %v16619_v15 = vld [vmem:[%s22663_s8 + $0x488] ss:$24 sps:$4 sm:$0xff]  }
 0x626   : > { %7468 = vmatpush1.bf16.msra.mxu1 %v16568_v62  ;;  %9199 = vmatprep.subr.bf16.mxu0 %v16603_v39  ;;  %v16582_v62 = vld [vmem:[%s22664_s9 + $0x494] ss:$24 sps:$4 sm:$0xff]   ;;  %v16613_v39 = vld [vmem:[%s22663_s8 + $0x458] ss:$24 sps:$4 sm:$0xff]  }
 0x627   : > { %7469 = vmatprep.subr.bf16.mxu1 %v16573_v43  ;;  %9200 = vmatpush1.bf16.msra.mxu0 %v16601_v54  ;;  %v16580_v43 = vld [vmem:[%s22664_s9 + $0x490] ss:$24 sps:$4 sm:$0xff]   ;;  %v16621_v54 = vld [vmem:[%s22663_s8 + $0x48c] ss:$24 sps:$4 sm:$0xff]  }
 0x628   : > { %9201 = vmatprep.subr.bf16.mxu0 %v16606_v46  ;;  %v16591_v46 = vld [vmem:[%s22664_s9 + $0x4c4] ss:$24 sps:$4 sm:$0xff]  }
 0x62a   : > { %7470 = vmatpush1.bf16.msra.mxu1 %v16571_v28  ;;  %v23017_v28 = vld [vmem:[#allocation67_spill] sm:$0xff] }
 0x62b   : > { %7471 = vmatprep.subr.bf16.mxu1 %v16576_v0  ;;  %9202 = vmatpush1.bf16.msra.mxu0 %v16604_v12  ;;  %v23018_v0 = vld [vmem:[#allocation23_spill] sm:$0xff]  ;;  %v16624_v12 = vld [vmem:[%s22663_s8 + $0x4bc] ss:$24 sps:$4 sm:$0xff]  }
 0x62c   : > { %7329 = vmatmul.mubr.bf16.gmra.mrb[108].mxu1 %v23013_v52  ;;  %9061 = vmatmul.mubr.bf16.gmra.mrb[44].mxu0 %v23014_v33  ;;  %v16622_v52 = vld [vmem:[%s22663_s8 + $0x4b8] ss:$24 sps:$4 sm:$0xff]  }
 0x62d   : > { %7338 = vmatprep.mubr.bf16.mxu1 %v23015_v53  ;;  %9070 = vmatprep.mubr.bf16.mxu0 %v23016_v63  ;;  %v16630_v53 = vld [vmem:[%s22663_s8 + $0x4ec] ss:$24 sps:$4 sm:$0xff]  }
 0x62e   : > { %7472 = vmatpush1.bf16.msra.mxu1 %v16574_v7  ;;  %9203 = vmatprep.subr.bf16.mxu0 %v16612_v32  ;;  %v23019_v7 = vld [vmem:[#allocation70_spill] sm:$0xff] }
 0x62f   : > { %7473 = vmatprep.subr.bf16.mxu1 %v16579_v58  ;;  %9204 = vmatpush1.bf16.msra.mxu0 %v16610_v2  ;;  %v23020_v32 = vld [vmem:[#allocation26_spill] sm:$0xff]  ;;  %v16600_v2 = vld [vmem:[%s22664_s9 + $0x4f4] ss:$24 sps:$4 sm:$0xff]  }
 0x630   : > { %9205 = vmatprep.subr.bf16.mxu0 %v16615_v30  ;;  %v16589_v58 = vld [vmem:[%s22664_s9 + $0x4c0] ss:$24 sps:$4 sm:$0xff]   ;;  %v16598_v30 = vld [vmem:[%s22664_s9 + $0x4f0] ss:$24 sps:$4 sm:$0xff]  }
 0x632   : > { %7474 = vmatpush1.bf16.msra.mxu1 %v16577_v18  ;;  %v16609_v18 = vld [vmem:[%s22664_s9 + $0x524] ss:$24 sps:$4 sm:$0xff]  }
 0x633   : > { %7475 = vmatprep.subr.bf16.mxu1 %v16582_v62  ;;  %9206 = vmatpush1.bf16.msra.mxu0 %v16613_v39  ;;  %v16628_v62 = vld [vmem:[%s22663_s8 + $0x4e8] ss:$24 sps:$4 sm:$0xff]   ;;  %v23021_v39 = vld [vmem:[#allocation69_spill] sm:$0xff] }
 0x634   : > { %7339 = vmatmul.mubr.bf16.gmra.mrb[112].mxu1 %v23017_v28  ;;  %9071 = vmatmul.mubr.bf16.gmra.mrb[48].mxu0 %v23018_v0  ;;  %v16607_v28 = vld [vmem:[%s22664_s9 + $0x520] ss:$24 sps:$4 sm:$0xff]  }
 0x635   : > { %7348 = vmatprep.mubr.bf16.mxu1 %v23019_v7  ;;  %9080 = vmatprep.mubr.bf16.mxu0 %v23020_v32  ;;  %v16631_v7 = vld [vmem:[%s22663_s8 + $0x518] ss:$24 sps:$4 sm:$0xff]  }
 0x636   : > { %7476 = vmatpush1.bf16.msra.mxu1 %v16580_v43  ;;  %9207 = vmatprep.subr.bf16.mxu0 %v16621_v54  ;;  %v23022_v43 = vld [vmem:[#allocation25_spill] sm:$0xff] }
 0x637   : > { %7477 = vmatprep.subr.bf16.mxu1 %v16591_v46  ;;  %9208 = vmatpush1.bf16.msra.mxu0 %v16619_v15  ;;  %v16633_v54 = vld [vmem:[%s22663_s8 + $0x51c] ss:$24 sps:$4 sm:$0xff]  }
 0x638   : > { %9209 = vmatprep.subr.bf16.mxu0 %v16624_v12  ;;  %v23023_v46 = vld [vmem:[#allocation72_spill] sm:$0xff] }
 0x639   : > { %v23024_v15 = vld [vmem:[#allocation28_spill] sm:$0xff] }
 0x63a   : > { %7478 = vmatpush1.bf16.msra.mxu1 %v16589_v58  ;;  %v16618_v12 = vld [vmem:[%s22664_s9 + $0x554] ss:$24 sps:$4 sm:$0xff]   ;;  %v16616_v58 = vld [vmem:[%s22664_s9 + $0x550] ss:$24 sps:$4 sm:$0xff]  }
 0x63b   : > { %7479 = vmatprep.subr.bf16.mxu1 %v16600_v2  ;;  %9210 = vmatpush1.bf16.msra.mxu0 %v16622_v52  ;;  %v16639_v2 = vld [vmem:[%s22663_s8 + $0x54c] ss:$24 sps:$4 sm:$0xff]  }
 0x63c   : > { %7349 = vmatmul.mubr.bf16.gmra.mrb[116].mxu1 %v23021_v39  ;;  %9081 = vmatmul.mubr.bf16.gmra.mrb[52].mxu0 %v23022_v43  ;;  %v16627_v52 = vld [vmem:[%s22664_s9 + $0x584] ss:$24 sps:$4 sm:$0xff]  }
 0x63d   : > { %7358 = vmatprep.mubr.bf16.mxu1 %v23023_v46  ;;  %9090 = vmatprep.mubr.bf16.mxu0 %v23024_v15  ;;  %v23027_v39 = vld [vmem:[#allocation74_spill] sm:$0xff] }
 0x63e   : > { %7480 = vmatpush1.bf16.msra.mxu1 %v16598_v30  ;;  %9211 = vmatprep.subr.bf16.mxu0 %v16630_v53  ;;  %v16637_v30 = vld [vmem:[%s22663_s8 + $0x548] ss:$24 sps:$4 sm:$0xff]  }
 0x63f   : > { %7481 = vmatprep.subr.bf16.mxu1 %v16609_v18  ;;  %9212 = vmatpush1.bf16.msra.mxu0 %v16628_v62  ;;  %v23025_v53 = vld [vmem:[#allocation71_spill] sm:$0xff]  ;;  %v16642_v62 = vld [vmem:[%s22663_s8 + $0x57c] ss:$24 sps:$4 sm:$0xff]   ;;  %v16625_v46 = vld [vmem:[%s22664_s9 + $0x580] ss:$24 sps:$4 sm:$0xff]  }
 0x640   : > { %9213 = vmatprep.subr.bf16.mxu0 %v16633_v54  ;;  %v23026_v18 = vld [vmem:[#allocation27_spill] sm:$0xff]  ;;  %v23028_v54 = vld [vmem:[#allocation30_spill] sm:$0xff] }
 0x642   : > { %7482 = vmatpush1.bf16.msra.mxu1 %v16607_v28  ;;  %v16636_v28 = vld [vmem:[%s22664_s9 + $0x5b4] ss:$24 sps:$4 sm:$0xff]  }
 0x643   : > { %7483 = vmatprep.subr.bf16.mxu1 %v16618_v12  ;;  %9214 = vmatpush1.bf16.msra.mxu0 %v16631_v7  ;;  %v16640_v12 = vld [vmem:[%s22663_s8 + $0x578] ss:$24 sps:$4 sm:$0xff]  }
 0x644   : > { %7359 = vmatmul.mubr.bf16.gmra.mrb[120].mxu1 %v23025_v53  ;;  %9091 = vmatmul.mubr.bf16.gmra.mrb[56].mxu0 %v23026_v18  ;;  %v16634_v7 = vld [vmem:[%s22664_s9 + $0x5b0] ss:$24 sps:$4 sm:$0xff]   ;;  %v23030_v53 = vld [vmem:[#allocation29_spill] sm:$0xff] }
 0x645   : > { %7368 = vmatprep.mubr.bf16.mxu1 %v23027_v39  ;;  %9100 = vmatprep.mubr.bf16.mxu0 %v23028_v54  ;;  %v23031_v39 = vld [vmem:[#allocation32_spill] sm:$0xff] }
 0x646   : > { %7484 = vmatpush1.bf16.msra.mxu1 %v16616_v58  ;;  %9215 = vmatprep.subr.bf16.mxu0 %v16639_v2  ;;  %v16648_v58 = vld [vmem:[%s22663_s8 + $0x5ac] ss:$24 sps:$4 sm:$0xff]  }
 0x647   : > { %7485 = vmatprep.subr.bf16.mxu1 %v16627_v52  ;;  %9216 = vmatpush1.bf16.msra.mxu0 %v16637_v30  ;;  %v16645_v2 = vld [vmem:[%s22664_s9 + $0x5e4] ss:$24 sps:$4 sm:$0xff]   ;;  %v16646_v52 = vld [vmem:[%s22663_s8 + $0x5a8] ss:$24 sps:$4 sm:$0xff]  }
 0x648   : > { %9217 = vmatprep.subr.bf16.mxu0 %v16642_v62  ;;  %v23029_v30 = vld [vmem:[#allocation73_spill] sm:$0xff] }
 0x649   : > { %v16651_v62 = vld [vmem:[%s22663_s8 + $0x5dc] ss:$24 sps:$4 sm:$0xff]  }
 0x64a   : > { %7486 = vmatpush1.bf16.msra.mxu1 %v16625_v46  ;;  %v16643_v46 = vld [vmem:[%s22664_s9 + $0x5e0] ss:$24 sps:$4 sm:$0xff]  }
 0x64b   : > { %7487 = vmatprep.subr.bf16.mxu1 %v16636_v28  ;;  %9218 = vmatpush1.bf16.msra.mxu0 %v16640_v12  ;;  %v16649_v28 = vld [vmem:[%s22663_s8 + $0x5d8] ss:$24 sps:$4 sm:$0xff]   ;;  %v16654_v12 = vld [vmem:[%s22663_s8 + $0x4] ss:$24 sps:$4 sm:$0xff]  }
 0x64c   : > { %7369 = vmatmul.mubr.bf16.gmra.mrb[124].mxu1 %v23029_v30  ;;  %9101 = vmatmul.mubr.bf16.gmra.mrb[60].mxu0 %v23030_v53  ;;  %v23034_v30 = vld [vmem:[#allocation77_spill] sm:$0xff]  ;;  %v23039_v53 = vld [vmem:[#allocation2_spill] sm:$0xff] }
 0x64d   : > { %7378 = vmatprep.mubr.bf16.mxu1 %v19881_v31  ;;  %9110 = vmatprep.mubr.bf16.mxu0 %v23031_v39  ;;  %v23032_v31 = vld [vmem:[#allocation75_spill] sm:$0xff] }
 0x64e   : > { %7488 = vmatpush1.bf16.msra.mxu1 %v16634_v7  ;;  %9219 = vmatprep.subr.bf16.mxu0 %v16648_v58  ;;  %v23033_v7 = vld [vmem:[#allocation31_spill] sm:$0xff]  ;;  %v23035_v58 = vld [vmem:[#allocation33_spill] sm:$0xff] }
 0x64f   : > { %7489 = vmatprep.subr.bf16.mxu1 %v16645_v2  ;;  %9220 = vmatpush1.bf16.msra.mxu0 %v16646_v52  ;;  %v23036_v2 = vld [vmem:[#allocation76_spill] sm:$0xff]  ;;  %v23038_v39 = vld [vmem:[#allocation79_spill] sm:$0xff] }
 0x650   : > { %9221 = vmatprep.subr.bf16.mxu0 %v16651_v62  ;;  %v23037_v52 = vld [vmem:[#allocation36_spill] sm:$0xff]  ;;  %v23040_v62 = vld [vmem:[#allocation78_spill] sm:$0xff] }
 0x652   : > { %7490 = vmatpush1.bf16.msra.mxu1 %v16643_v46  ;;  %v23041_v46 = vld [vmem:[#allocation3_spill] sm:$0xff] }
 0x653   : > { %9222 = vmatpush1.bf16.msra.mxu0 %v16649_v28  ;;  %8612 = vmatprep.subr.bf16.mxu1 %v16654_v12  ;;  %v23042_v28 = vld [vmem:[#allocation81_spill] sm:$0xff]  ;;  %v23043_v12 = vld [vmem:[#allocation4_spill] sm:$0xff] }
 0x654   : > { %7379 = vmatmul.mubr.bf16.gmra.mrb[128].mxu1 %v23032_v31  ;;  %9111 = vmatmul.mubr.bf16.gmra.mrb[64].mxu0 %v23033_v7  ;;  %v23044_v31 = vld [vmem:[#allocation80_spill] sm:$0xff] }
 0x655   : > { %7388 = vmatprep.mubr.bf16.mxu1 %v23034_v30  ;;  %9120 = vmatprep.mubr.bf16.mxu0 %v23035_v58  ;;  %v23045_v30 = vld [vmem:[#allocation5_spill] sm:$0xff]  ;;  %v23046_v58 = vld [vmem:[#allocation83_spill] sm:$0xff] }
 0x65c   : > { %7389 = vmatmul.mubr.bf16.gmra.mrb[132].mxu1 %v23036_v2  ;;  %9121 = vmatmul.mubr.bf16.gmra.mrb[68].mxu0 %v23037_v52  ;;  %v23047_v2 = vld [vmem:[#allocation6_spill] sm:$0xff] }
 0x65d   : > { %7398 = vmatprep.mubr.bf16.mxu1 %v23038_v39  ;;  %9130 = vmatprep.mubr.bf16.mxu0 %v23039_v53  ;;  %v23048_v52 = vld [vmem:[#allocation82_spill] sm:$0xff]  ;;  %v23049_v39 = vld [vmem:[#allocation7_spill] sm:$0xff]  ;;  %v23050_v53 = vld [vmem:[#allocation84_spill] sm:$0xff] }
 0x664   : > { %7399 = vmatmul.mubr.bf16.gmra.mrb[136].mxu1 %v23040_v62  ;;  %9131 = vmatmul.mubr.bf16.gmra.mrb[72].mxu0 %v23041_v46  ;;  %v23051_v62 = vld [vmem:[#allocation8_spill] sm:$0xff] }
 0x665   : > { %7408 = vmatprep.mubr.bf16.mxu1 %v23042_v28  ;;  %9140 = vmatprep.mubr.bf16.mxu0 %v23043_v12  ;;  %v23052_v28 = vld [vmem:[#allocation9_spill] sm:$0xff] }
 0x66c   : > { %7409 = vmatmul.mubr.bf16.gmra.mrb[140].mxu1 %v23044_v31  ;;  %9141 = vmatmul.mubr.bf16.gmra.mrb[76].mxu0 %v23045_v30  ;;  %v23053_v31 = vld [vmem:[#allocation10_spill] sm:$0xff] }
 0x66d   : > { %7418 = vmatprep.mubr.bf16.mxu1 %v23046_v58  ;;  %9150 = vmatprep.mubr.bf16.mxu0 %v23047_v2  ;;  %v23054_v58 = vld [vmem:[#allocation11_spill] sm:$0xff] }
 0x674   : > { %7419 = vmatmul.mubr.bf16.gmra.mrb[144].mxu1 %v23048_v52  ;;  %9151 = vmatmul.mubr.bf16.gmra.mrb[80].mxu0 %v23049_v39  ;;  %v23055_v52 = vld [vmem:[#allocation12_spill] sm:$0xff] }
 0x675   : > { %7428 = vmatprep.mubr.bf16.mxu1 %v23050_v53  ;;  %9160 = vmatprep.mubr.bf16.mxu0 %v23051_v62  ;;  %v23056_v53 = vld [vmem:[#allocation13_spill] sm:$0xff] }
 0x67c   : > { %7429 = vmatmul.mubr.bf16.gmra.mrb[148].mxu1 %v19942_v23  ;;  %9161 = vmatmul.mubr.bf16.gmra.mrb[84].mxu0 %v23052_v28  ;;  %v23057_v23 = vld [vmem:[#allocation14_spill] sm:$0xff] }
 0x67d   : > { %7438 = vmatprep.mubr.bf16.mxu1 %v19956_v11  ;;  %9170 = vmatprep.mubr.bf16.mxu0 %v23053_v31  ;;  %v16652_v11 = vld [vmem:[%s22663_s8] ss:$24 sps:$4 sm:$0xff]  }
 0x684   : > { %7439 = vmatmul.mubr.bf16.gmra.mrb[152].mxu1 %v19954_v10  ;;  %9171 = vmatmul.mubr.bf16.gmra.mrb[88].mxu0 %v23054_v58  ;;  %v16657_v10 = vld [vmem:[%s22663_s8 + $0x34] ss:$24 sps:$4 sm:$0xff]  }
 0x685   : > { %7448 = vmatprep.mubr.bf16.mxu1 %v19968_v3  ;;  %9180 = vmatprep.mubr.bf16.mxu0 %v23055_v52  ;;  %v23058_v3 = vld [vmem:[#allocation15_spill] sm:$0xff] }
 0x68c   : > { %7449 = vmatmul.mubr.bf16.gmra.mrb[156].mxu1 %v19966_v16  ;;  %9181 = vmatmul.mubr.bf16.gmra.mrb[92].mxu0 %v23056_v53  ;;  %v23059_v16 = vld [vmem:[#allocation17_spill] sm:$0xff] }
 0x68d   : > { %7491 = vmatprep.mubr.bf16.mxu1 %v19170_v57  ;;  %9223 = vmatprep.mubr.bf16.mxu0 %v23057_v23  ;;  %v16655_v57 = vld [vmem:[%s22663_s8 + $0x30] ss:$24 sps:$4 sm:$0xff]   ;;  %v16660_v23 = vld [vmem:[%s22663_s8 + $0x64] ss:$24 sps:$4 sm:$0xff]  }
 0x694   : > { %7492 = vmatmul.mubr.bf16.vlgmr.msra.gmra.mrb[96].mxu1 %v19167_v59  ;;  %9224 = vmatmul.mubr.bf16.vlgmr.msra.gmra.mrb[32].mxu0 %v23058_v3  ;;  %v16658_v59 = vld [vmem:[%s22663_s8 + $0x60] ss:$24 sps:$4 sm:$0xff]  }
 0x695   : > { %7501 = vmatprep.mubr.bf16.mxu1 %v19207_v56  ;;  %8613 = vmatpush1.bf16.msra.mxu1 %v16652_v11  ;;  %v16663_v56 = vld [vmem:[%s22663_s8 + $0x94] ss:$24 sps:$4 sm:$0xff]  }
 0x696   : > { %9233 = vmatprep.mubr.bf16.mxu0 %v23059_v16  ;;  %8614 = vmatprep.subr.bf16.mxu1 %v16657_v10  ;;  %v23060_v11 = vld [vmem:[#allocation16_spill] sm:$0xff]  ;;  %v23061_v10 = vld [vmem:[#allocation38_spill] sm:$0xff] }
 0x699   : > { %8615 = vmatpush1.bf16.msra.mxu1 %v16655_v57  ;;  %v16661_v57 = vld [vmem:[%s22663_s8 + $0x90] ss:$24 sps:$4 sm:$0xff]  }
 0x69a   : > { %8616 = vmatprep.subr.bf16.mxu1 %v16660_v23  ;;  %v16666_v23 = vld [vmem:[%s22663_s8 + $0xc4] ss:$24 sps:$4 sm:$0xff]  }
 0x69c   : > { %7502 = vmatmul.mubr.bf16.gmra.mrb[100].mxu1 %v19204_v50  ;;  %9234 = vmatmul.mubr.bf16.gmra.mrb[36].mxu0 %v23060_v11  ;;  %v16664_v50 = vld [vmem:[%s22663_s8 + $0xc0] ss:$24 sps:$4 sm:$0xff]  }
 0x69d   : > { %7511 = vmatprep.mubr.bf16.mxu1 %v19244_v26  ;;  %9243 = vmatprep.mubr.bf16.mxu0 %v23061_v10  ;;  %v16669_v26 = vld [vmem:[%s22663_s8 + $0xf4] ss:$24 sps:$4 sm:$0xff]  }
 0x69e   : > { %8617 = vmatpush1.bf16.msra.mxu1 %v16658_v59  ;;  %v23062_v59 = vld [vmem:[#allocation37_spill] sm:$0xff] }
 0x69f   : > { %8618 = vmatprep.subr.bf16.mxu1 %v16663_v56  ;;  %v23063_v56 = vld [vmem:[#allocation40_spill] sm:$0xff] }
 0x6a2   : > { %8619 = vmatpush1.bf16.msra.mxu1 %v16661_v57  ;;  %v16667_v57 = vld [vmem:[%s22663_s8 + $0xf0] ss:$24 sps:$4 sm:$0xff]  }
 0x6a3   : > { %8620 = vmatprep.subr.bf16.mxu1 %v16666_v23  ;;  %v16672_v23 = vld [vmem:[%s22663_s8 + $0x124] ss:$24 sps:$4 sm:$0xff]  }
 0x6a4   : > { %7512 = vmatmul.mubr.bf16.gmra.mrb[104].mxu1 %v19241_v55  ;;  %9244 = vmatmul.mubr.bf16.gmra.mrb[40].mxu0 %v23062_v59  ;;  %v16670_v55 = vld [vmem:[%s22663_s8 + $0x120] ss:$24 sps:$4 sm:$0xff]  }
 0x6a5   : > { %7521 = vmatprep.mubr.bf16.mxu1 %v19281_v38  ;;  %9253 = vmatprep.mubr.bf16.mxu0 %v23063_v56  ;;  %v16675_v38 = vld [vmem:[%s22663_s8 + $0x154] ss:$24 sps:$4 sm:$0xff]  }
 0x6a6   : > { %8621 = vmatpush1.bf16.msra.mxu1 %v16664_v50  ;;  %v23064_v50 = vld [vmem:[#allocation39_spill] sm:$0xff] }
 0x6a7   : > { %8622 = vmatprep.subr.bf16.mxu1 %v16669_v26  ;;  %v23065_v26 = vld [vmem:[#allocation42_spill] sm:$0xff] }
 0x6aa   : > { %8623 = vmatpush1.bf16.msra.mxu1 %v16667_v57  ;;  %v16673_v57 = vld [vmem:[%s22663_s8 + $0x150] ss:$24 sps:$4 sm:$0xff]  }
 0x6ab   : > { %8624 = vmatprep.subr.bf16.mxu1 %v16672_v23  ;;  %v16678_v23 = vld [vmem:[%s22663_s8 + $0x184] ss:$24 sps:$4 sm:$0xff]  }
 0x6ac   : > { %7522 = vmatmul.mubr.bf16.gmra.mrb[108].mxu1 %v19278_v45  ;;  %9254 = vmatmul.mubr.bf16.gmra.mrb[44].mxu0 %v23064_v50  ;;  %v16676_v45 = vld [vmem:[%s22663_s8 + $0x180] ss:$24 sps:$4 sm:$0xff]  }
 0x6ad   : > { %7531 = vmatprep.mubr.bf16.mxu1 %v19326_v40  ;;  %9263 = vmatprep.mubr.bf16.mxu0 %v23065_v26  ;;  %v16681_v40 = vld [vmem:[%s22663_s8 + $0x1b4] ss:$24 sps:$4 sm:$0xff]  }
 0x6ae   : > { %8625 = vmatpush1.bf16.msra.mxu1 %v16670_v55  ;;  %v23066_v55 = vld [vmem:[#allocation41_spill] sm:$0xff] }
 0x6af   : > { %8626 = vmatprep.subr.bf16.mxu1 %v16675_v38  ;;  %v23067_v38 = vld [vmem:[#allocation44_spill] sm:$0xff] }
 0x6b2   : > { %8627 = vmatpush1.bf16.msra.mxu1 %v16673_v57  ;;  %v16679_v57 = vld [vmem:[%s22663_s8 + $0x1b0] ss:$24 sps:$4 sm:$0xff]  }
 0x6b3   : > { %8628 = vmatprep.subr.bf16.mxu1 %v16678_v23  ;;  %v16684_v23 = vld [vmem:[%s22663_s8 + $0x1e4] ss:$24 sps:$4 sm:$0xff]  }
 0x6b4   : > { %7532 = vmatmul.mubr.bf16.gmra.mrb[112].mxu1 %v19323_v21  ;;  %9264 = vmatmul.mubr.bf16.gmra.mrb[48].mxu0 %v23066_v55  ;;  %v16682_v21 = vld [vmem:[%s22663_s8 + $0x1e0] ss:$24 sps:$4 sm:$0xff]  }
 0x6b5   : > { %7541 = vmatprep.mubr.bf16.mxu1 %v19363_v24  ;;  %9273 = vmatprep.mubr.bf16.mxu0 %v23067_v38  ;;  %v16687_v24 = vld [vmem:[%s22663_s8 + $0x214] ss:$24 sps:$4 sm:$0xff]  }
 0x6b6   : > { %8629 = vmatpush1.bf16.msra.mxu1 %v16676_v45  ;;  %v23068_v45 = vld [vmem:[#allocation43_spill] sm:$0xff] }
 0x6b7   : > { %8630 = vmatprep.subr.bf16.mxu1 %v16681_v40  ;;  %v23069_v40 = vld [vmem:[#allocation46_spill] sm:$0xff] }
 0x6ba   : > { %8631 = vmatpush1.bf16.msra.mxu1 %v16679_v57  ;;  %v16685_v57 = vld [vmem:[%s22663_s8 + $0x210] ss:$24 sps:$4 sm:$0xff]  }
 0x6bb   : > { %8632 = vmatprep.subr.bf16.mxu1 %v16684_v23  ;;  %v16690_v23 = vld [vmem:[%s22663_s8 + $0x244] ss:$24 sps:$4 sm:$0xff]  }
 0x6bc   : > { %7542 = vmatmul.mubr.bf16.gmra.mrb[116].mxu1 %v19360_v29  ;;  %9274 = vmatmul.mubr.bf16.gmra.mrb[52].mxu0 %v23068_v45  ;;  %v16688_v29 = vld [vmem:[%s22663_s8 + $0x240] ss:$24 sps:$4 sm:$0xff]  }
 0x6bd   : > { %7551 = vmatprep.mubr.bf16.mxu1 %v19385_v9  ;;  %9283 = vmatprep.mubr.bf16.mxu0 %v23069_v40  ;;  %v16693_v9 = vld [vmem:[%s22663_s8 + $0x274] ss:$24 sps:$4 sm:$0xff]  }
 0x6be   : > { %8633 = vmatpush1.bf16.msra.mxu1 %v16682_v21  ;;  %v23070_v21 = vld [vmem:[#allocation45_spill] sm:$0xff] }
 0x6bf   : > { %8634 = vmatprep.subr.bf16.mxu1 %v16687_v24  ;;  %v23071_v24 = vld [vmem:[#allocation48_spill] sm:$0xff] }
 0x6c2   : > { %8635 = vmatpush1.bf16.msra.mxu1 %v16685_v57  ;;  %v16691_v57 = vld [vmem:[%s22663_s8 + $0x270] ss:$24 sps:$4 sm:$0xff]  }
 0x6c3   : > { %8636 = vmatprep.subr.bf16.mxu1 %v16690_v23  ;;  %v16696_v23 = vld [vmem:[%s22663_s8 + $0x2a4] ss:$24 sps:$4 sm:$0xff]  }
 0x6c4   : > { %7552 = vmatmul.mubr.bf16.gmra.mrb[120].mxu1 %v19382_v13  ;;  %9284 = vmatmul.mubr.bf16.gmra.mrb[56].mxu0 %v23070_v21  ;;  %v16694_v13 = vld [vmem:[%s22663_s8 + $0x2a0] ss:$24 sps:$4 sm:$0xff]  }
 0x6c5   : > { %7561 = vmatprep.mubr.bf16.mxu1 %v19404_v34  ;;  %9293 = vmatprep.mubr.bf16.mxu0 %v23071_v24  ;;  %v16699_v34 = vld [vmem:[%s22663_s8 + $0x2d4] ss:$24 sps:$4 sm:$0xff]  }
 0x6c6   : > { %8637 = vmatpush1.bf16.msra.mxu1 %v16688_v29  ;;  %v23072_v29 = vld [vmem:[#allocation47_spill] sm:$0xff] }
 0x6c7   : > { %8638 = vmatprep.subr.bf16.mxu1 %v16693_v9  ;;  %v23073_v9 = vld [vmem:[#allocation50_spill] sm:$0xff] }
 0x6ca   : > { %8639 = vmatpush1.bf16.msra.mxu1 %v16691_v57  ;;  %v16697_v57 = vld [vmem:[%s22663_s8 + $0x2d0] ss:$24 sps:$4 sm:$0xff]  }
 0x6cb   : > { %8640 = vmatprep.subr.bf16.mxu1 %v16696_v23  ;;  %v16702_v23 = vld [vmem:[%s22663_s8 + $0x304] ss:$24 sps:$4 sm:$0xff]  }
 0x6cc   : > { %7562 = vmatmul.mubr.bf16.gmra.mrb[124].mxu1 %v19401_v17  ;;  %9294 = vmatmul.mubr.bf16.gmra.mrb[60].mxu0 %v23072_v29  ;;  %v23074_v17 = vld [vmem:[#allocation49_spill] sm:$0xff] }
 0x6cd   : > { %7571 = vmatprep.mubr.bf16.mxu1 %v19423_v25  ;;  %9303 = vmatprep.mubr.bf16.mxu0 %v23073_v9  ;;  %v23075_v25 = vld [vmem:[#allocation52_spill] sm:$0xff] }
 0x6ce   : > { %8641 = vmatpush1.bf16.msra.mxu1 %v16694_v13  ;;  %v23076_v13 = vld [vmem:[#allocation51_spill] sm:$0xff] }
 0x6cf   : > { %8642 = vmatprep.subr.bf16.mxu1 %v16699_v34  ;;  %v23077_v34 = vld [vmem:[#allocation54_spill] sm:$0xff] }
 0x6d2   : > { %8643 = vmatpush1.bf16.msra.mxu1 %v16697_v57  ;;  %v23078_v57 = vld [vmem:[#allocation53_spill] sm:$0xff] }
 0x6d3   : > { %8805 = vmatprep.subr.bf16.mxu1 %v16702_v23  ;;  %v16711_v23 = vld [vmem:[%s22663_s8 + $0x394] ss:$24 sps:$4 sm:$0xff]  }
 0x6d4   : > { %7572 = vmatmul.mubr.bf16.gmra.mrb[128].mxu1 %v19420_v60  ;;  %9304 = vmatmul.mubr.bf16.gmra.mrb[64].mxu0 %v23074_v17  ;;  %v23079_v60 = vld [vmem:[#allocation56_spill] sm:$0xff] }
 0x6d5   : > { %7581 = vmatprep.mubr.bf16.mxu1 %v19441_v27  ;;  %9313 = vmatprep.mubr.bf16.mxu0 %v23075_v25  ;;  %v23080_v27 = vld [vmem:[#allocation55_spill] sm:$0xff] }
 0x6dc   : > { %7582 = vmatmul.mubr.bf16.gmra.mrb[132].mxu1 %v19438_v37  ;;  %9314 = vmatmul.mubr.bf16.gmra.mrb[68].mxu0 %v23076_v13  ;;  %v23081_v37 = vld [vmem:[#allocation58_spill] sm:$0xff] }
 0x6dd   : > { %7591 = vmatprep.mubr.bf16.mxu1 %v19457_v20  ;;  %9323 = vmatprep.mubr.bf16.mxu0 %v23077_v34  ;;  %v23082_v20 = vld [vmem:[#allocation57_spill] sm:$0xff] }
 0x6e4   : > { %7592 = vmatmul.mubr.bf16.gmra.mrb[136].mxu1 %v19454_v47  ;;  %9324 = vmatmul.mubr.bf16.gmra.mrb[72].mxu0 %v23078_v57  ;;  %v23083_v47 = vld [vmem:[#allocation60_spill] sm:$0xff] }
 0x6e5   : > { %7601 = vmatprep.mubr.bf16.mxu1 %v19473_v48  ;;  %9333 = vmatprep.mubr.bf16.mxu0 %v23079_v60  ;;  %v23084_v48 = vld [vmem:[#allocation59_spill] sm:$0xff] }
 0x6ec   : > { %7602 = vmatmul.mubr.bf16.gmra.mrb[140].mxu1 %v19470_v1  ;;  %9334 = vmatmul.mubr.bf16.gmra.mrb[76].mxu0 %v23080_v27  ;;  %v23085_v1 = vld [vmem:[#allocation62_spill] sm:$0xff] }
 0x6ed   : > { %7611 = vmatprep.mubr.bf16.mxu1 %v19489_v22  ;;  %9343 = vmatprep.mubr.bf16.mxu0 %v23081_v37  ;;  %v23086_v22 = vld [vmem:[#allocation61_spill] sm:$0xff] }
 0x6f4   : > { %7612 = vmatmul.mubr.bf16.gmra.mrb[144].mxu1 %v19486_v36  ;;  %9344 = vmatmul.mubr.bf16.gmra.mrb[80].mxu0 %v23082_v20  ;;  %v23087_v36 = vld [vmem:[#allocation64_spill] sm:$0xff] }
 0x6f5   : > { %7621 = vmatprep.mubr.bf16.mxu1 %v19505_v49  ;;  %9353 = vmatprep.mubr.bf16.mxu0 %v23083_v47  ;;  %v23088_v49 = vld [vmem:[#allocation63_spill] sm:$0xff] }
 0x6fc   : > { %7622 = vmatmul.mubr.bf16.gmra.mrb[148].mxu1 %v19502_v6  ;;  %9354 = vmatmul.mubr.bf16.gmra.mrb[84].mxu0 %v23084_v48  ;;  %v16700_v6 = vld [vmem:[%s22663_s8 + $0x300] ss:$24 sps:$4 sm:$0xff]  }
 0x6fd   : > { %7631 = vmatprep.mubr.bf16.mxu1 %v19524_v61  ;;  %9363 = vmatprep.mubr.bf16.mxu0 %v23085_v1  ;;  %v16703_v61 = vld [vmem:[%s22663_s8 + $0x330] ss:$24 sps:$4 sm:$0xff]  }
 0x704   : > { %7632 = vmatmul.mubr.bf16.gmra.mrb[152].mxu1 %v19521_v42  ;;  %9364 = vmatmul.mubr.bf16.gmra.mrb[88].mxu0 %v23086_v22  ;;  %v16705_v42 = vld [vmem:[%s22663_s8 + $0x334] ss:$24 sps:$4 sm:$0xff]  }
 0x705   : > { %7641 = vmatprep.mubr.bf16.mxu1 %v19540_v41  ;;  %9373 = vmatprep.mubr.bf16.mxu0 %v23087_v36  ;;  %v16706_v41 = vld [vmem:[%s22663_s8 + $0x360] ss:$24 sps:$4 sm:$0xff]  }
 0x70c   : > { %7642 = vmatmul.mubr.bf16.gmra.mrb[156].mxu1 %v19537_v14  ;;  %9374 = vmatmul.mubr.bf16.gmra.mrb[92].mxu0 %v23088_v49  ;;  %v16708_v14 = vld [vmem:[%s22663_s8 + $0x364] ss:$24 sps:$4 sm:$0xff]  }
 0x70d   : > { %8644 = vmatprep.mubr.bf16.mxu1 %v18923_v51 }
 0x714   : > { %8645 = vmatmul.mubr.bf16.vlgmr.msra.gmra.mrb[32].mxu1 %v18921_v5 }
 0x715   : > { %8654 = vmatprep.mubr.bf16.mxu1 %v18937_v35  ;;  %8806 = vmatpush1.bf16.msra.mxu1 %v16700_v6  ;;  %v16709_v6 = vld [vmem:[%s22663_s8 + $0x390] ss:$24 sps:$4 sm:$0xff]  }
 0x716   : > { %8807 = vmatprep.subr.bf16.mxu1 %v16705_v42  ;;  %v16714_v42 = vld [vmem:[%s22663_s8 + $0x3c4] ss:$24 sps:$4 sm:$0xff]  }
 0x719   : > { %8808 = vmatpush1.bf16.msra.mxu1 %v16703_v61  ;;  %v16712_v61 = vld [vmem:[%s22663_s8 + $0x3c0] ss:$24 sps:$4 sm:$0xff]  }
 0x71a   : > { %8809 = vmatprep.subr.bf16.mxu1 %v16708_v14  ;;  %v16717_v14 = vld [vmem:[%s22663_s8 + $0x3f4] ss:$24 sps:$4 sm:$0xff]  }
 0x71c   : > { %8655 = vmatmul.mubr.bf16.gmra.mrb[36].mxu1 %v18932_v8 }
 0x71d   : > { %8664 = vmatprep.mubr.bf16.mxu1 %v18948_v19  ;;  %8810 = vmatpush1.bf16.msra.mxu1 %v16706_v41  ;;  %v16715_v41 = vld [vmem:[%s22663_s8 + $0x3f0] ss:$24 sps:$4 sm:$0xff]  }
 0x71e   : > { %8811 = vmatprep.subr.bf16.mxu1 %v16711_v23  ;;  %v16720_v23 = vld [vmem:[%s22663_s8 + $0x424] ss:$24 sps:$4 sm:$0xff]  }
 0x721   : > { %8812 = vmatpush1.bf16.msra.mxu1 %v16709_v6  ;;  %v16718_v6 = vld [vmem:[%s22663_s8 + $0x420] ss:$24 sps:$4 sm:$0xff]  }
 0x722   : > { %8813 = vmatprep.subr.bf16.mxu1 %v16714_v42  ;;  %v16723_v42 = vld [vmem:[%s22663_s8 + $0x454] ss:$24 sps:$4 sm:$0xff]  }
 0x724   : > { %8665 = vmatmul.mubr.bf16.gmra.mrb[40].mxu1 %v18946_v4 }
 0x725   : > { %8674 = vmatprep.mubr.bf16.mxu1 %v23012_v44  ;;  %8814 = vmatpush1.bf16.msra.mxu1 %v16712_v61  ;;  %v16721_v61 = vld [vmem:[%s22663_s8 + $0x450] ss:$24 sps:$4 sm:$0xff]  }
 0x726   : > { %8815 = vmatprep.subr.bf16.mxu1 %v16717_v14  ;;  %v16726_v14 = vld [vmem:[%s22663_s8 + $0x484] ss:$24 sps:$4 sm:$0xff]  }
 0x729   : > { %8816 = vmatpush1.bf16.msra.mxu1 %v16715_v41  ;;  %v16724_v41 = vld [vmem:[%s22663_s8 + $0x480] ss:$24 sps:$4 sm:$0xff]  }
 0x72a   : > { %8817 = vmatprep.subr.bf16.mxu1 %v16720_v23  ;;  %v16729_v23 = vld [vmem:[%s22663_s8 + $0x4b4] ss:$24 sps:$4 sm:$0xff]  }
 0x72c   : > { %8675 = vmatmul.mubr.bf16.gmra.mrb[44].mxu1 %v23014_v33 }
 0x72d   : > { %8684 = vmatprep.mubr.bf16.mxu1 %v23016_v63  ;;  %8818 = vmatpush1.bf16.msra.mxu1 %v16718_v6  ;;  %v16727_v6 = vld [vmem:[%s22663_s8 + $0x4b0] ss:$24 sps:$4 sm:$0xff]  }
 0x72e   : > { %8819 = vmatprep.subr.bf16.mxu1 %v16723_v42  ;;  %v16732_v42 = vld [vmem:[%s22663_s8 + $0x4e4] ss:$24 sps:$4 sm:$0xff]  }
 0x731   : > { %8820 = vmatpush1.bf16.msra.mxu1 %v16721_v61  ;;  %v16730_v61 = vld [vmem:[%s22663_s8 + $0x4e0] ss:$24 sps:$4 sm:$0xff]  }
 0x732   : > { %8821 = vmatprep.subr.bf16.mxu1 %v16726_v14  ;;  %v16735_v14 = vld [vmem:[%s22663_s8 + $0x514] ss:$24 sps:$4 sm:$0xff]  }
 0x734   : > { %8685 = vmatmul.mubr.bf16.gmra.mrb[48].mxu1 %v23018_v0 }
 0x735   : > { %8694 = vmatprep.mubr.bf16.mxu1 %v23020_v32  ;;  %8822 = vmatpush1.bf16.msra.mxu1 %v16724_v41  ;;  %v16733_v41 = vld [vmem:[%s22663_s8 + $0x510] ss:$24 sps:$4 sm:$0xff]  }
 0x736   : > { %8823 = vmatprep.subr.bf16.mxu1 %v16729_v23  ;;  %v16738_v23 = vld [vmem:[%s22663_s8 + $0x544] ss:$24 sps:$4 sm:$0xff]  }
 0x739   : > { %8824 = vmatpush1.bf16.msra.mxu1 %v16727_v6  ;;  %v16736_v6 = vld [vmem:[%s22663_s8 + $0x540] ss:$24 sps:$4 sm:$0xff]  }
 0x73a   : > { %8825 = vmatprep.subr.bf16.mxu1 %v16732_v42  ;;  %v16741_v42 = vld [vmem:[%s22663_s8 + $0x574] ss:$24 sps:$4 sm:$0xff]  }
 0x73c   : > { %8695 = vmatmul.mubr.bf16.gmra.mrb[52].mxu1 %v23022_v43 }
 0x73d   : > { %8704 = vmatprep.mubr.bf16.mxu1 %v23024_v15  ;;  %8826 = vmatpush1.bf16.msra.mxu1 %v16730_v61  ;;  %v16739_v61 = vld [vmem:[%s22663_s8 + $0x570] ss:$24 sps:$4 sm:$0xff]  }
 0x73e   : > { %8827 = vmatprep.subr.bf16.mxu1 %v16735_v14  ;;  %v16744_v14 = vld [vmem:[%s22663_s8 + $0x5a4] ss:$24 sps:$4 sm:$0xff]  }
 0x741   : > { %8828 = vmatpush1.bf16.msra.mxu1 %v16733_v41  ;;  %v16742_v41 = vld [vmem:[%s22663_s8 + $0x5a0] ss:$24 sps:$4 sm:$0xff]  }
 0x742   : > { %8829 = vmatprep.subr.bf16.mxu1 %v16738_v23  ;;  %v16747_v23 = vld [vmem:[%s22663_s8 + $0x5d4] ss:$24 sps:$4 sm:$0xff]  }
 0x744   : > { %8705 = vmatmul.mubr.bf16.gmra.mrb[56].mxu1 %v23026_v18  ;;  %v23092_v18 = vld [vmem:[#allocation36_spill] sm:$0xff] }
 0x745   : > { %8714 = vmatprep.mubr.bf16.mxu1 %v23028_v54  ;;  %8830 = vmatpush1.bf16.msra.mxu1 %v16736_v6  ;;  %v23089_v6 = vld [vmem:[#allocation29_spill] sm:$0xff]  ;;  %v23090_v54 = vld [vmem:[#allocation32_spill] sm:$0xff] }
 0x746   : > { %8831 = vmatprep.subr.bf16.mxu1 %v16741_v42  ;;  %v16745_v42 = vld [vmem:[%s22663_s8 + $0x5d0] ss:$24 sps:$4 sm:$0xff]  }
 0x749   : > { %8832 = vmatpush1.bf16.msra.mxu1 %v16739_v61  ;;  %v16750_v61 = vld [vmem:[%s22663_s8 + $0x14] ss:$24 sps:$4 sm:$0xff]  }
 0x74a   : > { %8833 = vmatprep.subr.bf16.mxu1 %v16744_v14  ;;  %v23091_v14 = vld [vmem:[#allocation33_spill] sm:$0xff] }
 0x74c   : > { %8715 = vmatmul.mubr.bf16.gmra.mrb[60].mxu1 %v23089_v6  ;;  %v23093_v6 = vld [vmem:[#allocation2_spill] sm:$0xff] }
 0x74d   : > { %8724 = vmatprep.mubr.bf16.mxu1 %v23090_v54  ;;  %8834 = vmatpush1.bf16.msra.mxu1 %v16742_v41  ;;  %v20763_v41 = vld [vmem:[%s22665_s10] sm:$0x3f] }
 0x74e   : > { %8835 = vmatprep.subr.bf16.mxu1 %v16747_v23  ;;  %23094 = vst [vmem:[#allocation66_spill] sm:$0xff] %v20763_v41  ;;  %v23095_v23 = vld [vmem:[#allocation34_spill] sm:$0xff] }
 0x74f   : > { %v20768_v54 = vrot.slane %v20763_v41, %v23095_v23 }
 0x751   : > { %8836 = vmatpush1.bf16.msra.mxu1 %v16745_v42  ;;  %v23096_v42 = vld [vmem:[#allocation35_spill] sm:$0xff] }
 0x752   : > { %9384 = vmatprep.subr.bf16.mxu1 %v16750_v61  ;;  %v20773_v61 = vrot.slane %v20763_v41, %v23096_v42 }
 0x754   : > { %8725 = vmatmul.mubr.bf16.gmra.mrb[64].mxu1 %v23033_v7 }
 0x755   : > { %8734 = vmatprep.mubr.bf16.mxu1 %v23091_v14 }
 0x75c   : > { %8735 = vmatmul.mubr.bf16.gmra.mrb[68].mxu1 %v23092_v18 }
 0x75d   : > { %8744 = vmatprep.mubr.bf16.mxu1 %v23093_v6 }
 0x764   : > { %8745 = vmatmul.mubr.bf16.gmra.mrb[72].mxu1 %v23041_v46 }
 0x765   : > { %8754 = vmatprep.mubr.bf16.mxu1 %v23043_v12 }
 0x767   : > { %v9225_v18 = vpop.f32.mrb[32].mxu0 }
 0x768   : > { %v9804_v6 = vadd.f32 %v20768_v54, %v9225_v18  ;;  %v9227_v14 = vpop.f32.mrb[33].mxu0  ;;  %v16784_v18 = vld [vmem:[%s22666_s11] ss:$16 sps:$4 sm:$0xff]  }
 0x769   : > { %v9805_v7 = vadd.f32 %v20773_v61, %v9227_v14  ;;  %v9229_v15 = vpop.f32.mrb[34].mxu0  ;;  %v16786_v14 = vld [vmem:[%s22666_s11 + $0x4] ss:$16 sps:$4 sm:$0xff]  }
 0x76a   : > { %v9810_v43 = vadd.f32 %v20768_v54, %v9229_v15  ;;  %v9231_v46 = vpop.f32.mrb[35].mxu0  ;;  %v9996_v23 = vmax.f32 %v9804_v6, 0.0  ;;  %11456 = vmatprep.subr.bf16.mxu0 %v16786_v14 }
 0x76b   : > { %v9811_v32 = vadd.f32 %v20773_v61, %v9231_v46  ;;  %v9997_v12 = vmax.f32 %v9805_v7, 0.0  ;;  %11457 = vmatpush1.bf16.msra.mxu0 %v16784_v18 }
 0x76c   : > { %v10002_v0 = vmax.f32 %v9810_v43, 0.0  ;;  %8755 = vmatmul.mubr.bf16.gmra.mrb[76].mxu1 %v23045_v30 }
 0x76d   : > { %v10003_v63 = vmax.f32 %v9811_v32, 0.0  ;;  %8764 = vmatprep.mubr.bf16.mxu1 %v23047_v2 }
 0x76e   : > { %v20787_v15 = vpack.c.bf16 %v10002_v0, %v9996_v23  ;;  %v16792_v23 = vld [vmem:[%s22666_s11 + $0x24] ss:$16 sps:$4 sm:$0xff]  }
 0x76f   : > { %v20789_v42 = vpack.c.bf16 %v10003_v63, %v9997_v12  ;;  %v9235_v46 = vpop.f32.mrb[36].mxu0  ;;  %v16790_v12 = vld [vmem:[%s22666_s11 + $0x20] ss:$16 sps:$4 sm:$0xff]   ;;  %11458 = vmatprep.subr.bf16.mxu0 %v16792_v23 }
 0x770   : > { %23097 = vst [vmem:[#allocation65_spill] sm:$0xff] %v20787_v15  ;;  %v9816_v43 = vadd.f32 %v20768_v54, %v9235_v46  ;;  %v9237_v7 = vpop.f32.mrb[37].mxu0  ;;  %11459 = vmatpush1.bf16.msra.mxu0 %v16790_v12 }
 0x771   : > { %23098 = vst [vmem:[#allocation68_spill] sm:$0xff] %v20789_v42  ;;  %v9817_v32 = vadd.f32 %v20773_v61, %v9237_v7  ;;  %v9239_v6 = vpop.f32.mrb[38].mxu0 }
 0x772   : > { %v9822_v2 = vadd.f32 %v20768_v54, %v9239_v6  ;;  %v9241_v30 = vpop.f32.mrb[39].mxu0  ;;  %v10008_v33 = vmax.f32 %v9816_v43, 0.0 }
 0x773   : > { %v9823_v41 = vadd.f32 %v20773_v61, %v9241_v30  ;;  %v10009_v63 = vmax.f32 %v9817_v32, 0.0 }
 0x774   : > { %v10014_v44 = vmax.f32 %v9822_v2, 0.0  ;;  %8765 = vmatmul.mubr.bf16.gmra.mrb[80].mxu1 %v23049_v39 }
 0x775   : > { %v10015_v0 = vmax.f32 %v9823_v41, 0.0  ;;  %8774 = vmatprep.mubr.bf16.mxu1 %v23051_v62 }
 0x776   : > { %v20803_v18 = vpack.c.bf16 %v10014_v44, %v10008_v33 }
 0x777   : > { %v20805_v14 = vpack.c.bf16 %v10015_v0, %v10009_v63  ;;  %v9245_v30 = vpop.f32.mrb[40].mxu0  ;;  %v16796_v63 = vld [vmem:[%s22666_s11 + $0x40] ss:$16 sps:$4 sm:$0xff]   ;;  %v16798_v0 = vld [vmem:[%s22666_s11 + $0x44] ss:$16 sps:$4 sm:$0xff]  }
 0x778   : > { %23099 = vst [vmem:[#allocation67_spill] sm:$0xff] %v20803_v18  ;;  %v9828_v2 = vadd.f32 %v20768_v54, %v9245_v30  ;;  %v9247_v46 = vpop.f32.mrb[41].mxu0  ;;  %11460 = vmatprep.subr.bf16.mxu0 %v16798_v0 }
 0x779   : > { %23100 = vst [vmem:[#allocation70_spill] sm:$0xff] %v20805_v14  ;;  %v9829_v41 = vadd.f32 %v20773_v61, %v9247_v46  ;;  %v9249_v43 = vpop.f32.mrb[42].mxu0  ;;  %11461 = vmatpush1.bf16.msra.mxu0 %v16796_v63 }
 0x77a   : > { %v9834_v7 = vadd.f32 %v20768_v54, %v9249_v43  ;;  %v9251_v32 = vpop.f32.mrb[43].mxu0  ;;  %v10020_v15 = vmax.f32 %v9828_v2, 0.0 }
 0x77b   : > { %v9835_v6 = vadd.f32 %v20773_v61, %v9251_v32  ;;  %v10021_v44 = vmax.f32 %v9829_v41, 0.0 }
 0x77c   : > { %v10026_v42 = vmax.f32 %v9834_v7, 0.0  ;;  %8775 = vmatmul.mubr.bf16.gmra.mrb[84].mxu1 %v23052_v28 }
 0x77d   : > { %v10027_v33 = vmax.f32 %v9835_v6, 0.0  ;;  %8784 = vmatprep.mubr.bf16.mxu1 %v23053_v31 }
 0x77e   : > { %v20819_v12 = vpack.c.bf16 %v10026_v42, %v10020_v15 }
 0x77f   : > { %v20821_v23 = vpack.c.bf16 %v10027_v33, %v10021_v44  ;;  %v9255_v30 = vpop.f32.mrb[44].mxu0  ;;  %v16802_v44 = vld [vmem:[%s22666_s11 + $0x60] ss:$16 sps:$4 sm:$0xff]   ;;  %v16804_v33 = vld [vmem:[%s22666_s11 + $0x64] ss:$16 sps:$4 sm:$0xff]  }
 0x780   : > { %23101 = vst [vmem:[#allocation69_spill] sm:$0xff] %v20819_v12  ;;  %v9840_v2 = vadd.f32 %v20768_v54, %v9255_v30  ;;  %v9257_v46 = vpop.f32.mrb[45].mxu0  ;;  %11462 = vmatprep.subr.bf16.mxu0 %v16804_v33 }
 0x781   : > { %23102 = vst [vmem:[#allocation72_spill] sm:$0xff] %v20821_v23  ;;  %v9841_v41 = vadd.f32 %v20773_v61, %v9257_v46  ;;  %v9259_v43 = vpop.f32.mrb[46].mxu0  ;;  %11463 = vmatpush1.bf16.msra.mxu0 %v16802_v44  ;;  %v16810_v44 = vld [vmem:[%s22666_s11 + $0x84] ss:$16 sps:$4 sm:$0xff]  }
 0x782   : > { %v9846_v7 = vadd.f32 %v20768_v54, %v9259_v43  ;;  %v9261_v32 = vpop.f32.mrb[47].mxu0  ;;  %v10032_v18 = vmax.f32 %v9840_v2, 0.0  ;;  %11464 = vmatprep.subr.bf16.mxu0 %v16810_v44 }
 0x783   : > { %v9847_v6 = vadd.f32 %v20773_v61, %v9261_v32  ;;  %v10033_v42 = vmax.f32 %v9841_v41, 0.0 }
 0x784   : > { %v10038_v14 = vmax.f32 %v9846_v7, 0.0  ;;  %8785 = vmatmul.mubr.bf16.gmra.mrb[88].mxu1 %v23054_v58 }
 0x785   : > { %v10039_v15 = vmax.f32 %v9847_v6, 0.0  ;;  %8794 = vmatprep.mubr.bf16.mxu1 %v23055_v52 }
 0x786   : > { %v20835_v63 = vpack.c.bf16 %v10038_v14, %v10032_v18 }
 0x787   : > { %v20837_v0 = vpack.c.bf16 %v10039_v15, %v10033_v42  ;;  %v9265_v30 = vpop.f32.mrb[48].mxu0  ;;  %v23105_v42 = vld [vmem:[#allocation14_spill] sm:$0xff] }
 0x788   : > { %23103 = vst [vmem:[#allocation71_spill] sm:$0xff] %v20835_v63  ;;  %v9852_v2 = vadd.f32 %v20768_v54, %v9265_v30  ;;  %v9267_v46 = vpop.f32.mrb[49].mxu0  ;;  %v16808_v15 = vld [vmem:[%s22666_s11 + $0x80] ss:$16 sps:$4 sm:$0xff]  }
 0x789   : > { %23104 = vst [vmem:[#allocation74_spill] sm:$0xff] %v20837_v0  ;;  %v9853_v41 = vadd.f32 %v20773_v61, %v9267_v46  ;;  %v9269_v43 = vpop.f32.mrb[50].mxu0  ;;  %11465 = vmatpush1.bf16.msra.mxu0 %v16808_v15  ;;  %v16751_v15 = vld [vmem:[%s22663_s8 + $0x40] ss:$24 sps:$4 sm:$0xff]  }
 0x78a   : > { %v9858_v7 = vadd.f32 %v20768_v54, %v9269_v43  ;;  %v9271_v32 = vpop.f32.mrb[51].mxu0  ;;  %v10044_v12 = vmax.f32 %v9852_v2, 0.0 }
 0x78b   : > { %v9859_v6 = vadd.f32 %v20773_v61, %v9271_v32  ;;  %v10045_v18 = vmax.f32 %v9853_v41, 0.0  ;;  %v16748_v32 = vld [vmem:[%s22663_s8 + $0x10] ss:$24 sps:$4 sm:$0xff]  }
 0x78c   : > { %v10050_v23 = vmax.f32 %v9858_v7, 0.0  ;;  %8795 = vmatmul.mubr.bf16.gmra.mrb[92].mxu1 %v23056_v53 }
 0x78d   : > { %v10051_v14 = vmax.f32 %v9859_v6, 0.0  ;;  %8837 = vmatprep.mubr.bf16.mxu1 %v23105_v42 }
 0x78e   : > { %v20851_v33 = vpack.c.bf16 %v10050_v23, %v10044_v12  ;;  %v16753_v12 = vld [vmem:[%s22663_s8 + $0x44] ss:$24 sps:$4 sm:$0xff]  }
 0x78f   : > { %v20853_v30 = vpack.c.bf16 %v10051_v14, %v10045_v18  ;;  %v9275_v2 = vpop.f32.mrb[52].mxu0 }
 0x790   : > { %23106 = vst [vmem:[#allocation73_spill] sm:$0xff] %v20851_v33  ;;  %v9864_v46 = vadd.f32 %v20768_v54, %v9275_v2  ;;  %v9277_v41 = vpop.f32.mrb[53].mxu0 }
 0x791   : > { %23107 = vst [vmem:[#allocation75_spill] sm:$0xff] %v20853_v30  ;;  %v9865_v43 = vadd.f32 %v20773_v61, %v9277_v41  ;;  %v9279_v7 = vpop.f32.mrb[54].mxu0  ;;  %v16814_v41 = vld [vmem:[%s22666_s11 + $0xa0] ss:$16 sps:$4 sm:$0xff]  }
 0x792   : > { %v9870_v6 = vadd.f32 %v20768_v54, %v9279_v7  ;;  %v9281_v63 = vpop.f32.mrb[55].mxu0  ;;  %v10056_v18 = vmax.f32 %v9864_v46, 0.0  ;;  %v16756_v7 = vld [vmem:[%s22663_s8 + $0x74] ss:$24 sps:$4 sm:$0xff]  }
 0x793   : > { %v9871_v23 = vadd.f32 %v20773_v61, %v9281_v63  ;;  %v10057_v44 = vmax.f32 %v9865_v43, 0.0  ;;  %v16816_v63 = vld [vmem:[%s22666_s11 + $0xa4] ss:$16 sps:$4 sm:$0xff]  }
 0x794   : > { %v10062_v14 = vmax.f32 %v9870_v6, 0.0  ;;  %8838 = vmatmul.mubr.bf16.vlgmr.msra.gmra.mrb[32].mxu1 %v23058_v3  ;;  %11466 = vmatprep.subr.bf16.mxu0 %v16816_v63 }
 0x795   : > { %v10063_v2 = vmax.f32 %v9871_v23, 0.0  ;;  %8847 = vmatprep.mubr.bf16.mxu1 %v23059_v16  ;;  %9385 = vmatpush1.bf16.msra.mxu1 %v16748_v32 }
 0x796   : > { %v20876_v46 = vpack.c.bf16 %v10062_v14, %v10056_v18  ;;  %9386 = vmatprep.subr.bf16.mxu1 %v16753_v12  ;;  %11467 = vmatpush1.bf16.msra.mxu0 %v16814_v41  ;;  %v16754_v12 = vld [vmem:[%s22663_s8 + $0x70] ss:$24 sps:$4 sm:$0xff]  }
 0x797   : > { %v20881_v43 = vpack.c.bf16 %v10063_v2, %v10057_v44  ;;  %v9285_v6 = vpop.f32.mrb[56].mxu0  ;;  %v16759_v44 = vld [vmem:[%s22663_s8 + $0xa4] ss:$24 sps:$4 sm:$0xff]  }
 0x798   : > { %23108 = vst [vmem:[#allocation77_spill] sm:$0xff] %v20876_v46  ;;  %v9876_v32 = vadd.f32 %v20768_v54, %v9285_v6  ;;  %v9287_v23 = vpop.f32.mrb[57].mxu0 }
 0x799   : > { %23109 = vst [vmem:[#allocation76_spill] sm:$0xff] %v20881_v43  ;;  %v9877_v33 = vadd.f32 %v20773_v61, %v9287_v23  ;;  %v9289_v30 = vpop.f32.mrb[58].mxu0  ;;  %9387 = vmatpush1.bf16.msra.mxu1 %v16751_v15  ;;  %v16757_v15 = vld [vmem:[%s22663_s8 + $0xa0] ss:$24 sps:$4 sm:$0xff]  }
 0x79a   : > { %v9882_v18 = vadd.f32 %v20768_v54, %v9289_v30  ;;  %v9291_v14 = vpop.f32.mrb[59].mxu0  ;;  %9388 = vmatprep.subr.bf16.mxu1 %v16756_v7  ;;  %v10068_v63 = vmax.f32 %v9876_v32, 0.0  ;;  %v16820_v30 = vld [vmem:[%s22666_s11 + $0xc0] ss:$16 sps:$4 sm:$0xff]   ;;  %v16822_v7 = vld [vmem:[%s22666_s11 + $0xc4] ss:$16 sps:$4 sm:$0xff]  }
 0x79b   : > { %v9883_v2 = vadd.f32 %v20773_v61, %v9291_v14  ;;  %v10069_v6 = vmax.f32 %v9877_v33, 0.0  ;;  %11468 = vmatprep.subr.bf16.mxu0 %v16822_v7 }
 0x79c   : > { %v10074_v41 = vmax.f32 %v9882_v18, 0.0  ;;  %8848 = vmatmul.mubr.bf16.gmra.mrb[36].mxu1 %v23060_v11  ;;  %v16762_v18 = vld [vmem:[%s22663_s8 + $0xd4] ss:$24 sps:$4 sm:$0xff]   ;;  %11469 = vmatpush1.bf16.msra.mxu0 %v16820_v30 }
 0x79d   : > { %v10075_v23 = vmax.f32 %v9883_v2, 0.0  ;;  %8857 = vmatprep.mubr.bf16.mxu1 %v23061_v10  ;;  %9389 = vmatpush1.bf16.msra.mxu1 %v16754_v12 }
 0x79e   : > { %v20904_v32 = vpack.c.bf16 %v10074_v41, %v10068_v63  ;;  %9390 = vmatprep.subr.bf16.mxu1 %v16759_v44  ;;  %v16760_v44 = vld [vmem:[%s22663_s8 + $0xd0] ss:$24 sps:$4 sm:$0xff]  }
 0x79f   : > { %v20909_v33 = vpack.c.bf16 %v10075_v23, %v10069_v6  ;;  %v9295_v14 = vpop.f32.mrb[60].mxu0  ;;  %v16765_v6 = vld [vmem:[%s22663_s8 + $0x104] ss:$24 sps:$4 sm:$0xff]  }
 0x7a0   : > { %23110 = vst [vmem:[#allocation79_spill] sm:$0xff] %v20904_v32  ;;  %v9888_v12 = vadd.f32 %v20768_v54, %v9295_v14  ;;  %v9297_v2 = vpop.f32.mrb[61].mxu0 }
 0x7a1   : > { %23111 = vst [vmem:[#allocation78_spill] sm:$0xff] %v20909_v33  ;;  %v9889_v46 = vadd.f32 %v20773_v61, %v9297_v2  ;;  %v9299_v43 = vpop.f32.mrb[62].mxu0  ;;  %9391 = vmatpush1.bf16.msra.mxu1 %v16757_v15  ;;  %v16763_v15 = vld [vmem:[%s22663_s8 + $0x100] ss:$24 sps:$4 sm:$0xff]  }
 0x7a2   : > { %v9894_v63 = vadd.f32 %v20768_v54, %v9299_v43  ;;  %v9301_v41 = vpop.f32.mrb[63].mxu0  ;;  %9392 = vmatprep.subr.bf16.mxu1 %v16762_v18  ;;  %v10080_v7 = vmax.f32 %v9888_v12, 0.0  ;;  %v16826_v43 = vld [vmem:[%s22666_s11 + $0xe0] ss:$16 sps:$4 sm:$0xff]   ;;  %v16828_v18 = vld [vmem:[%s22666_s11 + $0xe4] ss:$16 sps:$4 sm:$0xff]  }
 0x7a3   : > { %v9895_v23 = vadd.f32 %v20773_v61, %v9301_v41  ;;  %v10081_v14 = vmax.f32 %v9889_v46, 0.0  ;;  %11470 = vmatprep.subr.bf16.mxu0 %v16828_v18 }
 0x7a4   : > { %v10086_v30 = vmax.f32 %v9894_v63, 0.0  ;;  %8858 = vmatmul.mubr.bf16.gmra.mrb[40].mxu1 %v23062_v59  ;;  %v16768_v63 = vld [vmem:[%s22663_s8 + $0x134] ss:$24 sps:$4 sm:$0xff]   ;;  %11471 = vmatpush1.bf16.msra.mxu0 %v16826_v43 }
 0x7a5   : > { %v10087_v2 = vmax.f32 %v9895_v23, 0.0  ;;  %8867 = vmatprep.mubr.bf16.mxu1 %v23063_v56  ;;  %9393 = vmatpush1.bf16.msra.mxu1 %v16760_v44 }
 0x7a6   : > { %v20932_v12 = vpack.c.bf16 %v10086_v30, %v10080_v7  ;;  %9394 = vmatprep.subr.bf16.mxu1 %v16765_v6  ;;  %v16766_v6 = vld [vmem:[%s22663_s8 + $0x130] ss:$24 sps:$4 sm:$0xff]  }
 0x7a7   : > { %v20937_v46 = vpack.c.bf16 %v10087_v2, %v10081_v14  ;;  %v9305_v41 = vpop.f32.mrb[64].mxu0  ;;  %v16771_v14 = vld [vmem:[%s22663_s8 + $0x164] ss:$24 sps:$4 sm:$0xff]  }
 0x7a8   : > { %23112 = vst [vmem:[#allocation81_spill] sm:$0xff] %v20932_v12  ;;  %v9900_v44 = vadd.f32 %v20768_v54, %v9305_v41  ;;  %v9307_v23 = vpop.f32.mrb[65].mxu0 }
 0x7a9   : > { %23113 = vst [vmem:[#allocation80_spill] sm:$0xff] %v20937_v46  ;;  %v9901_v32 = vadd.f32 %v20773_v61, %v9307_v23  ;;  %v9309_v33 = vpop.f32.mrb[66].mxu0  ;;  %9395 = vmatpush1.bf16.msra.mxu1 %v16763_v15  ;;  %v16769_v15 = vld [vmem:[%s22663_s8 + $0x160] ss:$24 sps:$4 sm:$0xff]  }
 0x7aa   : > { %v9906_v7 = vadd.f32 %v20768_v54, %v9309_v33  ;;  %v9311_v30 = vpop.f32.mrb[67].mxu0  ;;  %9396 = vmatprep.subr.bf16.mxu1 %v16768_v63  ;;  %v10092_v18 = vmax.f32 %v9900_v44, 0.0  ;;  %v16832_v33 = vld [vmem:[%s22666_s11 + $0x100] ss:$16 sps:$4 sm:$0xff]   ;;  %v16834_v63 = vld [vmem:[%s22666_s11 + $0x104] ss:$16 sps:$4 sm:$0xff]  }
 0x7ab   : > { %v9907_v2 = vadd.f32 %v20773_v61, %v9311_v30  ;;  %v10093_v41 = vmax.f32 %v9901_v32, 0.0  ;;  %11472 = vmatprep.subr.bf16.mxu0 %v16834_v63 }
 0x7ac   : > { %v10098_v43 = vmax.f32 %v9906_v7, 0.0  ;;  %8868 = vmatmul.mubr.bf16.gmra.mrb[44].mxu1 %v23064_v50  ;;  %v16774_v7 = vld [vmem:[%s22663_s8 + $0x194] ss:$24 sps:$4 sm:$0xff]   ;;  %11473 = vmatpush1.bf16.msra.mxu0 %v16832_v33 }
 0x7ad   : > { %v10099_v23 = vmax.f32 %v9907_v2, 0.0  ;;  %8877 = vmatprep.mubr.bf16.mxu1 %v23065_v26  ;;  %9397 = vmatpush1.bf16.msra.mxu1 %v16766_v6 }
 0x7ae   : > { %v20960_v44 = vpack.c.bf16 %v10098_v43, %v10092_v18  ;;  %9398 = vmatprep.subr.bf16.mxu1 %v16771_v14  ;;  %v16772_v14 = vld [vmem:[%s22663_s8 + $0x190] ss:$24 sps:$4 sm:$0xff]  }
 0x7af   : > { %v20965_v32 = vpack.c.bf16 %v10099_v23, %v10093_v41  ;;  %v9315_v30 = vpop.f32.mrb[68].mxu0  ;;  %v16777_v41 = vld [vmem:[%s22663_s8 + $0x1c4] ss:$24 sps:$4 sm:$0xff]  }
 0x7b0   : > { %23114 = vst [vmem:[#allocation83_spill] sm:$0xff] %v20960_v44  ;;  %v9912_v6 = vadd.f32 %v20768_v54, %v9315_v30  ;;  %v9317_v2 = vpop.f32.mrb[69].mxu0 }
 0x7b1   : > { %23115 = vst [vmem:[#allocation82_spill] sm:$0xff] %v20965_v32  ;;  %v9913_v12 = vadd.f32 %v20773_v61, %v9317_v2  ;;  %v9319_v46 = vpop.f32.mrb[70].mxu0  ;;  %9399 = vmatpush1.bf16.msra.mxu1 %v16769_v15  ;;  %v16775_v15 = vld [vmem:[%s22663_s8 + $0x1c0] ss:$24 sps:$4 sm:$0xff]  }
 0x7b2   : > { %v9918_v18 = vadd.f32 %v20768_v54, %v9319_v46  ;;  %v9321_v43 = vpop.f32.mrb[71].mxu0  ;;  %9400 = vmatprep.subr.bf16.mxu1 %v16774_v7  ;;  %v10104_v63 = vmax.f32 %v9912_v6, 0.0  ;;  %v16838_v46 = vld [vmem:[%s22666_s11 + $0x120] ss:$16 sps:$4 sm:$0xff]   ;;  %v16840_v7 = vld [vmem:[%s22666_s11 + $0x124] ss:$16 sps:$4 sm:$0xff]  }
 0x7b3   : > { %v9919_v23 = vadd.f32 %v20773_v61, %v9321_v43  ;;  %v10105_v30 = vmax.f32 %v9913_v12, 0.0  ;;  %11474 = vmatprep.subr.bf16.mxu0 %v16840_v7 }
 0x7b4   : > { %v10110_v33 = vmax.f32 %v9918_v18, 0.0  ;;  %8878 = vmatmul.mubr.bf16.gmra.mrb[48].mxu1 %v23066_v55  ;;  %v16780_v18 = vld [vmem:[%s22663_s8 + $0x1f4] ss:$24 sps:$4 sm:$0xff]   ;;  %11475 = vmatpush1.bf16.msra.mxu0 %v16838_v46 }
 0x7b5   : > { %v10111_v2 = vmax.f32 %v9919_v23, 0.0  ;;  %8887 = vmatprep.mubr.bf16.mxu1 %v23067_v38  ;;  %9401 = vmatpush1.bf16.msra.mxu1 %v16772_v14 }
 0x7b6   : > { %v20988_v6 = vpack.c.bf16 %v10110_v33, %v10104_v63  ;;  %9402 = vmatprep.subr.bf16.mxu1 %v16777_v41  ;;  %v16778_v41 = vld [vmem:[%s22663_s8 + $0x1f0] ss:$24 sps:$4 sm:$0xff]  }
 0x7b7   : > { %v20993_v12 = vpack.c.bf16 %v10111_v2, %v10105_v30  ;;  %v9325_v43 = vpop.f32.mrb[72].mxu0  ;;  %v16783_v30 = vld [vmem:[%s22663_s8 + $0x224] ss:$24 sps:$4 sm:$0xff]  }
 0x7b8   : > { %23116 = vst [vmem:[#allocation7_spill] sm:$0xff] %v20988_v6  ;;  %v9924_v14 = vadd.f32 %v20768_v54, %v9325_v43  ;;  %v9327_v23 = vpop.f32.mrb[73].mxu0 }
 0x7b9   : > { %23117 = vst [vmem:[#allocation84_spill] sm:$0xff] %v20993_v12  ;;  %v9925_v44 = vadd.f32 %v20773_v61, %v9327_v23  ;;  %v9329_v32 = vpop.f32.mrb[74].mxu0  ;;  %9403 = vmatpush1.bf16.msra.mxu1 %v16775_v15  ;;  %v16781_v15 = vld [vmem:[%s22663_s8 + $0x220] ss:$24 sps:$4 sm:$0xff]  }
 0x7ba   : > { %v9930_v63 = vadd.f32 %v20768_v54, %v9329_v32  ;;  %v9331_v33 = vpop.f32.mrb[75].mxu0  ;;  %9404 = vmatprep.subr.bf16.mxu1 %v16780_v18  ;;  %v10116_v7 = vmax.f32 %v9924_v14, 0.0  ;;  %v16844_v32 = vld [vmem:[%s22666_s11 + $0x140] ss:$16 sps:$4 sm:$0xff]   ;;  %v16846_v18 = vld [vmem:[%s22666_s11 + $0x144] ss:$16 sps:$4 sm:$0xff]  }
 0x7bb   : > { %v9931_v2 = vadd.f32 %v20773_v61, %v9331_v33  ;;  %v10117_v43 = vmax.f32 %v9925_v44, 0.0  ;;  %11476 = vmatprep.subr.bf16.mxu0 %v16846_v18 }
 0x7bc   : > { %v10122_v46 = vmax.f32 %v9930_v63, 0.0  ;;  %8888 = vmatmul.mubr.bf16.gmra.mrb[52].mxu1 %v23068_v45  ;;  %v16789_v63 = vld [vmem:[%s22663_s8 + $0x254] ss:$24 sps:$4 sm:$0xff]   ;;  %11477 = vmatpush1.bf16.msra.mxu0 %v16844_v32 }
 0x7bd   : > { %v10123_v23 = vmax.f32 %v9931_v2, 0.0  ;;  %8897 = vmatprep.mubr.bf16.mxu1 %v23069_v40  ;;  %9405 = vmatpush1.bf16.msra.mxu1 %v16778_v41 }
 0x7be   : > { %v21016_v14 = vpack.c.bf16 %v10122_v46, %v10116_v7  ;;  %9406 = vmatprep.subr.bf16.mxu1 %v16783_v30  ;;  %v16787_v30 = vld [vmem:[%s22663_s8 + $0x250] ss:$24 sps:$4 sm:$0xff]  }
 0x7bf   : > { %v21021_v44 = vpack.c.bf16 %v10123_v23, %v10117_v43  ;;  %v9335_v33 = vpop.f32.mrb[76].mxu0  ;;  %v16795_v43 = vld [vmem:[%s22663_s8 + $0x284] ss:$24 sps:$4 sm:$0xff]  }
 0x7c0   : > { %23118 = vst [vmem:[#allocation8_spill] sm:$0xff] %v21016_v14  ;;  %v9936_v41 = vadd.f32 %v20768_v54, %v9335_v33  ;;  %v9337_v2 = vpop.f32.mrb[77].mxu0 }
 0x7c1   : > { %23119 = vst [vmem:[#allocation9_spill] sm:$0xff] %v21021_v44  ;;  %v9937_v6 = vadd.f32 %v20773_v61, %v9337_v2  ;;  %v9339_v12 = vpop.f32.mrb[78].mxu0  ;;  %9407 = vmatpush1.bf16.msra.mxu1 %v16781_v15  ;;  %v16793_v15 = vld [vmem:[%s22663_s8 + $0x280] ss:$24 sps:$4 sm:$0xff]  }
 0x7c2   : > { %v9942_v7 = vadd.f32 %v20768_v54, %v9339_v12  ;;  %v9341_v46 = vpop.f32.mrb[79].mxu0  ;;  %9408 = vmatprep.subr.bf16.mxu1 %v16789_v63  ;;  %v10128_v18 = vmax.f32 %v9936_v41, 0.0  ;;  %v16850_v12 = vld [vmem:[%s22666_s11 + $0x160] ss:$16 sps:$4 sm:$0xff]   ;;  %v16852_v63 = vld [vmem:[%s22666_s11 + $0x164] ss:$16 sps:$4 sm:$0xff]  }
 0x7c3   : > { %v9943_v23 = vadd.f32 %v20773_v61, %v9341_v46  ;;  %v10129_v33 = vmax.f32 %v9937_v6, 0.0  ;;  %11478 = vmatprep.subr.bf16.mxu0 %v16852_v63 }
 0x7c4   : > { %v10134_v32 = vmax.f32 %v9942_v7, 0.0  ;;  %8898 = vmatmul.mubr.bf16.gmra.mrb[56].mxu1 %v23070_v21  ;;  %v16801_v7 = vld [vmem:[%s22663_s8 + $0x2b4] ss:$24 sps:$4 sm:$0xff]   ;;  %11479 = vmatpush1.bf16.msra.mxu0 %v16850_v12 }
 0x7c5   : > { %v10135_v2 = vmax.f32 %v9943_v23, 0.0  ;;  %8907 = vmatprep.mubr.bf16.mxu1 %v23071_v24  ;;  %9409 = vmatpush1.bf16.msra.mxu1 %v16787_v30 }
 0x7c6   : > { %v21044_v41 = vpack.c.bf16 %v10134_v32, %v10128_v18  ;;  %9410 = vmatprep.subr.bf16.mxu1 %v16795_v43  ;;  %v16799_v43 = vld [vmem:[%s22663_s8 + $0x2b0] ss:$24 sps:$4 sm:$0xff]  }
 0x7c7   : > { %v21049_v6 = vpack.c.bf16 %v10135_v2, %v10129_v33  ;;  %v9345_v46 = vpop.f32.mrb[80].mxu0  ;;  %v16807_v33 = vld [vmem:[%s22663_s8 + $0x2e4] ss:$24 sps:$4 sm:$0xff]  }
 0x7c8   : > { %23120 = vst [vmem:[#allocation10_spill] sm:$0xff] %v21044_v41  ;;  %v9948_v30 = vadd.f32 %v20768_v54, %v9345_v46  ;;  %v9347_v23 = vpop.f32.mrb[81].mxu0 }
 0x7c9   : > { %23121 = vst [vmem:[#allocation11_spill] sm:$0xff] %v21049_v6  ;;  %v9949_v14 = vadd.f32 %v20773_v61, %v9347_v23  ;;  %v9349_v44 = vpop.f32.mrb[82].mxu0  ;;  %9411 = vmatpush1.bf16.msra.mxu1 %v16793_v15  ;;  %v16805_v15 = vld [vmem:[%s22663_s8 + $0x2e0] ss:$24 sps:$4 sm:$0xff]  }
 0x7ca   : > { %v9954_v18 = vadd.f32 %v20768_v54, %v9349_v44  ;;  %v9351_v32 = vpop.f32.mrb[83].mxu0  ;;  %9412 = vmatprep.subr.bf16.mxu1 %v16801_v7  ;;  %v10140_v63 = vmax.f32 %v9948_v30, 0.0  ;;  %v16856_v44 = vld [vmem:[%s22666_s11 + $0x180] ss:$16 sps:$4 sm:$0xff]   ;;  %v16858_v7 = vld [vmem:[%s22666_s11 + $0x184] ss:$16 sps:$4 sm:$0xff]  }
 0x7cb   : > { %v9955_v2 = vadd.f32 %v20773_v61, %v9351_v32  ;;  %v10141_v46 = vmax.f32 %v9949_v14, 0.0  ;;  %11480 = vmatprep.subr.bf16.mxu0 %v16858_v7 }
 0x7cc   : > { %v10146_v12 = vmax.f32 %v9954_v18, 0.0  ;;  %8908 = vmatmul.mubr.bf16.gmra.mrb[60].mxu1 %v23072_v29  ;;  %v16813_v18 = vld [vmem:[%s22663_s8 + $0x314] ss:$24 sps:$4 sm:$0xff]   ;;  %11481 = vmatpush1.bf16.msra.mxu0 %v16856_v44  ;;  %v16862_v44 = vld [vmem:[%s22666_s11 + $0x1a0] ss:$16 sps:$4 sm:$0xff]  }
 0x7cd   : > { %v10147_v23 = vmax.f32 %v9955_v2, 0.0  ;;  %8917 = vmatprep.mubr.bf16.mxu1 %v23073_v9  ;;  %9413 = vmatpush1.bf16.msra.mxu1 %v16799_v43 }
 0x7ce   : > { %v21072_v30 = vpack.c.bf16 %v10146_v12, %v10140_v63  ;;  %9414 = vmatprep.subr.bf16.mxu1 %v16807_v33 }
 0x7cf   : > { %v21077_v14 = vpack.c.bf16 %v10147_v23, %v10141_v46  ;;  %v9355_v32 = vpop.f32.mrb[84].mxu0 }
 0x7d0   : > { %23122 = vst [vmem:[#allocation12_spill] sm:$0xff] %v21072_v30  ;;  %v9960_v43 = vadd.f32 %v20768_v54, %v9355_v32  ;;  %v9357_v2 = vpop.f32.mrb[85].mxu0 }
 0x7d1   : > { %23123 = vst [vmem:[#allocation13_spill] sm:$0xff] %v21077_v14  ;;  %v9961_v41 = vadd.f32 %v20773_v61, %v9357_v2  ;;  %v9359_v6 = vpop.f32.mrb[86].mxu0  ;;  %9415 = vmatpush1.bf16.msra.mxu1 %v16805_v15 }
 0x7d2   : > { %v9966_v63 = vadd.f32 %v20768_v54, %v9359_v6  ;;  %v9361_v12 = vpop.f32.mrb[87].mxu0  ;;  %9577 = vmatprep.subr.bf16.mxu1 %v16813_v18  ;;  %v10152_v30 = vmax.f32 %v9960_v43, 0.0  ;;  %v16864_v6 = vld [vmem:[%s22666_s11 + $0x1a4] ss:$16 sps:$4 sm:$0xff]  }
 0x7d3   : > { %v9967_v33 = vadd.f32 %v20773_v61, %v9361_v12  ;;  %v10153_v46 = vmax.f32 %v9961_v41, 0.0  ;;  %11482 = vmatprep.subr.bf16.mxu0 %v16864_v6 }
 0x7d4   : > { %v10158_v0 = vmax.f32 %v9966_v63, 0.0  ;;  %8918 = vmatmul.mubr.bf16.gmra.mrb[64].mxu1 %v23074_v17  ;;  %11483 = vmatpush1.bf16.msra.mxu0 %v16862_v44 }
 0x7d5   : > { %v10159_v23 = vmax.f32 %v9967_v33, 0.0  ;;  %8927 = vmatprep.mubr.bf16.mxu1 %v23075_v25 }
 0x7d6   : > { %v21091_v15 = vpack.c.bf16 %v10158_v0, %v10152_v30 }
 0x7d7   : > { %v21093_v7 = vpack.c.bf16 %v10159_v23, %v10153_v46  ;;  %v9365_v18 = vpop.f32.mrb[88].mxu0  ;;  %v16868_v46 = vld [vmem:[%s22666_s11 + $0x1c0] ss:$16 sps:$4 sm:$0xff]   ;;  %v16870_v23 = vld [vmem:[%s22666_s11 + $0x1c4] ss:$16 sps:$4 sm:$0xff]  }
 0x7d8   : > { %23124 = vst [vmem:[#allocation15_spill] sm:$0xff] %v21091_v15  ;;  %v9972_v32 = vadd.f32 %v20768_v54, %v9365_v18  ;;  %v9367_v41 = vpop.f32.mrb[89].mxu0  ;;  %11484 = vmatprep.subr.bf16.mxu0 %v16870_v23  ;;  %v16817_v23 = vld [vmem:[%s22663_s8 + $0x340] ss:$24 sps:$4 sm:$0xff]  }
 0x7d9   : > { %23125 = vst [vmem:[#allocation17_spill] sm:$0xff] %v21093_v7  ;;  %v9973_v43 = vadd.f32 %v20773_v61, %v9367_v41  ;;  %v9369_v2 = vpop.f32.mrb[90].mxu0  ;;  %11485 = vmatpush1.bf16.msra.mxu0 %v16868_v46  ;;  %v16819_v46 = vld [vmem:[%s22663_s8 + $0x344] ss:$24 sps:$4 sm:$0xff]  }
 0x7da   : > { %v9978_v63 = vadd.f32 %v20768_v54, %v9369_v2  ;;  %v9371_v12 = vpop.f32.mrb[91].mxu0  ;;  %v10164_v14 = vmax.f32 %v9972_v32, 0.0 }
 0x7db   : > { %v9979_v33 = vadd.f32 %v20773_v61, %v9371_v12  ;;  %v10165_v0 = vmax.f32 %v9973_v43, 0.0 }
 0x7dc   : > { %v10170_v25 = vmax.f32 %v9978_v63, 0.0  ;;  %8928 = vmatmul.mubr.bf16.gmra.mrb[68].mxu1 %v23076_v13 }
 0x7dd   : > { %v10171_v30 = vmax.f32 %v9979_v33, 0.0  ;;  %8937 = vmatprep.mubr.bf16.mxu1 %v23077_v34 }
 0x7de   : > { %v21107_v44 = vpack.c.bf16 %v10170_v25, %v10164_v14 }
 0x7df   : > { %v21109_v6 = vpack.c.bf16 %v10171_v30, %v10165_v0  ;;  %v9375_v18 = vpop.f32.mrb[92].mxu0 }
 0x7e0   : > { %23126 = vst [vmem:[#allocation16_spill] sm:$0xff] %v21107_v44  ;;  %v9984_v32 = vadd.f32 %v20768_v54, %v9375_v18  ;;  %v9377_v41 = vpop.f32.mrb[93].mxu0  ;;  %v16823_v18 = vld [vmem:[%s22663_s8 + $0x370] ss:$24 sps:$4 sm:$0xff]  }
 0x7e1   : > { %23127 = vst [vmem:[#allocation38_spill] sm:$0xff] %v21109_v6  ;;  %v9985_v43 = vadd.f32 %v20773_v61, %v9377_v41  ;;  %v9379_v2 = vpop.f32.mrb[94].mxu0  ;;  %v16835_v41 = vld [vmem:[%s22663_s8 + $0x3d0] ss:$24 sps:$4 sm:$0xff]  }
 0x7e2   : > { %v9990_v63 = vadd.f32 %v20768_v54, %v9379_v2  ;;  %v9381_v12 = vpop.f32.mrb[95].mxu0  ;;  %v10176_v15 = vmax.f32 %v9984_v32, 0.0  ;;  %v16876_v54 = vld [vmem:[%s22666_s11 + $0x1e4] ss:$16 sps:$4 sm:$0xff]  }
 0x7e3   : > { %v9991_v33 = vadd.f32 %v20773_v61, %v9381_v12  ;;  %v10177_v25 = vmax.f32 %v9985_v43, 0.0  ;;  %v16874_v61 = vld [vmem:[%s22666_s11 + $0x1e0] ss:$16 sps:$4 sm:$0xff]   ;;  %11486 = vmatprep.subr.bf16.mxu0 %v16876_v54  ;;  %v16837_v32 = vld [vmem:[%s22663_s8 + $0x3d4] ss:$24 sps:$4 sm:$0xff]   ;;  %v23131_v12 = vld [vmem:[#allocation21_spill] sm:$0xff] }
 0x7e4   : > { %v10182_v7 = vmax.f32 %v9990_v63, 0.0  ;;  %8938 = vmatmul.mubr.bf16.gmra.mrb[72].mxu1 %v23078_v57  ;;  %11487 = vmatpush1.bf16.msra.mxu0 %v16874_v61  ;;  %v16841_v43 = vld [vmem:[%s22663_s8 + $0x400] ss:$24 sps:$4 sm:$0xff]   ;;  %v16849_v2 = vld [vmem:[%s22663_s8 + $0x434] ss:$24 sps:$4 sm:$0xff]  }
 0x7e5   : > { %v10183_v14 = vmax.f32 %v9991_v33, 0.0  ;;  %8947 = vmatprep.mubr.bf16.mxu1 %v23079_v60  ;;  %v16847_v63 = vld [vmem:[%s22663_s8 + $0x430] ss:$24 sps:$4 sm:$0xff]   ;;  %v16867_v61 = vld [vmem:[%s22663_s8 + $0x4c4] ss:$24 sps:$4 sm:$0xff]  }
 0x7e6   : > { %v21117_v0 = vpack.c.bf16 %v10182_v7, %v10176_v15  ;;  %v16882_v15 = vld [vmem:[%s22666_s11 + $0x204] ss:$16 sps:$4 sm:$0xff]   ;;  %v16811_v7 = vld [vmem:[%s22663_s8 + $0x310] ss:$24 sps:$4 sm:$0xff]  }
 0x7e7   : > { %v21119_v30 = vpack.c.bf16 %v10183_v14, %v10177_v25  ;;  %11649 = vmatprep.subr.bf16.mxu0 %v16882_v15  ;;  %v23132_v33 = vld [vmem:[#allocation24_spill] sm:$0xff]  ;;  %v16853_v25 = vld [vmem:[%s22663_s8 + $0x460] ss:$24 sps:$4 sm:$0xff]   ;;  %v23133_v15 = vld [vmem:[#allocation23_spill] sm:$0xff] }
 0x7e8   : > { %23128 = vst [vmem:[#allocation37_spill] sm:$0xff] %v21117_v0  ;;  %v16861_v14 = vld [vmem:[%s22663_s8 + $0x494] ss:$24 sps:$4 sm:$0xff]   ;;  %v16859_v54 = vld [vmem:[%s22663_s8 + $0x490] ss:$24 sps:$4 sm:$0xff]  }
 0x7e9   : > { %23129 = vst [vmem:[#allocation40_spill] sm:$0xff] %v21119_v30 }
 0x7ec   : > { %8948 = vmatmul.mubr.bf16.gmra.mrb[76].mxu1 %v23080_v27 }
 0x7ed   : > { %8957 = vmatprep.mubr.bf16.mxu1 %v23081_v37 }
 0x7f4   : > { %8958 = vmatmul.mubr.bf16.gmra.mrb[80].mxu1 %v23082_v20 }
 0x7f5   : > { %8967 = vmatprep.mubr.bf16.mxu1 %v23083_v47 }
 0x7fc   : > { %8968 = vmatmul.mubr.bf16.gmra.mrb[84].mxu1 %v23084_v48 }
 0x7fd   : > { %8977 = vmatprep.mubr.bf16.mxu1 %v23085_v1 }
 0x804   : > { %8978 = vmatmul.mubr.bf16.gmra.mrb[88].mxu1 %v23086_v22 }
 0x805   : > { %8987 = vmatprep.mubr.bf16.mxu1 %v23087_v36 }
 0x80c   : > { %8988 = vmatmul.mubr.bf16.gmra.mrb[92].mxu1 %v23088_v49 }
 0x80d   : > { %9416 = vmatprep.mubr.bf16.mxu1 %v18923_v51  ;;  %v16825_v51 = vld [vmem:[%s22663_s8 + $0x374] ss:$24 sps:$4 sm:$0xff]  }
 0x814   : > { %9417 = vmatmul.mubr.bf16.vlgmr.msra.gmra.mrb[96].mxu1 %v18921_v5  ;;  %v16831_v5 = vld [vmem:[%s22663_s8 + $0x3a4] ss:$24 sps:$4 sm:$0xff]  }
 0x815   : > { %9426 = vmatprep.mubr.bf16.mxu1 %v18937_v35  ;;  %9578 = vmatpush1.bf16.msra.mxu1 %v16811_v7  ;;  %v16829_v35 = vld [vmem:[%s22663_s8 + $0x3a0] ss:$24 sps:$4 sm:$0xff]  }
 0x816   : > { %9579 = vmatprep.subr.bf16.mxu1 %v16819_v46  ;;  %v23134_v7 = vld [vmem:[#allocation26_spill] sm:$0xff] }
 0x817   : > { %v16865_v46 = vld [vmem:[%s22663_s8 + $0x4c0] ss:$24 sps:$4 sm:$0xff]  }
 0x819   : > { %9580 = vmatpush1.bf16.msra.mxu1 %v16817_v23  ;;  %v16873_v23 = vld [vmem:[%s22663_s8 + $0x4f4] ss:$24 sps:$4 sm:$0xff]  }
 0x81a   : > { %9581 = vmatprep.subr.bf16.mxu1 %v16825_v51  ;;  %v16871_v51 = vld [vmem:[%s22663_s8 + $0x4f0] ss:$24 sps:$4 sm:$0xff]  }
 0x81c   : > { %9427 = vmatmul.mubr.bf16.gmra.mrb[100].mxu1 %v18932_v8  ;;  %v16843_v8 = vld [vmem:[%s22663_s8 + $0x404] ss:$24 sps:$4 sm:$0xff]  }
 0x81d   : > { %9436 = vmatprep.mubr.bf16.mxu1 %v18948_v19  ;;  %9582 = vmatpush1.bf16.msra.mxu1 %v16823_v18  ;;  %v23130_v19 = vld [vmem:[#allocation22_spill] sm:$0xff] }
 0x81e   : > { %9583 = vmatprep.subr.bf16.mxu1 %v16831_v5  ;;  %v16879_v18 = vld [vmem:[%s22663_s8 + $0x524] ss:$24 sps:$4 sm:$0xff]  }
 0x81f   : > { %v23135_v5 = vld [vmem:[#allocation25_spill] sm:$0xff] }
 0x821   : > { %9584 = vmatpush1.bf16.msra.mxu1 %v16829_v35  ;;  %v23136_v35 = vld [vmem:[#allocation28_spill] sm:$0xff] }
 0x822   : > { %9585 = vmatprep.subr.bf16.mxu1 %v16837_v32  ;;  %v16877_v32 = vld [vmem:[%s22663_s8 + $0x520] ss:$24 sps:$4 sm:$0xff]  }
 0x824   : > { %9437 = vmatmul.mubr.bf16.gmra.mrb[104].mxu1 %v18946_v4  ;;  %v16855_v4 = vld [vmem:[%s22663_s8 + $0x464] ss:$24 sps:$4 sm:$0xff]  }
 0x825   : > { %9446 = vmatprep.mubr.bf16.mxu1 %v23130_v19  ;;  %9586 = vmatpush1.bf16.msra.mxu1 %v16835_v41  ;;  %v16885_v41 = vld [vmem:[%s22663_s8 + $0x554] ss:$24 sps:$4 sm:$0xff]   ;;  %v16891_v19 = vld [vmem:[%s22663_s8 + $0x584] ss:$24 sps:$4 sm:$0xff]  }
 0x826   : > { %9587 = vmatprep.subr.bf16.mxu1 %v16843_v8  ;;  %v16883_v8 = vld [vmem:[%s22663_s8 + $0x550] ss:$24 sps:$4 sm:$0xff]  }
 0x829   : > { %9588 = vmatpush1.bf16.msra.mxu1 %v16841_v43  ;;  %v23137_v43 = vld [vmem:[#allocation27_spill] sm:$0xff] }
 0x82a   : > { %9589 = vmatprep.subr.bf16.mxu1 %v16849_v2  ;;  %v23138_v2 = vld [vmem:[#allocation30_spill] sm:$0xff] }
 0x82c   : > { %9447 = vmatmul.mubr.bf16.gmra.mrb[108].mxu1 %v23131_v12  ;;  %v16895_v12 = vld [vmem:[%s22663_s8 + $0x5b0] ss:$24 sps:$4 sm:$0xff]  }
 0x82d   : > { %9456 = vmatprep.mubr.bf16.mxu1 %v23132_v33  ;;  %9590 = vmatpush1.bf16.msra.mxu1 %v16847_v63  ;;  %v16889_v63 = vld [vmem:[%s22663_s8 + $0x580] ss:$24 sps:$4 sm:$0xff]   ;;  %v16903_v33 = vld [vmem:[%s22663_s8 + $0x5e4] ss:$24 sps:$4 sm:$0xff]  }
 0x82e   : > { %9591 = vmatprep.subr.bf16.mxu1 %v16855_v4  ;;  %v16897_v4 = vld [vmem:[%s22663_s8 + $0x5b4] ss:$24 sps:$4 sm:$0xff]  }
 0x831   : > { %9592 = vmatpush1.bf16.msra.mxu1 %v16853_v25  ;;  %v23139_v25 = vld [vmem:[#allocation29_spill] sm:$0xff] }
 0x832   : > { %9593 = vmatprep.subr.bf16.mxu1 %v16861_v14  ;;  %v23140_v14 = vld [vmem:[#allocation32_spill] sm:$0xff] }
 0x834   : > { %9457 = vmatmul.mubr.bf16.gmra.mrb[112].mxu1 %v23133_v15  ;;  %v23142_v15 = vld [vmem:[#allocation33_spill] sm:$0xff] }
 0x835   : > { %9466 = vmatprep.mubr.bf16.mxu1 %v23134_v7  ;;  %9594 = vmatpush1.bf16.msra.mxu1 %v16859_v54  ;;  %v16901_v54 = vld [vmem:[%s22663_s8 + $0x5e0] ss:$24 sps:$4 sm:$0xff]   ;;  %v23143_v7 = vld [vmem:[#allocation36_spill] sm:$0xff] }
 0x836   : > { %9595 = vmatprep.subr.bf16.mxu1 %v16867_v61  ;;  %v23141_v61 = vld [vmem:[#allocation31_spill] sm:$0xff] }
 0x839   : > { %9596 = vmatpush1.bf16.msra.mxu1 %v16865_v46  ;;  %v23144_v46 = vld [vmem:[#allocation2_spill] sm:$0xff] }
 0x83a   : > { %9597 = vmatprep.subr.bf16.mxu1 %v16873_v23  ;;  %v23145_v23 = vld [vmem:[#allocation3_spill] sm:$0xff] }
 0x83c   : > { %9467 = vmatmul.mubr.bf16.gmra.mrb[116].mxu1 %v23135_v5 }
 0x83d   : > { %9476 = vmatprep.mubr.bf16.mxu1 %v23136_v35  ;;  %9598 = vmatpush1.bf16.msra.mxu1 %v16871_v51  ;;  %v23146_v51 = vld [vmem:[#allocation19_spill] sm:$0xff]  ;;  %v23148_v35 = vld [vmem:[#allocation4_spill] sm:$0xff] }
 0x83e   : > { %9599 = vmatprep.subr.bf16.mxu1 %v16879_v18  ;;  %v23147_v18 = vld [vmem:[#allocation66_spill] sm:$0xff] }
 0x83f   : > { %v21256_v5 = vrot.slane %v23147_v18, %v23146_v51 }
 0x841   : > { %9600 = vmatpush1.bf16.msra.mxu1 %v16877_v32  ;;  %v23149_v32 = vld [vmem:[#allocation20_spill] sm:$0xff] }
 0x842   : > { %9601 = vmatprep.subr.bf16.mxu1 %v16885_v41  ;;  %v21261_v41 = vrot.slane %v23147_v18, %v23149_v32 }
 0x844   : > { %9477 = vmatmul.mubr.bf16.gmra.mrb[120].mxu1 %v23137_v43 }
 0x845   : > { %9486 = vmatprep.mubr.bf16.mxu1 %v23138_v2  ;;  %9602 = vmatpush1.bf16.msra.mxu1 %v16883_v8 }
 0x846   : > { %9603 = vmatprep.subr.bf16.mxu1 %v16891_v19 }
 0x849   : > { %9604 = vmatpush1.bf16.msra.mxu1 %v16889_v63 }
 0x84a   : > { %9605 = vmatprep.subr.bf16.mxu1 %v16897_v4 }
 0x84c   : > { %9487 = vmatmul.mubr.bf16.gmra.mrb[124].mxu1 %v23139_v25 }
 0x84d   : > { %9496 = vmatprep.mubr.bf16.mxu1 %v23140_v14  ;;  %9606 = vmatpush1.bf16.msra.mxu1 %v16895_v12 }
 0x84e   : > { %9607 = vmatprep.subr.bf16.mxu1 %v16903_v33 }
 0x851   : > { %9608 = vmatpush1.bf16.msra.mxu1 %v16901_v54  ;;  %v23150_v54 = vld [vmem:[#allocation5_spill] sm:$0xff] }
 0x854   : > { %9497 = vmatmul.mubr.bf16.gmra.mrb[128].mxu1 %v23141_v61 }
 0x855   : > { %9506 = vmatprep.mubr.bf16.mxu1 %v23142_v15 }
 0x85c   : > { %9507 = vmatmul.mubr.bf16.gmra.mrb[132].mxu1 %v23143_v7  ;;  %v23151_v7 = vld [vmem:[#allocation6_spill] sm:$0xff] }
 0x85d   : > { %9516 = vmatprep.mubr.bf16.mxu1 %v23144_v46 }
 0x864   : > { %9517 = vmatmul.mubr.bf16.gmra.mrb[136].mxu1 %v23145_v23 }
 0x865   : > { %9526 = vmatprep.mubr.bf16.mxu1 %v23148_v35  ;;  %v16880_v35 = vld [vmem:[%s22666_s11 + $0x200] ss:$16 sps:$4 sm:$0xff]  }
 0x867   : > { %v8839_v8 = vpop.f32.mrb[32].mxu1 }
 0x868   : > { %v9802_v19 = vadd.f32 %v21256_v5, %v8839_v8  ;;  %v8841_v43 = vpop.f32.mrb[33].mxu1 }
 0x869   : > { %v9803_v2 = vadd.f32 %v21261_v41, %v8841_v43  ;;  %v8843_v63 = vpop.f32.mrb[34].mxu1 }
 0x86a   : > { %v9808_v4 = vadd.f32 %v21256_v5, %v8843_v63  ;;  %v8845_v12 = vpop.f32.mrb[35].mxu1  ;;  %v9994_v25 = vmax.f32 %v9802_v19, 0.0  ;;  %v16888_v19 = vld [vmem:[%s22666_s11 + $0x224] ss:$16 sps:$4 sm:$0xff]  }
 0x86b   : > { %v9809_v33 = vadd.f32 %v21261_v41, %v8845_v12  ;;  %v9995_v61 = vmax.f32 %v9803_v2, 0.0 }
 0x86c   : > { %v10000_v14 = vmax.f32 %v9808_v4, 0.0  ;;  %9527 = vmatmul.mubr.bf16.gmra.mrb[140].mxu1 %v23150_v54 }
 0x86d   : > { %v10001_v15 = vmax.f32 %v9809_v33, 0.0  ;;  %9536 = vmatprep.mubr.bf16.mxu1 %v23151_v7 }
 0x86e   : > { %v21269_v46 = vpack.c.bf16 %v10000_v14, %v9994_v25  ;;  %v16886_v25 = vld [vmem:[%s22666_s11 + $0x220] ss:$16 sps:$4 sm:$0xff]  }
 0x86f   : > { %v21271_v23 = vpack.c.bf16 %v10001_v15, %v9995_v61  ;;  %v8849_v18 = vpop.f32.mrb[36].mxu1  ;;  %v16894_v61 = vld [vmem:[%s22666_s11 + $0x244] ss:$16 sps:$4 sm:$0xff]  }
 0x870   : > { %v9814_v8 = vadd.f32 %v21256_v5, %v8849_v18  ;;  %v8851_v43 = vpop.f32.mrb[37].mxu1 }
 0x871   : > { %v9815_v2 = vadd.f32 %v21261_v41, %v8851_v43  ;;  %v8853_v63 = vpop.f32.mrb[38].mxu1  ;;  %11488 = vmatprep.mubr.bf16.mxu0 %v21271_v23 }
 0x872   : > { %v9820_v4 = vadd.f32 %v21256_v5, %v8853_v63  ;;  %v8855_v12 = vpop.f32.mrb[39].mxu1  ;;  %11489 = vmatmul.mubr.bf16.vlgmr.msra.gmra.mrb[96].mxu0 %v21269_v46  ;;  %v10006_v14 = vmax.f32 %v9814_v8, 0.0  ;;  %v16892_v8 = vld [vmem:[%s22666_s11 + $0x240] ss:$16 sps:$4 sm:$0xff]  }
 0x873   : > { %v9821_v33 = vadd.f32 %v21261_v41, %v8855_v12  ;;  %11650 = vmatpush1.bf16.msra.mxu0 %v16880_v35  ;;  %v10007_v15 = vmax.f32 %v9815_v2, 0.0  ;;  %v16900_v2 = vld [vmem:[%s22666_s11 + $0x264] ss:$16 sps:$4 sm:$0xff]  }
 0x874   : > { %v10012_v54 = vmax.f32 %v9820_v4, 0.0  ;;  %9537 = vmatmul.mubr.bf16.gmra.mrb[144].mxu1 %v23049_v39  ;;  %11651 = vmatprep.subr.bf16.mxu0 %v16888_v19 }
 0x875   : > { %v10013_v7 = vmax.f32 %v9821_v33, 0.0  ;;  %9546 = vmatprep.mubr.bf16.mxu1 %v23051_v62 }
 0x876   : > { %v21293_v18 = vpack.c.bf16 %v10012_v54, %v10006_v14 }
 0x877   : > { %v21295_v35 = vpack.c.bf16 %v10013_v7, %v10007_v15  ;;  %v8859_v43 = vpop.f32.mrb[40].mxu1  ;;  %11652 = vmatpush1.bf16.msra.mxu0 %v16886_v25  ;;  %v16898_v25 = vld [vmem:[%s22666_s11 + $0x260] ss:$16 sps:$4 sm:$0xff]  }
 0x878   : > { %v9826_v39 = vadd.f32 %v21256_v5, %v8859_v43  ;;  %v8861_v19 = vpop.f32.mrb[41].mxu1  ;;  %11653 = vmatprep.subr.bf16.mxu0 %v16894_v61  ;;  %v16906_v61 = vld [vmem:[%s22666_s11 + $0x284] ss:$16 sps:$4 sm:$0xff]  }
 0x879   : > { %v9827_v62 = vadd.f32 %v21261_v41, %v8861_v19  ;;  %v8863_v63 = vpop.f32.mrb[42].mxu1  ;;  %11498 = vmatprep.mubr.bf16.mxu0 %v21295_v35 }
 0x87a   : > { %v9832_v4 = vadd.f32 %v21256_v5, %v8863_v63  ;;  %v8865_v12 = vpop.f32.mrb[43].mxu1  ;;  %11499 = vmatmul.mubr.bf16.gmra.mrb[100].mxu0 %v21293_v18  ;;  %v10018_v14 = vmax.f32 %v9826_v39, 0.0  ;;  %v16904_v39 = vld [vmem:[%s22666_s11 + $0x280] ss:$16 sps:$4 sm:$0xff]  }
 0x87b   : > { %v9833_v33 = vadd.f32 %v21261_v41, %v8865_v12  ;;  %11654 = vmatpush1.bf16.msra.mxu0 %v16892_v8  ;;  %v10019_v15 = vmax.f32 %v9827_v62, 0.0  ;;  %v16909_v62 = vld [vmem:[%s22666_s11 + $0x2a4] ss:$16 sps:$4 sm:$0xff]  }
 0x87c   : > { %v10024_v54 = vmax.f32 %v9832_v4, 0.0  ;;  %9547 = vmatmul.mubr.bf16.gmra.mrb[148].mxu1 %v23052_v28  ;;  %11655 = vmatprep.subr.bf16.mxu0 %v16900_v2 }
 0x87d   : > { %v10025_v7 = vmax.f32 %v9833_v33, 0.0  ;;  %9556 = vmatprep.mubr.bf16.mxu1 %v23053_v31 }
 0x87e   : > { %v21317_v43 = vpack.c.bf16 %v10024_v54, %v10018_v14 }
 0x87f   : > { %v21319_v8 = vpack.c.bf16 %v10025_v7, %v10019_v15  ;;  %v8869_v19 = vpop.f32.mrb[44].mxu1  ;;  %11656 = vmatpush1.bf16.msra.mxu0 %v16898_v25  ;;  %v16907_v25 = vld [vmem:[%s22666_s11 + $0x2a0] ss:$16 sps:$4 sm:$0xff]  }
 0x880   : > { %v9838_v28 = vadd.f32 %v21256_v5, %v8869_v19  ;;  %v8871_v2 = vpop.f32.mrb[45].mxu1  ;;  %11657 = vmatprep.subr.bf16.mxu0 %v16906_v61  ;;  %v16912_v61 = vld [vmem:[%s22666_s11 + $0x2c4] ss:$16 sps:$4 sm:$0xff]  }
 0x881   : > { %v9839_v31 = vadd.f32 %v21261_v41, %v8871_v2  ;;  %v8873_v63 = vpop.f32.mrb[46].mxu1  ;;  %11508 = vmatprep.mubr.bf16.mxu0 %v21319_v8 }
 0x882   : > { %v9844_v4 = vadd.f32 %v21256_v5, %v8873_v63  ;;  %v8875_v12 = vpop.f32.mrb[47].mxu1  ;;  %11509 = vmatmul.mubr.bf16.gmra.mrb[104].mxu0 %v21317_v43  ;;  %v10030_v14 = vmax.f32 %v9838_v28, 0.0  ;;  %v16910_v28 = vld [vmem:[%s22666_s11 + $0x2c0] ss:$16 sps:$4 sm:$0xff]  }
 0x883   : > { %v9845_v33 = vadd.f32 %v21261_v41, %v8875_v12  ;;  %11658 = vmatpush1.bf16.msra.mxu0 %v16904_v39  ;;  %v10031_v15 = vmax.f32 %v9839_v31, 0.0  ;;  %v16915_v31 = vld [vmem:[%s22666_s11 + $0x2e4] ss:$16 sps:$4 sm:$0xff]  }
 0x884   : > { %v10036_v54 = vmax.f32 %v9844_v4, 0.0  ;;  %9557 = vmatmul.mubr.bf16.gmra.mrb[152].mxu1 %v23054_v58  ;;  %11659 = vmatprep.subr.bf16.mxu0 %v16909_v62 }
 0x885   : > { %v10037_v7 = vmax.f32 %v9845_v33, 0.0  ;;  %9566 = vmatprep.mubr.bf16.mxu1 %v23055_v52 }
 0x886   : > { %v21341_v19 = vpack.c.bf16 %v10036_v54, %v10030_v14 }
 0x887   : > { %v21343_v39 = vpack.c.bf16 %v10037_v7, %v10031_v15  ;;  %v8879_v2 = vpop.f32.mrb[48].mxu1  ;;  %11660 = vmatpush1.bf16.msra.mxu0 %v16907_v25  ;;  %v16913_v25 = vld [vmem:[%s22666_s11 + $0x2e0] ss:$16 sps:$4 sm:$0xff]  }
 0x888   : > { %v9850_v58 = vadd.f32 %v21256_v5, %v8879_v2  ;;  %v8881_v62 = vpop.f32.mrb[49].mxu1  ;;  %11661 = vmatprep.subr.bf16.mxu0 %v16912_v61  ;;  %v16918_v61 = vld [vmem:[%s22666_s11 + $0x304] ss:$16 sps:$4 sm:$0xff]  }
 0x889   : > { %v9851_v52 = vadd.f32 %v21261_v41, %v8881_v62  ;;  %v8883_v63 = vpop.f32.mrb[50].mxu1  ;;  %11518 = vmatprep.mubr.bf16.mxu0 %v21343_v39 }
 0x88a   : > { %v9856_v4 = vadd.f32 %v21256_v5, %v8883_v63  ;;  %v8885_v12 = vpop.f32.mrb[51].mxu1  ;;  %11519 = vmatmul.mubr.bf16.gmra.mrb[108].mxu0 %v21341_v19  ;;  %v10042_v14 = vmax.f32 %v9850_v58, 0.0  ;;  %v16916_v58 = vld [vmem:[%s22666_s11 + $0x300] ss:$16 sps:$4 sm:$0xff]  }
 0x88b   : > { %v9857_v33 = vadd.f32 %v21261_v41, %v8885_v12  ;;  %11662 = vmatpush1.bf16.msra.mxu0 %v16910_v28  ;;  %v10043_v15 = vmax.f32 %v9851_v52, 0.0  ;;  %v16921_v52 = vld [vmem:[%s22666_s11 + $0x324] ss:$16 sps:$4 sm:$0xff]  }
 0x88c   : > { %v10048_v54 = vmax.f32 %v9856_v4, 0.0  ;;  %9567 = vmatmul.mubr.bf16.gmra.mrb[156].mxu1 %v23056_v53  ;;  %11663 = vmatprep.subr.bf16.mxu0 %v16915_v31 }
 0x88d   : > { %v10049_v7 = vmax.f32 %v9857_v33, 0.0  ;;  %9609 = vmatprep.mubr.bf16.mxu1 %v23105_v42 }
 0x88e   : > { %v21365_v2 = vpack.c.bf16 %v10048_v54, %v10042_v14 }
 0x88f   : > { %v21367_v28 = vpack.c.bf16 %v10049_v7, %v10043_v15  ;;  %v8889_v62 = vpop.f32.mrb[52].mxu1  ;;  %11664 = vmatpush1.bf16.msra.mxu0 %v16913_v25  ;;  %v16919_v25 = vld [vmem:[%s22666_s11 + $0x320] ss:$16 sps:$4 sm:$0xff]  }
 0x890   : > { %v9862_v53 = vadd.f32 %v21256_v5, %v8889_v62  ;;  %v8891_v31 = vpop.f32.mrb[53].mxu1  ;;  %11665 = vmatprep.subr.bf16.mxu0 %v16918_v61  ;;  %v16924_v61 = vld [vmem:[%s22666_s11 + $0x344] ss:$16 sps:$4 sm:$0xff]  }
 0x891   : > { %v9863_v42 = vadd.f32 %v21261_v41, %v8891_v31  ;;  %v8893_v63 = vpop.f32.mrb[54].mxu1  ;;  %11528 = vmatprep.mubr.bf16.mxu0 %v21367_v28 }
 0x892   : > { %v9868_v4 = vadd.f32 %v21256_v5, %v8893_v63  ;;  %v8895_v12 = vpop.f32.mrb[55].mxu1  ;;  %11529 = vmatmul.mubr.bf16.gmra.mrb[112].mxu0 %v21365_v2  ;;  %v10054_v14 = vmax.f32 %v9862_v53, 0.0  ;;  %v16922_v53 = vld [vmem:[%s22666_s11 + $0x340] ss:$16 sps:$4 sm:$0xff]  }
 0x893   : > { %v9869_v33 = vadd.f32 %v21261_v41, %v8895_v12  ;;  %11666 = vmatpush1.bf16.msra.mxu0 %v16916_v58  ;;  %v10055_v15 = vmax.f32 %v9863_v42, 0.0  ;;  %v16927_v42 = vld [vmem:[%s22666_s11 + $0x364] ss:$16 sps:$4 sm:$0xff]  }
 0x894   : > { %v10060_v54 = vmax.f32 %v9868_v4, 0.0  ;;  %9610 = vmatmul.mubr.bf16.vlgmr.msra.gmra.mrb[96].mxu1 %v23058_v3  ;;  %11667 = vmatprep.subr.bf16.mxu0 %v16921_v52 }
 0x895   : > { %v10061_v7 = vmax.f32 %v9869_v33, 0.0  ;;  %9619 = vmatprep.mubr.bf16.mxu1 %v23059_v16 }
 0x896   : > { %v21389_v62 = vpack.c.bf16 %v10060_v54, %v10054_v14 }
 0x897   : > { %v21391_v58 = vpack.c.bf16 %v10061_v7, %v10055_v15  ;;  %v8899_v31 = vpop.f32.mrb[56].mxu1  ;;  %11668 = vmatpush1.bf16.msra.mxu0 %v16919_v25  ;;  %v16925_v25 = vld [vmem:[%s22666_s11 + $0x360] ss:$16 sps:$4 sm:$0xff]  }
 0x898   : > { %v9874_v3 = vadd.f32 %v21256_v5, %v8899_v31  ;;  %v8901_v52 = vpop.f32.mrb[57].mxu1  ;;  %11669 = vmatprep.subr.bf16.mxu0 %v16924_v61  ;;  %v16930_v61 = vld [vmem:[%s22666_s11 + $0x384] ss:$16 sps:$4 sm:$0xff]  }
 0x899   : > { %v9875_v16 = vadd.f32 %v21261_v41, %v8901_v52  ;;  %v8903_v63 = vpop.f32.mrb[58].mxu1  ;;  %11538 = vmatprep.mubr.bf16.mxu0 %v21391_v58 }
 0x89a   : > { %v9880_v4 = vadd.f32 %v21256_v5, %v8903_v63  ;;  %v8905_v12 = vpop.f32.mrb[59].mxu1  ;;  %11539 = vmatmul.mubr.bf16.gmra.mrb[116].mxu0 %v21389_v62  ;;  %v10066_v14 = vmax.f32 %v9874_v3, 0.0  ;;  %v16928_v3 = vld [vmem:[%s22666_s11 + $0x380] ss:$16 sps:$4 sm:$0xff]  }
 0x89b   : > { %v9881_v33 = vadd.f32 %v21261_v41, %v8905_v12  ;;  %11670 = vmatpush1.bf16.msra.mxu0 %v16922_v53  ;;  %v10067_v15 = vmax.f32 %v9875_v16, 0.0  ;;  %v16933_v16 = vld [vmem:[%s22666_s11 + $0x3a4] ss:$16 sps:$4 sm:$0xff]  }
 0x89c   : > { %v10072_v54 = vmax.f32 %v9880_v4, 0.0  ;;  %9620 = vmatmul.mubr.bf16.gmra.mrb[100].mxu1 %v23060_v11  ;;  %11671 = vmatprep.subr.bf16.mxu0 %v16927_v42 }
 0x89d   : > { %v10073_v7 = vmax.f32 %v9881_v33, 0.0  ;;  %9629 = vmatprep.mubr.bf16.mxu1 %v23061_v10 }
 0x89e   : > { %v21413_v31 = vpack.c.bf16 %v10072_v54, %v10066_v14 }
 0x89f   : > { %v21415_v53 = vpack.c.bf16 %v10073_v7, %v10067_v15  ;;  %v8909_v52 = vpop.f32.mrb[60].mxu1  ;;  %11672 = vmatpush1.bf16.msra.mxu0 %v16925_v25  ;;  %v16931_v25 = vld [vmem:[%s22666_s11 + $0x3a0] ss:$16 sps:$4 sm:$0xff]  }
 0x8a0   : > { %v9886_v11 = vadd.f32 %v21256_v5, %v8909_v52  ;;  %v8911_v42 = vpop.f32.mrb[61].mxu1  ;;  %11673 = vmatprep.subr.bf16.mxu0 %v16930_v61  ;;  %v16936_v61 = vld [vmem:[%s22666_s11 + $0x3c4] ss:$16 sps:$4 sm:$0xff]  }
 0x8a1   : > { %v9887_v10 = vadd.f32 %v21261_v41, %v8911_v42  ;;  %v8913_v63 = vpop.f32.mrb[62].mxu1  ;;  %11548 = vmatprep.mubr.bf16.mxu0 %v21415_v53 }
 0x8a2   : > { %v9892_v4 = vadd.f32 %v21256_v5, %v8913_v63  ;;  %v8915_v12 = vpop.f32.mrb[63].mxu1  ;;  %11549 = vmatmul.mubr.bf16.gmra.mrb[120].mxu0 %v21413_v31  ;;  %v10078_v14 = vmax.f32 %v9886_v11, 0.0  ;;  %v16934_v11 = vld [vmem:[%s22666_s11 + $0x3c0] ss:$16 sps:$4 sm:$0xff]  }
 0x8a3   : > { %v9893_v33 = vadd.f32 %v21261_v41, %v8915_v12  ;;  %11674 = vmatpush1.bf16.msra.mxu0 %v16928_v3  ;;  %v10079_v15 = vmax.f32 %v9887_v10, 0.0  ;;  %v16939_v10 = vld [vmem:[%s22666_s11 + $0x3e4] ss:$16 sps:$4 sm:$0xff]  }
 0x8a4   : > { %v10084_v54 = vmax.f32 %v9892_v4, 0.0  ;;  %9630 = vmatmul.mubr.bf16.gmra.mrb[104].mxu1 %v23062_v59  ;;  %11675 = vmatprep.subr.bf16.mxu0 %v16933_v16 }
 0x8a5   : > { %v10085_v7 = vmax.f32 %v9893_v33, 0.0  ;;  %9639 = vmatprep.mubr.bf16.mxu1 %v23063_v56 }
 0x8a6   : > { %v21437_v52 = vpack.c.bf16 %v10084_v54, %v10078_v14 }
 0x8a7   : > { %v21439_v3 = vpack.c.bf16 %v10085_v7, %v10079_v15  ;;  %v8919_v42 = vpop.f32.mrb[64].mxu1  ;;  %11676 = vmatpush1.bf16.msra.mxu0 %v16931_v25  ;;  %v16937_v25 = vld [vmem:[%s22666_s11 + $0x3e0] ss:$16 sps:$4 sm:$0xff]  }
 0x8a8   : > { %v9898_v59 = vadd.f32 %v21256_v5, %v8919_v42  ;;  %v8921_v16 = vpop.f32.mrb[65].mxu1  ;;  %11677 = vmatprep.subr.bf16.mxu0 %v16936_v61  ;;  %v16942_v61 = vld [vmem:[%s22666_s11 + $0x404] ss:$16 sps:$4 sm:$0xff]  }
 0x8a9   : > { %v9899_v56 = vadd.f32 %v21261_v41, %v8921_v16  ;;  %v8923_v63 = vpop.f32.mrb[66].mxu1  ;;  %11558 = vmatprep.mubr.bf16.mxu0 %v21439_v3 }
 0x8aa   : > { %v9904_v4 = vadd.f32 %v21256_v5, %v8923_v63  ;;  %v8925_v12 = vpop.f32.mrb[67].mxu1  ;;  %11559 = vmatmul.mubr.bf16.gmra.mrb[124].mxu0 %v21437_v52  ;;  %v10090_v14 = vmax.f32 %v9898_v59, 0.0 }
 0x8ab   : > { %v9905_v33 = vadd.f32 %v21261_v41, %v8925_v12  ;;  %11678 = vmatpush1.bf16.msra.mxu0 %v16934_v11  ;;  %v10091_v15 = vmax.f32 %v9899_v56, 0.0 }
 0x8ac   : > { %v10096_v54 = vmax.f32 %v9904_v4, 0.0  ;;  %9640 = vmatmul.mubr.bf16.gmra.mrb[108].mxu1 %v23064_v50  ;;  %11679 = vmatprep.subr.bf16.mxu0 %v16939_v10 }
 0x8ad   : > { %v10097_v7 = vmax.f32 %v9905_v33, 0.0  ;;  %9649 = vmatprep.mubr.bf16.mxu1 %v23065_v26 }
 0x8ae   : > { %v21461_v42 = vpack.c.bf16 %v10096_v54, %v10090_v14 }
 0x8af   : > { %v21463_v11 = vpack.c.bf16 %v10097_v7, %v10091_v15  ;;  %v8929_v16 = vpop.f32.mrb[68].mxu1  ;;  %11680 = vmatpush1.bf16.msra.mxu0 %v16937_v25 }
 0x8b0   : > { %v9910_v59 = vadd.f32 %v21256_v5, %v8929_v16  ;;  %v8931_v63 = vpop.f32.mrb[69].mxu1  ;;  %11842 = vmatprep.subr.bf16.mxu0 %v16942_v61 }
 0x8b1   : > { %v9911_v50 = vadd.f32 %v21261_v41, %v8931_v63  ;;  %v8933_v10 = vpop.f32.mrb[70].mxu1  ;;  %11568 = vmatprep.mubr.bf16.mxu0 %v21463_v11 }
 0x8b2   : > { %v9916_v56 = vadd.f32 %v21256_v5, %v8933_v10  ;;  %v8935_v4 = vpop.f32.mrb[71].mxu1  ;;  %11569 = vmatmul.mubr.bf16.gmra.mrb[128].mxu0 %v21461_v42  ;;  %v10102_v12 = vmax.f32 %v9910_v59, 0.0 }
 0x8b3   : > { %v9917_v26 = vadd.f32 %v21261_v41, %v8935_v4  ;;  %v10103_v25 = vmax.f32 %v9911_v50, 0.0 }
 0x8b4   : > { %v10108_v33 = vmax.f32 %v9916_v56, 0.0  ;;  %9650 = vmatmul.mubr.bf16.gmra.mrb[112].mxu1 %v23066_v55 }
 0x8b5   : > { %v10109_v14 = vmax.f32 %v9917_v26, 0.0  ;;  %9659 = vmatprep.mubr.bf16.mxu1 %v23067_v38 }
 0x8b6   : > { %v21473_v54 = vpack.c.bf16 %v10108_v33, %v10102_v12 }
 0x8b7   : > { %v21475_v61 = vpack.c.bf16 %v10109_v14, %v10103_v25  ;;  %v8939_v15 = vpop.f32.mrb[72].mxu1 }
 0x8b8   : > { %v9922_v7 = vadd.f32 %v21256_v5, %v8939_v15  ;;  %v8941_v16 = vpop.f32.mrb[73].mxu1 }
 0x8b9   : > { %v9923_v63 = vadd.f32 %v21261_v41, %v8941_v16  ;;  %v8943_v10 = vpop.f32.mrb[74].mxu1  ;;  %11578 = vmatprep.mubr.bf16.mxu0 %v21475_v61 }
 0x8ba   : > { %v9928_v59 = vadd.f32 %v21256_v5, %v8943_v10  ;;  %v8945_v55 = vpop.f32.mrb[75].mxu1  ;;  %11579 = vmatmul.mubr.bf16.gmra.mrb[132].mxu0 %v21473_v54  ;;  %v10114_v50 = vmax.f32 %v9922_v7, 0.0 }
 0x8bb   : > { %v9929_v38 = vadd.f32 %v21261_v41, %v8945_v55  ;;  %v10115_v4 = vmax.f32 %v9923_v63, 0.0 }
 0x8bc   : > { %v10120_v56 = vmax.f32 %v9928_v59, 0.0  ;;  %9660 = vmatmul.mubr.bf16.gmra.mrb[116].mxu1 %v23068_v45 }
 0x8bd   : > { %v10121_v26 = vmax.f32 %v9929_v38, 0.0  ;;  %9669 = vmatprep.mubr.bf16.mxu1 %v23069_v40 }
 0x8be   : > { %v21485_v12 = vpack.c.bf16 %v10120_v56, %v10114_v50 }
 0x8bf   : > { %v21487_v33 = vpack.c.bf16 %v10121_v26, %v10115_v4  ;;  %v8949_v25 = vpop.f32.mrb[76].mxu1 }
 0x8c0   : > { %v9934_v14 = vadd.f32 %v21256_v5, %v8949_v25  ;;  %v8951_v15 = vpop.f32.mrb[77].mxu1 }
 0x8c1   : > { %v9935_v16 = vadd.f32 %v21261_v41, %v8951_v15  ;;  %v8953_v10 = vpop.f32.mrb[78].mxu1  ;;  %11588 = vmatprep.mubr.bf16.mxu0 %v21487_v33 }
 0x8c2   : > { %v9940_v7 = vadd.f32 %v21256_v5, %v8953_v10  ;;  %v8955_v45 = vpop.f32.mrb[79].mxu1  ;;  %11589 = vmatmul.mubr.bf16.gmra.mrb[136].mxu0 %v21485_v12  ;;  %v10126_v63 = vmax.f32 %v9934_v14, 0.0 }
 0x8c3   : > { %v9941_v40 = vadd.f32 %v21261_v41, %v8955_v45  ;;  %v10127_v55 = vmax.f32 %v9935_v16, 0.0 }
 0x8c4   : > { %v10132_v59 = vmax.f32 %v9940_v7, 0.0  ;;  %9670 = vmatmul.mubr.bf16.gmra.mrb[120].mxu1 %v23070_v21 }
 0x8c5   : > { %v10133_v38 = vmax.f32 %v9941_v40, 0.0  ;;  %9679 = vmatprep.mubr.bf16.mxu1 %v23071_v24 }
 0x8c6   : > { %v21497_v50 = vpack.c.bf16 %v10132_v59, %v10126_v63 }
 0x8c7   : > { %v21499_v56 = vpack.c.bf16 %v10133_v38, %v10127_v55  ;;  %v8959_v4 = vpop.f32.mrb[80].mxu1 }
 0x8c8   : > { %v9946_v26 = vadd.f32 %v21256_v5, %v8959_v4  ;;  %v8961_v25 = vpop.f32.mrb[81].mxu1 }
 0x8c9   : > { %v9947_v15 = vadd.f32 %v21261_v41, %v8961_v25  ;;  %v8963_v10 = vpop.f32.mrb[82].mxu1  ;;  %11598 = vmatprep.mubr.bf16.mxu0 %v21499_v56 }
 0x8ca   : > { %v9952_v14 = vadd.f32 %v21256_v5, %v8963_v10  ;;  %v8965_v21 = vpop.f32.mrb[83].mxu1  ;;  %11599 = vmatmul.mubr.bf16.gmra.mrb[140].mxu0 %v21497_v50  ;;  %v10138_v16 = vmax.f32 %v9946_v26, 0.0 }
 0x8cb   : > { %v9953_v24 = vadd.f32 %v21261_v41, %v8965_v21  ;;  %v10139_v45 = vmax.f32 %v9947_v15, 0.0 }
 0x8cc   : > { %v10144_v7 = vmax.f32 %v9952_v14, 0.0  ;;  %9680 = vmatmul.mubr.bf16.gmra.mrb[124].mxu1 %v23072_v29 }
 0x8cd   : > { %v10145_v40 = vmax.f32 %v9953_v24, 0.0  ;;  %9689 = vmatprep.mubr.bf16.mxu1 %v23073_v9 }
 0x8ce   : > { %v21509_v63 = vpack.c.bf16 %v10144_v7, %v10138_v16  ;;  %v23153_v16 = vld [vmem:[#allocation52_spill] sm:$0xff] }
 0x8cf   : > { %v21511_v59 = vpack.c.bf16 %v10145_v40, %v10139_v45  ;;  %v8969_v55 = vpop.f32.mrb[84].mxu1 }
 0x8d0   : > { %23152 = vst [vmem:[#allocation39_spill] sm:$0xff] %v21509_v63  ;;  %v9958_v38 = vadd.f32 %v21256_v5, %v8969_v55  ;;  %v8971_v4 = vpop.f32.mrb[85].mxu1 }
 0x8d1   : > { %v9959_v25 = vadd.f32 %v21261_v41, %v8971_v4  ;;  %v8973_v10 = vpop.f32.mrb[86].mxu1  ;;  %11608 = vmatprep.mubr.bf16.mxu0 %v21511_v59 }
 0x8d2   : > { %v9964_v26 = vadd.f32 %v21256_v5, %v8973_v10  ;;  %v8975_v29 = vpop.f32.mrb[87].mxu1  ;;  %11609 = vmatmul.mubr.bf16.gmra.mrb[144].mxu0 %v21509_v63  ;;  %v10150_v15 = vmax.f32 %v9958_v38, 0.0 }
 0x8d3   : > { %v9965_v9 = vadd.f32 %v21261_v41, %v8975_v29  ;;  %v10151_v21 = vmax.f32 %v9959_v25, 0.0 }
 0x8d4   : > { %v10156_v14 = vmax.f32 %v9964_v26, 0.0  ;;  %9690 = vmatmul.mubr.bf16.gmra.mrb[128].mxu1 %v23074_v17 }
 0x8d5   : > { %v10157_v24 = vmax.f32 %v9965_v9, 0.0  ;;  %9699 = vmatprep.mubr.bf16.mxu1 %v23153_v16 }
 0x8d6   : > { %v21521_v7 = vpack.c.bf16 %v10156_v14, %v10150_v15 }
 0x8d7   : > { %v21523_v45 = vpack.c.bf16 %v10157_v24, %v10151_v21  ;;  %v8979_v40 = vpop.f32.mrb[88].mxu1 }
 0x8d8   : > { %v9970_v55 = vadd.f32 %v21256_v5, %v8979_v40  ;;  %v8981_v4 = vpop.f32.mrb[89].mxu1 }
 0x8d9   : > { %v9971_v10 = vadd.f32 %v21261_v41, %v8981_v4  ;;  %v8983_v63 = vpop.f32.mrb[90].mxu1  ;;  %11618 = vmatprep.mubr.bf16.mxu0 %v21523_v45 }
 0x8da   : > { %v9976_v38 = vadd.f32 %v21256_v5, %v8983_v63  ;;  %v8985_v17 = vpop.f32.mrb[91].mxu1  ;;  %11619 = vmatmul.mubr.bf16.gmra.mrb[148].mxu0 %v21521_v7  ;;  %v10162_v26 = vmax.f32 %v9970_v55, 0.0 }
 0x8db   : > { %v9977_v25 = vadd.f32 %v21261_v41, %v8985_v17  ;;  %v10163_v9 = vmax.f32 %v9971_v10, 0.0 }
 0x8dc   : > { %v10168_v29 = vmax.f32 %v9976_v38, 0.0  ;;  %9700 = vmatmul.mubr.bf16.gmra.mrb[132].mxu1 %v23076_v13 }
 0x8dd   : > { %v10169_v15 = vmax.f32 %v9977_v25, 0.0  ;;  %9709 = vmatprep.mubr.bf16.mxu1 %v23077_v34 }
 0x8de   : > { %v21533_v14 = vpack.c.bf16 %v10168_v29, %v10162_v26 }
 0x8df   : > { %v21535_v21 = vpack.c.bf16 %v10169_v15, %v10163_v9  ;;  %v8989_v24 = vpop.f32.mrb[92].mxu1  ;;  %v23156_v9 = vld [vmem:[#allocation70_spill] sm:$0xff] }
 0x8e0   : > { %v9982_v63 = vadd.f32 %v21256_v5, %v8989_v24  ;;  %v8991_v16 = vpop.f32.mrb[93].mxu1  ;;  %v16943_v15 = vld [vmem:[%s22666_s11 + $0x420] ss:$16 sps:$4 sm:$0xff]   ;;  %v16951_v24 = vld [vmem:[%s22666_s11 + $0x464] ss:$16 sps:$4 sm:$0xff]  }
 0x8e1   : > { %v9983_v40 = vadd.f32 %v21261_v41, %v8991_v16  ;;  %v8993_v4 = vpop.f32.mrb[94].mxu1  ;;  %11628 = vmatprep.mubr.bf16.mxu0 %v21535_v21  ;;  %v16949_v16 = vld [vmem:[%s22666_s11 + $0x460] ss:$16 sps:$4 sm:$0xff]  }
 0x8e2   : > { %v9988_v55 = vadd.f32 %v21256_v5, %v8993_v4  ;;  %v8995_v13 = vpop.f32.mrb[95].mxu1  ;;  %11629 = vmatmul.mubr.bf16.gmra.mrb[152].mxu0 %v21533_v14  ;;  %v10174_v10 = vmax.f32 %v9982_v63, 0.0  ;;  %v23154_v5 = vld [vmem:[#allocation68_spill] sm:$0xff]  ;;  %v23157_v63 = vld [vmem:[#allocation67_spill] sm:$0xff] }
 0x8e3   : > { %v9989_v34 = vadd.f32 %v21261_v41, %v8995_v13  ;;  %v10175_v17 = vmax.f32 %v9983_v40, 0.0  ;;  %v23155_v41 = vld [vmem:[#allocation65_spill] sm:$0xff]  ;;  %v16952_v40 = vld [vmem:[%s22666_s11 + $0x480] ss:$16 sps:$4 sm:$0xff]   ;;  %v16957_v4 = vld [vmem:[%s22666_s11 + $0x4a4] ss:$16 sps:$4 sm:$0xff]  }
 0x8e4   : > { %v10180_v38 = vmax.f32 %v9988_v55, 0.0  ;;  %9710 = vmatmul.mubr.bf16.gmra.mrb[136].mxu1 %v23078_v57  ;;  %v16940_v57 = vld [vmem:[%s22666_s11 + $0x400] ss:$16 sps:$4 sm:$0xff]   ;;  %v23159_v55 = vld [vmem:[#allocation69_spill] sm:$0xff] }
 0x8e5   : > { %v10181_v25 = vmax.f32 %v9989_v34, 0.0  ;;  %9719 = vmatprep.mubr.bf16.mxu1 %v23079_v60  ;;  %v16945_v60 = vld [vmem:[%s22666_s11 + $0x424] ss:$16 sps:$4 sm:$0xff]   ;;  %v16955_v13 = vld [vmem:[%s22666_s11 + $0x4a0] ss:$16 sps:$4 sm:$0xff]  }
 0x8e6   : > { %v21545_v26 = vpack.c.bf16 %v10180_v38, %v10174_v10  ;;  %v16958_v34 = vld [vmem:[%s22666_s11 + $0x4c0] ss:$16 sps:$4 sm:$0xff]   ;;  %v16963_v10 = vld [vmem:[%s22666_s11 + $0x4e4] ss:$16 sps:$4 sm:$0xff]   ;;  %v23161_v38 = vld [vmem:[#allocation71_spill] sm:$0xff] }
 0x8e7   : > { %v21547_v29 = vpack.c.bf16 %v10181_v25, %v10175_v17  ;;  %v16961_v17 = vld [vmem:[%s22666_s11 + $0x4e0] ss:$16 sps:$4 sm:$0xff]  }
 0x8e8   : > { %v16964_v25 = vld [vmem:[%s22666_s11 + $0x500] ss:$16 sps:$4 sm:$0xff]  }
 0x8e9   : > { %11638 = vmatprep.mubr.bf16.mxu0 %v21547_v29 }
 0x8ea   : > { %11639 = vmatmul.mubr.bf16.gmra.mrb[156].mxu0 %v21545_v26 }
 0x8eb   : > { %11681 = vmatprep.mubr.bf16.mxu0 %v23154_v5 }
 0x8ec   : > { %9720 = vmatmul.mubr.bf16.gmra.mrb[140].mxu1 %v23080_v27  ;;  %v16948_v27 = vld [vmem:[%s22666_s11 + $0x444] ss:$16 sps:$4 sm:$0xff]  }
 0x8ed   : > { %9729 = vmatprep.mubr.bf16.mxu1 %v23081_v37  ;;  %v16946_v37 = vld [vmem:[%s22666_s11 + $0x440] ss:$16 sps:$4 sm:$0xff]  }
 0x8f2   : > { %11682 = vmatmul.mubr.bf16.vlgmr.msra.gmra.mrb[96].mxu0 %v23155_v41 }
 0x8f3   : > { %11691 = vmatprep.mubr.bf16.mxu0 %v23156_v9  ;;  %11843 = vmatpush1.bf16.msra.mxu0 %v16940_v57  ;;  %v16969_v57 = vld [vmem:[%s22666_s11 + $0x524] ss:$16 sps:$4 sm:$0xff]  }
 0x8f4   : > { %9730 = vmatmul.mubr.bf16.gmra.mrb[144].mxu1 %v23082_v20  ;;  %11844 = vmatprep.subr.bf16.mxu0 %v16945_v60  ;;  %v23158_v20 = vld [vmem:[#allocation72_spill] sm:$0xff]  ;;  %v23163_v60 = vld [vmem:[#allocation73_spill] sm:$0xff] }
 0x8f5   : > { %9739 = vmatprep.mubr.bf16.mxu1 %v23083_v47  ;;  %v16954_v47 = vld [vmem:[%s22666_s11 + $0x484] ss:$16 sps:$4 sm:$0xff]  }
 0x8f7   : > { %11845 = vmatpush1.bf16.msra.mxu0 %v16943_v15  ;;  %v23164_v15 = vld [vmem:[#allocation76_spill] sm:$0xff] }
 0x8f8   : > { %11846 = vmatprep.subr.bf16.mxu0 %v16948_v27  ;;  %v16972_v27 = vld [vmem:[%s22666_s11 + $0x544] ss:$16 sps:$4 sm:$0xff]  }
 0x8fa   : > { %11692 = vmatmul.mubr.bf16.gmra.mrb[100].mxu0 %v23157_v63 }
 0x8fb   : > { %11701 = vmatprep.mubr.bf16.mxu0 %v23158_v20  ;;  %11847 = vmatpush1.bf16.msra.mxu0 %v16946_v37  ;;  %v16970_v37 = vld [vmem:[%s22666_s11 + $0x540] ss:$16 sps:$4 sm:$0xff]  }
 0x8fc   : > { %9740 = vmatmul.mubr.bf16.gmra.mrb[148].mxu1 %v23084_v48  ;;  %11848 = vmatprep.subr.bf16.mxu0 %v16951_v24  ;;  %v23160_v48 = vld [vmem:[#allocation74_spill] sm:$0xff] }
 0x8fd   : > { %9749 = vmatprep.mubr.bf16.mxu1 %v23085_v1  ;;  %v16960_v1 = vld [vmem:[%s22666_s11 + $0x4c4] ss:$16 sps:$4 sm:$0xff]  }
 0x8fe   : > { %v16975_v24 = vld [vmem:[%s22666_s11 + $0x564] ss:$16 sps:$4 sm:$0xff]  }
 0x8ff   : > { %11849 = vmatpush1.bf16.msra.mxu0 %v16949_v16  ;;  %v23165_v16 = vld [vmem:[#allocation77_spill] sm:$0xff] }
 0x900   : > { %11850 = vmatprep.subr.bf16.mxu0 %v16954_v47  ;;  %v23166_v47 = vld [vmem:[#allocation78_spill] sm:$0xff] }
 0x902   : > { %11702 = vmatmul.mubr.bf16.gmra.mrb[104].mxu0 %v23159_v55 }
 0x903   : > { %11711 = vmatprep.mubr.bf16.mxu0 %v23160_v48  ;;  %11851 = vmatpush1.bf16.msra.mxu0 %v16952_v40  ;;  %v16973_v40 = vld [vmem:[%s22666_s11 + $0x560] ss:$16 sps:$4 sm:$0xff]  }
 0x904   : > { %9750 = vmatmul.mubr.bf16.gmra.mrb[152].mxu1 %v23086_v22  ;;  %11852 = vmatprep.subr.bf16.mxu0 %v16957_v4  ;;  %v23162_v22 = vld [vmem:[#allocation75_spill] sm:$0xff]  ;;  %v16978_v4 = vld [vmem:[%s22666_s11 + $0x584] ss:$16 sps:$4 sm:$0xff]  }
 0x905   : > { %9759 = vmatprep.mubr.bf16.mxu1 %v23087_v36  ;;  %v16966_v36 = vld [vmem:[%s22666_s11 + $0x504] ss:$16 sps:$4 sm:$0xff]  }
 0x907   : > { %11853 = vmatpush1.bf16.msra.mxu0 %v16955_v13  ;;  %v16976_v13 = vld [vmem:[%s22666_s11 + $0x580] ss:$16 sps:$4 sm:$0xff]  }
 0x908   : > { %11854 = vmatprep.subr.bf16.mxu0 %v16960_v1  ;;  %v16981_v1 = vld [vmem:[%s22666_s11 + $0x5a4] ss:$16 sps:$4 sm:$0xff]  }
 0x90a   : > { %11712 = vmatmul.mubr.bf16.gmra.mrb[108].mxu0 %v23161_v38 }
 0x90b   : > { %11721 = vmatprep.mubr.bf16.mxu0 %v23162_v22  ;;  %11855 = vmatpush1.bf16.msra.mxu0 %v16958_v34  ;;  %v23167_v34 = vld [vmem:[#allocation79_spill] sm:$0xff] }
 0x90c   : > { %9760 = vmatmul.mubr.bf16.gmra.mrb[156].mxu1 %v23088_v49  ;;  %11856 = vmatprep.subr.bf16.mxu0 %v16963_v10  ;;  %v16967_v49 = vld [vmem:[%s22666_s11 + $0x520] ss:$16 sps:$4 sm:$0xff]  }
 0x90d   : > { %v23168_v10 = vld [vmem:[#allocation80_spill] sm:$0xff] }
 0x90f   : > { %11857 = vmatpush1.bf16.msra.mxu0 %v16961_v17  ;;  %v16979_v17 = vld [vmem:[%s22666_s11 + $0x5a0] ss:$16 sps:$4 sm:$0xff]  }
 0x910   : > { %11858 = vmatprep.subr.bf16.mxu0 %v16966_v36  ;;  %v16984_v36 = vld [vmem:[%s22666_s11 + $0x5c4] ss:$16 sps:$4 sm:$0xff]  }
 0x912   : > { %11722 = vmatmul.mubr.bf16.gmra.mrb[112].mxu0 %v23163_v60 }
 0x913   : > { %11731 = vmatprep.mubr.bf16.mxu0 %v23164_v15  ;;  %11859 = vmatpush1.bf16.msra.mxu0 %v16964_v25  ;;  %v16982_v25 = vld [vmem:[%s22666_s11 + $0x5c0] ss:$16 sps:$4 sm:$0xff]  }
 0x914   : > { %11860 = vmatprep.subr.bf16.mxu0 %v16969_v57  ;;  %v16987_v57 = vld [vmem:[%s22666_s11 + $0x5e4] ss:$16 sps:$4 sm:$0xff]  }
 0x917   : > { %11861 = vmatpush1.bf16.msra.mxu0 %v16967_v49  ;;  %v23169_v49 = vld [vmem:[#allocation81_spill] sm:$0xff] }
 0x918   : > { %11862 = vmatprep.subr.bf16.mxu0 %v16972_v27  ;;  %v23170_v27 = vld [vmem:[#allocation82_spill] sm:$0xff] }
 0x91a   : > { %11732 = vmatmul.mubr.bf16.gmra.mrb[116].mxu0 %v23165_v16 }
 0x91b   : > { %11741 = vmatprep.mubr.bf16.mxu0 %v23166_v47  ;;  %11863 = vmatpush1.bf16.msra.mxu0 %v16970_v37  ;;  %v16985_v37 = vld [vmem:[%s22666_s11 + $0x5e0] ss:$16 sps:$4 sm:$0xff]  }
 0x91c   : > { %11864 = vmatprep.subr.bf16.mxu0 %v16975_v24  ;;  %v16990_v24 = vld [vmem:[%s22666_s11 + $0xc] ss:$16 sps:$4 sm:$0xff]  }
 0x91f   : > { %11865 = vmatpush1.bf16.msra.mxu0 %v16973_v40  ;;  %v23171_v40 = vld [vmem:[#allocation83_spill] sm:$0xff] }
 0x920   : > { %11866 = vmatprep.subr.bf16.mxu0 %v16978_v4  ;;  %v23172_v4 = vld [vmem:[#allocation84_spill] sm:$0xff] }
 0x922   : > { %11742 = vmatmul.mubr.bf16.gmra.mrb[120].mxu0 %v23167_v34 }
 0x923   : > { %11751 = vmatprep.mubr.bf16.mxu0 %v23168_v10  ;;  %11867 = vmatpush1.bf16.msra.mxu0 %v16976_v13  ;;  %v23173_v13 = vld [vmem:[#allocation7_spill] sm:$0xff] }
 0x924   : > { %11868 = vmatprep.subr.bf16.mxu0 %v16981_v1  ;;  %v23174_v1 = vld [vmem:[#allocation9_spill] sm:$0xff] }
 0x927   : > { %11869 = vmatpush1.bf16.msra.mxu0 %v16979_v17  ;;  %v23175_v17 = vld [vmem:[#allocation8_spill] sm:$0xff] }
 0x928   : > { %11870 = vmatprep.subr.bf16.mxu0 %v16984_v36  ;;  %v23176_v36 = vld [vmem:[#allocation11_spill] sm:$0xff] }
 0x92a   : > { %11752 = vmatmul.mubr.bf16.gmra.mrb[124].mxu0 %v23169_v49 }
 0x92b   : > { %11761 = vmatprep.mubr.bf16.mxu0 %v23170_v27  ;;  %11871 = vmatpush1.bf16.msra.mxu0 %v16982_v25  ;;  %v23177_v25 = vld [vmem:[#allocation10_spill] sm:$0xff]  ;;  %v23179_v27 = vld [vmem:[#allocation12_spill] sm:$0xff] }
 0x92c   : > { %11872 = vmatprep.subr.bf16.mxu0 %v16987_v57  ;;  %v23178_v57 = vld [vmem:[#allocation13_spill] sm:$0xff] }
 0x92f   : > { %11873 = vmatpush1.bf16.msra.mxu0 %v16985_v37  ;;  %v23180_v37 = vld [vmem:[#allocation17_spill] sm:$0xff] }
 0x930   : > { %12035 = vmatprep.subr.bf16.mxu0 %v16990_v24  ;;  %v23181_v24 = vld [vmem:[#allocation15_spill] sm:$0xff] }
 0x932   : > { %11762 = vmatmul.mubr.bf16.gmra.mrb[128].mxu0 %v23171_v40 }
 0x933   : > { %11771 = vmatprep.mubr.bf16.mxu0 %v23172_v4  ;;  %v23182_v4 = vld [vmem:[#allocation18_spill] sm:$0xff] }
 0x93a   : > { %11772 = vmatmul.mubr.bf16.gmra.mrb[132].mxu0 %v23173_v13  ;;  %v9790_v13 = vsub.s32 4, %v23182_v4 }
 0x93b   : > { %11781 = vmatprep.mubr.bf16.mxu0 %v23174_v1  ;;  %v9794_v1 = vsub.s32 5, %v23182_v4 }
 0x942   : > { %11782 = vmatmul.mubr.bf16.gmra.mrb[136].mxu0 %v23175_v17 }
 0x943   : > { %11791 = vmatprep.mubr.bf16.mxu0 %v23176_v36 }
 0x94a   : > { %11792 = vmatmul.mubr.bf16.gmra.mrb[140].mxu0 %v23177_v25 }
 0x94b   : > { %11801 = vmatprep.mubr.bf16.mxu0 %v23178_v57  ;;  %v17167_v57 = vld [vmem:[%s22665_s10] sm:$0x3f] }
 0x94c   : > { %v21692_v25 = vrot.slane %v17167_v57, %v9790_v13 }
 0x952   : > { %11802 = vmatmul.mubr.bf16.gmra.mrb[144].mxu0 %v23179_v27  ;;  %v21694_v27 = vrot.slane %v17167_v57, %v9794_v1 }
 0x953   : > { %11811 = vmatprep.mubr.bf16.mxu0 %v23180_v37 }
 0x95a   : > { %11812 = vmatmul.mubr.bf16.gmra.mrb[148].mxu0 %v23181_v24 }
 0x95b   : > { %11821 = vmatprep.mubr.bf16.mxu0 %v21109_v6 }
 0x962   : > { %11822 = vmatmul.mubr.bf16.gmra.mrb[152].mxu0 %v21107_v44 }
 0x963   : > { %11831 = vmatprep.mubr.bf16.mxu0 %v21119_v30 }
 0x967   : > { %v9611_v37 = vpop.f32.mrb[96].mxu1 }
 0x968   : > { %v9806_v24 = vadd.f32 %v21692_v25, %v9611_v37  ;;  %v9613_v6 = vpop.f32.mrb[97].mxu1 }
 0x969   : > { %v9807_v36 = vadd.f32 %v21694_v27, %v9613_v6  ;;  %v9615_v17 = vpop.f32.mrb[98].mxu1  ;;  %v16988_v6 = vld [vmem:[%s22666_s11 + $0x8] ss:$16 sps:$4 sm:$0xff]  }
 0x96a   : > { %v9812_v4 = vadd.f32 %v21692_v25, %v9615_v17  ;;  %v9617_v44 = vpop.f32.mrb[99].mxu1  ;;  %11832 = vmatmul.mubr.bf16.gmra.mrb[156].mxu0 %v21117_v0  ;;  %v9998_v40 = vmax.f32 %v9806_v24, 0.0 }
 0x96b   : > { %v9813_v30 = vadd.f32 %v21694_v27, %v9617_v44  ;;  %v9999_v13 = vmax.f32 %v9807_v36, 0.0  ;;  %v16993_v44 = vld [vmem:[%s22666_s11 + $0x2c] ss:$16 sps:$4 sm:$0xff]  }
 0x96c   : > { %v10004_v49 = vmax.f32 %v9812_v4, 0.0 }
 0x96d   : > { %v10005_v10 = vmax.f32 %v9813_v30, 0.0 }
 0x96e   : > { %v21701_v1 = vpack.c.bf16 %v10004_v49, %v9998_v40  ;;  %v16991_v40 = vld [vmem:[%s22666_s11 + $0x28] ss:$16 sps:$4 sm:$0xff]  }
 0x96f   : > { %v21703_v57 = vpack.c.bf16 %v10005_v10, %v9999_v13  ;;  %v9621_v37 = vpop.f32.mrb[100].mxu1 }
 0x970   : > { %23183 = vst [vmem:[#allocation42_spill] sm:$0xff] %v21701_v1  ;;  %v9818_v17 = vadd.f32 %v21692_v25, %v9621_v37  ;;  %v9623_v34 = vpop.f32.mrb[101].mxu1 }
 0x971   : > { %23184 = vst [vmem:[#allocation41_spill] sm:$0xff] %v21703_v57  ;;  %v9819_v24 = vadd.f32 %v21694_v27, %v9623_v34  ;;  %v9625_v36 = vpop.f32.mrb[102].mxu1  ;;  %11874 = vmatprep.mubr.bf16.mxu0 %v21703_v57  ;;  %v16996_v34 = vld [vmem:[%s22666_s11 + $0x4c] ss:$16 sps:$4 sm:$0xff]  }
 0x972   : > { %v9824_v30 = vadd.f32 %v21692_v25, %v9625_v36  ;;  %v9627_v10 = vpop.f32.mrb[103].mxu1  ;;  %11875 = vmatmul.mubr.bf16.vlgmr.msra.gmra.mrb[96].mxu0 %v21701_v1  ;;  %v10010_v4 = vmax.f32 %v9818_v17, 0.0 }
 0x973   : > { %v9825_v49 = vadd.f32 %v21694_v27, %v9627_v10  ;;  %12036 = vmatpush1.bf16.msra.mxu0 %v16988_v6  ;;  %v10011_v37 = vmax.f32 %v9819_v24, 0.0  ;;  %v16994_v6 = vld [vmem:[%s22666_s11 + $0x48] ss:$16 sps:$4 sm:$0xff]  }
 0x974   : > { %v10016_v13 = vmax.f32 %v9824_v30, 0.0  ;;  %12037 = vmatprep.subr.bf16.mxu0 %v16993_v44  ;;  %v16999_v44 = vld [vmem:[%s22666_s11 + $0x6c] ss:$16 sps:$4 sm:$0xff]  }
 0x975   : > { %v10017_v57 = vmax.f32 %v9825_v49, 0.0 }
 0x976   : > { %v21723_v36 = vpack.c.bf16 %v10016_v13, %v10010_v4 }
 0x977   : > { %v21725_v0 = vpack.c.bf16 %v10017_v57, %v10011_v37  ;;  %v9631_v1 = vpop.f32.mrb[104].mxu1  ;;  %12038 = vmatpush1.bf16.msra.mxu0 %v16991_v40 }
 0x978   : > { %23185 = vst [vmem:[#allocation44_spill] sm:$0xff] %v21723_v36  ;;  %v9830_v17 = vadd.f32 %v21692_v25, %v9631_v1  ;;  %v9633_v30 = vpop.f32.mrb[105].mxu1  ;;  %12039 = vmatprep.subr.bf16.mxu0 %v16996_v34  ;;  %v16997_v1 = vld [vmem:[%s22666_s11 + $0x68] ss:$16 sps:$4 sm:$0xff]   ;;  %v17002_v34 = vld [vmem:[%s22666_s11 + $0x8c] ss:$16 sps:$4 sm:$0xff]  }
 0x979   : > { %23186 = vst [vmem:[#allocation43_spill] sm:$0xff] %v21725_v0  ;;  %v9831_v24 = vadd.f32 %v21694_v27, %v9633_v30  ;;  %v9635_v10 = vpop.f32.mrb[106].mxu1  ;;  %11884 = vmatprep.mubr.bf16.mxu0 %v21725_v0 }
 0x97a   : > { %v9836_v57 = vadd.f32 %v21692_v25, %v9635_v10  ;;  %v9637_v49 = vpop.f32.mrb[107].mxu1  ;;  %11885 = vmatmul.mubr.bf16.gmra.mrb[100].mxu0 %v21723_v36  ;;  %v10022_v4 = vmax.f32 %v9830_v17, 0.0 }
 0x97b   : > { %v9837_v40 = vadd.f32 %v21694_v27, %v9637_v49  ;;  %12040 = vmatpush1.bf16.msra.mxu0 %v16994_v6  ;;  %v10023_v37 = vmax.f32 %v9831_v24, 0.0  ;;  %v17000_v6 = vld [vmem:[%s22666_s11 + $0x88] ss:$16 sps:$4 sm:$0xff]  }
 0x97c   : > { %v10028_v13 = vmax.f32 %v9836_v57, 0.0  ;;  %12041 = vmatprep.subr.bf16.mxu0 %v16999_v44  ;;  %v17005_v44 = vld [vmem:[%s22666_s11 + $0xac] ss:$16 sps:$4 sm:$0xff]  }
 0x97d   : > { %v10029_v30 = vmax.f32 %v9837_v40, 0.0 }
 0x97e   : > { %v21745_v10 = vpack.c.bf16 %v10028_v13, %v10022_v4 }
 0x97f   : > { %v21747_v0 = vpack.c.bf16 %v10029_v30, %v10023_v37  ;;  %v9641_v36 = vpop.f32.mrb[108].mxu1  ;;  %12042 = vmatpush1.bf16.msra.mxu0 %v16997_v1  ;;  %v17008_v37 = vld [vmem:[%s22666_s11 + $0xcc] ss:$16 sps:$4 sm:$0xff]  }
 0x980   : > { %23187 = vst [vmem:[#allocation46_spill] sm:$0xff] %v21745_v10  ;;  %v9842_v17 = vadd.f32 %v21692_v25, %v9641_v36  ;;  %v9643_v57 = vpop.f32.mrb[109].mxu1  ;;  %12043 = vmatprep.subr.bf16.mxu0 %v17002_v34  ;;  %v17003_v36 = vld [vmem:[%s22666_s11 + $0xa8] ss:$16 sps:$4 sm:$0xff]  }
 0x981   : > { %23188 = vst [vmem:[#allocation45_spill] sm:$0xff] %v21747_v0  ;;  %v9843_v24 = vadd.f32 %v21694_v27, %v9643_v57  ;;  %v9645_v49 = vpop.f32.mrb[110].mxu1  ;;  %11894 = vmatprep.mubr.bf16.mxu0 %v21747_v0 }
 0x982   : > { %v9848_v40 = vadd.f32 %v21692_v25, %v9645_v49  ;;  %v9647_v1 = vpop.f32.mrb[111].mxu1  ;;  %11895 = vmatmul.mubr.bf16.gmra.mrb[104].mxu0 %v21745_v10  ;;  %v10034_v13 = vmax.f32 %v9842_v17, 0.0 }
 0x983   : > { %v9849_v4 = vadd.f32 %v21694_v27, %v9647_v1  ;;  %12044 = vmatpush1.bf16.msra.mxu0 %v17000_v6  ;;  %v10035_v30 = vmax.f32 %v9843_v24, 0.0  ;;  %v17006_v6 = vld [vmem:[%s22666_s11 + $0xc8] ss:$16 sps:$4 sm:$0xff]  }
 0x984   : > { %v10040_v34 = vmax.f32 %v9848_v40, 0.0  ;;  %12045 = vmatprep.subr.bf16.mxu0 %v17005_v44  ;;  %v17011_v44 = vld [vmem:[%s22666_s11 + $0xec] ss:$16 sps:$4 sm:$0xff]  }
 0x985   : > { %v10041_v57 = vmax.f32 %v9849_v4, 0.0 }
 0x986   : > { %v21767_v49 = vpack.c.bf16 %v10040_v34, %v10034_v13 }
 0x987   : > { %v21769_v0 = vpack.c.bf16 %v10041_v57, %v10035_v30  ;;  %v9651_v10 = vpop.f32.mrb[112].mxu1  ;;  %12046 = vmatpush1.bf16.msra.mxu0 %v17003_v36  ;;  %v17014_v30 = vld [vmem:[%s22666_s11 + $0x10c] ss:$16 sps:$4 sm:$0xff]  }
 0x988   : > { %23189 = vst [vmem:[#allocation48_spill] sm:$0xff] %v21767_v49  ;;  %v9854_v17 = vadd.f32 %v21692_v25, %v9651_v10  ;;  %v9653_v40 = vpop.f32.mrb[113].mxu1  ;;  %12047 = vmatprep.subr.bf16.mxu0 %v17008_v37  ;;  %v17009_v10 = vld [vmem:[%s22666_s11 + $0xe8] ss:$16 sps:$4 sm:$0xff]  }
 0x989   : > { %23190 = vst [vmem:[#allocation47_spill] sm:$0xff] %v21769_v0  ;;  %v9855_v24 = vadd.f32 %v21694_v27, %v9653_v40  ;;  %v9655_v1 = vpop.f32.mrb[114].mxu1  ;;  %11904 = vmatprep.mubr.bf16.mxu0 %v21769_v0 }
 0x98a   : > { %v9860_v4 = vadd.f32 %v21692_v25, %v9655_v1  ;;  %v9657_v36 = vpop.f32.mrb[115].mxu1  ;;  %11905 = vmatmul.mubr.bf16.gmra.mrb[108].mxu0 %v21767_v49  ;;  %v10046_v34 = vmax.f32 %v9854_v17, 0.0 }
 0x98b   : > { %v9861_v13 = vadd.f32 %v21694_v27, %v9657_v36  ;;  %12048 = vmatpush1.bf16.msra.mxu0 %v17006_v6  ;;  %v10047_v57 = vmax.f32 %v9855_v24, 0.0  ;;  %v17012_v6 = vld [vmem:[%s22666_s11 + $0x108] ss:$16 sps:$4 sm:$0xff]  }
 0x98c   : > { %v10052_v37 = vmax.f32 %v9860_v4, 0.0  ;;  %12049 = vmatprep.subr.bf16.mxu0 %v17011_v44  ;;  %v17017_v44 = vld [vmem:[%s22666_s11 + $0x12c] ss:$16 sps:$4 sm:$0xff]  }
 0x98d   : > { %v10053_v40 = vmax.f32 %v9861_v13, 0.0 }
 0x98e   : > { %v21789_v1 = vpack.c.bf16 %v10052_v37, %v10046_v34 }
 0x98f   : > { %v21791_v0 = vpack.c.bf16 %v10053_v40, %v10047_v57  ;;  %v9661_v49 = vpop.f32.mrb[116].mxu1  ;;  %12050 = vmatpush1.bf16.msra.mxu0 %v17009_v10  ;;  %v17020_v57 = vld [vmem:[%s22666_s11 + $0x14c] ss:$16 sps:$4 sm:$0xff]  }
 0x990   : > { %23191 = vst [vmem:[#allocation50_spill] sm:$0xff] %v21789_v1  ;;  %v9866_v17 = vadd.f32 %v21692_v25, %v9661_v49  ;;  %v9663_v4 = vpop.f32.mrb[117].mxu1  ;;  %12051 = vmatprep.subr.bf16.mxu0 %v17014_v30  ;;  %v17015_v49 = vld [vmem:[%s22666_s11 + $0x128] ss:$16 sps:$4 sm:$0xff]  }
 0x991   : > { %23192 = vst [vmem:[#allocation49_spill] sm:$0xff] %v21791_v0  ;;  %v9867_v24 = vadd.f32 %v21694_v27, %v9663_v4  ;;  %v9665_v36 = vpop.f32.mrb[118].mxu1  ;;  %11914 = vmatprep.mubr.bf16.mxu0 %v21791_v0 }
 0x992   : > { %v9872_v13 = vadd.f32 %v21692_v25, %v9665_v36  ;;  %v9667_v10 = vpop.f32.mrb[119].mxu1  ;;  %11915 = vmatmul.mubr.bf16.gmra.mrb[112].mxu0 %v21789_v1  ;;  %v10058_v37 = vmax.f32 %v9866_v17, 0.0 }
 0x993   : > { %v9873_v34 = vadd.f32 %v21694_v27, %v9667_v10  ;;  %12052 = vmatpush1.bf16.msra.mxu0 %v17012_v6  ;;  %v10059_v40 = vmax.f32 %v9867_v24, 0.0  ;;  %v17018_v6 = vld [vmem:[%s22666_s11 + $0x148] ss:$16 sps:$4 sm:$0xff]  }
 0x994   : > { %v10064_v30 = vmax.f32 %v9872_v13, 0.0  ;;  %12053 = vmatprep.subr.bf16.mxu0 %v17017_v44  ;;  %v17023_v44 = vld [vmem:[%s22666_s11 + $0x16c] ss:$16 sps:$4 sm:$0xff]  }
 0x995   : > { %v10065_v4 = vmax.f32 %v9873_v34, 0.0 }
 0x996   : > { %v21811_v36 = vpack.c.bf16 %v10064_v30, %v10058_v37 }
 0x997   : > { %v21813_v0 = vpack.c.bf16 %v10065_v4, %v10059_v40  ;;  %v9671_v1 = vpop.f32.mrb[120].mxu1  ;;  %12054 = vmatpush1.bf16.msra.mxu0 %v17015_v49  ;;  %v17026_v40 = vld [vmem:[%s22666_s11 + $0x18c] ss:$16 sps:$4 sm:$0xff]  }
 0x998   : > { %23193 = vst [vmem:[#allocation51_spill] sm:$0xff] %v21811_v36  ;;  %v9878_v17 = vadd.f32 %v21692_v25, %v9671_v1  ;;  %v9673_v13 = vpop.f32.mrb[121].mxu1  ;;  %12055 = vmatprep.subr.bf16.mxu0 %v17020_v57  ;;  %v17021_v1 = vld [vmem:[%s22666_s11 + $0x168] ss:$16 sps:$4 sm:$0xff]  }
 0x999   : > { %23194 = vst [vmem:[#allocation54_spill] sm:$0xff] %v21813_v0  ;;  %v9879_v24 = vadd.f32 %v21694_v27, %v9673_v13  ;;  %v9675_v10 = vpop.f32.mrb[122].mxu1  ;;  %11924 = vmatprep.mubr.bf16.mxu0 %v21813_v0 }
 0x99a   : > { %v9884_v34 = vadd.f32 %v21692_v25, %v9675_v10  ;;  %v9677_v49 = vpop.f32.mrb[123].mxu1  ;;  %11925 = vmatmul.mubr.bf16.gmra.mrb[116].mxu0 %v21811_v36  ;;  %v10070_v30 = vmax.f32 %v9878_v17, 0.0 }
 0x99b   : > { %v9885_v37 = vadd.f32 %v21694_v27, %v9677_v49  ;;  %12056 = vmatpush1.bf16.msra.mxu0 %v17018_v6  ;;  %v10071_v4 = vmax.f32 %v9879_v24, 0.0  ;;  %v17024_v6 = vld [vmem:[%s22666_s11 + $0x188] ss:$16 sps:$4 sm:$0xff]  }
 0x99c   : > { %v10076_v57 = vmax.f32 %v9884_v34, 0.0  ;;  %12057 = vmatprep.subr.bf16.mxu0 %v17023_v44  ;;  %v17029_v44 = vld [vmem:[%s22666_s11 + $0x1ac] ss:$16 sps:$4 sm:$0xff]  }
 0x99d   : > { %v10077_v13 = vmax.f32 %v9885_v37, 0.0 }
 0x99e   : > { %v21833_v10 = vpack.c.bf16 %v10076_v57, %v10070_v30 }
 0x99f   : > { %v21835_v0 = vpack.c.bf16 %v10077_v13, %v10071_v4  ;;  %v9681_v36 = vpop.f32.mrb[124].mxu1  ;;  %12058 = vmatpush1.bf16.msra.mxu0 %v17021_v1  ;;  %v17032_v4 = vld [vmem:[%s22666_s11 + $0x1cc] ss:$16 sps:$4 sm:$0xff]  }
 0x9a0   : > { %23195 = vst [vmem:[#allocation53_spill] sm:$0xff] %v21833_v10  ;;  %v9890_v17 = vadd.f32 %v21692_v25, %v9681_v36  ;;  %v9683_v34 = vpop.f32.mrb[125].mxu1  ;;  %12059 = vmatprep.subr.bf16.mxu0 %v17026_v40  ;;  %v17027_v36 = vld [vmem:[%s22666_s11 + $0x1a8] ss:$16 sps:$4 sm:$0xff]  }
 0x9a1   : > { %23196 = vst [vmem:[#allocation56_spill] sm:$0xff] %v21835_v0  ;;  %v9891_v24 = vadd.f32 %v21694_v27, %v9683_v34  ;;  %v9685_v49 = vpop.f32.mrb[126].mxu1  ;;  %11934 = vmatprep.mubr.bf16.mxu0 %v21835_v0 }
 0x9a2   : > { %v9896_v37 = vadd.f32 %v21692_v25, %v9685_v49  ;;  %v9687_v1 = vpop.f32.mrb[127].mxu1  ;;  %11935 = vmatmul.mubr.bf16.gmra.mrb[120].mxu0 %v21833_v10  ;;  %v10082_v57 = vmax.f32 %v9890_v17, 0.0 }
 0x9a3   : > { %v9897_v30 = vadd.f32 %v21694_v27, %v9687_v1  ;;  %12060 = vmatpush1.bf16.msra.mxu0 %v17024_v6  ;;  %v10083_v13 = vmax.f32 %v9891_v24, 0.0  ;;  %v17030_v6 = vld [vmem:[%s22666_s11 + $0x1c8] ss:$16 sps:$4 sm:$0xff]  }
 0x9a4   : > { %v10088_v40 = vmax.f32 %v9896_v37, 0.0  ;;  %12061 = vmatprep.subr.bf16.mxu0 %v17029_v44  ;;  %v17035_v44 = vld [vmem:[%s22666_s11 + $0x1ec] ss:$16 sps:$4 sm:$0xff]  }
 0x9a5   : > { %v10089_v34 = vmax.f32 %v9897_v30, 0.0 }
 0x9a6   : > { %v21855_v49 = vpack.c.bf16 %v10088_v40, %v10082_v57  ;;  %v17060_v40 = vld [vmem:[%s22668_s13 + $0x40] sm:$0xff]  }
 0x9a7   : > { %v21857_v0 = vpack.c.bf16 %v10089_v34, %v10083_v13  ;;  %v9691_v10 = vpop.f32.mrb[128].mxu1  ;;  %12062 = vmatpush1.bf16.msra.mxu0 %v17027_v36  ;;  %14584 = vmatprep.subr.bf16.mxu1 %v17060_v40 }
 0x9a8   : > { %23197 = vst [vmem:[#allocation55_spill] sm:$0xff] %v21855_v49  ;;  %v9902_v17 = vadd.f32 %v21692_v25, %v9691_v10  ;;  %v9693_v37 = vpop.f32.mrb[129].mxu1  ;;  %12063 = vmatprep.subr.bf16.mxu0 %v17032_v4  ;;  %v17033_v10 = vld [vmem:[%s22666_s11 + $0x1e8] ss:$16 sps:$4 sm:$0xff]   ;;  %v17061_v4 = vld [vmem:[%s22668_s13] sm:$0xff]  }
 0x9a9   : > { %23198 = vst [vmem:[#allocation58_spill] sm:$0xff] %v21857_v0  ;;  %v9903_v24 = vadd.f32 %v21694_v27, %v9693_v37  ;;  %v9695_v1 = vpop.f32.mrb[130].mxu1  ;;  %11944 = vmatprep.mubr.bf16.mxu0 %v21857_v0  ;;  %v17038_v37 = vld [vmem:[%s22666_s11 + $0x20c] ss:$16 sps:$4 sm:$0xff]   ;;  %14585 = vmatpush3.bf16.msra.mxu1 %v17061_v4 }
 0x9aa   : > { %v9908_v30 = vadd.f32 %v21692_v25, %v9695_v1  ;;  %v9697_v36 = vpop.f32.mrb[131].mxu1  ;;  %11945 = vmatmul.mubr.bf16.gmra.mrb[124].mxu0 %v21855_v49  ;;  %v10094_v13 = vmax.f32 %v9902_v17, 0.0 }
 0x9ab   : > { %v9909_v57 = vadd.f32 %v21694_v27, %v9697_v36  ;;  %12064 = vmatpush1.bf16.msra.mxu0 %v17030_v6  ;;  %v10095_v6 = vmax.f32 %v9903_v24, 0.0 }
 0x9ac   : > { %v10100_v34 = vmax.f32 %v9908_v30, 0.0  ;;  %12065 = vmatprep.subr.bf16.mxu0 %v17035_v44 }
 0x9ad   : > { %v10101_v1 = vmax.f32 %v9909_v57, 0.0 }
 0x9ae   : > { %v21883_v36 = vpack.c.bf16 %v10100_v34, %v10094_v13 }
 0x9af   : > { %v21885_v49 = vpack.c.bf16 %v10101_v1, %v10095_v6  ;;  %v9701_v0 = vpop.f32.mrb[132].mxu1  ;;  %12066 = vmatpush1.bf16.msra.mxu0 %v17033_v10  ;;  %v17065_v10 = vld [vmem:[%s22668_s13 + $0x48] sm:$0xff]   ;;  %v17068_v6 = vld [vmem:[%s22668_s13 + $0x10] sm:$0xff]  }
 0x9b0   : > { %23199 = vst [vmem:[#allocation57_spill] sm:$0xff] %v21883_v36  ;;  %v9914_v47 = vadd.f32 %v21692_v25, %v9701_v0  ;;  %v9703_v16 = vpop.f32.mrb[133].mxu1  ;;  %12228 = vmatprep.subr.bf16.mxu0 %v17038_v37  ;;  %v17066_v0 = vld [vmem:[%s22668_s13 + $0x8] sm:$0xff]   ;;  %14586 = vmatprep.subr.bf16.mxu1 %v17065_v10 }
 0x9b1   : > { %v9915_v17 = vadd.f32 %v21694_v27, %v9703_v16  ;;  %v9705_v44 = vpop.f32.mrb[134].mxu1  ;;  %11954 = vmatprep.mubr.bf16.mxu0 %v21885_v49  ;;  %v17067_v16 = vld [vmem:[%s22668_s13 + $0x50] sm:$0xff]   ;;  %14587 = vmatpush3.bf16.msra.mxu1 %v17066_v0  ;;  %v17072_v0 = vld [vmem:[%s22668_s13 + $0x58] sm:$0xff]  }
 0x9b2   : > { %v9920_v24 = vadd.f32 %v21692_v25, %v9705_v44  ;;  %v9707_v30 = vpop.f32.mrb[135].mxu1  ;;  %11955 = vmatmul.mubr.bf16.gmra.mrb[128].mxu0 %v21883_v36  ;;  %v10106_v40 = vmax.f32 %v9914_v47, 0.0  ;;  %14588 = vmatprep.subr.bf16.mxu1 %v17067_v16  ;;  %v17073_v16 = vld [vmem:[%s22668_s13 + $0x18] sm:$0xff]  }
 0x9b3   : > { %v9921_v57 = vadd.f32 %v21694_v27, %v9707_v30  ;;  %v10107_v13 = vmax.f32 %v9915_v17, 0.0 }
 0x9b4   : > { %v10112_v4 = vmax.f32 %v9920_v24, 0.0 }
 0x9b5   : > { %v10113_v34 = vmax.f32 %v9921_v57, 0.0  ;;  %14589 = vmatpush3.bf16.msra.mxu1 %v17068_v6 }
 0x9b6   : > { %v21902_v37 = vpack.c.bf16 %v10112_v4, %v10106_v40  ;;  %14590 = vmatprep.subr.bf16.mxu1 %v17072_v0 }
 0x9b7   : > { %v21907_v1 = vpack.c.bf16 %v10113_v34, %v10107_v13  ;;  %v9711_v44 = vpop.f32.mrb[136].mxu1 }
 0x9b8   : > { %23200 = vst [vmem:[#allocation60_spill] sm:$0xff] %v21902_v37  ;;  %v9926_v30 = vadd.f32 %v21692_v25, %v9711_v44  ;;  %v9713_v36 = vpop.f32.mrb[137].mxu1  ;;  %v17075_v44 = vld [vmem:[%s22668_s13 + $0x20] sm:$0xff]  }
 0x9b9   : > { %23201 = vst [vmem:[#allocation59_spill] sm:$0xff] %v21907_v1  ;;  %v9927_v47 = vadd.f32 %v21694_v27, %v9713_v36  ;;  %v9715_v24 = vpop.f32.mrb[138].mxu1  ;;  %11964 = vmatprep.mubr.bf16.mxu0 %v21907_v1  ;;  %v17074_v36 = vld [vmem:[%s22668_s13 + $0x60] sm:$0xff]   ;;  %14591 = vmatpush3.bf16.msra.mxu1 %v17073_v16  ;;  %v17079_v16 = vld [vmem:[%s22668_s13 + $0x68] sm:$0xff]  }
 0x9ba   : > { %v9932_v17 = vadd.f32 %v21692_v25, %v9715_v24  ;;  %v9717_v57 = vpop.f32.mrb[139].mxu1  ;;  %11965 = vmatmul.mubr.bf16.gmra.mrb[132].mxu0 %v21902_v37  ;;  %v10118_v40 = vmax.f32 %v9926_v30, 0.0  ;;  %14592 = vmatprep.subr.bf16.mxu1 %v17074_v36 }
 0x9bb   : > { %v9933_v10 = vadd.f32 %v21694_v27, %v9717_v57  ;;  %v10119_v13 = vmax.f32 %v9927_v47, 0.0 }
 0x9bc   : > { %v10124_v4 = vmax.f32 %v9932_v17, 0.0 }
 0x9bd   : > { %v10125_v34 = vmax.f32 %v9933_v10, 0.0  ;;  %14593 = vmatpush3.bf16.msra.mxu1 %v17075_v44 }
 0x9be   : > { %v21924_v6 = vpack.c.bf16 %v10124_v4, %v10118_v40  ;;  %14594 = vmatprep.subr.bf16.mxu1 %v17079_v16 }
 0x9bf   : > { %v21929_v24 = vpack.c.bf16 %v10125_v34, %v10119_v13  ;;  %v9721_v57 = vpop.f32.mrb[140].mxu1 }
 0x9c0   : > { %23202 = vst [vmem:[#allocation62_spill] sm:$0xff] %v21924_v6  ;;  %v9938_v37 = vadd.f32 %v21692_v25, %v9721_v57  ;;  %v9723_v1 = vpop.f32.mrb[141].mxu1 }
 0x9c1   : > { %23203 = vst [vmem:[#allocation61_spill] sm:$0xff] %v21929_v24  ;;  %v9939_v30 = vadd.f32 %v21694_v27, %v9723_v1  ;;  %v9725_v17 = vpop.f32.mrb[142].mxu1  ;;  %11974 = vmatprep.mubr.bf16.mxu0 %v21929_v24  ;;  %v17080_v1 = vld [vmem:[%s22668_s13 + $0x28] sm:$0xff]  }
 0x9c2   : > { %v9944_v47 = vadd.f32 %v21692_v25, %v9725_v17  ;;  %v9727_v10 = vpop.f32.mrb[143].mxu1  ;;  %11975 = vmatmul.mubr.bf16.gmra.mrb[136].mxu0 %v21924_v6  ;;  %v10130_v36 = vmax.f32 %v9938_v37, 0.0  ;;  %14595 = vmatpush3.bf16.msra.mxu1 %v17080_v1  ;;  %v17081_v37 = vld [vmem:[%s22668_s13 + $0x70] sm:$0xff]   ;;  %v17086_v1 = vld [vmem:[%s22668_s13 + $0x78] sm:$0xff]  }
 0x9c3   : > { %v9945_v0 = vadd.f32 %v21694_v27, %v9727_v10  ;;  %v10131_v4 = vmax.f32 %v9939_v30, 0.0  ;;  %14596 = vmatprep.subr.bf16.mxu1 %v17081_v37 }
 0x9c4   : > { %v10136_v40 = vmax.f32 %v9944_v47, 0.0 }
 0x9c5   : > { %v10137_v13 = vmax.f32 %v9945_v0, 0.0  ;;  %v17082_v0 = vld [vmem:[%s22668_s13 + $0x30] sm:$0xff]  }
 0x9c6   : > { %v21943_v34 = vpack.c.bf16 %v10136_v40, %v10130_v36  ;;  %14597 = vmatpush3.bf16.msra.mxu1 %v17082_v0 }
 0x9c7   : > { %v21945_v57 = vpack.c.bf16 %v10137_v13, %v10131_v4  ;;  %v9731_v44 = vpop.f32.mrb[144].mxu1  ;;  %14598 = vmatprep.subr.bf16.mxu1 %v17086_v1 }
 0x9c8   : > { %23204 = vst [vmem:[#allocation64_spill] sm:$0xff] %v21943_v34  ;;  %v9950_v17 = vadd.f32 %v21692_v25, %v9731_v44  ;;  %v9733_v10 = vpop.f32.mrb[145].mxu1 }
 0x9c9   : > { %23205 = vst [vmem:[#allocation63_spill] sm:$0xff] %v21945_v57  ;;  %v9951_v30 = vadd.f32 %v21694_v27, %v9733_v10  ;;  %v9735_v47 = vpop.f32.mrb[146].mxu1  ;;  %11984 = vmatprep.mubr.bf16.mxu0 %v21945_v57  ;;  %v17087_v57 = vld [vmem:[%s22668_s13 + $0x38] sm:$0xff]  }
 0x9ca   : > { %v9956_v16 = vadd.f32 %v21692_v25, %v9735_v47  ;;  %v9737_v36 = vpop.f32.mrb[147].mxu1  ;;  %11985 = vmatmul.mubr.bf16.gmra.mrb[140].mxu0 %v21943_v34  ;;  %v10142_v4 = vmax.f32 %v9950_v17, 0.0  ;;  %14599 = vmatpush3.bf16.msra.mxu1 %v17087_v57 }
 0x9cb   : > { %v9957_v40 = vadd.f32 %v21694_v27, %v9737_v36  ;;  %v10143_v44 = vmax.f32 %v9951_v30, 0.0 }
 0x9cc   : > { %v10148_v13 = vmax.f32 %v9956_v16, 0.0 }
 0x9cd   : > { %v10149_v10 = vmax.f32 %v9957_v40, 0.0 }
 0x9ce   : > { %v21965_v47 = vpack.c.bf16 %v10148_v13, %v10142_v4 }
 0x9cf   : > { %v21967_v34 = vpack.c.bf16 %v10149_v10, %v10143_v44  ;;  %v9741_v37 = vpop.f32.mrb[148].mxu1 }
 0x9d0   : > { %23206 = vst [vmem:[#allocation14_spill] sm:$0xff] %v21965_v47  ;;  %v9962_v17 = vadd.f32 %v21692_v25, %v9741_v37  ;;  %v9743_v0 = vpop.f32.mrb[149].mxu1 }
 0x9d1   : > { %23207 = vst [vmem:[#allocation22_spill] sm:$0xff] %v21967_v34  ;;  %v9963_v16 = vadd.f32 %v21694_v27, %v9743_v0  ;;  %v9745_v36 = vpop.f32.mrb[150].mxu1  ;;  %11994 = vmatprep.mubr.bf16.mxu0 %v21967_v34 }
 0x9d2   : > { %v9968_v30 = vadd.f32 %v21692_v25, %v9745_v36  ;;  %v9747_v40 = vpop.f32.mrb[151].mxu1  ;;  %11995 = vmatmul.mubr.bf16.gmra.mrb[144].mxu0 %v21965_v47  ;;  %v10154_v13 = vmax.f32 %v9962_v17, 0.0 }
 0x9d3   : > { %v9969_v4 = vadd.f32 %v21694_v27, %v9747_v40  ;;  %v10155_v44 = vmax.f32 %v9963_v16, 0.0 }
 0x9d4   : > { %v10160_v1 = vmax.f32 %v9968_v30, 0.0 }
 0x9d5   : > { %v10161_v10 = vmax.f32 %v9969_v4, 0.0 }
 0x9d6   : > { %v21975_v57 = vpack.c.bf16 %v10160_v1, %v10154_v13 }
 0x9d7   : > { %v21977_v37 = vpack.c.bf16 %v10161_v10, %v10155_v44  ;;  %v9751_v6 = vpop.f32.mrb[152].mxu1 }
 0x9d8   : > { %23208 = vst [vmem:[#allocation21_spill] sm:$0xff] %v21975_v57  ;;  %v9974_v0 = vadd.f32 %v21692_v25, %v9751_v6  ;;  %v9753_v24 = vpop.f32.mrb[153].mxu1 }
 0x9d9   : > { %23209 = vst [vmem:[#allocation24_spill] sm:$0xff] %v21977_v37  ;;  %v9975_v34 = vadd.f32 %v21694_v27, %v9753_v24  ;;  %v9755_v36 = vpop.f32.mrb[154].mxu1  ;;  %12004 = vmatprep.mubr.bf16.mxu0 %v21977_v37 }
 0x9da   : > { %v9980_v47 = vadd.f32 %v21692_v25, %v9755_v36  ;;  %v9757_v40 = vpop.f32.mrb[155].mxu1  ;;  %12005 = vmatmul.mubr.bf16.gmra.mrb[148].mxu0 %v21975_v57  ;;  %v10166_v16 = vmax.f32 %v9974_v0, 0.0 }
 0x9db   : > { %v9981_v17 = vadd.f32 %v21694_v27, %v9757_v40  ;;  %v10167_v4 = vmax.f32 %v9975_v34, 0.0 }
 0x9dc   : > { %v10172_v30 = vmax.f32 %v9980_v47, 0.0 }
 0x9dd   : > { %v10173_v13 = vmax.f32 %v9981_v17, 0.0 }
 0x9de   : > { %v21985_v1 = vpack.c.bf16 %v10172_v30, %v10166_v16 }
 0x9df   : > { %v21987_v6 = vpack.c.bf16 %v10173_v13, %v10167_v4  ;;  %v9761_v44 = vpop.f32.mrb[156].mxu1  ;;  %v17050_v13 = vld [vmem:[%s22666_s11 + $0x28c] ss:$16 sps:$4 sm:$0xff]  }
 0x9e0   : > { %v9986_v24 = vadd.f32 %v21692_v25, %v9761_v44  ;;  %v9763_v10 = vpop.f32.mrb[157].mxu1  ;;  %v17048_v44 = vld [vmem:[%s22666_s11 + $0x288] ss:$16 sps:$4 sm:$0xff]  }
 0x9e1   : > { %v9987_v37 = vadd.f32 %v21694_v27, %v9763_v10  ;;  %v9765_v36 = vpop.f32.mrb[158].mxu1  ;;  %12014 = vmatprep.mubr.bf16.mxu0 %v21987_v6  ;;  %v17054_v10 = vld [vmem:[%s22666_s11 + $0x2c8] ss:$16 sps:$4 sm:$0xff]  }
 0x9e2   : > { %v9992_v57 = vadd.f32 %v21692_v25, %v9765_v36  ;;  %v9767_v40 = vpop.f32.mrb[159].mxu1  ;;  %12015 = vmatmul.mubr.bf16.gmra.mrb[152].mxu0 %v21985_v1  ;;  %v10178_v47 = vmax.f32 %v9986_v24, 0.0  ;;  %v17036_v25 = vld [vmem:[%s22666_s11 + $0x208] ss:$16 sps:$4 sm:$0xff]   ;;  %v17056_v24 = vld [vmem:[%s22666_s11 + $0x2cc] ss:$16 sps:$4 sm:$0xff]  }
 0x9e3   : > { %v9993_v34 = vadd.f32 %v21694_v27, %v9767_v40  ;;  %v10179_v17 = vmax.f32 %v9987_v37, 0.0  ;;  %v17041_v27 = vld [vmem:[%s22666_s11 + $0x22c] ss:$16 sps:$4 sm:$0xff]   ;;  %v17042_v37 = vld [vmem:[%s22666_s11 + $0x248] ss:$16 sps:$4 sm:$0xff]  }
 0x9e4   : > { %v10184_v0 = vmax.f32 %v9992_v57, 0.0  ;;  %v17039_v57 = vld [vmem:[%s22666_s11 + $0x228] ss:$16 sps:$4 sm:$0xff]   ;;  %v17064_v36 = vld [vmem:[%s22666_s11 + $0x30c] ss:$16 sps:$4 sm:$0xff]  }
 0x9e5   : > { %v10185_v16 = vmax.f32 %v9993_v34, 0.0  ;;  %v17062_v40 = vld [vmem:[%s22666_s11 + $0x308] ss:$16 sps:$4 sm:$0xff]   ;;  %v17078_v34 = vld [vmem:[%s22666_s11 + $0x34c] ss:$16 sps:$4 sm:$0xff]  }
 0x9e6   : > { %v21995_v30 = vpack.c.bf16 %v10184_v0, %v10178_v47  ;;  %v17076_v47 = vld [vmem:[%s22666_s11 + $0x348] ss:$16 sps:$4 sm:$0xff]   ;;  %v17090_v0 = vld [vmem:[%s22666_s11 + $0x38c] ss:$16 sps:$4 sm:$0xff]  }
 0x9e7   : > { %v21997_v4 = vpack.c.bf16 %v10185_v16, %v10179_v17  ;;  %v17088_v17 = vld [vmem:[%s22666_s11 + $0x388] ss:$16 sps:$4 sm:$0xff]   ;;  %v17096_v16 = vld [vmem:[%s22666_s11 + $0x3cc] ss:$16 sps:$4 sm:$0xff]  }
 0x9e9   : > { %12024 = vmatprep.mubr.bf16.mxu0 %v21997_v4 }
 0x9ea   : > { %12025 = vmatmul.mubr.bf16.gmra.mrb[156].mxu0 %v21995_v30 }
 0x9eb   : > { %12067 = vmatprep.mubr.bf16.mxu0 %v21271_v23  ;;  %v17044_v23 = vld [vmem:[%s22666_s11 + $0x24c] ss:$16 sps:$4 sm:$0xff]  }
 0x9f2   : > { %12068 = vmatmul.mubr.bf16.vlgmr.msra.gmra.mrb[160].mxu0 %v21269_v46  ;;  %v17047_v46 = vld [vmem:[%s22666_s11 + $0x26c] ss:$16 sps:$4 sm:$0xff]  }
 0x9f3   : > { %12077 = vmatprep.mubr.bf16.mxu0 %v21295_v35  ;;  %12229 = vmatpush1.bf16.msra.mxu0 %v17036_v25  ;;  %v17045_v35 = vld [vmem:[%s22666_s11 + $0x268] ss:$16 sps:$4 sm:$0xff]  }
 0x9f4   : > { %12230 = vmatprep.subr.bf16.mxu0 %v17041_v27  ;;  %v17094_v25 = vld [vmem:[%s22666_s11 + $0x3c8] ss:$16 sps:$4 sm:$0xff]   ;;  %v17102_v27 = vld [vmem:[%s22666_s11 + $0x40c] ss:$16 sps:$4 sm:$0xff]  }
 0x9f7   : > { %12231 = vmatpush1.bf16.msra.mxu0 %v17039_v57 }
 0x9f8   : > { %12232 = vmatprep.subr.bf16.mxu0 %v17044_v23 }
 0x9fa   : > { %12078 = vmatmul.mubr.bf16.gmra.mrb[164].mxu0 %v21293_v18  ;;  %v17053_v18 = vld [vmem:[%s22666_s11 + $0x2ac] ss:$16 sps:$4 sm:$0xff]  }
 0x9fb   : > { %12087 = vmatprep.mubr.bf16.mxu0 %v21319_v8  ;;  %12233 = vmatpush1.bf16.msra.mxu0 %v17042_v37  ;;  %v17051_v8 = vld [vmem:[%s22666_s11 + $0x2a8] ss:$16 sps:$4 sm:$0xff]  }
 0x9fc   : > { %12234 = vmatprep.subr.bf16.mxu0 %v17047_v46 }
 0x9ff   : > { %12235 = vmatpush1.bf16.msra.mxu0 %v17045_v35 }
 0xa00   : > { %12236 = vmatprep.subr.bf16.mxu0 %v17050_v13 }
 0xa02   : > { %12088 = vmatmul.mubr.bf16.gmra.mrb[168].mxu0 %v21317_v43  ;;  %v17059_v43 = vld [vmem:[%s22666_s11 + $0x2ec] ss:$16 sps:$4 sm:$0xff]  }
 0xa03   : > { %12097 = vmatprep.mubr.bf16.mxu0 %v21343_v39  ;;  %12237 = vmatpush1.bf16.msra.mxu0 %v17048_v44  ;;  %v17057_v39 = vld [vmem:[%s22666_s11 + $0x2e8] ss:$16 sps:$4 sm:$0xff]  }
 0xa04   : > { %12238 = vmatprep.subr.bf16.mxu0 %v17053_v18 }
 0xa07   : > { %12239 = vmatpush1.bf16.msra.mxu0 %v17051_v8 }
 0xa08   : > { %12240 = vmatprep.subr.bf16.mxu0 %v17056_v24 }
 0xa0a   : > { %12098 = vmatmul.mubr.bf16.gmra.mrb[172].mxu0 %v21341_v19  ;;  %v17071_v19 = vld [vmem:[%s22666_s11 + $0x32c] ss:$16 sps:$4 sm:$0xff]  }
 0xa0b   : > { %12107 = vmatprep.mubr.bf16.mxu0 %v21367_v28  ;;  %12241 = vmatpush1.bf16.msra.mxu0 %v17054_v10  ;;  %v17069_v28 = vld [vmem:[%s22666_s11 + $0x328] ss:$16 sps:$4 sm:$0xff]  }
 0xa0c   : > { %12242 = vmatprep.subr.bf16.mxu0 %v17059_v43 }
 0xa0f   : > { %12243 = vmatpush1.bf16.msra.mxu0 %v17057_v39 }
 0xa10   : > { %12244 = vmatprep.subr.bf16.mxu0 %v17064_v36 }
 0xa12   : > { %12108 = vmatmul.mubr.bf16.gmra.mrb[176].mxu0 %v21365_v2  ;;  %v17085_v2 = vld [vmem:[%s22666_s11 + $0x36c] ss:$16 sps:$4 sm:$0xff]  }
 0xa13   : > { %12117 = vmatprep.mubr.bf16.mxu0 %v21391_v58  ;;  %12245 = vmatpush1.bf16.msra.mxu0 %v17062_v40  ;;  %v17083_v58 = vld [vmem:[%s22666_s11 + $0x368] ss:$16 sps:$4 sm:$0xff]  }
 0xa14   : > { %12246 = vmatprep.subr.bf16.mxu0 %v17071_v19 }
 0xa17   : > { %12247 = vmatpush1.bf16.msra.mxu0 %v17069_v28  ;;  %v23210_v28 = vld [vmem:[#allocation39_spill] sm:$0xff] }
 0xa18   : > { %12248 = vmatprep.subr.bf16.mxu0 %v17078_v34 }
 0xa1a   : > { %12118 = vmatmul.mubr.bf16.gmra.mrb[180].mxu0 %v21389_v62  ;;  %v17093_v62 = vld [vmem:[%s22666_s11 + $0x3ac] ss:$16 sps:$4 sm:$0xff]  }
 0xa1b   : > { %12127 = vmatprep.mubr.bf16.mxu0 %v21415_v53  ;;  %12249 = vmatpush1.bf16.msra.mxu0 %v17076_v47  ;;  %v17091_v53 = vld [vmem:[%s22666_s11 + $0x3a8] ss:$16 sps:$4 sm:$0xff]  }
 0xa1c   : > { %12250 = vmatprep.subr.bf16.mxu0 %v17085_v2 }
 0xa1f   : > { %12251 = vmatpush1.bf16.msra.mxu0 %v17083_v58 }
 0xa20   : > { %12252 = vmatprep.subr.bf16.mxu0 %v17090_v0 }
 0xa22   : > { %12128 = vmatmul.mubr.bf16.gmra.mrb[184].mxu0 %v21413_v31  ;;  %v17099_v31 = vld [vmem:[%s22666_s11 + $0x3ec] ss:$16 sps:$4 sm:$0xff]  }
 0xa23   : > { %12137 = vmatprep.mubr.bf16.mxu0 %v21439_v3  ;;  %12253 = vmatpush1.bf16.msra.mxu0 %v17088_v17  ;;  %v17097_v3 = vld [vmem:[%s22666_s11 + $0x3e8] ss:$16 sps:$4 sm:$0xff]  }
 0xa24   : > { %12254 = vmatprep.subr.bf16.mxu0 %v17093_v62 }
 0xa27   : > { %12255 = vmatpush1.bf16.msra.mxu0 %v17091_v53 }
 0xa28   : > { %12256 = vmatprep.subr.bf16.mxu0 %v17096_v16 }
 0xa2a   : > { %12138 = vmatmul.mubr.bf16.gmra.mrb[188].mxu0 %v21437_v52  ;;  %v10474_v52 = vld [vmem:[%s22667_s12] sm:$0xf] }
 0xa2b   : > { %12147 = vmatprep.mubr.bf16.mxu0 %v21463_v11  ;;  %12257 = vmatpush1.bf16.msra.mxu0 %v17094_v25  ;;  %v22123_v11 = vrot.slane %v10474_v52, %v23146_v51  ;;  %v22127_v57 = vrot.slane %v10474_v52, %v23149_v32 }
 0xa2c   : > { %12258 = vmatprep.subr.bf16.mxu0 %v17099_v31 }
 0xa2f   : > { %12259 = vmatpush1.bf16.msra.mxu0 %v17097_v3 }
 0xa30   : > { %12421 = vmatprep.subr.bf16.mxu0 %v17102_v27 }
 0xa32   : > { %12148 = vmatmul.mubr.bf16.gmra.mrb[192].mxu0 %v21461_v42 }
 0xa33   : > { %12157 = vmatprep.mubr.bf16.mxu0 %v21475_v61 }
 0xa3a   : > { %12158 = vmatmul.mubr.bf16.gmra.mrb[196].mxu0 %v21473_v54 }
 0xa3b   : > { %12167 = vmatprep.mubr.bf16.mxu0 %v21487_v33 }
 0xa42   : > { %12168 = vmatmul.mubr.bf16.gmra.mrb[200].mxu0 %v21485_v12 }
 0xa43   : > { %12177 = vmatprep.mubr.bf16.mxu0 %v21499_v56 }
 0xa45   : > { %v11876_v42 = vpop.f32.mrb[96].mxu0 }
 0xa46   : > { %v15120_v61 = vadd.f32 %v11876_v42, %v22123_v11  ;;  %v11878_v54 = vpop.f32.mrb[97].mxu0 }
 0xa47   : > { %v15121_v33 = vadd.f32 %v11878_v54, %v22127_v57  ;;  %v11880_v23 = vpop.f32.mrb[98].mxu0 }
 0xa48   : > { %v15122_v37 = vadd.f32 %v11880_v23, %v22123_v11  ;;  %v11882_v46 = vpop.f32.mrb[99].mxu0  ;;  %v12614_v35 = vmax.f32 %v15120_v61, 0.0 }
 0xa49   : > { %v15123_v12 = vadd.f32 %v11882_v46, %v22127_v57  ;;  %v12615_v56 = vmax.f32 %v15121_v33, 0.0 }
 0xa4a   : > { %v12618_v51 = vmax.f32 %v15122_v37, 0.0  ;;  %12178 = vmatmul.mubr.bf16.gmra.mrb[204].mxu0 %v21497_v50 }
 0xa4b   : > { %v12619_v13 = vmax.f32 %v15123_v12, 0.0  ;;  %12187 = vmatprep.mubr.bf16.mxu0 %v21511_v59 }
 0xa4c   : > { %v12742_v32 = vpack.c.bf16 %v12618_v51, %v12614_v35 }
 0xa4d   : > { %v12743_v44 = vpack.c.bf16 %v12619_v13, %v12615_v56  ;;  %v11886_v18 = vpop.f32.mrb[100].mxu0 }
 0xa4e   : > { %v15124_v8 = vadd.f32 %v11886_v18, %v22123_v11  ;;  %v11888_v24 = vpop.f32.mrb[101].mxu0 }
 0xa4f   : > { %v15125_v10 = vadd.f32 %v11888_v24, %v22127_v57  ;;  %v11890_v43 = vpop.f32.mrb[102].mxu0  ;;  %13101 = vmatprep.mubr.bf16.mxu1 %v12743_v44 }
 0xa50   : > { %v15126_v39 = vadd.f32 %v11890_v43, %v22123_v11  ;;  %v11892_v36 = vpop.f32.mrb[103].mxu0  ;;  %13102 = vmatmul.mubr.bf16.vlgmr.msra.gmra.mrb[160].mxu1 %v12742_v32  ;;  %v12622_v40 = vmax.f32 %v15124_v8, 0.0 }
 0xa51   : > { %v15127_v50 = vadd.f32 %v11892_v36, %v22127_v57  ;;  %v12623_v59 = vmax.f32 %v15125_v10, 0.0 }
 0xa52   : > { %v12626_v19 = vmax.f32 %v15126_v39, 0.0  ;;  %12188 = vmatmul.mubr.bf16.gmra.mrb[208].mxu0 %v23210_v28 }
 0xa53   : > { %v12627_v34 = vmax.f32 %v15127_v50, 0.0  ;;  %12197 = vmatprep.mubr.bf16.mxu0 %v21523_v45 }
 0xa54   : > { %v12746_v47 = vpack.c.bf16 %v12626_v19, %v12622_v40 }
 0xa55   : > { %v12747_v2 = vpack.c.bf16 %v12627_v34, %v12623_v59  ;;  %v11896_v58 = vpop.f32.mrb[104].mxu0 }
 0xa56   : > { %v15128_v0 = vadd.f32 %v11896_v58, %v22123_v11  ;;  %v11898_v17 = vpop.f32.mrb[105].mxu0 }
 0xa57   : > { %v15129_v62 = vadd.f32 %v11898_v17, %v22127_v57  ;;  %v11900_v53 = vpop.f32.mrb[106].mxu0  ;;  %13109 = vmatprep.mubr.bf16.mxu1 %v12747_v2  ;;  %v17100_v17 = vld [vmem:[%s22666_s11 + $0x408] ss:$16 sps:$4 sm:$0xff]  }
 0xa58   : > { %v15130_v16 = vadd.f32 %v11900_v53, %v22123_v11  ;;  %v11902_v25 = vpop.f32.mrb[107].mxu0  ;;  %13110 = vmatmul.mubr.bf16.gmra.mrb[164].mxu1 %v12746_v47  ;;  %v12630_v3 = vmax.f32 %v15128_v0, 0.0 }
 0xa59   : > { %v15131_v31 = vadd.f32 %v11902_v25, %v22127_v57  ;;  %v12631_v45 = vmax.f32 %v15129_v62, 0.0 }
 0xa5a   : > { %v12634_v27 = vmax.f32 %v15130_v16, 0.0  ;;  %12198 = vmatmul.mubr.bf16.gmra.mrb[212].mxu0 %v21521_v7 }
 0xa5b   : > { %v12635_v52 = vmax.f32 %v15131_v31, 0.0  ;;  %12207 = vmatprep.mubr.bf16.mxu0 %v21535_v21 }
 0xa5c   : > { %v12750_v42 = vpack.c.bf16 %v12634_v27, %v12630_v3  ;;  %v17103_v27 = vld [vmem:[%s22666_s11 + $0x428] ss:$16 sps:$4 sm:$0xff]  }
 0xa5d   : > { %v12751_v61 = vpack.c.bf16 %v12635_v52, %v12631_v45  ;;  %v11906_v54 = vpop.f32.mrb[108].mxu0  ;;  %v17108_v52 = vld [vmem:[%s22666_s11 + $0x44c] ss:$16 sps:$4 sm:$0xff]  }
 0xa5e   : > { %v15132_v33 = vadd.f32 %v11906_v54, %v22123_v11  ;;  %v11908_v23 = vpop.f32.mrb[109].mxu0 }
 0xa5f   : > { %v15133_v37 = vadd.f32 %v11908_v23, %v22127_v57  ;;  %v11910_v46 = vpop.f32.mrb[110].mxu0  ;;  %13117 = vmatprep.mubr.bf16.mxu1 %v12751_v61 }
 0xa60   : > { %v15134_v12 = vadd.f32 %v11910_v46, %v22123_v11  ;;  %v11912_v35 = vpop.f32.mrb[111].mxu0  ;;  %13118 = vmatmul.mubr.bf16.gmra.mrb[168].mxu1 %v12750_v42  ;;  %v12638_v51 = vmax.f32 %v15132_v33, 0.0 }
 0xa61   : > { %v15135_v7 = vadd.f32 %v11912_v35, %v22127_v57  ;;  %v12639_v21 = vmax.f32 %v15133_v37, 0.0 }
 0xa62   : > { %v12642_v56 = vmax.f32 %v15134_v12, 0.0  ;;  %12208 = vmatmul.mubr.bf16.gmra.mrb[216].mxu0 %v21533_v14  ;;  %v17111_v12 = vld [vmem:[%s22666_s11 + $0x46c] ss:$16 sps:$4 sm:$0xff]  }
 0xa63   : > { %v12643_v13 = vmax.f32 %v15135_v7, 0.0  ;;  %12217 = vmatprep.mubr.bf16.mxu0 %v21547_v29 }
 0xa64   : > { %v12754_v32 = vpack.c.bf16 %v12642_v56, %v12638_v51 }
 0xa65   : > { %v12755_v44 = vpack.c.bf16 %v12643_v13, %v12639_v21  ;;  %v11916_v18 = vpop.f32.mrb[112].mxu0  ;;  %v17109_v13 = vld [vmem:[%s22666_s11 + $0x468] ss:$16 sps:$4 sm:$0xff]  }
 0xa66   : > { %v15136_v8 = vadd.f32 %v11916_v18, %v22123_v11  ;;  %v11918_v24 = vpop.f32.mrb[113].mxu0 }
 0xa67   : > { %v15137_v10 = vadd.f32 %v11918_v24, %v22127_v57  ;;  %v11920_v43 = vpop.f32.mrb[114].mxu0  ;;  %13125 = vmatprep.mubr.bf16.mxu1 %v12755_v44  ;;  %v17114_v44 = vld [vmem:[%s22666_s11 + $0x48c] ss:$16 sps:$4 sm:$0xff]  }
 0xa68   : > { %v15138_v39 = vadd.f32 %v11920_v43, %v22123_v11  ;;  %v11922_v36 = vpop.f32.mrb[115].mxu0  ;;  %13126 = vmatmul.mubr.bf16.gmra.mrb[172].mxu1 %v12754_v32  ;;  %v12646_v50 = vmax.f32 %v15136_v8, 0.0 }
 0xa69   : > { %v15139_v14 = vadd.f32 %v11922_v36, %v22127_v57  ;;  %v12647_v29 = vmax.f32 %v15137_v10, 0.0 }
 0xa6a   : > { %v12650_v40 = vmax.f32 %v15138_v39, 0.0  ;;  %12218 = vmatmul.mubr.bf16.gmra.mrb[220].mxu0 %v21545_v26 }
 0xa6b   : > { %v12651_v19 = vmax.f32 %v15139_v14, 0.0  ;;  %12260 = vmatprep.mubr.bf16.mxu0 %v23154_v5  ;;  %v17105_v5 = vld [vmem:[%s22666_s11 + $0x42c] ss:$16 sps:$4 sm:$0xff]  }
 0xa6c   : > { %v12758_v28 = vpack.c.bf16 %v12650_v40, %v12646_v50  ;;  %v17117_v14 = vld [vmem:[%s22666_s11 + $0x4ac] ss:$16 sps:$4 sm:$0xff]  }
 0xa6d   : > { %v12759_v59 = vpack.c.bf16 %v12651_v19, %v12647_v29  ;;  %v11926_v34 = vpop.f32.mrb[116].mxu0 }
 0xa6e   : > { %v15140_v47 = vadd.f32 %v11926_v34, %v22123_v11  ;;  %v11928_v2 = vpop.f32.mrb[117].mxu0 }
 0xa6f   : > { %v15141_v58 = vadd.f32 %v11928_v2, %v22127_v57  ;;  %v11930_v0 = vpop.f32.mrb[118].mxu0  ;;  %13133 = vmatprep.mubr.bf16.mxu1 %v12759_v59  ;;  %v17115_v59 = vld [vmem:[%s22666_s11 + $0x4a8] ss:$16 sps:$4 sm:$0xff]  }
 0xa70   : > { %v15142_v26 = vadd.f32 %v11930_v0, %v22123_v11  ;;  %v11932_v62 = vpop.f32.mrb[119].mxu0  ;;  %13134 = vmatmul.mubr.bf16.gmra.mrb[176].mxu1 %v12758_v28  ;;  %v12654_v16 = vmax.f32 %v15140_v47, 0.0  ;;  %v17120_v47 = vld [vmem:[%s22666_s11 + $0x4cc] ss:$16 sps:$4 sm:$0xff]  }
 0xa71   : > { %v15143_v53 = vadd.f32 %v11932_v62, %v22127_v57  ;;  %v12655_v31 = vmax.f32 %v15141_v58, 0.0 }
 0xa72   : > { %v12658_v25 = vmax.f32 %v15142_v26, 0.0  ;;  %12261 = vmatmul.mubr.bf16.vlgmr.msra.gmra.mrb[160].mxu0 %v23155_v41 }
 0xa73   : > { %v12659_v3 = vmax.f32 %v15143_v53, 0.0  ;;  %12270 = vmatprep.mubr.bf16.mxu0 %v23156_v9  ;;  %12422 = vmatpush1.bf16.msra.mxu0 %v17100_v17  ;;  %v17106_v9 = vld [vmem:[%s22666_s11 + $0x448] ss:$16 sps:$4 sm:$0xff]   ;;  %v17123_v53 = vld [vmem:[%s22666_s11 + $0x4ec] ss:$16 sps:$4 sm:$0xff]  }
 0xa74   : > { %v12762_v45 = vpack.c.bf16 %v12658_v25, %v12654_v16  ;;  %12423 = vmatprep.subr.bf16.mxu0 %v17105_v5 }
 0xa75   : > { %v12763_v42 = vpack.c.bf16 %v12659_v3, %v12655_v31  ;;  %v11936_v61 = vpop.f32.mrb[120].mxu0 }
 0xa76   : > { %v15144_v54 = vadd.f32 %v11936_v61, %v22123_v11  ;;  %v11938_v41 = vpop.f32.mrb[121].mxu0 }
 0xa77   : > { %v15145_v33 = vadd.f32 %v11938_v41, %v22127_v57  ;;  %v11940_v23 = vpop.f32.mrb[122].mxu0  ;;  %13141 = vmatprep.mubr.bf16.mxu1 %v12763_v42  ;;  %12424 = vmatpush1.bf16.msra.mxu0 %v17103_v27  ;;  %v17126_v42 = vld [vmem:[%s22666_s11 + $0x50c] ss:$16 sps:$4 sm:$0xff]  }
 0xa78   : > { %v15146_v37 = vadd.f32 %v11940_v23, %v22123_v11  ;;  %v11942_v46 = vpop.f32.mrb[123].mxu0  ;;  %13142 = vmatmul.mubr.bf16.gmra.mrb[180].mxu1 %v12762_v45  ;;  %12425 = vmatprep.subr.bf16.mxu0 %v17108_v52  ;;  %v12662_v7 = vmax.f32 %v15144_v54, 0.0  ;;  %v17121_v45 = vld [vmem:[%s22666_s11 + $0x4e8] ss:$16 sps:$4 sm:$0xff]  }
 0xa79   : > { %v15147_v35 = vadd.f32 %v11942_v46, %v22127_v57  ;;  %v12663_v56 = vmax.f32 %v15145_v33, 0.0  ;;  %v17129_v46 = vld [vmem:[%s22666_s11 + $0x52c] ss:$16 sps:$4 sm:$0xff]  }
 0xa7a   : > { %v12666_v51 = vmax.f32 %v15146_v37, 0.0  ;;  %12271 = vmatmul.mubr.bf16.gmra.mrb[164].mxu0 %v23157_v63 }
 0xa7b   : > { %v12667_v21 = vmax.f32 %v15147_v35, 0.0  ;;  %12280 = vmatprep.mubr.bf16.mxu0 %v23158_v20  ;;  %12426 = vmatpush1.bf16.msra.mxu0 %v17106_v9  ;;  %v17112_v20 = vld [vmem:[%s22666_s11 + $0x488] ss:$16 sps:$4 sm:$0xff]  }
 0xa7c   : > { %v12766_v32 = vpack.c.bf16 %v12666_v51, %v12662_v7  ;;  %12427 = vmatprep.subr.bf16.mxu0 %v17111_v12 }
 0xa7d   : > { %v12767_v18 = vpack.c.bf16 %v12667_v21, %v12663_v56  ;;  %v11946_v8 = vpop.f32.mrb[124].mxu0  ;;  %v17127_v21 = vld [vmem:[%s22666_s11 + $0x528] ss:$16 sps:$4 sm:$0xff]  }
 0xa7e   : > { %v15148_v24 = vadd.f32 %v11946_v8, %v22123_v11  ;;  %v11948_v63 = vpop.f32.mrb[125].mxu0 }
 0xa7f   : > { %v15149_v10 = vadd.f32 %v11948_v63, %v22127_v57  ;;  %v11950_v43 = vpop.f32.mrb[126].mxu0  ;;  %13149 = vmatprep.mubr.bf16.mxu1 %v12767_v18  ;;  %12428 = vmatpush1.bf16.msra.mxu0 %v17109_v13 }
 0xa80   : > { %v15150_v39 = vadd.f32 %v11950_v43, %v22123_v11  ;;  %v11952_v36 = vpop.f32.mrb[127].mxu0  ;;  %13150 = vmatmul.mubr.bf16.gmra.mrb[184].mxu1 %v12766_v32  ;;  %12429 = vmatprep.subr.bf16.mxu0 %v17114_v44  ;;  %v12670_v40 = vmax.f32 %v15148_v24, 0.0  ;;  %v17132_v32 = vld [vmem:[%s22666_s11 + $0x54c] ss:$16 sps:$4 sm:$0xff]  }
 0xa81   : > { %v15151_v50 = vadd.f32 %v11952_v36, %v22127_v57  ;;  %v12671_v19 = vmax.f32 %v15149_v10, 0.0 }
 0xa82   : > { %v12674_v29 = vmax.f32 %v15150_v39, 0.0  ;;  %12281 = vmatmul.mubr.bf16.gmra.mrb[168].mxu0 %v23159_v55 }
 0xa83   : > { %v12675_v28 = vmax.f32 %v15151_v50, 0.0  ;;  %12290 = vmatprep.mubr.bf16.mxu0 %v23160_v48  ;;  %12430 = vmatpush1.bf16.msra.mxu0 %v17112_v20  ;;  %v17118_v48 = vld [vmem:[%s22666_s11 + $0x4c8] ss:$16 sps:$4 sm:$0xff]   ;;  %v17135_v20 = vld [vmem:[%s22666_s11 + $0x56c] ss:$16 sps:$4 sm:$0xff]  }
 0xa84   : > { %v12770_v34 = vpack.c.bf16 %v12674_v29, %v12670_v40  ;;  %12431 = vmatprep.subr.bf16.mxu0 %v17117_v14  ;;  %v23211_v50 = vld [vmem:[#allocation77_spill] sm:$0xff] }
 0xa85   : > { %v12771_v2 = vpack.c.bf16 %v12675_v28, %v12671_v19  ;;  %v11956_v58 = vpop.f32.mrb[128].mxu0  ;;  %v23212_v19 = vld [vmem:[#allocation78_spill] sm:$0xff]  ;;  %v17133_v28 = vld [vmem:[%s22666_s11 + $0x568] ss:$16 sps:$4 sm:$0xff]  }
 0xa86   : > { %v15152_v0 = vadd.f32 %v11956_v58, %v22123_v11  ;;  %v11958_v55 = vpop.f32.mrb[129].mxu0 }
 0xa87   : > { %v15153_v17 = vadd.f32 %v11958_v55, %v22127_v57  ;;  %v11960_v26 = vpop.f32.mrb[130].mxu0  ;;  %13157 = vmatprep.mubr.bf16.mxu1 %v12771_v2  ;;  %12432 = vmatpush1.bf16.msra.mxu0 %v17115_v59 }
 0xa88   : > { %v15154_v62 = vadd.f32 %v11960_v26, %v22123_v11  ;;  %v11962_v5 = vpop.f32.mrb[131].mxu0  ;;  %13158 = vmatmul.mubr.bf16.gmra.mrb[188].mxu1 %v12770_v34  ;;  %12433 = vmatprep.subr.bf16.mxu0 %v17120_v47  ;;  %v12678_v25 = vmax.f32 %v15152_v0, 0.0  ;;  %v17138_v34 = vld [vmem:[%s22666_s11 + $0x58c] ss:$16 sps:$4 sm:$0xff]   ;;  %v17136_v26 = vld [vmem:[%s22666_s11 + $0x588] ss:$16 sps:$4 sm:$0xff]  }
 0xa89   : > { %v15155_v16 = vadd.f32 %v11962_v5, %v22127_v57  ;;  %v12679_v3 = vmax.f32 %v15153_v17, 0.0  ;;  %v17141_v5 = vld [vmem:[%s22666_s11 + $0x5ac] ss:$16 sps:$4 sm:$0xff]  }
 0xa8a   : > { %v12682_v31 = vmax.f32 %v15154_v62, 0.0  ;;  %12291 = vmatmul.mubr.bf16.gmra.mrb[172].mxu0 %v23161_v38 }
 0xa8b   : > { %v12683_v27 = vmax.f32 %v15155_v16, 0.0  ;;  %12300 = vmatprep.mubr.bf16.mxu0 %v23162_v22  ;;  %12434 = vmatpush1.bf16.msra.mxu0 %v17118_v48  ;;  %v17124_v22 = vld [vmem:[%s22666_s11 + $0x508] ss:$16 sps:$4 sm:$0xff]  }
 0xa8c   : > { %v12774_v52 = vpack.c.bf16 %v12682_v31, %v12678_v25  ;;  %12435 = vmatprep.subr.bf16.mxu0 %v17123_v53  ;;  %v23213_v31 = vld [vmem:[#allocation79_spill] sm:$0xff] }
 0xa8d   : > { %v12775_v61 = vpack.c.bf16 %v12683_v27, %v12679_v3  ;;  %v11966_v54 = vpop.f32.mrb[132].mxu0 }
 0xa8e   : > { %v15156_v41 = vadd.f32 %v11966_v54, %v22123_v11  ;;  %v11968_v38 = vpop.f32.mrb[133].mxu0 }
 0xa8f   : > { %v15157_v33 = vadd.f32 %v11968_v38, %v22127_v57  ;;  %v11970_v23 = vpop.f32.mrb[134].mxu0  ;;  %13165 = vmatprep.mubr.bf16.mxu1 %v12775_v61  ;;  %12436 = vmatpush1.bf16.msra.mxu0 %v17121_v45  ;;  %v23214_v45 = vld [vmem:[#allocation80_spill] sm:$0xff]  ;;  %v17144_v61 = vld [vmem:[%s22666_s11 + $0x5cc] ss:$16 sps:$4 sm:$0xff]  }
 0xa90   : > { %v15158_v9 = vadd.f32 %v11970_v23, %v22123_v11  ;;  %v11972_v37 = vpop.f32.mrb[135].mxu0  ;;  %13166 = vmatmul.mubr.bf16.gmra.mrb[192].mxu1 %v12774_v52  ;;  %12437 = vmatprep.subr.bf16.mxu0 %v17126_v42  ;;  %v12686_v35 = vmax.f32 %v15156_v41, 0.0  ;;  %v17139_v52 = vld [vmem:[%s22666_s11 + $0x5a8] ss:$16 sps:$4 sm:$0xff]  }
 0xa91   : > { %v15159_v12 = vadd.f32 %v11972_v37, %v22127_v57  ;;  %v12687_v51 = vmax.f32 %v15157_v33, 0.0 }
 0xa92   : > { %v12690_v7 = vmax.f32 %v15158_v9, 0.0  ;;  %12301 = vmatmul.mubr.bf16.gmra.mrb[176].mxu0 %v23163_v60  ;;  %v17142_v9 = vld [vmem:[%s22666_s11 + $0x5c8] ss:$16 sps:$4 sm:$0xff]  }
 0xa93   : > { %v12691_v56 = vmax.f32 %v15159_v12, 0.0  ;;  %12310 = vmatprep.mubr.bf16.mxu0 %v23164_v15  ;;  %12438 = vmatpush1.bf16.msra.mxu0 %v17124_v22  ;;  %v17130_v15 = vld [vmem:[%s22666_s11 + $0x548] ss:$16 sps:$4 sm:$0xff]   ;;  %v17147_v12 = vld [vmem:[%s22666_s11 + $0x5ec] ss:$16 sps:$4 sm:$0xff]  }
 0xa94   : > { %v12778_v13 = vpack.c.bf16 %v12690_v7, %v12686_v35  ;;  %12439 = vmatprep.subr.bf16.mxu0 %v17129_v46 }
 0xa95   : > { %v12779_v44 = vpack.c.bf16 %v12691_v56, %v12687_v51  ;;  %v11976_v18 = vpop.f32.mrb[136].mxu0  ;;  %v23215_v56 = vld [vmem:[#allocation81_spill] sm:$0xff] }
 0xa96   : > { %v15160_v8 = vadd.f32 %v11976_v18, %v22123_v11  ;;  %v11978_v60 = vpop.f32.mrb[137].mxu0 }
 0xa97   : > { %v15161_v24 = vadd.f32 %v11978_v60, %v22127_v57  ;;  %v11980_v63 = vpop.f32.mrb[138].mxu0  ;;  %13173 = vmatprep.mubr.bf16.mxu1 %v12779_v44  ;;  %12440 = vmatpush1.bf16.msra.mxu0 %v17127_v21  ;;  %v17145_v44 = vld [vmem:[%s22666_s11 + $0x5e8] ss:$16 sps:$4 sm:$0xff]  }
 0xa98   : > { %v15162_v10 = vadd.f32 %v11980_v63, %v22123_v11  ;;  %v11982_v43 = vpop.f32.mrb[139].mxu0  ;;  %13174 = vmatmul.mubr.bf16.gmra.mrb[196].mxu1 %v12778_v13  ;;  %12441 = vmatprep.subr.bf16.mxu0 %v17132_v32  ;;  %v12694_v36 = vmax.f32 %v15160_v8, 0.0  ;;  %v23216_v32 = vld [vmem:[#allocation82_spill] sm:$0xff] }
 0xa99   : > { %v15163_v39 = vadd.f32 %v11982_v43, %v22127_v57  ;;  %v12695_v40 = vmax.f32 %v15161_v24, 0.0 }
 0xa9a   : > { %v12698_v14 = vmax.f32 %v15162_v10, 0.0  ;;  %12311 = vmatmul.mubr.bf16.gmra.mrb[180].mxu0 %v23211_v50  ;;  %v23217_v50 = vld [vmem:[#allocation83_spill] sm:$0xff] }
 0xa9b   : > { %v12699_v29 = vmax.f32 %v15163_v39, 0.0  ;;  %12320 = vmatprep.mubr.bf16.mxu0 %v23212_v19  ;;  %12442 = vmatpush1.bf16.msra.mxu0 %v17130_v15  ;;  %v23218_v19 = vld [vmem:[#allocation84_spill] sm:$0xff] }
 0xa9c   : > { %v12782_v59 = vpack.c.bf16 %v12698_v14, %v12694_v36  ;;  %12443 = vmatprep.subr.bf16.mxu0 %v17135_v20 }
 0xa9d   : > { %v12783_v47 = vpack.c.bf16 %v12699_v29, %v12695_v40  ;;  %v11986_v2 = vpop.f32.mrb[140].mxu0 }
 0xa9e   : > { %v15164_v58 = vadd.f32 %v11986_v2, %v22123_v11  ;;  %v11988_v0 = vpop.f32.mrb[141].mxu0 }
 0xa9f   : > { %v15165_v55 = vadd.f32 %v11988_v0, %v22127_v57  ;;  %v11990_v17 = vpop.f32.mrb[142].mxu0  ;;  %13181 = vmatprep.mubr.bf16.mxu1 %v12783_v47  ;;  %12444 = vmatpush1.bf16.msra.mxu0 %v17133_v28 }
 0xaa0   : > { %v15166_v48 = vadd.f32 %v11990_v17, %v22123_v11  ;;  %v11992_v62 = vpop.f32.mrb[143].mxu0  ;;  %13182 = vmatmul.mubr.bf16.gmra.mrb[200].mxu1 %v12782_v59  ;;  %12445 = vmatprep.subr.bf16.mxu0 %v17138_v34  ;;  %v12702_v16 = vmax.f32 %v15164_v58, 0.0 }
 0xaa1   : > { %v15167_v53 = vadd.f32 %v11992_v62, %v22127_v57  ;;  %v12703_v3 = vmax.f32 %v15165_v55, 0.0 }
 0xaa2   : > { %v12706_v25 = vmax.f32 %v15166_v48, 0.0  ;;  %12321 = vmatmul.mubr.bf16.gmra.mrb[184].mxu0 %v23213_v31 }
 0xaa3   : > { %v12707_v27 = vmax.f32 %v15167_v53, 0.0  ;;  %12330 = vmatprep.mubr.bf16.mxu0 %v23214_v45  ;;  %12446 = vmatpush1.bf16.msra.mxu0 %v17136_v26 }
 0xaa4   : > { %v12786_v42 = vpack.c.bf16 %v12706_v25, %v12702_v16  ;;  %12447 = vmatprep.subr.bf16.mxu0 %v17141_v5  ;;  %v23219_v5 = vld [vmem:[#allocation7_spill] sm:$0xff]  ;;  %v23220_v25 = vld [vmem:[#allocation9_spill] sm:$0xff] }
 0xaa5   : > { %v12787_v54 = vpack.c.bf16 %v12707_v27, %v12703_v3  ;;  %v11996_v41 = vpop.f32.mrb[144].mxu0 }
 0xaa6   : > { %v15168_v38 = vadd.f32 %v11996_v41, %v22123_v11  ;;  %v11998_v33 = vpop.f32.mrb[145].mxu0 }
 0xaa7   : > { %v15169_v23 = vadd.f32 %v11998_v33, %v22127_v57  ;;  %v12000_v22 = vpop.f32.mrb[146].mxu0  ;;  %13189 = vmatprep.mubr.bf16.mxu1 %v12787_v54  ;;  %12448 = vmatpush1.bf16.msra.mxu0 %v17139_v52 }
 0xaa8   : > { %v15170_v37 = vadd.f32 %v12000_v22, %v22123_v11  ;;  %v12002_v46 = vpop.f32.mrb[147].mxu0  ;;  %13190 = vmatmul.mubr.bf16.gmra.mrb[204].mxu1 %v12786_v42  ;;  %12449 = vmatprep.subr.bf16.mxu0 %v17144_v61  ;;  %v12710_v7 = vmax.f32 %v15168_v38, 0.0  ;;  %v23221_v22 = vld [vmem:[#allocation8_spill] sm:$0xff] }
 0xaa9   : > { %v15171_v35 = vadd.f32 %v12002_v46, %v22127_v57  ;;  %v12711_v21 = vmax.f32 %v15169_v23, 0.0  ;;  %v23222_v46 = vld [vmem:[#allocation11_spill] sm:$0xff] }
 0xaaa   : > { %v12714_v51 = vmax.f32 %v15170_v37, 0.0  ;;  %12331 = vmatmul.mubr.bf16.gmra.mrb[188].mxu0 %v23215_v56  ;;  %v23225_v56 = vld [vmem:[#allocation12_spill] sm:$0xff] }
 0xaab   : > { %v12715_v13 = vmax.f32 %v15171_v35, 0.0  ;;  %12340 = vmatprep.mubr.bf16.mxu0 %v23216_v32  ;;  %12450 = vmatpush1.bf16.msra.mxu0 %v17142_v9  ;;  %v23228_v32 = vld [vmem:[#allocation38_spill] sm:$0xff] }
 0xaac   : > { %v12790_v18 = vpack.c.bf16 %v12714_v51, %v12710_v7  ;;  %12451 = vmatprep.subr.bf16.mxu0 %v17147_v12  ;;  %v23223_v7 = vld [vmem:[#allocation10_spill] sm:$0xff]  ;;  %v23224_v51 = vld [vmem:[#allocation13_spill] sm:$0xff] }
 0xaad   : > { %v12791_v8 = vpack.c.bf16 %v12715_v13, %v12711_v21  ;;  %v12006_v60 = vpop.f32.mrb[148].mxu0  ;;  %v23226_v21 = vld [vmem:[#allocation17_spill] sm:$0xff]  ;;  %v23227_v13 = vld [vmem:[#allocation15_spill] sm:$0xff] }
 0xaae   : > { %v15172_v24 = vadd.f32 %v12006_v60, %v22123_v11  ;;  %v12008_v63 = vpop.f32.mrb[149].mxu0  ;;  %v23230_v60 = vld [vmem:[#allocation40_spill] sm:$0xff] }
 0xaaf   : > { %v15173_v15 = vadd.f32 %v12008_v63, %v22127_v57  ;;  %v12010_v10 = vpop.f32.mrb[150].mxu0  ;;  %13197 = vmatprep.mubr.bf16.mxu1 %v12791_v8  ;;  %12452 = vmatpush1.bf16.msra.mxu0 %v17145_v44  ;;  %v17150_v44 = vld [vmem:[%s22668_s13 + $0xc8] sm:$0xff]   ;;  %v23229_v8 = vld [vmem:[#allocation16_spill] sm:$0xff]  ;;  %v23232_v63 = vld [vmem:[#allocation41_spill] sm:$0xff] }
 0xab0   : > { %v15174_v43 = vadd.f32 %v12010_v10, %v22123_v11  ;;  %v12012_v20 = vpop.f32.mrb[151].mxu0  ;;  %13198 = vmatmul.mubr.bf16.gmra.mrb[208].mxu1 %v12790_v18  ;;  %v12718_v36 = vmax.f32 %v15172_v24, 0.0  ;;  %v17151_v18 = vld [vmem:[%s22668_s13 + $0x88] sm:$0xff]   ;;  %v23231_v24 = vld [vmem:[#allocation37_spill] sm:$0xff]  ;;  %v17153_v10 = vld [vmem:[%s22668_s13 + $0x90] sm:$0xff]  }
 0xab1   : > { %v15175_v39 = vadd.f32 %v12012_v20, %v22127_v57  ;;  %v12719_v40 = vmax.f32 %v15173_v15, 0.0  ;;  %v17152_v15 = vld [vmem:[%s22668_s13 + $0xd0] sm:$0xff]   ;;  %v23234_v20 = vld [vmem:[#allocation43_spill] sm:$0xff] }
 0xab2   : > { %v12722_v14 = vmax.f32 %v15174_v43, 0.0  ;;  %12341 = vmatmul.mubr.bf16.gmra.mrb[192].mxu0 %v23217_v50  ;;  %v23233_v43 = vld [vmem:[#allocation42_spill] sm:$0xff]  ;;  %v17155_v50 = vld [vmem:[%s22668_s13 + $0x98] sm:$0xff]  }
 0xab3   : > { %v12723_v29 = vmax.f32 %v15175_v39, 0.0  ;;  %12350 = vmatprep.mubr.bf16.mxu0 %v23218_v19  ;;  %v23235_v39 = vld [vmem:[#allocation44_spill] sm:$0xff] }
 0xab4   : > { %v12794_v28 = vpack.c.bf16 %v12722_v14, %v12718_v36  ;;  %v23236_v36 = vld [vmem:[#allocation45_spill] sm:$0xff]  ;;  %v23239_v19 = vld [vmem:[#allocation48_spill] sm:$0xff] }
 0xab5   : > { %v12795_v59 = vpack.c.bf16 %v12723_v29, %v12719_v40  ;;  %v12016_v34 = vpop.f32.mrb[152].mxu0  ;;  %v17154_v14 = vld [vmem:[%s22668_s13 + $0xd8] sm:$0xff]   ;;  %v23237_v40 = vld [vmem:[#allocation46_spill] sm:$0xff]  ;;  %v23238_v29 = vld [vmem:[#allocation47_spill] sm:$0xff] }
 0xab6   : > { %v15176_v47 = vadd.f32 %v12016_v34, %v22123_v11  ;;  %v12018_v2 = vpop.f32.mrb[153].mxu0  ;;  %v17157_v34 = vld [vmem:[%s22668_s13 + $0xa0] sm:$0xff]  }
 0xab7   : > { %v15177_v58 = vadd.f32 %v12018_v2, %v22127_v57  ;;  %v12020_v0 = vpop.f32.mrb[154].mxu0  ;;  %13205 = vmatprep.mubr.bf16.mxu1 %v12795_v59  ;;  %v17156_v59 = vld [vmem:[%s22668_s13 + $0xe0] sm:$0xff]  }
 0xab8   : > { %v15178_v55 = vadd.f32 %v12020_v0, %v22123_v11  ;;  %v12022_v17 = vpop.f32.mrb[155].mxu0  ;;  %13206 = vmatmul.mubr.bf16.gmra.mrb[212].mxu1 %v12794_v28  ;;  %v12726_v48 = vmax.f32 %v15176_v47, 0.0  ;;  %v23240_v28 = vld [vmem:[#allocation49_spill] sm:$0xff]  ;;  %v23241_v47 = vld [vmem:[#allocation50_spill] sm:$0xff]  ;;  %v23244_v0 = vld [vmem:[#allocation56_spill] sm:$0xff] }
 0xab9   : > { %v15179_v26 = vadd.f32 %v12022_v17, %v22127_v57  ;;  %v12727_v53 = vmax.f32 %v15177_v58, 0.0  ;;  %v23242_v2 = vld [vmem:[#allocation54_spill] sm:$0xff]  ;;  %v23243_v58 = vld [vmem:[#allocation51_spill] sm:$0xff] }
 0xaba   : > { %v12730_v62 = vmax.f32 %v15178_v55, 0.0  ;;  %12351 = vmatmul.mubr.bf16.gmra.mrb[196].mxu0 %v23219_v5  ;;  %v17158_v55 = vld [vmem:[%s22668_s13 + $0xe8] sm:$0xff]  }
 0xabb   : > { %v12731_v16 = vmax.f32 %v15179_v26, 0.0  ;;  %12360 = vmatprep.mubr.bf16.mxu0 %v23220_v25  ;;  %v17159_v17 = vld [vmem:[%s22668_s13 + $0xa8] sm:$0xff]   ;;  %v17160_v26 = vld [vmem:[%s22668_s13 + $0xf0] sm:$0xff]  }
 0xabc   : > { %v12798_v31 = vpack.c.bf16 %v12730_v62, %v12726_v48  ;;  %v23245_v48 = vld [vmem:[#allocation53_spill] sm:$0xff]  ;;  %v23246_v62 = vld [vmem:[#allocation58_spill] sm:$0xff] }
 0xabd   : > { %v12799_v3 = vpack.c.bf16 %v12731_v16, %v12727_v53  ;;  %v12026_v27 = vpop.f32.mrb[156].mxu0  ;;  %v17161_v16 = vld [vmem:[%s22668_s13 + $0xb0] sm:$0xff]  }
 0xabe   : > { %v15180_v45 = vadd.f32 %v12026_v27, %v22123_v11  ;;  %v12028_v52 = vpop.f32.mrb[157].mxu0 }
 0xabf   : > { %v15181_v42 = vadd.f32 %v12028_v52, %v22127_v57  ;;  %v12030_v61 = vpop.f32.mrb[158].mxu0  ;;  %13213 = vmatprep.mubr.bf16.mxu1 %v12799_v3  ;;  %v17162_v3 = vld [vmem:[%s22668_s13 + $0xf8] sm:$0xff]  }
 0xac0   : > { %v15182_v54 = vadd.f32 %v12030_v61, %v22123_v11  ;;  %v12032_v41 = vpop.f32.mrb[159].mxu0  ;;  %13214 = vmatmul.mubr.bf16.gmra.mrb[216].mxu1 %v12798_v31  ;;  %v12734_v33 = vmax.f32 %v15180_v45, 0.0  ;;  %v17148_v11 = vld [vmem:[%s22668_s13 + $0xc0] sm:$0xff]   ;;  %v17163_v52 = vld [vmem:[%s22668_s13 + $0xb8] sm:$0xff]  }
 0xac1   : > { %v15183_v38 = vadd.f32 %v12032_v41, %v22127_v57  ;;  %v12735_v9 = vmax.f32 %v15181_v42, 0.0  ;;  %v17149_v57 = vld [vmem:[%s22668_s13 + $0x80] sm:$0xff]   ;;  %14696 = vmatprep.subr.bf16.mxu1 %v17148_v11  ;;  %v23247_v42 = vld [vmem:[#allocation55_spill] sm:$0xff]  ;;  %v23251_v11 = vld [vmem:[#allocation61_spill] sm:$0xff] }
 0xac2   : > { %v12738_v23 = vmax.f32 %v15182_v54, 0.0  ;;  %12361 = vmatmul.mubr.bf16.gmra.mrb[200].mxu0 %v23221_v22  ;;  %14697 = vmatpush3.bf16.msra.mxu1 %v17149_v57  ;;  %v23248_v22 = vld [vmem:[#allocation57_spill] sm:$0xff] }
 0xac3   : > { %v12739_v37 = vmax.f32 %v15183_v38, 0.0  ;;  %12370 = vmatprep.mubr.bf16.mxu0 %v23222_v46  ;;  %14698 = vmatprep.subr.bf16.mxu1 %v17150_v44 }
 0xac4   : > { %v12802_v12 = vpack.c.bf16 %v12738_v23, %v12734_v33 }
 0xac5   : > { %v12803_v35 = vpack.c.bf16 %v12739_v37, %v12735_v9  ;;  %v23249_v9 = vld [vmem:[#allocation59_spill] sm:$0xff] }
 0xac6   : > { %14699 = vmatpush3.bf16.msra.mxu1 %v17151_v18  ;;  %v23252_v18 = vld [vmem:[#allocation62_spill] sm:$0xff] }
 0xac7   : > { %13221 = vmatprep.mubr.bf16.mxu1 %v12803_v35  ;;  %14700 = vmatprep.subr.bf16.mxu1 %v17152_v15 }
 0xac8   : > { %13222 = vmatmul.mubr.bf16.gmra.mrb[220].mxu1 %v12802_v12 }
 0xaca   : > { %12371 = vmatmul.mubr.bf16.gmra.mrb[204].mxu0 %v23223_v7  ;;  %14701 = vmatpush3.bf16.msra.mxu1 %v17153_v10 }
 0xacb   : > { %12380 = vmatprep.mubr.bf16.mxu0 %v23224_v51  ;;  %14702 = vmatprep.subr.bf16.mxu1 %v17154_v14  ;;  %v23250_v51 = vld [vmem:[#allocation60_spill] sm:$0xff] }
 0xace   : > { %14703 = vmatpush3.bf16.msra.mxu1 %v17155_v50 }
 0xacf   : > { %14704 = vmatprep.subr.bf16.mxu1 %v17156_v59  ;;  %v23257_v59 = vld [vmem:[#allocation24_spill] sm:$0xff] }
 0xad2   : > { %12381 = vmatmul.mubr.bf16.gmra.mrb[208].mxu0 %v23225_v56  ;;  %14705 = vmatpush3.bf16.msra.mxu1 %v17157_v34 }
 0xad3   : > { %12390 = vmatprep.mubr.bf16.mxu0 %v23226_v21  ;;  %14706 = vmatprep.subr.bf16.mxu1 %v17158_v55 }
 0xad6   : > { %14707 = vmatpush3.bf16.msra.mxu1 %v17159_v17  ;;  %v23258_v17 = vld [vmem:[#allocation21_spill] sm:$0xff] }
 0xad7   : > { %14708 = vmatprep.subr.bf16.mxu1 %v17160_v26 }
 0xada   : > { %12391 = vmatmul.mubr.bf16.gmra.mrb[212].mxu0 %v23227_v13  ;;  %14709 = vmatpush3.bf16.msra.mxu1 %v17161_v16 }
 0xadb   : > { %12400 = vmatprep.mubr.bf16.mxu0 %v23228_v32  ;;  %14710 = vmatprep.subr.bf16.mxu1 %v17162_v3 }
 0xade   : > { %14711 = vmatpush3.bf16.msra.mxu1 %v17163_v52 }
 0xae2   : > { %12401 = vmatmul.mubr.bf16.gmra.mrb[216].mxu0 %v23229_v8  ;;  %v23253_v8 = vld [vmem:[#allocation63_spill] sm:$0xff] }
 0xae3   : > { %12410 = vmatprep.mubr.bf16.mxu0 %v23230_v60 }
 0xaea   : > { %12411 = vmatmul.mubr.bf16.gmra.mrb[220].mxu0 %v23231_v24 }
 0xaeb   : > { %12453 = vmatprep.mubr.bf16.mxu0 %v23232_v63 }
 0xaf2   : > { %12454 = vmatmul.mubr.bf16.vlgmr.msra.gmra.mrb[160].mxu0 %v23233_v43 }
 0xaf3   : > { %12463 = vmatprep.mubr.bf16.mxu0 %v23234_v20  ;;  %v23254_v20 = vld [vmem:[#allocation64_spill] sm:$0xff] }
 0xafa   : > { %12464 = vmatmul.mubr.bf16.gmra.mrb[164].mxu0 %v23235_v39  ;;  %v23255_v39 = vld [vmem:[#allocation22_spill] sm:$0xff] }
 0xafb   : > { %12473 = vmatprep.mubr.bf16.mxu0 %v23236_v36 }
 0xb02   : > { %12474 = vmatmul.mubr.bf16.gmra.mrb[168].mxu0 %v23237_v40 }
 0xb03   : > { %12483 = vmatprep.mubr.bf16.mxu0 %v23238_v29 }
 0xb0a   : > { %12484 = vmatmul.mubr.bf16.gmra.mrb[172].mxu0 %v23239_v19 }
 0xb0b   : > { %12493 = vmatprep.mubr.bf16.mxu0 %v23240_v28  ;;  %v23256_v28 = vld [vmem:[#allocation14_spill] sm:$0xff] }
 0xb12   : > { %12494 = vmatmul.mubr.bf16.gmra.mrb[176].mxu0 %v23241_v47 }
 0xb13   : > { %12503 = vmatprep.mubr.bf16.mxu0 %v23242_v2 }
 0xb1a   : > { %12504 = vmatmul.mubr.bf16.gmra.mrb[180].mxu0 %v23243_v58 }
 0xb1b   : > { %12513 = vmatprep.mubr.bf16.mxu0 %v23244_v0 }
 0xb22   : > { %12514 = vmatmul.mubr.bf16.gmra.mrb[184].mxu0 %v23245_v48 }
 0xb23   : > { %12523 = vmatprep.mubr.bf16.mxu0 %v23246_v62  ;;  %v14600_v5 = vpop.f32.mrb[160].mxu1 }
 0xb24   : > { %v14601_v53 = vpop.f32.mrb[161].mxu1 }
 0xb25   : > { %v22384_v25 = vadd.f32 %v14601_v53, %v14600_v5  ;;  %v14603_v31 = vpop.f32.mrb[162].mxu1 }
 0xb26   : > { %v14604_v27 = vpop.f32.mrb[163].mxu1 }
 0xb27   : > { %v22389_v45 = vadd.f32 %v14604_v27, %v14603_v31 }
 0xb2a   : > { %12524 = vmatmul.mubr.bf16.gmra.mrb[188].mxu0 %v23247_v42 }
 0xb2b   : > { %12533 = vmatprep.mubr.bf16.mxu0 %v21885_v49  ;;  %v14606_v61 = vpop.f32.mrb[164].mxu1 }
 0xb2c   : > { %v14607_v54 = vpop.f32.mrb[165].mxu1 }
 0xb2d   : > { %v22396_v41 = vadd.f32 %v14607_v54, %v14606_v61  ;;  %v14609_v38 = vpop.f32.mrb[166].mxu1 }
 0xb2e   : > { %v14610_v33 = vpop.f32.mrb[167].mxu1 }
 0xb2f   : > { %v22398_v23 = vadd.f32 %v14610_v33, %v14609_v38 }
 0xb32   : > { %12534 = vmatmul.mubr.bf16.gmra.mrb[192].mxu0 %v23248_v22 }
 0xb33   : > { %12543 = vmatprep.mubr.bf16.mxu0 %v23249_v9  ;;  %v14612_v37 = vpop.f32.mrb[168].mxu1 }
 0xb34   : > { %v14613_v46 = vpop.f32.mrb[169].mxu1 }
 0xb35   : > { %v22402_v12 = vadd.f32 %v14613_v46, %v14612_v37  ;;  %v14615_v35 = vpop.f32.mrb[170].mxu1 }
 0xb36   : > { %v14616_v7 = vpop.f32.mrb[171].mxu1 }
 0xb37   : > { %v22404_v49 = vadd.f32 %v14616_v7, %v14615_v35 }
 0xb3a   : > { %12544 = vmatmul.mubr.bf16.gmra.mrb[196].mxu0 %v23250_v51 }
 0xb3b   : > { %12553 = vmatprep.mubr.bf16.mxu0 %v23251_v11  ;;  %v14618_v57 = vpop.f32.mrb[172].mxu1 }
 0xb3c   : > { %v14619_v56 = vpop.f32.mrb[173].mxu1 }
 0xb3d   : > { %v22408_v21 = vadd.f32 %v14619_v56, %v14618_v57  ;;  %v14621_v13 = vpop.f32.mrb[174].mxu1 }
 0xb3e   : > { %v14622_v32 = vpop.f32.mrb[175].mxu1 }
 0xb3f   : > { %v22410_v44 = vadd.f32 %v14622_v32, %v14621_v13 }
 0xb42   : > { %12554 = vmatmul.mubr.bf16.gmra.mrb[200].mxu0 %v23252_v18 }
 0xb43   : > { %12563 = vmatprep.mubr.bf16.mxu0 %v23253_v8  ;;  %v14624_v60 = vpop.f32.mrb[176].mxu1 }
 0xb44   : > { %v14625_v24 = vpop.f32.mrb[177].mxu1 }
 0xb45   : > { %v22414_v63 = vadd.f32 %v14625_v24, %v14624_v60  ;;  %v14627_v15 = vpop.f32.mrb[178].mxu1 }
 0xb46   : > { %v14628_v10 = vpop.f32.mrb[179].mxu1 }
 0xb47   : > { %v22416_v43 = vadd.f32 %v14628_v10, %v14627_v15 }
 0xb4a   : > { %12564 = vmatmul.mubr.bf16.gmra.mrb[204].mxu0 %v23254_v20 }
 0xb4b   : > { %12573 = vmatprep.mubr.bf16.mxu0 %v23255_v39  ;;  %v14630_v36 = vpop.f32.mrb[180].mxu1 }
 0xb4c   : > { %v14631_v14 = vpop.f32.mrb[181].mxu1 }
 0xb4d   : > { %v22420_v50 = vadd.f32 %v14631_v14, %v14630_v36  ;;  %v14633_v40 = vpop.f32.mrb[182].mxu1 }
 0xb4e   : > { %v14634_v29 = vpop.f32.mrb[183].mxu1 }
 0xb4f   : > { %v22422_v19 = vadd.f32 %v14634_v29, %v14633_v40 }
 0xb52   : > { %12574 = vmatmul.mubr.bf16.gmra.mrb[208].mxu0 %v23256_v28 }
 0xb53   : > { %12583 = vmatprep.mubr.bf16.mxu0 %v23257_v59  ;;  %v14636_v34 = vpop.f32.mrb[184].mxu1 }
 0xb54   : > { %v14637_v47 = vpop.f32.mrb[185].mxu1 }
 0xb55   : > { %v22426_v2 = vadd.f32 %v14637_v47, %v14636_v34  ;;  %v14639_v58 = vpop.f32.mrb[186].mxu1 }
 0xb56   : > { %v14640_v0 = vpop.f32.mrb[187].mxu1 }
 0xb57   : > { %v22428_v55 = vadd.f32 %v14640_v0, %v14639_v58 }
 0xb5a   : > { %12584 = vmatmul.mubr.bf16.gmra.mrb[212].mxu0 %v23258_v17 }
 0xb5b   : > { %12593 = vmatprep.mubr.bf16.mxu0 %v21987_v6  ;;  %v14642_v26 = vpop.f32.mrb[188].mxu1 }
 0xb5c   : > { %v14643_v48 = vpop.f32.mrb[189].mxu1 }
 0xb5d   : > { %v22432_v62 = vadd.f32 %v14643_v48, %v14642_v26  ;;  %v14645_v5 = vpop.f32.mrb[190].mxu1 }
 0xb5e   : > { %v14646_v53 = vpop.f32.mrb[191].mxu1 }
 0xb5f   : > { %v22434_v16 = vadd.f32 %v14646_v53, %v14645_v5 }
 0xb62   : > { %12594 = vmatmul.mubr.bf16.gmra.mrb[216].mxu0 %v21985_v1 }
 0xb63   : > { %12603 = vmatprep.mubr.bf16.mxu0 %v21997_v4  ;;  %v14648_v31 = vpop.f32.mrb[192].mxu1 }
 0xb64   : > { %v14649_v3 = vpop.f32.mrb[193].mxu1 }
 0xb65   : > { %v22438_v27 = vadd.f32 %v14649_v3, %v14648_v31  ;;  %v14651_v52 = vpop.f32.mrb[194].mxu1  ;;  %v17168_v31 = vld [vmem:[%s22667_s12] sm:$0xf] }
 0xb66   : > { %v14652_v42 = vpop.f32.mrb[195].mxu1  ;;  %v23259_v3 = vld [vmem:[#allocation34_spill] sm:$0xff] }
 0xb67   : > { %v22440_v61 = vadd.f32 %v14652_v42, %v14651_v52  ;;  %v22475_v52 = vrot.slane %v17168_v31, %v23259_v3  ;;  %v23260_v42 = vld [vmem:[#allocation35_spill] sm:$0xff] }
 0xb6a   : > { %12604 = vmatmul.mubr.bf16.gmra.mrb[220].mxu0 %v21995_v30 }
 0xb6b   : > { %v14654_v6 = vpop.f32.mrb[196].mxu1 }
 0xb6c   : > { %v14655_v54 = vpop.f32.mrb[197].mxu1 }
 0xb6d   : > { %v22443_v38 = vadd.f32 %v14655_v54, %v14654_v6  ;;  %v14657_v33 = vpop.f32.mrb[198].mxu1  ;;  %v22478_v6 = vrot.slane %v17168_v31, %v23260_v42 }
 0xb6e   : > { %v14658_v22 = vpop.f32.mrb[199].mxu1 }
 0xb6f   : > { %v22445_v9 = vadd.f32 %v14658_v22, %v14657_v33 }
 0xb73   : > { %v14660_v1 = vpop.f32.mrb[200].mxu1 }
 0xb74   : > { %v14661_v4 = vpop.f32.mrb[201].mxu1 }
 0xb75   : > { %v22447_v37 = vadd.f32 %v14661_v4, %v14660_v1  ;;  %v14663_v46 = vpop.f32.mrb[202].mxu1 }
 0xb76   : > { %v14664_v35 = vpop.f32.mrb[203].mxu1 }
 0xb77   : > { %v22449_v7 = vadd.f32 %v14664_v35, %v14663_v46 }
 0xb7b   : > { %v14666_v51 = vpop.f32.mrb[204].mxu1 }
 0xb7c   : > { %v14667_v11 = vpop.f32.mrb[205].mxu1 }
 0xb7d   : > { %v22451_v57 = vadd.f32 %v14667_v11, %v14666_v51  ;;  %v14669_v30 = vpop.f32.mrb[206].mxu1 }
 0xb7e   : > { %v14670_v56 = vpop.f32.mrb[207].mxu1 }
 0xb7f   : > { %v22453_v13 = vadd.f32 %v14670_v56, %v14669_v30 }
 0xb83   : > { %v14672_v32 = vpop.f32.mrb[208].mxu1 }
 0xb84   : > { %v14673_v18 = vpop.f32.mrb[209].mxu1 }
 0xb85   : > { %v22455_v8 = vadd.f32 %v14673_v18, %v14672_v32  ;;  %v14675_v60 = vpop.f32.mrb[210].mxu1 }
 0xb86   : > { %v14676_v24 = vpop.f32.mrb[211].mxu1 }
 0xb87   : > { %v22457_v15 = vadd.f32 %v14676_v24, %v14675_v60 }
 0xb8b   : > { %v14678_v10 = vpop.f32.mrb[212].mxu1 }
 0xb8c   : > { %v14679_v20 = vpop.f32.mrb[213].mxu1 }
 0xb8d   : > { %v22459_v39 = vadd.f32 %v14679_v20, %v14678_v10  ;;  %v14681_v36 = vpop.f32.mrb[214].mxu1 }
 0xb8e   : > { %v14682_v14 = vpop.f32.mrb[215].mxu1 }
 0xb8f   : > { %v22461_v40 = vadd.f32 %v14682_v14, %v14681_v36 }
 0xb93   : > { %v14684_v29 = vpop.f32.mrb[216].mxu1 }
 0xb94   : > { %v14685_v28 = vpop.f32.mrb[217].mxu1 }
 0xb95   : > { %v22463_v59 = vadd.f32 %v14685_v28, %v14684_v29  ;;  %v14687_v34 = vpop.f32.mrb[218].mxu1 }
 0xb96   : > { %v14688_v47 = vpop.f32.mrb[219].mxu1 }
 0xb97   : > { %v22465_v58 = vadd.f32 %v14688_v47, %v14687_v34 }
 0xb9b   : > { %v14690_v0 = vpop.f32.mrb[220].mxu1 }
 0xb9c   : > { %v14691_v17 = vpop.f32.mrb[221].mxu1 }
 0xb9d   : > { %v22467_v26 = vadd.f32 %v14691_v17, %v14690_v0  ;;  %v14693_v48 = vpop.f32.mrb[222].mxu1 }
 0xb9e   : > { %v14694_v5 = vpop.f32.mrb[223].mxu1 }
 0xb9f   : > { %v22469_v53 = vadd.f32 %v14694_v5, %v14693_v48 }
 0xbc5   : > { %v12455_v54 = vpop.f32.mrb[160].mxu0 }
 0xbc6   : > { %v15184_v33 = vadd.f32 %v12455_v54, %v22475_v52  ;;  %v12457_v22 = vpop.f32.mrb[161].mxu0 }
 0xbc7   : > { %v15185_v1 = vadd.f32 %v12457_v22, %v22478_v6  ;;  %v12459_v4 = vpop.f32.mrb[162].mxu0 }
 0xbc8   : > { %v15186_v46 = vadd.f32 %v12459_v4, %v22475_v52  ;;  %v12461_v35 = vpop.f32.mrb[163].mxu0  ;;  %v12616_v11 = vmax.f32 %v15184_v33, 0.0 }
 0xbc9   : > { %v15187_v51 = vadd.f32 %v12461_v35, %v22478_v6  ;;  %v12617_v56 = vmax.f32 %v15185_v1, 0.0 }
 0xbca   : > { %v12620_v30 = vmax.f32 %v15186_v46, 0.0 }
 0xbcb   : > { %v12621_v32 = vmax.f32 %v15187_v51, 0.0 }
 0xbcc   : > { %v12744_v18 = vpack.c.bf16 %v12620_v30, %v12616_v11 }
 0xbcd   : > { %v12745_v60 = vpack.c.bf16 %v12621_v32, %v12617_v56  ;;  %v12465_v24 = vpop.f32.mrb[164].mxu0 }
 0xbce   : > { %v15188_v10 = vadd.f32 %v12465_v24, %v22475_v52  ;;  %v12467_v20 = vpop.f32.mrb[165].mxu0 }
 0xbcf   : > { %v15189_v36 = vadd.f32 %v12467_v20, %v22478_v6  ;;  %v12469_v14 = vpop.f32.mrb[166].mxu0  ;;  %13262 = vmatprep.mubr.bf16.mxu1 %v12745_v60 }
 0xbd0   : > { %v15190_v29 = vadd.f32 %v12469_v14, %v22475_v52  ;;  %v12471_v28 = vpop.f32.mrb[167].mxu0  ;;  %13263 = vmatmul.mubr.bf16.vlgmr.msra.gmra.mrb[224].mxu1 %v12744_v18  ;;  %v12624_v47 = vmax.f32 %v15188_v10, 0.0 }
 0xbd1   : > { %v15191_v34 = vadd.f32 %v12471_v28, %v22478_v6  ;;  %v12625_v17 = vmax.f32 %v15189_v36, 0.0 }
 0xbd2   : > { %v12628_v0 = vmax.f32 %v15190_v29, 0.0 }
 0xbd3   : > { %v12629_v48 = vmax.f32 %v15191_v34, 0.0 }
 0xbd4   : > { %v12748_v5 = vpack.c.bf16 %v12628_v0, %v12624_v47 }
 0xbd5   : > { %v12749_v31 = vpack.c.bf16 %v12629_v48, %v12625_v17  ;;  %v12475_v3 = vpop.f32.mrb[168].mxu0 }
 0xbd6   : > { %v15192_v42 = vadd.f32 %v12475_v3, %v22475_v52  ;;  %v12477_v54 = vpop.f32.mrb[169].mxu0 }
 0xbd7   : > { %v15193_v33 = vadd.f32 %v12477_v54, %v22478_v6  ;;  %v12479_v22 = vpop.f32.mrb[170].mxu0  ;;  %13270 = vmatprep.mubr.bf16.mxu1 %v12749_v31 }
 0xbd8   : > { %v15194_v1 = vadd.f32 %v12479_v22, %v22475_v52  ;;  %v12481_v4 = vpop.f32.mrb[171].mxu0  ;;  %13271 = vmatmul.mubr.bf16.gmra.mrb[228].mxu1 %v12748_v5  ;;  %v12632_v35 = vmax.f32 %v15192_v42, 0.0 }
 0xbd9   : > { %v15195_v46 = vadd.f32 %v12481_v4, %v22478_v6  ;;  %v12633_v11 = vmax.f32 %v15193_v33, 0.0 }
 0xbda   : > { %v12636_v51 = vmax.f32 %v15194_v1, 0.0 }
 0xbdb   : > { %v12637_v30 = vmax.f32 %v15195_v46, 0.0 }
 0xbdc   : > { %v12752_v56 = vpack.c.bf16 %v12636_v51, %v12632_v35 }
 0xbdd   : > { %v12753_v32 = vpack.c.bf16 %v12637_v30, %v12633_v11  ;;  %v12485_v18 = vpop.f32.mrb[172].mxu0 }
 0xbde   : > { %v15196_v60 = vadd.f32 %v12485_v18, %v22475_v52  ;;  %v12487_v24 = vpop.f32.mrb[173].mxu0 }
 0xbdf   : > { %v15197_v10 = vadd.f32 %v12487_v24, %v22478_v6  ;;  %v12489_v20 = vpop.f32.mrb[174].mxu0  ;;  %13278 = vmatprep.mubr.bf16.mxu1 %v12753_v32 }
 0xbe0   : > { %v15198_v36 = vadd.f32 %v12489_v20, %v22475_v52  ;;  %v12491_v14 = vpop.f32.mrb[175].mxu0  ;;  %13279 = vmatmul.mubr.bf16.gmra.mrb[232].mxu1 %v12752_v56  ;;  %v12640_v28 = vmax.f32 %v15196_v60, 0.0 }
 0xbe1   : > { %v15199_v29 = vadd.f32 %v12491_v14, %v22478_v6  ;;  %v12641_v47 = vmax.f32 %v15197_v10, 0.0 }
 0xbe2   : > { %v12644_v34 = vmax.f32 %v15198_v36, 0.0 }
 0xbe3   : > { %v12645_v0 = vmax.f32 %v15199_v29, 0.0 }
 0xbe4   : > { %v12756_v17 = vpack.c.bf16 %v12644_v34, %v12640_v28 }
 0xbe5   : > { %v12757_v48 = vpack.c.bf16 %v12645_v0, %v12641_v47  ;;  %v12495_v5 = vpop.f32.mrb[176].mxu0 }
 0xbe6   : > { %v15200_v31 = vadd.f32 %v12495_v5, %v22475_v52  ;;  %v12497_v3 = vpop.f32.mrb[177].mxu0 }
 0xbe7   : > { %v15201_v42 = vadd.f32 %v12497_v3, %v22478_v6  ;;  %v12499_v54 = vpop.f32.mrb[178].mxu0  ;;  %13286 = vmatprep.mubr.bf16.mxu1 %v12757_v48 }
 0xbe8   : > { %v15202_v33 = vadd.f32 %v12499_v54, %v22475_v52  ;;  %v12501_v22 = vpop.f32.mrb[179].mxu0  ;;  %13287 = vmatmul.mubr.bf16.gmra.mrb[236].mxu1 %v12756_v17  ;;  %v12648_v4 = vmax.f32 %v15200_v31, 0.0 }
 0xbe9   : > { %v15203_v1 = vadd.f32 %v12501_v22, %v22478_v6  ;;  %v12649_v35 = vmax.f32 %v15201_v42, 0.0 }
 0xbea   : > { %v12652_v46 = vmax.f32 %v15202_v33, 0.0 }
 0xbeb   : > { %v12653_v51 = vmax.f32 %v15203_v1, 0.0 }
 0xbec   : > { %v12760_v11 = vpack.c.bf16 %v12652_v46, %v12648_v4 }
 0xbed   : > { %v12761_v30 = vpack.c.bf16 %v12653_v51, %v12649_v35  ;;  %v12505_v56 = vpop.f32.mrb[180].mxu0 }
 0xbee   : > { %v15204_v32 = vadd.f32 %v12505_v56, %v22475_v52  ;;  %v12507_v18 = vpop.f32.mrb[181].mxu0 }
 0xbef   : > { %v15205_v60 = vadd.f32 %v12507_v18, %v22478_v6  ;;  %v12509_v24 = vpop.f32.mrb[182].mxu0  ;;  %13294 = vmatprep.mubr.bf16.mxu1 %v12761_v30 }
 0xbf0   : > { %v15206_v10 = vadd.f32 %v12509_v24, %v22475_v52  ;;  %v12511_v20 = vpop.f32.mrb[183].mxu0  ;;  %13295 = vmatmul.mubr.bf16.gmra.mrb[240].mxu1 %v12760_v11  ;;  %v12656_v14 = vmax.f32 %v15204_v32, 0.0 }
 0xbf1   : > { %v15207_v36 = vadd.f32 %v12511_v20, %v22478_v6  ;;  %v12657_v28 = vmax.f32 %v15205_v60, 0.0 }
 0xbf2   : > { %v12660_v29 = vmax.f32 %v15206_v10, 0.0 }
 0xbf3   : > { %v12661_v34 = vmax.f32 %v15207_v36, 0.0 }
 0xbf4   : > { %v12764_v47 = vpack.c.bf16 %v12660_v29, %v12656_v14 }
 0xbf5   : > { %v12765_v0 = vpack.c.bf16 %v12661_v34, %v12657_v28  ;;  %v12515_v17 = vpop.f32.mrb[184].mxu0 }
 0xbf6   : > { %v15208_v48 = vadd.f32 %v12515_v17, %v22475_v52  ;;  %v12517_v5 = vpop.f32.mrb[185].mxu0 }
 0xbf7   : > { %v15209_v31 = vadd.f32 %v12517_v5, %v22478_v6  ;;  %v12519_v3 = vpop.f32.mrb[186].mxu0  ;;  %13302 = vmatprep.mubr.bf16.mxu1 %v12765_v0 }
 0xbf8   : > { %v15210_v42 = vadd.f32 %v12519_v3, %v22475_v52  ;;  %v12521_v54 = vpop.f32.mrb[187].mxu0  ;;  %13303 = vmatmul.mubr.bf16.gmra.mrb[244].mxu1 %v12764_v47  ;;  %v12664_v22 = vmax.f32 %v15208_v48, 0.0 }
 0xbf9   : > { %v15211_v33 = vadd.f32 %v12521_v54, %v22478_v6  ;;  %v12665_v4 = vmax.f32 %v15209_v31, 0.0 }
 0xbfa   : > { %v12668_v1 = vmax.f32 %v15210_v42, 0.0 }
 0xbfb   : > { %v12669_v46 = vmax.f32 %v15211_v33, 0.0 }
 0xbfc   : > { %v12768_v35 = vpack.c.bf16 %v12668_v1, %v12664_v22 }
 0xbfd   : > { %v12769_v51 = vpack.c.bf16 %v12669_v46, %v12665_v4  ;;  %v12525_v11 = vpop.f32.mrb[188].mxu0 }
 0xbfe   : > { %v15212_v30 = vadd.f32 %v12525_v11, %v22475_v52  ;;  %v12527_v56 = vpop.f32.mrb[189].mxu0 }
 0xbff   : > { %v15213_v32 = vadd.f32 %v12527_v56, %v22478_v6  ;;  %v12529_v18 = vpop.f32.mrb[190].mxu0  ;;  %13310 = vmatprep.mubr.bf16.mxu1 %v12769_v51 }
 0xc00   : > { %v15214_v60 = vadd.f32 %v12529_v18, %v22475_v52  ;;  %v12531_v24 = vpop.f32.mrb[191].mxu0  ;;  %13311 = vmatmul.mubr.bf16.gmra.mrb[248].mxu1 %v12768_v35  ;;  %v12672_v20 = vmax.f32 %v15212_v30, 0.0 }
 0xc01   : > { %v15215_v10 = vadd.f32 %v12531_v24, %v22478_v6  ;;  %v12673_v14 = vmax.f32 %v15213_v32, 0.0 }
 0xc02   : > { %v12676_v36 = vmax.f32 %v15214_v60, 0.0 }
 0xc03   : > { %v12677_v29 = vmax.f32 %v15215_v10, 0.0 }
 0xc04   : > { %v12772_v28 = vpack.c.bf16 %v12676_v36, %v12672_v20 }
 0xc05   : > { %v12773_v34 = vpack.c.bf16 %v12677_v29, %v12673_v14  ;;  %v12535_v47 = vpop.f32.mrb[192].mxu0 }
 0xc06   : > { %v15216_v0 = vadd.f32 %v12535_v47, %v22475_v52  ;;  %v12537_v17 = vpop.f32.mrb[193].mxu0 }
 0xc07   : > { %v15217_v48 = vadd.f32 %v12537_v17, %v22478_v6  ;;  %v12539_v5 = vpop.f32.mrb[194].mxu0  ;;  %13318 = vmatprep.mubr.bf16.mxu1 %v12773_v34 }
 0xc08   : > { %v15218_v31 = vadd.f32 %v12539_v5, %v22475_v52  ;;  %v12541_v3 = vpop.f32.mrb[195].mxu0  ;;  %13319 = vmatmul.mubr.bf16.gmra.mrb[252].mxu1 %v12772_v28  ;;  %v12680_v54 = vmax.f32 %v15216_v0, 0.0 }
 0xc09   : > { %v15219_v42 = vadd.f32 %v12541_v3, %v22478_v6  ;;  %v12681_v22 = vmax.f32 %v15217_v48, 0.0 }
 0xc0a   : > { %v12684_v33 = vmax.f32 %v15218_v31, 0.0 }
 0xc0b   : > { %v12685_v1 = vmax.f32 %v15219_v42, 0.0 }
 0xc0c   : > { %v12776_v4 = vpack.c.bf16 %v12684_v33, %v12680_v54 }
 0xc0d   : > { %v12777_v46 = vpack.c.bf16 %v12685_v1, %v12681_v22  ;;  %v12545_v35 = vpop.f32.mrb[196].mxu0 }
 0xc0e   : > { %v15220_v51 = vadd.f32 %v12545_v35, %v22475_v52  ;;  %v12547_v11 = vpop.f32.mrb[197].mxu0 }
 0xc0f   : > { %v15221_v30 = vadd.f32 %v12547_v11, %v22478_v6  ;;  %v12549_v56 = vpop.f32.mrb[198].mxu0  ;;  %13326 = vmatprep.mubr.bf16.mxu1 %v12777_v46 }
 0xc10   : > { %v15222_v32 = vadd.f32 %v12549_v56, %v22475_v52  ;;  %v12551_v18 = vpop.f32.mrb[199].mxu0  ;;  %13327 = vmatmul.mubr.bf16.gmra.mrb[0].mxu1 %v12776_v4  ;;  %v12688_v24 = vmax.f32 %v15220_v51, 0.0 }
 0xc11   : > { %v15223_v60 = vadd.f32 %v12551_v18, %v22478_v6  ;;  %v12689_v20 = vmax.f32 %v15221_v30, 0.0 }
 0xc12   : > { %v12692_v10 = vmax.f32 %v15222_v32, 0.0 }
 0xc13   : > { %v12693_v36 = vmax.f32 %v15223_v60, 0.0 }
 0xc14   : > { %v12780_v14 = vpack.c.bf16 %v12692_v10, %v12688_v24 }
 0xc15   : > { %v12781_v29 = vpack.c.bf16 %v12693_v36, %v12689_v20  ;;  %v12555_v28 = vpop.f32.mrb[200].mxu0 }
 0xc16   : > { %v15224_v34 = vadd.f32 %v12555_v28, %v22475_v52  ;;  %v12557_v47 = vpop.f32.mrb[201].mxu0 }
 0xc17   : > { %v15225_v0 = vadd.f32 %v12557_v47, %v22478_v6  ;;  %v12559_v17 = vpop.f32.mrb[202].mxu0  ;;  %13334 = vmatprep.mubr.bf16.mxu1 %v12781_v29 }
 0xc18   : > { %v15226_v48 = vadd.f32 %v12559_v17, %v22475_v52  ;;  %v12561_v5 = vpop.f32.mrb[203].mxu0  ;;  %13335 = vmatmul.mubr.bf16.gmra.mrb[4].mxu1 %v12780_v14  ;;  %v12696_v3 = vmax.f32 %v15224_v34, 0.0 }
 0xc19   : > { %v15227_v31 = vadd.f32 %v12561_v5, %v22478_v6  ;;  %v12697_v54 = vmax.f32 %v15225_v0, 0.0 }
 0xc1a   : > { %v12700_v42 = vmax.f32 %v15226_v48, 0.0 }
 0xc1b   : > { %v12701_v33 = vmax.f32 %v15227_v31, 0.0 }
 0xc1c   : > { %v12784_v22 = vpack.c.bf16 %v12700_v42, %v12696_v3 }
 0xc1d   : > { %v12785_v1 = vpack.c.bf16 %v12701_v33, %v12697_v54  ;;  %v12565_v4 = vpop.f32.mrb[204].mxu0 }
 0xc1e   : > { %v15228_v46 = vadd.f32 %v12565_v4, %v22475_v52  ;;  %v12567_v35 = vpop.f32.mrb[205].mxu0 }
 0xc1f   : > { %v15229_v51 = vadd.f32 %v12567_v35, %v22478_v6  ;;  %v12569_v11 = vpop.f32.mrb[206].mxu0  ;;  %13342 = vmatprep.mubr.bf16.mxu1 %v12785_v1 }
 0xc20   : > { %v15230_v30 = vadd.f32 %v12569_v11, %v22475_v52  ;;  %v12571_v56 = vpop.f32.mrb[207].mxu0  ;;  %13343 = vmatmul.mubr.bf16.gmra.mrb[8].mxu1 %v12784_v22  ;;  %v12704_v18 = vmax.f32 %v15228_v46, 0.0 }
 0xc21   : > { %v15231_v32 = vadd.f32 %v12571_v56, %v22478_v6  ;;  %v12705_v24 = vmax.f32 %v15229_v51, 0.0 }
 0xc22   : > { %v12708_v60 = vmax.f32 %v15230_v30, 0.0 }
 0xc23   : > { %v12709_v10 = vmax.f32 %v15231_v32, 0.0 }
 0xc24   : > { %v12788_v20 = vpack.c.bf16 %v12708_v60, %v12704_v18 }
 0xc25   : > { %v12789_v36 = vpack.c.bf16 %v12709_v10, %v12705_v24  ;;  %v12575_v14 = vpop.f32.mrb[208].mxu0 }
 0xc26   : > { %v15232_v29 = vadd.f32 %v12575_v14, %v22475_v52  ;;  %v12577_v28 = vpop.f32.mrb[209].mxu0 }
 0xc27   : > { %v15233_v34 = vadd.f32 %v12577_v28, %v22478_v6  ;;  %v12579_v47 = vpop.f32.mrb[210].mxu0  ;;  %13350 = vmatprep.mubr.bf16.mxu1 %v12789_v36 }
 0xc28   : > { %v15234_v0 = vadd.f32 %v12579_v47, %v22475_v52  ;;  %v12581_v17 = vpop.f32.mrb[211].mxu0  ;;  %13351 = vmatmul.mubr.bf16.gmra.mrb[12].mxu1 %v12788_v20  ;;  %v12712_v5 = vmax.f32 %v15232_v29, 0.0 }
 0xc29   : > { %v15235_v48 = vadd.f32 %v12581_v17, %v22478_v6  ;;  %v12713_v3 = vmax.f32 %v15233_v34, 0.0 }
 0xc2a   : > { %v12716_v31 = vmax.f32 %v15234_v0, 0.0 }
 0xc2b   : > { %v12717_v42 = vmax.f32 %v15235_v48, 0.0 }
 0xc2c   : > { %v12792_v54 = vpack.c.bf16 %v12716_v31, %v12712_v5 }
 0xc2d   : > { %v12793_v33 = vpack.c.bf16 %v12717_v42, %v12713_v3  ;;  %v12585_v22 = vpop.f32.mrb[212].mxu0 }
 0xc2e   : > { %v15236_v1 = vadd.f32 %v12585_v22, %v22475_v52  ;;  %v12587_v4 = vpop.f32.mrb[213].mxu0 }
 0xc2f   : > { %v15237_v46 = vadd.f32 %v12587_v4, %v22478_v6  ;;  %v12589_v35 = vpop.f32.mrb[214].mxu0  ;;  %13358 = vmatprep.mubr.bf16.mxu1 %v12793_v33 }
 0xc30   : > { %v15238_v51 = vadd.f32 %v12589_v35, %v22475_v52  ;;  %v12591_v11 = vpop.f32.mrb[215].mxu0  ;;  %13359 = vmatmul.mubr.bf16.gmra.mrb[16].mxu1 %v12792_v54  ;;  %v12720_v56 = vmax.f32 %v15236_v1, 0.0 }
 0xc31   : > { %v15239_v30 = vadd.f32 %v12591_v11, %v22478_v6  ;;  %v12721_v18 = vmax.f32 %v15237_v46, 0.0 }
 0xc32   : > { %v12724_v32 = vmax.f32 %v15238_v51, 0.0 }
 0xc33   : > { %v12725_v60 = vmax.f32 %v15239_v30, 0.0 }
 0xc34   : > { %v12796_v24 = vpack.c.bf16 %v12724_v32, %v12720_v56 }
 0xc35   : > { %v12797_v10 = vpack.c.bf16 %v12725_v60, %v12721_v18  ;;  %v12595_v20 = vpop.f32.mrb[216].mxu0 }
 0xc36   : > { %v15240_v36 = vadd.f32 %v12595_v20, %v22475_v52  ;;  %v12597_v14 = vpop.f32.mrb[217].mxu0 }
 0xc37   : > { %v15241_v29 = vadd.f32 %v12597_v14, %v22478_v6  ;;  %v12599_v28 = vpop.f32.mrb[218].mxu0  ;;  %13366 = vmatprep.mubr.bf16.mxu1 %v12797_v10 }
 0xc38   : > { %v15242_v34 = vadd.f32 %v12599_v28, %v22475_v52  ;;  %v12601_v47 = vpop.f32.mrb[219].mxu0  ;;  %13367 = vmatmul.mubr.bf16.gmra.mrb[20].mxu1 %v12796_v24  ;;  %v12728_v17 = vmax.f32 %v15240_v36, 0.0 }
 0xc39   : > { %v15243_v0 = vadd.f32 %v12601_v47, %v22478_v6  ;;  %v12729_v5 = vmax.f32 %v15241_v29, 0.0 }
 0xc3a   : > { %v12732_v48 = vmax.f32 %v15242_v34, 0.0 }
 0xc3b   : > { %v12733_v31 = vmax.f32 %v15243_v0, 0.0 }
 0xc3c   : > { %v12800_v3 = vpack.c.bf16 %v12732_v48, %v12728_v17 }
 0xc3d   : > { %v12801_v42 = vpack.c.bf16 %v12733_v31, %v12729_v5  ;;  %v12605_v54 = vpop.f32.mrb[220].mxu0 }
 0xc3e   : > { %v15244_v33 = vadd.f32 %v12605_v54, %v22475_v52  ;;  %v12607_v22 = vpop.f32.mrb[221].mxu0 }
 0xc3f   : > { %v15245_v1 = vadd.f32 %v12607_v22, %v22478_v6  ;;  %v12609_v4 = vpop.f32.mrb[222].mxu0  ;;  %13374 = vmatprep.mubr.bf16.mxu1 %v12801_v42 }
 0xc40   : > { %v15246_v46 = vadd.f32 %v12609_v4, %v22475_v52  ;;  %v12611_v35 = vpop.f32.mrb[223].mxu0  ;;  %13375 = vmatmul.mubr.bf16.gmra.mrb[24].mxu1 %v12800_v3  ;;  %v12736_v11 = vmax.f32 %v15244_v33, 0.0  ;;  %v22549_v52 = vld [vmem:[%s22669_s14] ss:$0 sm:$0xff] }
 0xc41   : > { %v15247_v51 = vadd.f32 %v12611_v35, %v22478_v6  ;;  %v12737_v56 = vmax.f32 %v15245_v1, 0.0  ;;  %v13104_v10 = vadd.f32 %v22384_v25, %v22549_v52  ;;  %v13107_v29 = vadd.f32 %v22389_v45, %v22549_v52 }
 0xc42   : > { %v12740_v30 = vmax.f32 %v15246_v46, 0.0  ;;  %v13112_v17 = vadd.f32 %v22396_v41, %v22549_v52  ;;  %v13115_v3 = vadd.f32 %v22398_v23, %v22549_v52  ;;  %v13120_v1 = vadd.f32 %v22402_v12, %v22549_v52 }
 0xc43   : > { %v12741_v32 = vmax.f32 %v15247_v51, 0.0  ;;  %v13123_v35 = vadd.f32 %v22404_v49, %v22549_v52 }
 0xc44   : > { %v12804_v18 = vpack.c.bf16 %v12740_v30, %v12736_v11 }
 0xc45   : > { %v12805_v60 = vpack.c.bf16 %v12741_v32, %v12737_v56  ;;  %v13128_v32 = vadd.f32 %v22408_v21, %v22549_v52 }
 0xc47   : > { %13382 = vmatprep.mubr.bf16.mxu1 %v12805_v60 }
 0xc48   : > { %13383 = vmatmul.mubr.bf16.gmra.mrb[28].mxu1 %v12804_v18 }
 0xca3   : > { %v14712_v24 = vpop.f32.mrb[224].mxu1 }
 0xca4   : > { %v14713_v6 = vpop.f32.mrb[225].mxu1 }
 0xca5   : > { %v14714_v20 = vadd.f32 %v14713_v6, %v14712_v24  ;;  %v14715_v36 = vpop.f32.mrb[226].mxu1  ;;  %v13131_v24 = vadd.f32 %v22410_v44, %v22549_v52 }
 0xca6   : > { %v14716_v14 = vpop.f32.mrb[227].mxu1 }
 0xca7   : > { %v13265_v28 = vadd.f32 %v14714_v20, %v13104_v10  ;;  %v14717_v34 = vadd.f32 %v14716_v14, %v14715_v36  ;;  %v13136_v14 = vadd.f32 %v22414_v63, %v22549_v52 }
 0xca9   : > { %13391 = vst [vmem:[%s22556_s20] sm:$0xff] %v13265_v28  ;;  %v13268_v47 = vadd.f32 %v14717_v34, %v13107_v29  ;;  %v13139_v34 = vadd.f32 %v22416_v43, %v22549_v52 }
 0xcab   : > { %13392 = vst [vmem:[%s22556_s20 + $0x8] sm:$0xff] %v13268_v47  ;;  %v14718_v25 = vpop.f32.mrb[228].mxu1 }
 0xcac   : > { %v14719_v0 = vpop.f32.mrb[229].mxu1 }
 0xcad   : > { %v14720_v48 = vadd.f32 %v14719_v0, %v14718_v25  ;;  %v14721_v5 = vpop.f32.mrb[230].mxu1 }
 0xcae   : > { %v14722_v31 = vpop.f32.mrb[231].mxu1 }
 0xcaf   : > { %v13273_v42 = vadd.f32 %v14720_v48, %v13112_v17  ;;  %v14723_v45 = vadd.f32 %v14722_v31, %v14721_v5  ;;  %v13144_v48 = vadd.f32 %v22420_v50, %v22549_v52 }
 0xcb1   : > { %13393 = vst [vmem:[%s22556_s20 + $0x10] sm:$0xff] %v13273_v42  ;;  %v13276_v54 = vadd.f32 %v14723_v45, %v13115_v3  ;;  %v13147_v3 = vadd.f32 %v22422_v19, %v22549_v52 }
 0xcb3   : > { %13394 = vst [vmem:[%s22556_s20 + $0x18] sm:$0xff] %v13276_v54  ;;  %v14724_v33 = vpop.f32.mrb[232].mxu1 }
 0xcb4   : > { %v14725_v22 = vpop.f32.mrb[233].mxu1 }
 0xcb5   : > { %v14726_v4 = vadd.f32 %v14725_v22, %v14724_v33  ;;  %v14727_v41 = vpop.f32.mrb[234].mxu1  ;;  %v13152_v22 = vadd.f32 %v22426_v2, %v22549_v52 }
 0xcb6   : > { %v14728_v46 = vpop.f32.mrb[235].mxu1 }
 0xcb7   : > { %v13281_v51 = vadd.f32 %v14726_v4, %v13120_v1  ;;  %v14729_v23 = vadd.f32 %v14728_v46, %v14727_v41  ;;  %v13155_v41 = vadd.f32 %v22428_v55, %v22549_v52 }
 0xcb9   : > { %13395 = vst [vmem:[%s22556_s20 + $0x20] sm:$0xff] %v13281_v51  ;;  %v13284_v11 = vadd.f32 %v14729_v23, %v13123_v35 }
 0xcbb   : > { %13396 = vst [vmem:[%s22556_s20 + $0x28] sm:$0xff] %v13284_v11  ;;  %v14730_v30 = vpop.f32.mrb[236].mxu1  ;;  %v13160_v11 = vadd.f32 %v22432_v62, %v22549_v52 }
 0xcbc   : > { %v14731_v56 = vpop.f32.mrb[237].mxu1 }
 0xcbd   : > { %v14732_v18 = vadd.f32 %v14731_v56, %v14730_v30  ;;  %v14733_v12 = vpop.f32.mrb[238].mxu1 }
 0xcbe   : > { %v14734_v60 = vpop.f32.mrb[239].mxu1 }
 0xcbf   : > { %v13289_v6 = vadd.f32 %v14732_v18, %v13128_v32  ;;  %v14735_v49 = vadd.f32 %v14734_v60, %v14733_v12  ;;  %v13163_v32 = vadd.f32 %v22434_v16, %v22549_v52 }
 0xcc1   : > { %13397 = vst [vmem:[%s22556_s20 + $0x30] sm:$0xff] %v13289_v6  ;;  %v13292_v10 = vadd.f32 %v14735_v49, %v13131_v24  ;;  %v13168_v6 = vadd.f32 %v22438_v27, %v22549_v52 }
 0xcc3   : > { %13398 = vst [vmem:[%s22556_s20 + $0x38] sm:$0xff] %v13292_v10  ;;  %v14736_v20 = vpop.f32.mrb[240].mxu1 }
 0xcc4   : > { %v14737_v36 = vpop.f32.mrb[241].mxu1 }
 0xcc5   : > { %v14738_v29 = vadd.f32 %v14737_v36, %v14736_v20  ;;  %v14739_v21 = vpop.f32.mrb[242].mxu1  ;;  %v13171_v20 = vadd.f32 %v22440_v61, %v22549_v52 }
 0xcc6   : > { %v14740_v28 = vpop.f32.mrb[243].mxu1 }
 0xcc7   : > { %v13297_v47 = vadd.f32 %v14738_v29, %v13136_v14  ;;  %v14741_v44 = vadd.f32 %v14740_v28, %v14739_v21  ;;  %v13176_v28 = vadd.f32 %v22443_v38, %v22549_v52 }
 0xcc9   : > { %13399 = vst [vmem:[%s22556_s20 + $0x40] sm:$0xff] %v13297_v47  ;;  %v13300_v25 = vadd.f32 %v14741_v44, %v13139_v34  ;;  %v13179_v44 = vadd.f32 %v22445_v9, %v22549_v52 }
 0xccb   : > { %13400 = vst [vmem:[%s22556_s20 + $0x48] sm:$0xff] %v13300_v25  ;;  %v14742_v0 = vpop.f32.mrb[244].mxu1 }
 0xccc   : > { %v14743_v17 = vpop.f32.mrb[245].mxu1 }
 0xccd   : > { %v14744_v5 = vadd.f32 %v14743_v17, %v14742_v0  ;;  %v14745_v63 = vpop.f32.mrb[246].mxu1 }
 0xcce   : > { %v14746_v31 = vpop.f32.mrb[247].mxu1 }
 0xccf   : > { %v13305_v42 = vadd.f32 %v14744_v5, %v13144_v48  ;;  %v14747_v43 = vadd.f32 %v14746_v31, %v14745_v63  ;;  %v13184_v5 = vadd.f32 %v22447_v37, %v22549_v52 }
 0xcd1   : > { %13401 = vst [vmem:[%s22556_s20 + $0x50] sm:$0xff] %v13305_v42  ;;  %v13308_v45 = vadd.f32 %v14747_v43, %v13147_v3  ;;  %v13187_v3 = vadd.f32 %v22449_v7, %v22549_v52 }
 0xcd3   : > { %13402 = vst [vmem:[%s22556_s20 + $0x58] sm:$0xff] %v13308_v45  ;;  %v14748_v54 = vpop.f32.mrb[248].mxu1 }
 0xcd4   : > { %v14749_v33 = vpop.f32.mrb[249].mxu1 }
 0xcd5   : > { %v14750_v1 = vadd.f32 %v14749_v33, %v14748_v54  ;;  %v14751_v50 = vpop.f32.mrb[250].mxu1  ;;  %v13192_v33 = vadd.f32 %v22451_v57, %v22549_v52 }
 0xcd6   : > { %v14752_v4 = vpop.f32.mrb[251].mxu1 }
 0xcd7   : > { %v13313_v46 = vadd.f32 %v14750_v1, %v13152_v22  ;;  %v14753_v19 = vadd.f32 %v14752_v4, %v14751_v50  ;;  %v13195_v50 = vadd.f32 %v22453_v13, %v22549_v52 }
 0xcd9   : > { %13403 = vst [vmem:[%s22556_s20 + $0x60] sm:$0xff] %v13313_v46  ;;  %v13316_v35 = vadd.f32 %v14753_v19, %v13155_v41 }
 0xcdb   : > { %13404 = vst [vmem:[%s22556_s20 + $0x68] sm:$0xff] %v13316_v35  ;;  %v14754_v51 = vpop.f32.mrb[252].mxu1  ;;  %v13200_v35 = vadd.f32 %v22455_v8, %v22549_v52 }
 0xcdc   : > { %v14755_v23 = vpop.f32.mrb[253].mxu1 }
 0xcdd   : > { %v14756_v30 = vadd.f32 %v14755_v23, %v14754_v51  ;;  %v14757_v2 = vpop.f32.mrb[254].mxu1 }
 0xcde   : > { %v14758_v56 = vpop.f32.mrb[255].mxu1 }
 0xcdf   : > { %v13321_v18 = vadd.f32 %v14756_v30, %v13160_v11  ;;  %v14759_v55 = vadd.f32 %v14758_v56, %v14757_v2  ;;  %v13203_v11 = vadd.f32 %v22457_v15, %v22549_v52 }
 0xce1   : > { %13405 = vst [vmem:[%s22556_s20 + $0x70] sm:$0xff] %v13321_v18  ;;  %v13324_v12 = vadd.f32 %v14759_v55, %v13163_v32  ;;  %v13208_v18 = vadd.f32 %v22459_v39, %v22549_v52 }
 0xce3   : > { %13406 = vst [vmem:[%s22556_s20 + $0x78] sm:$0xff] %v13324_v12  ;;  %v14760_v60 = vpop.f32.mrb[0].mxu1 }
 0xce4   : > { %v14761_v24 = vpop.f32.mrb[1].mxu1 }
 0xce5   : > { %v14762_v49 = vadd.f32 %v14761_v24, %v14760_v60  ;;  %v14763_v62 = vpop.f32.mrb[2].mxu1  ;;  %v13211_v60 = vadd.f32 %v22461_v40, %v22549_v52 }
 0xce6   : > { %v14764_v10 = vpop.f32.mrb[3].mxu1 }
 0xce7   : > { %v13329_v36 = vadd.f32 %v14762_v49, %v13168_v6  ;;  %v14765_v16 = vadd.f32 %v14764_v10, %v14763_v62  ;;  %v13216_v10 = vadd.f32 %v22463_v59, %v22549_v52 }
 0xce9   : > { %13407 = vst [vmem:[%s22556_s20 + $0x80] sm:$0xff] %v13329_v36  ;;  %v13332_v14 = vadd.f32 %v14765_v16, %v13171_v20  ;;  %v13219_v16 = vadd.f32 %v22465_v58, %v22549_v52 }
 0xceb   : > { %13408 = vst [vmem:[%s22556_s20 + $0x88] sm:$0xff] %v13332_v14  ;;  %v14766_v29 = vpop.f32.mrb[4].mxu1 }
 0xcec   : > { %v14767_v21 = vpop.f32.mrb[5].mxu1 }
 0xced   : > { %v14768_v34 = vadd.f32 %v14767_v21, %v14766_v29  ;;  %v14769_v27 = vpop.f32.mrb[6].mxu1 }
 0xcee   : > { %v14770_v47 = vpop.f32.mrb[7].mxu1 }
 0xcef   : > { %v13337_v25 = vadd.f32 %v14768_v34, %v13176_v28  ;;  %v14771_v61 = vadd.f32 %v14770_v47, %v14769_v27  ;;  %v13224_v34 = vadd.f32 %v22467_v26, %v22549_v52 }
 0xcf1   : > { %13409 = vst [vmem:[%s22556_s20 + $0x90] sm:$0xff] %v13337_v25  ;;  %v13340_v0 = vadd.f32 %v14771_v61, %v13179_v44  ;;  %v13227_v44 = vadd.f32 %v22469_v53, %v22549_v52 }
 0xcf3   : > { %13410 = vst [vmem:[%s22556_s20 + $0x98] sm:$0xff] %v13340_v0  ;;  %v14772_v17 = vpop.f32.mrb[8].mxu1 }
 0xcf4   : > { %v14773_v48 = vpop.f32.mrb[9].mxu1 }
 0xcf5   : > { %v14774_v63 = vadd.f32 %v14773_v48, %v14772_v17  ;;  %v14775_v38 = vpop.f32.mrb[10].mxu1 }
 0xcf6   : > { %v14776_v31 = vpop.f32.mrb[11].mxu1 }
 0xcf7   : > { %v13345_v42 = vadd.f32 %v14774_v63, %v13184_v5  ;;  %v14777_v9 = vadd.f32 %v14776_v31, %v14775_v38 }
 0xcf9   : > { %13411 = vst [vmem:[%s22556_s20 + $0xa0] sm:$0xff] %v13345_v42  ;;  %v13348_v43 = vadd.f32 %v14777_v9, %v13187_v3 }
 0xcfb   : > { %13412 = vst [vmem:[%s22556_s20 + $0xa8] sm:$0xff] %v13348_v43  ;;  %v14778_v45 = vpop.f32.mrb[12].mxu1 }
 0xcfc   : > { %v14779_v54 = vpop.f32.mrb[13].mxu1 }
 0xcfd   : > { %v14780_v22 = vadd.f32 %v14779_v54, %v14778_v45  ;;  %v14781_v37 = vpop.f32.mrb[14].mxu1 }
 0xcfe   : > { %v14782_v1 = vpop.f32.mrb[15].mxu1 }
 0xcff   : > { %v13353_v4 = vadd.f32 %v14780_v22, %v13192_v33  ;;  %v14783_v7 = vadd.f32 %v14782_v1, %v14781_v37 }
 0xd01   : > { %13413 = vst [vmem:[%s22556_s20 + $0xb0] sm:$0xff] %v13353_v4  ;;  %v13356_v41 = vadd.f32 %v14783_v7, %v13195_v50 }
 0xd03   : > { %13414 = vst [vmem:[%s22556_s20 + $0xb8] sm:$0xff] %v13356_v41  ;;  %v14784_v46 = vpop.f32.mrb[16].mxu1 }
 0xd04   : > { %v14785_v19 = vpop.f32.mrb[17].mxu1 }
 0xd05   : > { %v14786_v51 = vadd.f32 %v14785_v19, %v14784_v46  ;;  %v14787_v57 = vpop.f32.mrb[18].mxu1 }
 0xd06   : > { %v14788_v23 = vpop.f32.mrb[19].mxu1 }
 0xd07   : > { %v13361_v30 = vadd.f32 %v14786_v51, %v13200_v35  ;;  %v14789_v13 = vadd.f32 %v14788_v23, %v14787_v57 }
 0xd09   : > { %13415 = vst [vmem:[%s22556_s20 + $0xc0] sm:$0xff] %v13361_v30  ;;  %v13364_v2 = vadd.f32 %v14789_v13, %v13203_v11 }
 0xd0b   : > { %13416 = vst [vmem:[%s22556_s20 + $0xc8] sm:$0xff] %v13364_v2  ;;  %v14790_v56 = vpop.f32.mrb[20].mxu1 }
 0xd0c   : > { %v14791_v32 = vpop.f32.mrb[21].mxu1 }
 0xd0d   : > { %v14792_v55 = vadd.f32 %v14791_v32, %v14790_v56  ;;  %v14793_v8 = vpop.f32.mrb[22].mxu1 }
 0xd0e   : > { %v14794_v12 = vpop.f32.mrb[23].mxu1 }
 0xd0f   : > { %v13369_v24 = vadd.f32 %v14792_v55, %v13208_v18  ;;  %v14795_v15 = vadd.f32 %v14794_v12, %v14793_v8 }
 0xd11   : > { %13417 = vst [vmem:[%s22556_s20 + $0xd0] sm:$0xff] %v13369_v24  ;;  %v13372_v6 = vadd.f32 %v14795_v15, %v13211_v60 }
 0xd13   : > { %13418 = vst [vmem:[%s22556_s20 + $0xd8] sm:$0xff] %v13372_v6  ;;  %v14796_v49 = vpop.f32.mrb[24].mxu1 }
 0xd14   : > { %v14797_v62 = vpop.f32.mrb[25].mxu1 }
 0xd15   : > { %v14798_v20 = vadd.f32 %v14797_v62, %v14796_v49  ;;  %v14799_v39 = vpop.f32.mrb[26].mxu1 }
 0xd16   : > { %v14800_v36 = vpop.f32.mrb[27].mxu1 }
 0xd17   : > { %v13377_v14 = vadd.f32 %v14798_v20, %v13216_v10  ;;  %v14801_v40 = vadd.f32 %v14800_v36, %v14799_v39 }
 0xd19   : > { %13419 = vst [vmem:[%s22556_s20 + $0xe0] sm:$0xff] %v13377_v14  ;;  %v13380_v29 = vadd.f32 %v14801_v40, %v13219_v16 }
 0xd1b   : > { %13420 = vst [vmem:[%s22556_s20 + $0xe8] sm:$0xff] %v13380_v29  ;;  %v14802_v21 = vpop.f32.mrb[28].mxu1 }
 0xd1c   : > { %v14803_v28 = vpop.f32.mrb[29].mxu1 }
 0xd1d   : > { %v14804_v27 = vadd.f32 %v14803_v28, %v14802_v21  ;;  %v14805_v59 = vpop.f32.mrb[30].mxu1 }
 0xd1e   : > { %v14806_v47 = vpop.f32.mrb[31].mxu1 }
 0xd1f   : > { %v13385_v25 = vadd.f32 %v14804_v27, %v13224_v34  ;;  %v14807_v61 = vadd.f32 %v14806_v47, %v14805_v59 }
 0xd21   : > { %13421 = vst [vmem:[%s22556_s20 + $0xf0] sm:$0xff] %v13385_v25  ;;  %v13388_v58 = vadd.f32 %v14807_v61, %v13227_v44 }
 0xd23   : > { %13422 = vst [vmem:[%s22556_s20 + $0xf8] sm:$0xff] %v13388_v58 }
 0xd24 PF: > { %s25_s18 = sadd.s32 1, %s17175_s18  }
 0xd25   : > { %p22_p5 = scmp.ge.s32.totalorder %s25_s18, 4  }
 0xd27   :  { %24 = sbr.rel (!%p22_p5) target bundleno = 1 (0x1), region = 110 }

</bundles_post_ra>
